<compile_context>
chip_gen: v5e
topology: v5e:2x2
jax: 0.10.0
libtpu: 0.0.40
codegen_flags: <defaults>
</compile_context>

<pallas_src>
import functools

import numpy as np
import jax
import jax.numpy as jnp
from jax import lax
from jax.experimental import pallas as pl
from jax.experimental.pallas import tpu as pltpu


# ----------------------------------------------------------------------------
# one-hot selector constants (built with numpy at trace time; tiny)
# ----------------------------------------------------------------------------
def _build_selectors(H, W):
    H2, W2 = H // 2, W // 2
    W2p = W2 + 2                       # padded width after pooling
    W3p = W + 2                        # padded width at full resolution
    L2 = (H2 - 1) * W2p + W2           # conv2 core slab length
    L3 = (H - 1) * W3p + W             # conv3 core slab length
    P2 = (H2 + 2) * W2p                # pooled, padded flat size
    P3 = (H + 2) * W3p                 # full-res, padded flat size

    pool = np.zeros((4, P2, H * W), np.float32)   # pool corner -> padded slab
    scat = np.zeros((4, P3, L2), np.float32)      # deconv corner scatter
    for yy in range(H2):
        for xx in range(W2):
            q = (yy + 1) * W2p + (xx + 1)         # padded-flat idx of pooled px
            j = yy * W2p + xx                     # conv2-core idx of same px
            for ky in range(2):
                for kx in range(2):
                    k = ky * 2 + kx
                    pool[k, q, (2 * yy + ky) * W + (2 * xx + kx)] = 1.0
                    r = (2 * yy + ky + 1) * W3p + (2 * xx + kx + 1)
                    scat[k, r, j] = 1.0

    gath = np.zeros((H * W, L3), np.float32)      # real pixels out of conv3 core
    mask3 = np.zeros((P3, 1), np.float32)         # interior mask of x3 slab
    for yy in range(H):
        for xx in range(W):
            gath[yy * W + xx, yy * W3p + xx] = 1.0
            mask3[(yy + 1) * W3p + (xx + 1), 0] = 1.0
    return pool, scat, gath, mask3, L2, L3, P2, P3


# ----------------------------------------------------------------------------
# fused kernel (one grid step == one image, everything VMEM-resident)
# ----------------------------------------------------------------------------
def _unet_kernel(im_ref, w1_ref, b1_ref, w2_ref, b2_ref, wt_ref, btm_ref,
                 w3_ref, b3_ref, pool_ref, scat_ref, gath_ref,
                 o_ref, x2p_ref, x3p_ref, *, H, W):
    f32 = jnp.float32
    H2, W2 = H // 2, W // 2
    W2p = W2 + 2
    W3p = W + 2
    L2 = (H2 - 1) * W2p + W2
    L3 = (H - 1) * W3p + W
    C2 = w2_ref.shape[-1]

    # ---- encoder conv 3x3 (im2col, single K=32 matmul) + ReLU : (H*W, 64)
    x1 = jnp.dot(im_ref[0], w1_ref[...], preferred_element_type=f32)
    x1 = jnp.maximum(x1 + b1_ref[...], 0.0)

    # ---- maxpool 2x2 stride 2, fused with re-padding into the flat padded
    #      (H/2+2)*(W/2+2) slab via 4 one-hot selector matmuls (ring -> 0).
    p00 = jnp.dot(pool_ref[0], x1, preferred_element_type=f32)
    p01 = jnp.dot(pool_ref[1], x1, preferred_element_type=f32)
    p10 = jnp.dot(pool_ref[2], x1, preferred_element_type=f32)
    p11 = jnp.dot(pool_ref[3], x1, preferred_element_type=f32)
    x2p_ref[...] = jnp.maximum(jnp.maximum(p00, p01), jnp.maximum(p10, p11))

    # ---- middle conv 3x3 (64->128) + ReLU: 9 whole-image tap matmuls.
    #      Tap (dy,dx) of the "same" conv is the contiguous slice starting at
    #      dy*W2p + dx of the padded slab; junk rows land in padding columns
    #      and are never selected downstream.
    acc2 = jnp.zeros((L2, C2), f32)
    for dy in range(3):
        for dx in range(3):
            patch = x2p_ref[pl.ds(dy * W2p + dx, L2), :]
            acc2 = acc2 + jnp.dot(patch, w2_ref[dy, dx],
                                  preferred_element_type=f32)
    x2c = jnp.maximum(acc2 + b2_ref[...], 0.0)                 # (L2, 128)

    # ---- deconv 2x2 stride 2 (128->64) + ReLU, scattered straight into the
    #      flat padded (H+2)*(W+2) slab (bias pre-masked to the interior so
    #      the zero ring needed by the next conv is preserved).
    pre3 = jnp.zeros(x3p_ref.shape, f32)
    for k in range(4):
        yk = jnp.dot(x2c, wt_ref[k // 2, k % 2], preferred_element_type=f32)
        pre3 = pre3 + jnp.dot(scat_ref[k], yk, preferred_element_type=f32)
    x3p_ref[...] = jnp.maximum(pre3 + btm_ref[...], 0.0)

    # ---- decoder conv 3x3 (64->1), gather the H*W real pixels, sigmoid.
    acc3 = jnp.zeros((L3, 1), f32)
    for dy in range(3):
        for dx in range(3):
            patch = x3p_ref[pl.ds(dy * W3p + dx, L3), :]
            acc3 = acc3 + jnp.dot(patch, w3_ref[dy, dx],
                                  preferred_element_type=f32)
    v = jnp.dot(gath_ref[...], acc3, preferred_element_type=f32) + b3_ref[...]
    sig = pl.reciprocal(1.0 + jnp.exp(-v), approx=True)        # EUP recip
    o_ref[0, :, :] = sig.astype(o_ref.dtype)


# ----------------------------------------------------------------------------
# wrapper: NCHW in, NCHW out (matches PyTorch SimpleUNet.forward)
# ----------------------------------------------------------------------------
@jax.jit
def simple_unet_forward(x_nchw, p):
    N, Cin, H, W = x_nchw.shape
    C1 = p["w1"].shape[-1]
    C2 = p["w2"].shape[-1]
    C3 = p["wt"].shape[-1]

    pool, scat, gath, mask3, L2, L3, P2, P3 = _build_selectors(H, W)

    # layer-1 im2col (wrapper-side layout plumbing): (N, H*W, 9*Cin), K -> 32
    x = jnp.transpose(x_nchw, (0, 2, 3, 1))                     # NHWC
    xp = jnp.pad(x, ((0, 0), (1, 1), (1, 1), (0, 0)))
    cols = [xp[:, dy:dy + H, dx:dx + W, :]
            for dy in range(3) for dx in range(3)]
    im = jnp.concatenate(cols, axis=-1).reshape(N, H * W, 9 * Cin)
    K1 = ((9 * Cin + 31) // 32) * 32
    im = jnp.pad(im, ((0, 0), (0, 0), (0, K1 - 9 * Cin)))
    w1m = jnp.pad(p["w1"].reshape(9 * Cin, C1), ((0, K1 - 9 * Cin), (0, 0)))

    # deconv bias, pre-masked onto the interior of the padded x3 slab
    btmap = jnp.asarray(mask3) * p["bt"].reshape(1, C3)         # (P3, C3)

    kernel = functools.partial(_unet_kernel, H=H, W=W)
    out = pl.pallas_call(
        kernel,
        out_shape=jax.ShapeDtypeStruct((N, H * W, 1), jnp.float32),
        grid=(N,),
        in_specs=[
            pl.BlockSpec((1, H * W, K1), lambda n: (n, 0, 0)),      # im2col
            pl.BlockSpec((K1, C1), lambda n: (0, 0)),               # w1
            pl.BlockSpec((1, C1), lambda n: (0, 0)),                # b1
            pl.BlockSpec((3, 3, C1, C2), lambda n: (0, 0, 0, 0)),   # w2
            pl.BlockSpec((1, C2), lambda n: (0, 0)),                # b2
            pl.BlockSpec((2, 2, C2, C3), lambda n: (0, 0, 0, 0)),   # wt
            pl.BlockSpec((P3, C3), lambda n: (0, 0)),               # bt*mask
            pl.BlockSpec((3, 3, C3, 1), lambda n: (0, 0, 0, 0)),    # w3
            pl.BlockSpec((1, 1), lambda n: (0, 0)),                 # b3
            pl.BlockSpec((4, P2, H * W), lambda n: (0, 0, 0)),      # pool sel
            pl.BlockSpec((4, P3, L2), lambda n: (0, 0, 0)),         # scat sel
            pl.BlockSpec((H * W, L3), lambda n: (0, 0)),            # gather
        ],
        out_specs=pl.BlockSpec((1, H * W, 1), lambda n: (n, 0, 0)),
        scratch_shapes=[pltpu.VMEM((P2, C1), jnp.float32),          # x2 padded
                        pltpu.VMEM((P3, C3), jnp.float32)],         # x3 padded
        compiler_params=pltpu.CompilerParams(
            dimension_semantics=("parallel",)),
    )(im, w1m, p["b1"].reshape(1, C1), p["w2"], p["b2"].reshape(1, C2),
      p["wt"], btmap, p["w3"], p["b3"].reshape(1, 1),
      jnp.asarray(pool), jnp.asarray(scat), jnp.asarray(gath))

    return out.reshape(N, 1, H, W)                               # NCHW


# ----------------------------------------------------------------------------
# pure-JAX reference (correctness check only; high precision)
# ----------------------------------------------------------------------------
def reference_forward(x_nchw, p):
    hp = lax.Precision.HIGHEST
    x = jnp.transpose(x_nchw, (0, 2, 3, 1))

    def conv_ref(h, w, b):
        y = lax.conv_general_dilated(
            h, w, window_strides=(1, 1), padding="SAME",
            dimension_numbers=("NHWC", "HWIO", "NHWC"), precision=hp)
        return y + b.reshape(1, 1, 1, -1)

    x1 = jnp.maximum(conv_ref(x, p["w1"], p["b1"]), 0.0)
    x1 = lax.reduce_window(x1, -jnp.inf, lax.max,
                           (1, 2, 2, 1), (1, 2, 2, 1), "VALID")
    x2 = jnp.maximum(conv_ref(x1, p["w2"], p["b2"]), 0.0)

    N, Hm, Wm, _ = x2.shape
    Cout = p["wt"].shape[-1]
    x3 = jnp.zeros((N, 2 * Hm, 2 * Wm, Cout), jnp.float32)
    for ky in range(2):
        for kx in range(2):
            y = jnp.einsum("nhwc,cd->nhwd", x2, p["wt"][ky, kx], precision=hp)
            x3 = x3.at[:, ky::2, kx::2, :].set(y)
    x3 = jnp.maximum(x3 + p["bt"].reshape(1, 1, 1, -1), 0.0)

    y = conv_ref(x3, p["w3"], p["b3"])
    y = 1.0 / (1.0 + jnp.exp(-y))
    return jnp.transpose(y, (0, 3, 1, 2))


if __name__ == "__main__":
    key = jax.random.PRNGKey(0)
    ks = jax.random.split(key, 9)
    # Deterministic synthetic parameters (shapes from SimpleUNet.__init__);
    # conv weights stored HWIO, deconv weight stored (kH, kW, Cin, Cout).
    params = {
        "w1": jax.random.normal(ks[0], (3, 3, 3, 64), jnp.float32) * 0.10,
        "b1": jax.random.normal(ks[1], (64,), jnp.float32) * 0.10,
        "w2": jax.random.normal(ks[2], (3, 3, 64, 128), jnp.float32) * 0.05,
        "b2": jax.random.normal(ks[3], (128,), jnp.float32) * 0.10,
        "wt": jax.random.normal(ks[4], (2, 2, 128, 64), jnp.float32) * 0.05,
        "bt": jax.random.normal(ks[5], (64,), jnp.float32) * 0.10,
        "w3": jax.random.normal(ks[6], (3, 3, 64, 1), jnp.float32) * 0.05,
        "b3": jax.random.normal(ks[7], (1,), jnp.float32) * 0.10,
    }
    x = jax.random.normal(ks[8], (2, 3, 16, 16), jnp.float32)    # NCHW

    out = jax.block_until_ready(simple_unet_forward(x, params))
    assert out.shape == (2, 1, 16, 16)

    ref = reference_forward(x, params)
    err = float(jnp.max(jnp.abs(out - ref)))
    # all-f32 pipeline; 5e-3 leaves margin for MXU f32 pass behaviour while
    # still catching real regressions (previous tolerance was 3e-2).
    assert err < 5e-3, f"mismatch vs reference: max abs err = {err}"

    print("KERNEL_OK")
</pallas_src>

<mosaic_0001>
module attributes {stable_mosaic.version = 11 : i64} {
  func.func @_unet_kernel(%arg0: i32, %arg1: memref<1x256x32xf32, #tpu.memory_space<vmem>>, %arg2: memref<32x64xf32, #tpu.memory_space<vmem>>, %arg3: memref<1x64xf32, #tpu.memory_space<vmem>>, %arg4: memref<3x3x64x128xf32, #tpu.memory_space<vmem>>, %arg5: memref<1x128xf32, #tpu.memory_space<vmem>>, %arg6: memref<2x2x128x64xf32, #tpu.memory_space<vmem>>, %arg7: memref<324x64xf32, #tpu.memory_space<vmem>>, %arg8: memref<3x3x64x1xf32, #tpu.memory_space<vmem>>, %arg9: memref<1x1xf32, #tpu.memory_space<vmem>>, %arg10: memref<4x100x256xf32, #tpu.memory_space<vmem>>, %arg11: memref<4x324x78xf32, #tpu.memory_space<vmem>>, %arg12: memref<256x286xf32, #tpu.memory_space<vmem>>, %arg13: memref<1x256x1xf32, #tpu.memory_space<vmem>>, %arg14: memref<100x64xf32, #tpu.memory_space<vmem>>, %arg15: memref<324x64xf32, #tpu.memory_space<vmem>>) attributes {dimension_semantics = [#tpu.dimension_semantics<parallel>], iteration_bounds = array<i64: 2>, scalar_prefetch = 0 : i64, scratch_operands = 2 : i64, tpu.core_type = #tpu.core_type<tc>, window_params = [{transform_indices = @transform_0, window_bounds = array<i64: 1, 256, 32>}, {pipeline_mode = #tpu.pipeline_mode<synchronous>, transform_indices = @transform_1, window_bounds = array<i64: 32, 64>}, {pipeline_mode = #tpu.pipeline_mode<synchronous>, transform_indices = @transform_2, window_bounds = array<i64: 1, 64>}, {pipeline_mode = #tpu.pipeline_mode<synchronous>, transform_indices = @transform_3, window_bounds = array<i64: 3, 3, 64, 128>}, {pipeline_mode = #tpu.pipeline_mode<synchronous>, transform_indices = @transform_4, window_bounds = array<i64: 1, 128>}, {pipeline_mode = #tpu.pipeline_mode<synchronous>, transform_indices = @transform_5, window_bounds = array<i64: 2, 2, 128, 64>}, {pipeline_mode = #tpu.pipeline_mode<synchronous>, transform_indices = @transform_6, window_bounds = array<i64: 324, 64>}, {pipeline_mode = #tpu.pipeline_mode<synchronous>, transform_indices = @transform_7, window_bounds = array<i64: 3, 3, 64, 1>}, {pipeline_mode = #tpu.pipeline_mode<synchronous>, transform_indices = @transform_8, window_bounds = array<i64: 1, 1>}, {pipeline_mode = #tpu.pipeline_mode<synchronous>, transform_indices = @transform_9, window_bounds = array<i64: 4, 100, 256>}, {pipeline_mode = #tpu.pipeline_mode<synchronous>, transform_indices = @transform_10, window_bounds = array<i64: 4, 324, 78>}, {pipeline_mode = #tpu.pipeline_mode<synchronous>, transform_indices = @transform_11, window_bounds = array<i64: 256, 286>}, {transform_indices = @transform_12, window_bounds = array<i64: 1, 256, 1>}]} {
    %c0 = arith.constant 0 : index
    %c0_0 = arith.constant 0 : index
    %c0_1 = arith.constant 0 : index
    %0 = vector.load %arg1[%c0, %c0_0, %c0_1] : memref<1x256x32xf32, #tpu.memory_space<vmem>>, vector<1x256x32xf32>
    %1 = vector.shape_cast %0 : vector<1x256x32xf32> to vector<256x32xf32>
    %c0_2 = arith.constant 0 : index
    %c0_3 = arith.constant 0 : index
    %2 = vector.load %arg2[%c0_2, %c0_3] : memref<32x64xf32, #tpu.memory_space<vmem>>, vector<32x64xf32>
    %cst = arith.constant dense<0.000000e+00> : vector<256x64xf32>
    %3 = tpu.matmul %1, %2, %cst {dimension_numbers = #tpu.dot_dimension_numbers<[1], [0], [0], [1], [0, 0, 1, 1], [], []>} : vector<256x32xf32>, vector<32x64xf32>, vector<256x64xf32> -> vector<256x64xf32>
    %c0_4 = arith.constant 0 : index
    %c0_5 = arith.constant 0 : index
    %4 = vector.load %arg3[%c0_4, %c0_5] : memref<1x64xf32, #tpu.memory_space<vmem>>, vector<1x64xf32>
    %5 = vector.broadcast %4 : vector<1x64xf32> to vector<256x64xf32>
    %6 = arith.addf %3, %5 : vector<256x64xf32>
    %cst_6 = arith.constant 0.000000e+00 : f32
    %7 = vector.broadcast %cst_6 : f32 to vector<256x64xf32>
    %8 = arith.maximumf %6, %7 : vector<256x64xf32>
    %c0_7 = arith.constant 0 : index
    %c0_8 = arith.constant 0 : index
    %c0_9 = arith.constant 0 : index
    %9 = vector.load %arg10[%c0_7, %c0_8, %c0_9] : memref<4x100x256xf32, #tpu.memory_space<vmem>>, vector<1x100x256xf32>
    %10 = vector.shape_cast %9 : vector<1x100x256xf32> to vector<100x256xf32>
    %cst_10 = arith.constant dense<0.000000e+00> : vector<100x64xf32>
    %11 = tpu.matmul %10, %8, %cst_10 {dimension_numbers = #tpu.dot_dimension_numbers<[1], [0], [0], [1], [0, 0, 1, 1], [], []>} : vector<100x256xf32>, vector<256x64xf32>, vector<100x64xf32> -> vector<100x64xf32>
    %c1 = arith.constant 1 : index
    %c0_11 = arith.constant 0 : index
    %c0_12 = arith.constant 0 : index
    %12 = vector.load %arg10[%c1, %c0_11, %c0_12] : memref<4x100x256xf32, #tpu.memory_space<vmem>>, vector<1x100x256xf32>
    %13 = vector.shape_cast %12 : vector<1x100x256xf32> to vector<100x256xf32>
    %cst_13 = arith.constant dense<0.000000e+00> : vector<100x64xf32>
    %14 = tpu.matmul %13, %8, %cst_13 {dimension_numbers = #tpu.dot_dimension_numbers<[1], [0], [0], [1], [0, 0, 1, 1], [], []>} : vector<100x256xf32>, vector<256x64xf32>, vector<100x64xf32> -> vector<100x64xf32>
    %c2 = arith.constant 2 : index
    %c0_14 = arith.constant 0 : index
    %c0_15 = arith.constant 0 : index
    %15 = vector.load %arg10[%c2, %c0_14, %c0_15] : memref<4x100x256xf32, #tpu.memory_space<vmem>>, vector<1x100x256xf32>
    %16 = vector.shape_cast %15 : vector<1x100x256xf32> to vector<100x256xf32>
    %cst_16 = arith.constant dense<0.000000e+00> : vector<100x64xf32>
    %17 = tpu.matmul %16, %8, %cst_16 {dimension_numbers = #tpu.dot_dimension_numbers<[1], [0], [0], [1], [0, 0, 1, 1], [], []>} : vector<100x256xf32>, vector<256x64xf32>, vector<100x64xf32> -> vector<100x64xf32>
    %c3 = arith.constant 3 : index
    %c0_17 = arith.constant 0 : index
    %c0_18 = arith.constant 0 : index
    %18 = vector.load %arg10[%c3, %c0_17, %c0_18] : memref<4x100x256xf32, #tpu.memory_space<vmem>>, vector<1x100x256xf32>
    %19 = vector.shape_cast %18 : vector<1x100x256xf32> to vector<100x256xf32>
    %cst_19 = arith.constant dense<0.000000e+00> : vector<100x64xf32>
    %20 = tpu.matmul %19, %8, %cst_19 {dimension_numbers = #tpu.dot_dimension_numbers<[1], [0], [0], [1], [0, 0, 1, 1], [], []>} : vector<100x256xf32>, vector<256x64xf32>, vector<100x64xf32> -> vector<100x64xf32>
    %21 = arith.maximumf %11, %14 : vector<100x64xf32>
    %22 = arith.maximumf %17, %20 : vector<100x64xf32>
    %23 = arith.maximumf %21, %22 : vector<100x64xf32>
    %c0_20 = arith.constant 0 : index
    %c0_21 = arith.constant 0 : index
    %24 = vector.load %arg14[%c0_20, %c0_21] : memref<100x64xf32, #tpu.memory_space<vmem>>, vector<100x64xf32>
    tpu.vector_store %arg14[%c0_20, %c0_21], %23 {strides = array<i32>} : memref<100x64xf32, #tpu.memory_space<vmem>>, vector<100x64xf32>,
    %cst_22 = arith.constant 0.000000e+00 : f32
    %25 = vector.broadcast %cst_22 : f32 to vector<78x128xf32>
    %c0_23 = arith.constant 0 : index
    %c0_24 = arith.constant 0 : index
    %26 = vector.load %arg14[%c0_23, %c0_24] : memref<100x64xf32, #tpu.memory_space<vmem>>, vector<78x64xf32>
    %c0_25 = arith.constant 0 : index
    %c0_26 = arith.constant 0 : index
    %c0_27 = arith.constant 0 : index
    %c0_28 = arith.constant 0 : index
    %27 = vector.load %arg4[%c0_25, %c0_26, %c0_27, %c0_28] : memref<3x3x64x128xf32, #tpu.memory_space<vmem>>, vector<1x1x64x128xf32>
    %28 = vector.shape_cast %27 : vector<1x1x64x128xf32> to vector<64x128xf32>
    %cst_29 = arith.constant dense<0.000000e+00> : vector<78x128xf32>
    %29 = tpu.matmul %26, %28, %cst_29 {dimension_numbers = #tpu.dot_dimension_numbers<[1], [0], [0], [1], [0, 0, 1, 1], [], []>} : vector<78x64xf32>, vector<64x128xf32>, vector<78x128xf32> -> vector<78x128xf32>
    %30 = arith.addf %25, %29 : vector<78x128xf32>
    %c1_30 = arith.constant 1 : index
    %c0_31 = arith.constant 0 : index
    %31 = vector.load %arg14[%c1_30, %c0_31] : memref<100x64xf32, #tpu.memory_space<vmem>>, vector<78x64xf32>
    %c0_32 = arith.constant 0 : index
    %c1_33 = arith.constant 1 : index
    %c0_34 = arith.constant 0 : index
    %c0_35 = arith.constant 0 : index
    %32 = vector.load %arg4[%c0_32, %c1_33, %c0_34, %c0_35] : memref<3x3x64x128xf32, #tpu.memory_space<vmem>>, vector<1x1x64x128xf32>
    %33 = vector.shape_cast %32 : vector<1x1x64x128xf32> to vector<64x128xf32>
    %cst_36 = arith.constant dense<0.000000e+00> : vector<78x128xf32>
    %34 = tpu.matmul %31, %33, %cst_36 {dimension_numbers = #tpu.dot_dimension_numbers<[1], [0], [0], [1], [0, 0, 1, 1], [], []>} : vector<78x64xf32>, vector<64x128xf32>, vector<78x128xf32> -> vector<78x128xf32>
    %35 = arith.addf %30, %34 : vector<78x128xf32>
    %c2_37 = arith.constant 2 : index
    %c0_38 = arith.constant 0 : index
    %36 = vector.load %arg14[%c2_37, %c0_38] : memref<100x64xf32, #tpu.memory_space<vmem>>, vector<78x64xf32>
    %c0_39 = arith.constant 0 : index
    %c2_40 = arith.constant 2 : index
    %c0_41 = arith.constant 0 : index
    %c0_42 = arith.constant 0 : index
    %37 = vector.load %arg4[%c0_39, %c2_40, %c0_41, %c0_42] : memref<3x3x64x128xf32, #tpu.memory_space<vmem>>, vector<1x1x64x128xf32>
    %38 = vector.shape_cast %37 : vector<1x1x64x128xf32> to vector<64x128xf32>
    %cst_43 = arith.constant dense<0.000000e+00> : vector<78x128xf32>
    %39 = tpu.matmul %36, %38, %cst_43 {dimension_numbers = #tpu.dot_dimension_numbers<[1], [0], [0], [1], [0, 0, 1, 1], [], []>} : vector<78x64xf32>, vector<64x128xf32>, vector<78x128xf32> -> vector<78x128xf32>
    %40 = arith.addf %35, %39 : vector<78x128xf32>
    %c10 = arith.constant 10 : index
    %c0_44 = arith.constant 0 : index
    %41 = vector.load %arg14[%c10, %c0_44] : memref<100x64xf32, #tpu.memory_space<vmem>>, vector<78x64xf32>
    %c1_45 = arith.constant 1 : index
    %c0_46 = arith.constant 0 : index
    %c0_47 = arith.constant 0 : index
    %c0_48 = arith.constant 0 : index
    %42 = vector.load %arg4[%c1_45, %c0_46, %c0_47, %c0_48] : memref<3x3x64x128xf32, #tpu.memory_space<vmem>>, vector<1x1x64x128xf32>
    %43 = vector.shape_cast %42 : vector<1x1x64x128xf32> to vector<64x128xf32>
    %cst_49 = arith.constant dense<0.000000e+00> : vector<78x128xf32>
    %44 = tpu.matmul %41, %43, %cst_49 {dimension_numbers = #tpu.dot_dimension_numbers<[1], [0], [0], [1], [0, 0, 1, 1], [], []>} : vector<78x64xf32>, vector<64x128xf32>, vector<78x128xf32> -> vector<78x128xf32>
    %45 = arith.addf %40, %44 : vector<78x128xf32>
    %c11 = arith.constant 11 : index
    %c0_50 = arith.constant 0 : index
    %46 = vector.load %arg14[%c11, %c0_50] : memref<100x64xf32, #tpu.memory_space<vmem>>, vector<78x64xf32>
    %c1_51 = arith.constant 1 : index
    %c1_52 = arith.constant 1 : index
    %c0_53 = arith.constant 0 : index
    %c0_54 = arith.constant 0 : index
    %47 = vector.load %arg4[%c1_51, %c1_52, %c0_53, %c0_54] : memref<3x3x64x128xf32, #tpu.memory_space<vmem>>, vector<1x1x64x128xf32>
    %48 = vector.shape_cast %47 : vector<1x1x64x128xf32> to vector<64x128xf32>
    %cst_55 = arith.constant dense<0.000000e+00> : vector<78x128xf32>
    %49 = tpu.matmul %46, %48, %cst_55 {dimension_numbers = #tpu.dot_dimension_numbers<[1], [0], [0], [1], [0, 0, 1, 1], [], []>} : vector<78x64xf32>, vector<64x128xf32>, vector<78x128xf32> -> vector<78x128xf32>
    %50 = arith.addf %45, %49 : vector<78x128xf32>
    %c12 = arith.constant 12 : index
    %c0_56 = arith.constant 0 : index
    %51 = vector.load %arg14[%c12, %c0_56] : memref<100x64xf32, #tpu.memory_space<vmem>>, vector<78x64xf32>
    %c1_57 = arith.constant 1 : index
    %c2_58 = arith.constant 2 : index
    %c0_59 = arith.constant 0 : index
    %c0_60 = arith.constant 0 : index
    %52 = vector.load %arg4[%c1_57, %c2_58, %c0_59, %c0_60] : memref<3x3x64x128xf32, #tpu.memory_space<vmem>>, vector<1x1x64x128xf32>
    %53 = vector.shape_cast %52 : vector<1x1x64x128xf32> to vector<64x128xf32>
    %cst_61 = arith.constant dense<0.000000e+00> : vector<78x128xf32>
    %54 = tpu.matmul %51, %53, %cst_61 {dimension_numbers = #tpu.dot_dimension_numbers<[1], [0], [0], [1], [0, 0, 1, 1], [], []>} : vector<78x64xf32>, vector<64x128xf32>, vector<78x128xf32> -> vector<78x128xf32>
    %55 = arith.addf %50, %54 : vector<78x128xf32>
    %c20 = arith.constant 20 : index
    %c0_62 = arith.constant 0 : index
    %56 = vector.load %arg14[%c20, %c0_62] : memref<100x64xf32, #tpu.memory_space<vmem>>, vector<78x64xf32>
    %c2_63 = arith.constant 2 : index
    %c0_64 = arith.constant 0 : index
    %c0_65 = arith.constant 0 : index
    %c0_66 = arith.constant 0 : index
    %57 = vector.load %arg4[%c2_63, %c0_64, %c0_65, %c0_66] : memref<3x3x64x128xf32, #tpu.memory_space<vmem>>, vector<1x1x64x128xf32>
    %58 = vector.shape_cast %57 : vector<1x1x64x128xf32> to vector<64x128xf32>
    %cst_67 = arith.constant dense<0.000000e+00> : vector<78x128xf32>
    %59 = tpu.matmul %56, %58, %cst_67 {dimension_numbers = #tpu.dot_dimension_numbers<[1], [0], [0], [1], [0, 0, 1, 1], [], []>} : vector<78x64xf32>, vector<64x128xf32>, vector<78x128xf32> -> vector<78x128xf32>
    %60 = arith.addf %55, %59 : vector<78x128xf32>
    %c21 = arith.constant 21 : index
    %c0_68 = arith.constant 0 : index
    %61 = vector.load %arg14[%c21, %c0_68] : memref<100x64xf32, #tpu.memory_space<vmem>>, vector<78x64xf32>
    %c2_69 = arith.constant 2 : index
    %c1_70 = arith.constant 1 : index
    %c0_71 = arith.constant 0 : index
    %c0_72 = arith.constant 0 : index
    %62 = vector.load %arg4[%c2_69, %c1_70, %c0_71, %c0_72] : memref<3x3x64x128xf32, #tpu.memory_space<vmem>>, vector<1x1x64x128xf32>
    %63 = vector.shape_cast %62 : vector<1x1x64x128xf32> to vector<64x128xf32>
    %cst_73 = arith.constant dense<0.000000e+00> : vector<78x128xf32>
    %64 = tpu.matmul %61, %63, %cst_73 {dimension_numbers = #tpu.dot_dimension_numbers<[1], [0], [0], [1], [0, 0, 1, 1], [], []>} : vector<78x64xf32>, vector<64x128xf32>, vector<78x128xf32> -> vector<78x128xf32>
    %65 = arith.addf %60, %64 : vector<78x128xf32>
    %c22 = arith.constant 22 : index
    %c0_74 = arith.constant 0 : index
    %66 = vector.load %arg14[%c22, %c0_74] : memref<100x64xf32, #tpu.memory_space<vmem>>, vector<78x64xf32>
    %c2_75 = arith.constant 2 : index
    %c2_76 = arith.constant 2 : index
    %c0_77 = arith.constant 0 : index
    %c0_78 = arith.constant 0 : index
    %67 = vector.load %arg4[%c2_75, %c2_76, %c0_77, %c0_78] : memref<3x3x64x128xf32, #tpu.memory_space<vmem>>, vector<1x1x64x128xf32>
    %68 = vector.shape_cast %67 : vector<1x1x64x128xf32> to vector<64x128xf32>
    %cst_79 = arith.constant dense<0.000000e+00> : vector<78x128xf32>
    %69 = tpu.matmul %66, %68, %cst_79 {dimension_numbers = #tpu.dot_dimension_numbers<[1], [0], [0], [1], [0, 0, 1, 1], [], []>} : vector<78x64xf32>, vector<64x128xf32>, vector<78x128xf32> -> vector<78x128xf32>
    %70 = arith.addf %65, %69 : vector<78x128xf32>
    %c0_80 = arith.constant 0 : index
    %c0_81 = arith.constant 0 : index
    %71 = vector.load %arg5[%c0_80, %c0_81] : memref<1x128xf32, #tpu.memory_space<vmem>>, vector<1x128xf32>
    %72 = vector.broadcast %71 : vector<1x128xf32> to vector<78x128xf32>
    %73 = arith.addf %70, %72 : vector<78x128xf32>
    %cst_82 = arith.constant 0.000000e+00 : f32
    %74 = vector.broadcast %cst_82 : f32 to vector<78x128xf32>
    %75 = arith.maximumf %73, %74 : vector<78x128xf32>
    %cst_83 = arith.constant 0.000000e+00 : f32
    %76 = vector.broadcast %cst_83 : f32 to vector<324x64xf32>
    %c0_84 = arith.constant 0 : index
    %c0_85 = arith.constant 0 : index
    %c0_86 = arith.constant 0 : index
    %c0_87 = arith.constant 0 : index
    %77 = vector.load %arg6[%c0_84, %c0_85, %c0_86, %c0_87] : memref<2x2x128x64xf32, #tpu.memory_space<vmem>>, vector<1x1x128x64xf32>
    %78 = vector.shape_cast %77 : vector<1x1x128x64xf32> to vector<128x64xf32>
    %cst_88 = arith.constant dense<0.000000e+00> : vector<78x64xf32>
    %79 = tpu.matmul %75, %78, %cst_88 {dimension_numbers = #tpu.dot_dimension_numbers<[1], [0], [0], [1], [0, 0, 1, 1], [], []>} : vector<78x128xf32>, vector<128x64xf32>, vector<78x64xf32> -> vector<78x64xf32>
    %c0_89 = arith.constant 0 : index
    %c0_90 = arith.constant 0 : index
    %c0_91 = arith.constant 0 : index
    %80 = vector.load %arg11[%c0_89, %c0_90, %c0_91] : memref<4x324x78xf32, #tpu.memory_space<vmem>>, vector<1x324x78xf32>
    %81 = vector.shape_cast %80 : vector<1x324x78xf32> to vector<324x78xf32>
    %cst_92 = arith.constant dense<0.000000e+00> : vector<324x64xf32>
    %82 = tpu.matmul %81, %79, %cst_92 {dimension_numbers = #tpu.dot_dimension_numbers<[1], [0], [0], [1], [0, 0, 1, 1], [], []>} : vector<324x78xf32>, vector<78x64xf32>, vector<324x64xf32> -> vector<324x64xf32>
    %83 = arith.addf %76, %82 : vector<324x64xf32>
    %c0_93 = arith.constant 0 : index
    %c1_94 = arith.constant 1 : index
    %c0_95 = arith.constant 0 : index
    %c0_96 = arith.constant 0 : index
    %84 = vector.load %arg6[%c0_93, %c1_94, %c0_95, %c0_96] : memref<2x2x128x64xf32, #tpu.memory_space<vmem>>, vector<1x1x128x64xf32>
    %85 = vector.shape_cast %84 : vector<1x1x128x64xf32> to vector<128x64xf32>
    %cst_97 = arith.constant dense<0.000000e+00> : vector<78x64xf32>
    %86 = tpu.matmul %75, %85, %cst_97 {dimension_numbers = #tpu.dot_dimension_numbers<[1], [0], [0], [1], [0, 0, 1, 1], [], []>} : vector<78x128xf32>, vector<128x64xf32>, vector<78x64xf32> -> vector<78x64xf32>
    %c1_98 = arith.constant 1 : index
    %c0_99 = arith.constant 0 : index
    %c0_100 = arith.constant 0 : index
    %87 = vector.load %arg11[%c1_98, %c0_99, %c0_100] : memref<4x324x78xf32, #tpu.memory_space<vmem>>, vector<1x324x78xf32>
    %88 = vector.shape_cast %87 : vector<1x324x78xf32> to vector<324x78xf32>
    %cst_101 = arith.constant dense<0.000000e+00> : vector<324x64xf32>
    %89 = tpu.matmul %88, %86, %cst_101 {dimension_numbers = #tpu.dot_dimension_numbers<[1], [0], [0], [1], [0, 0, 1, 1], [], []>} : vector<324x78xf32>, vector<78x64xf32>, vector<324x64xf32> -> vector<324x64xf32>
    %90 = arith.addf %83, %89 : vector<324x64xf32>
    %c1_102 = arith.constant 1 : index
    %c0_103 = arith.constant 0 : index
    %c0_104 = arith.constant 0 : index
    %c0_105 = arith.constant 0 : index
    %91 = vector.load %arg6[%c1_102, %c0_103, %c0_104, %c0_105] : memref<2x2x128x64xf32, #tpu.memory_space<vmem>>, vector<1x1x128x64xf32>
    %92 = vector.shape_cast %91 : vector<1x1x128x64xf32> to vector<128x64xf32>
    %cst_106 = arith.constant dense<0.000000e+00> : vector<78x64xf32>
    %93 = tpu.matmul %75, %92, %cst_106 {dimension_numbers = #tpu.dot_dimension_numbers<[1], [0], [0], [1], [0, 0, 1, 1], [], []>} : vector<78x128xf32>, vector<128x64xf32>, vector<78x64xf32> -> vector<78x64xf32>
    %c2_107 = arith.constant 2 : index
    %c0_108 = arith.constant 0 : index
    %c0_109 = arith.constant 0 : index
    %94 = vector.load %arg11[%c2_107, %c0_108, %c0_109] : memref<4x324x78xf32, #tpu.memory_space<vmem>>, vector<1x324x78xf32>
    %95 = vector.shape_cast %94 : vector<1x324x78xf32> to vector<324x78xf32>
    %cst_110 = arith.constant dense<0.000000e+00> : vector<324x64xf32>
    %96 = tpu.matmul %95, %93, %cst_110 {dimension_numbers = #tpu.dot_dimension_numbers<[1], [0], [0], [1], [0, 0, 1, 1], [], []>} : vector<324x78xf32>, vector<78x64xf32>, vector<324x64xf32> -> vector<324x64xf32>
    %97 = arith.addf %90, %96 : vector<324x64xf32>
    %c1_111 = arith.constant 1 : index
    %c1_112 = arith.constant 1 : index
    %c0_113 = arith.constant 0 : index
    %c0_114 = arith.constant 0 : index
    %98 = vector.load %arg6[%c1_111, %c1_112, %c0_113, %c0_114] : memref<2x2x128x64xf32, #tpu.memory_space<vmem>>, vector<1x1x128x64xf32>
    %99 = vector.shape_cast %98 : vector<1x1x128x64xf32> to vector<128x64xf32>
    %cst_115 = arith.constant dense<0.000000e+00> : vector<78x64xf32>
    %100 = tpu.matmul %75, %99, %cst_115 {dimension_numbers = #tpu.dot_dimension_numbers<[1], [0], [0], [1], [0, 0, 1, 1], [], []>} : vector<78x128xf32>, vector<128x64xf32>, vector<78x64xf32> -> vector<78x64xf32>
    %c3_116 = arith.constant 3 : index
    %c0_117 = arith.constant 0 : index
    %c0_118 = arith.constant 0 : index
    %101 = vector.load %arg11[%c3_116, %c0_117, %c0_118] : memref<4x324x78xf32, #tpu.memory_space<vmem>>, vector<1x324x78xf32>
    %102 = vector.shape_cast %101 : vector<1x324x78xf32> to vector<324x78xf32>
    %cst_119 = arith.constant dense<0.000000e+00> : vector<324x64xf32>
    %103 = tpu.matmul %102, %100, %cst_119 {dimension_numbers = #tpu.dot_dimension_numbers<[1], [0], [0], [1], [0, 0, 1, 1], [], []>} : vector<324x78xf32>, vector<78x64xf32>, vector<324x64xf32> -> vector<324x64xf32>
    %104 = arith.addf %97, %103 : vector<324x64xf32>
    %c0_120 = arith.constant 0 : index
    %c0_121 = arith.constant 0 : index
    %105 = vector.load %arg7[%c0_120, %c0_121] : memref<324x64xf32, #tpu.memory_space<vmem>>, vector<324x64xf32>
    %106 = arith.addf %104, %105 : vector<324x64xf32>
    %cst_122 = arith.constant 0.000000e+00 : f32
    %107 = vector.broadcast %cst_122 : f32 to vector<324x64xf32>
    %108 = arith.maximumf %106, %107 : vector<324x64xf32>
    %c0_123 = arith.constant 0 : index
    %c0_124 = arith.constant 0 : index
    %109 = vector.load %arg15[%c0_123, %c0_124] : memref<324x64xf32, #tpu.memory_space<vmem>>, vector<324x64xf32>
    tpu.vector_store %arg15[%c0_123, %c0_124], %108 {strides = array<i32>} : memref<324x64xf32, #tpu.memory_space<vmem>>, vector<324x64xf32>,
    %cst_125 = arith.constant 0.000000e+00 : f32
    %110 = vector.broadcast %cst_125 : f32 to vector<286x1xf32>
    %c0_126 = arith.constant 0 : index
    %c0_127 = arith.constant 0 : index
    %111 = vector.load %arg15[%c0_126, %c0_127] : memref<324x64xf32, #tpu.memory_space<vmem>>, vector<286x64xf32>
    %c0_128 = arith.constant 0 : index
    %c0_129 = arith.constant 0 : index
    %c0_130 = arith.constant 0 : index
    %c0_131 = arith.constant 0 : index
    %112 = vector.load %arg8[%c0_128, %c0_129, %c0_130, %c0_131] : memref<3x3x64x1xf32, #tpu.memory_space<vmem>>, vector<1x1x64x1xf32>
    %113 = vector.shape_cast %112 : vector<1x1x64x1xf32> to vector<64x1xf32>
    %cst_132 = arith.constant dense<0.000000e+00> : vector<286x1xf32>
    %114 = tpu.matmul %111, %113, %cst_132 {dimension_numbers = #tpu.dot_dimension_numbers<[1], [0], [0], [1], [0, 0, 1, 1], [], []>} : vector<286x64xf32>, vector<64x1xf32>, vector<286x1xf32> -> vector<286x1xf32>
    %115 = arith.addf %110, %114 : vector<286x1xf32>
    %c1_133 = arith.constant 1 : index
    %c0_134 = arith.constant 0 : index
    %116 = vector.load %arg15[%c1_133, %c0_134] : memref<324x64xf32, #tpu.memory_space<vmem>>, vector<286x64xf32>
    %c0_135 = arith.constant 0 : index
    %c1_136 = arith.constant 1 : index
    %c0_137 = arith.constant 0 : index
    %c0_138 = arith.constant 0 : index
    %117 = vector.load %arg8[%c0_135, %c1_136, %c0_137, %c0_138] : memref<3x3x64x1xf32, #tpu.memory_space<vmem>>, vector<1x1x64x1xf32>
    %118 = vector.shape_cast %117 : vector<1x1x64x1xf32> to vector<64x1xf32>
    %cst_139 = arith.constant dense<0.000000e+00> : vector<286x1xf32>
    %119 = tpu.matmul %116, %118, %cst_139 {dimension_numbers = #tpu.dot_dimension_numbers<[1], [0], [0], [1], [0, 0, 1, 1], [], []>} : vector<286x64xf32>, vector<64x1xf32>, vector<286x1xf32> -> vector<286x1xf32>
    %120 = arith.addf %115, %119 : vector<286x1xf32>
    %c2_140 = arith.constant 2 : index
    %c0_141 = arith.constant 0 : index
    %121 = vector.load %arg15[%c2_140, %c0_141] : memref<324x64xf32, #tpu.memory_space<vmem>>, vector<286x64xf32>
    %c0_142 = arith.constant 0 : index
    %c2_143 = arith.constant 2 : index
    %c0_144 = arith.constant 0 : index
    %c0_145 = arith.constant 0 : index
    %122 = vector.load %arg8[%c0_142, %c2_143, %c0_144, %c0_145] : memref<3x3x64x1xf32, #tpu.memory_space<vmem>>, vector<1x1x64x1xf32>
    %123 = vector.shape_cast %122 : vector<1x1x64x1xf32> to vector<64x1xf32>
    %cst_146 = arith.constant dense<0.000000e+00> : vector<286x1xf32>
    %124 = tpu.matmul %121, %123, %cst_146 {dimension_numbers = #tpu.dot_dimension_numbers<[1], [0], [0], [1], [0, 0, 1, 1], [], []>} : vector<286x64xf32>, vector<64x1xf32>, vector<286x1xf32> -> vector<286x1xf32>
    %125 = arith.addf %120, %124 : vector<286x1xf32>
    %c18 = arith.constant 18 : index
    %c0_147 = arith.constant 0 : index
    %126 = vector.load %arg15[%c18, %c0_147] : memref<324x64xf32, #tpu.memory_space<vmem>>, vector<286x64xf32>
    %c1_148 = arith.constant 1 : index
    %c0_149 = arith.constant 0 : index
    %c0_150 = arith.constant 0 : index
    %c0_151 = arith.constant 0 : index
    %127 = vector.load %arg8[%c1_148, %c0_149, %c0_150, %c0_151] : memref<3x3x64x1xf32, #tpu.memory_space<vmem>>, vector<1x1x64x1xf32>
    %128 = vector.shape_cast %127 : vector<1x1x64x1xf32> to vector<64x1xf32>
    %cst_152 = arith.constant dense<0.000000e+00> : vector<286x1xf32>
    %129 = tpu.matmul %126, %128, %cst_152 {dimension_numbers = #tpu.dot_dimension_numbers<[1], [0], [0], [1], [0, 0, 1, 1], [], []>} : vector<286x64xf32>, vector<64x1xf32>, vector<286x1xf32> -> vector<286x1xf32>
    %130 = arith.addf %125, %129 : vector<286x1xf32>
    %c19 = arith.constant 19 : index
    %c0_153 = arith.constant 0 : index
    %131 = vector.load %arg15[%c19, %c0_153] : memref<324x64xf32, #tpu.memory_space<vmem>>, vector<286x64xf32>
    %c1_154 = arith.constant 1 : index
    %c1_155 = arith.constant 1 : index
    %c0_156 = arith.constant 0 : index
    %c0_157 = arith.constant 0 : index
    %132 = vector.load %arg8[%c1_154, %c1_155, %c0_156, %c0_157] : memref<3x3x64x1xf32, #tpu.memory_space<vmem>>, vector<1x1x64x1xf32>
    %133 = vector.shape_cast %132 : vector<1x1x64x1xf32> to vector<64x1xf32>
    %cst_158 = arith.constant dense<0.000000e+00> : vector<286x1xf32>
    %134 = tpu.matmul %131, %133, %cst_158 {dimension_numbers = #tpu.dot_dimension_numbers<[1], [0], [0], [1], [0, 0, 1, 1], [], []>} : vector<286x64xf32>, vector<64x1xf32>, vector<286x1xf32> -> vector<286x1xf32>
    %135 = arith.addf %130, %134 : vector<286x1xf32>
    %c20_159 = arith.constant 20 : index
    %c0_160 = arith.constant 0 : index
    %136 = vector.load %arg15[%c20_159, %c0_160] : memref<324x64xf32, #tpu.memory_space<vmem>>, vector<286x64xf32>
    %c1_161 = arith.constant 1 : index
    %c2_162 = arith.constant 2 : index
    %c0_163 = arith.constant 0 : index
    %c0_164 = arith.constant 0 : index
    %137 = vector.load %arg8[%c1_161, %c2_162, %c0_163, %c0_164] : memref<3x3x64x1xf32, #tpu.memory_space<vmem>>, vector<1x1x64x1xf32>
    %138 = vector.shape_cast %137 : vector<1x1x64x1xf32> to vector<64x1xf32>
    %cst_165 = arith.constant dense<0.000000e+00> : vector<286x1xf32>
    %139 = tpu.matmul %136, %138, %cst_165 {dimension_numbers = #tpu.dot_dimension_numbers<[1], [0], [0], [1], [0, 0, 1, 1], [], []>} : vector<286x64xf32>, vector<64x1xf32>, vector<286x1xf32> -> vector<286x1xf32>
    %140 = arith.addf %135, %139 : vector<286x1xf32>
    %c36 = arith.constant 36 : index
    %c0_166 = arith.constant 0 : index
    %141 = vector.load %arg15[%c36, %c0_166] : memref<324x64xf32, #tpu.memory_space<vmem>>, vector<286x64xf32>
    %c2_167 = arith.constant 2 : index
    %c0_168 = arith.constant 0 : index
    %c0_169 = arith.constant 0 : index
    %c0_170 = arith.constant 0 : index
    %142 = vector.load %arg8[%c2_167, %c0_168, %c0_169, %c0_170] : memref<3x3x64x1xf32, #tpu.memory_space<vmem>>, vector<1x1x64x1xf32>
    %143 = vector.shape_cast %142 : vector<1x1x64x1xf32> to vector<64x1xf32>
    %cst_171 = arith.constant dense<0.000000e+00> : vector<286x1xf32>
    %144 = tpu.matmul %141, %143, %cst_171 {dimension_numbers = #tpu.dot_dimension_numbers<[1], [0], [0], [1], [0, 0, 1, 1], [], []>} : vector<286x64xf32>, vector<64x1xf32>, vector<286x1xf32> -> vector<286x1xf32>
    %145 = arith.addf %140, %144 : vector<286x1xf32>
    %c37 = arith.constant 37 : index
    %c0_172 = arith.constant 0 : index
    %146 = vector.load %arg15[%c37, %c0_172] : memref<324x64xf32, #tpu.memory_space<vmem>>, vector<286x64xf32>
    %c2_173 = arith.constant 2 : index
    %c1_174 = arith.constant 1 : index
    %c0_175 = arith.constant 0 : index
    %c0_176 = arith.constant 0 : index
    %147 = vector.load %arg8[%c2_173, %c1_174, %c0_175, %c0_176] : memref<3x3x64x1xf32, #tpu.memory_space<vmem>>, vector<1x1x64x1xf32>
    %148 = vector.shape_cast %147 : vector<1x1x64x1xf32> to vector<64x1xf32>
    %cst_177 = arith.constant dense<0.000000e+00> : vector<286x1xf32>
    %149 = tpu.matmul %146, %148, %cst_177 {dimension_numbers = #tpu.dot_dimension_numbers<[1], [0], [0], [1], [0, 0, 1, 1], [], []>} : vector<286x64xf32>, vector<64x1xf32>, vector<286x1xf32> -> vector<286x1xf32>
    %150 = arith.addf %145, %149 : vector<286x1xf32>
    %c38 = arith.constant 38 : index
    %c0_178 = arith.constant 0 : index
    %151 = vector.load %arg15[%c38, %c0_178] : memref<324x64xf32, #tpu.memory_space<vmem>>, vector<286x64xf32>
    %c2_179 = arith.constant 2 : index
    %c2_180 = arith.constant 2 : index
    %c0_181 = arith.constant 0 : index
    %c0_182 = arith.constant 0 : index
    %152 = vector.load %arg8[%c2_179, %c2_180, %c0_181, %c0_182] : memref<3x3x64x1xf32, #tpu.memory_space<vmem>>, vector<1x1x64x1xf32>
    %153 = vector.shape_cast %152 : vector<1x1x64x1xf32> to vector<64x1xf32>
    %cst_183 = arith.constant dense<0.000000e+00> : vector<286x1xf32>
    %154 = tpu.matmul %151, %153, %cst_183 {dimension_numbers = #tpu.dot_dimension_numbers<[1], [0], [0], [1], [0, 0, 1, 1], [], []>} : vector<286x64xf32>, vector<64x1xf32>, vector<286x1xf32> -> vector<286x1xf32>
    %155 = arith.addf %150, %154 : vector<286x1xf32>
    %c0_184 = arith.constant 0 : index
    %c0_185 = arith.constant 0 : index
    %156 = vector.load %arg12[%c0_184, %c0_185] : memref<256x286xf32, #tpu.memory_space<vmem>>, vector<256x286xf32>
    %cst_186 = arith.constant dense<0.000000e+00> : vector<256x1xf32>
    %157 = tpu.matmul %156, %155, %cst_186 {dimension_numbers = #tpu.dot_dimension_numbers<[1], [0], [0], [1], [0, 0, 1, 1], [], []>} : vector<256x286xf32>, vector<286x1xf32>, vector<256x1xf32> -> vector<256x1xf32>
    %c0_187 = arith.constant 0 : index
    %c0_188 = arith.constant 0 : index
    %158 = vector.load %arg9[%c0_187, %c0_188] : memref<1x1xf32, #tpu.memory_space<vmem>>, vector<1x1xf32>
    %159 = vector.broadcast %158 : vector<1x1xf32> to vector<256x1xf32>
    %160 = arith.addf %157, %159 : vector<256x1xf32>
    %cst_189 = arith.constant 0.000000e+00 : f32
    %161 = vector.broadcast %cst_189 : f32 to vector<256x1xf32>
    %162 = arith.subf %161, %160 : vector<256x1xf32>
    %163 = math.exp %162 : vector<256x1xf32>
    %cst_190 = arith.constant 1.000000e+00 : f32
    %164 = vector.broadcast %cst_190 : f32 to vector<256x1xf32>
    %165 = arith.addf %164, %163 : vector<256x1xf32>
    %166 = tpu.reciprocal %165 {approx = true} : vector<256x1xf32> -> vector<256x1xf32>
    %c0_191 = arith.constant 0 : index
    %c0_192 = arith.constant 0 : index
    %c0_193 = arith.constant 0 : index
    %167 = vector.load %arg13[%c0_191, %c0_192, %c0_193] : memref<1x256x1xf32, #tpu.memory_space<vmem>>, vector<1x256x1xf32>
    %168 = vector.shape_cast %167 : vector<1x256x1xf32> to vector<256x1xf32>
    %169 = vector.shape_cast %166 : vector<256x1xf32> to vector<1x256x1xf32>
    tpu.vector_store %arg13[%c0_191, %c0_192, %c0_193], %169 {strides = array<i32>} : memref<1x256x1xf32, #tpu.memory_space<vmem>>, vector<1x256x1xf32>,
    return
  }
  func.func @transform_0(%arg0: i32) -> (i32, i32, i32) {
    %c0_i32 = arith.constant 0 : i32
    %c0_i32_0 = arith.constant 0 : i32
    %c0_i32_1 = arith.constant 0 : i32
    return %arg0, %c0_i32, %c0_i32_0 : i32, i32, i32
  }
  func.func @transform_1(%arg0: i32) -> (i32, i32) {
    %c0_i32 = arith.constant 0 : i32
    %c0_i32_0 = arith.constant 0 : i32
    %c0_i32_1 = arith.constant 0 : i32
    return %c0_i32, %c0_i32_0 : i32, i32
  }
  func.func @transform_2(%arg0: i32) -> (i32, i32) {
    %c0_i32 = arith.constant 0 : i32
    %c0_i32_0 = arith.constant 0 : i32
    %c0_i32_1 = arith.constant 0 : i32
    return %c0_i32, %c0_i32_0 : i32, i32
  }
  func.func @transform_3(%arg0: i32) -> (i32, i32, i32, i32) {
    %c0_i32 = arith.constant 0 : i32
    %c0_i32_0 = arith.constant 0 : i32
    %c0_i32_1 = arith.constant 0 : i32
    %c0_i32_2 = arith.constant 0 : i32
    %c0_i32_3 = arith.constant 0 : i32
    return %c0_i32, %c0_i32_0, %c0_i32_1, %c0_i32_2 : i32, i32, i32, i32
  }
  func.func @transform_4(%arg0: i32) -> (i32, i32) {
    %c0_i32 = arith.constant 0 : i32
    %c0_i32_0 = arith.constant 0 : i32
    %c0_i32_1 = arith.constant 0 : i32
    return %c0_i32, %c0_i32_0 : i32, i32
  }
  func.func @transform_5(%arg0: i32) -> (i32, i32, i32, i32) {
    %c0_i32 = arith.constant 0 : i32
    %c0_i32_0 = arith.constant 0 : i32
    %c0_i32_1 = arith.constant 0 : i32
    %c0_i32_2 = arith.constant 0 : i32
    %c0_i32_3 = arith.constant 0 : i32
    return %c0_i32, %c0_i32_0, %c0_i32_1, %c0_i32_2 : i32, i32, i32, i32
  }
  func.func @transform_6(%arg0: i32) -> (i32, i32) {
    %c0_i32 = arith.constant 0 : i32
    %c0_i32_0 = arith.constant 0 : i32
    %c0_i32_1 = arith.constant 0 : i32
    return %c0_i32, %c0_i32_0 : i32, i32
  }
  func.func @transform_7(%arg0: i32) -> (i32, i32, i32, i32) {
    %c0_i32 = arith.constant 0 : i32
    %c0_i32_0 = arith.constant 0 : i32
    %c0_i32_1 = arith.constant 0 : i32
    %c0_i32_2 = arith.constant 0 : i32
    %c0_i32_3 = arith.constant 0 : i32
    return %c0_i32, %c0_i32_0, %c0_i32_1, %c0_i32_2 : i32, i32, i32, i32
  }
  func.func @transform_8(%arg0: i32) -> (i32, i32) {
    %c0_i32 = arith.constant 0 : i32
    %c0_i32_0 = arith.constant 0 : i32
    %c0_i32_1 = arith.constant 0 : i32
    return %c0_i32, %c0_i32_0 : i32, i32
  }
  func.func @transform_9(%arg0: i32) -> (i32, i32, i32) {
    %c0_i32 = arith.constant 0 : i32
    %c0_i32_0 = arith.constant 0 : i32
    %c0_i32_1 = arith.constant 0 : i32
    %c0_i32_2 = arith.constant 0 : i32
    return %c0_i32, %c0_i32_0, %c0_i32_1 : i32, i32, i32
  }
  func.func @transform_10(%arg0: i32) -> (i32, i32, i32) {
    %c0_i32 = arith.constant 0 : i32
    %c0_i32_0 = arith.constant 0 : i32
    %c0_i32_1 = arith.constant 0 : i32
    %c0_i32_2 = arith.constant 0 : i32
    return %c0_i32, %c0_i32_0, %c0_i32_1 : i32, i32, i32
  }
  func.func @transform_11(%arg0: i32) -> (i32, i32) {
    %c0_i32 = arith.constant 0 : i32
    %c0_i32_0 = arith.constant 0 : i32
    %c0_i32_1 = arith.constant 0 : i32
    return %c0_i32, %c0_i32_0 : i32, i32
  }
  func.func @transform_12(%arg0: i32) -> (i32, i32, i32) {
    %c0_i32 = arith.constant 0 : i32
    %c0_i32_0 = arith.constant 0 : i32
    %c0_i32_1 = arith.constant 0 : i32
    return %arg0, %c0_i32, %c0_i32_0 : i32, i32, i32
  }
}

</mosaic_0001>

<bundles_post_ra>
// kernel: simple_unet_forward.1
= control target key start
LH: loop header
LB: loop body
LE: loop exit
PB: predicated region body
PF: predicated region fallthrough
CT: control target
= control target key end

     0   :  { %s8822_s23 = smov 0   ;;  %s13745_s0 = inlined_call_operand.vmem [shape: f32[2,256,32], index: 0, kind: input, shape index: {}]   ;;  %s13746_s1 = inlined_call_operand.vmem [shape: f32[32,64], index: 1, kind: input, shape index: {}]   ;;  %s13747_s2 = inlined_call_operand.vmem [shape: f32[1,64], index: 2, kind: input, shape index: {}]   ;;  %s13748_s3 = inlined_call_operand.vmem [shape: f32[3,3,64,128], index: 3, kind: input, shape index: {}]   ;;  %s13749_s4 = inlined_call_operand.vmem [shape: f32[1,128], index: 4, kind: input, shape index: {}]   ;;  %s13750_s5 = inlined_call_operand.vmem [shape: f32[2,2,128,64], index: 5, kind: input, shape index: {}]   ;;  %s13751_s6 = inlined_call_operand.vmem [shape: f32[324,64], index: 6, kind: input, shape index: {}]   ;;  %s13752_s7 = inlined_call_operand.vmem [shape: f32[3,3,64,1], index: 7, kind: input, shape index: {}]   ;;  %s13753_s8 = inlined_call_operand.<no memory space> [shape: f32[1,1], index: 8, kind: input, shape index: {}]   ;;  %s13754_s9 = inlined_call_operand.vmem [shape: f32[4,100,256], index: 9, kind: input, shape index: {}]   ;;  %s13755_s10 = inlined_call_operand.vmem [shape: f32[4,324,78], index: 10, kind: input, shape index: {}]   ;;  %s13756_s11 = inlined_call_operand.vmem [shape: f32[256,286], index: 11, kind: input, shape index: {}]   ;;  %s13757_s12 = inlined_call_operand.vmem [shape: f32[2,256,1], index: 12, kind: output, shape index: {}]  }
   0x1   :  { %v17_v0 = vstv %s13753_s8 }
   0x2   :  { %18 = vst [vmem:[#allocation4] sm:$0x1] %v17_v0 }
   0x3 LB: > { %s7538_s24 = sadd.s32 4294967295, %s8752_s23   ;;  %p7542_p0 = scmp.ge.s32.totalorder %s8752_s23, 1  ;;  %s8752_s23 = sphi %s8822_s23, %s24_s23  }
   0x4   : > { %p364_p1 = scmp.lt.s32.totalorder %s8752_s23, 3 }
   0x6   : > { %p365_p2 = pnand %p7542_p0, %p364_p1 }
   0x8   : > { %368 = sbr.rel (%p365_p2) target bundleno = 3333 (0xd05), region = 68 }
   0xd   : > { %v451_v1 = vld [vmem:[%s13746_s1 + $0x18] sm:$0xff]  ;;  %v450_v2 = vld [vmem:[%s13746_s1 + $0x10] sm:$0xff]  ;;  %p406_p3 = scmp.lt.s32.totalorder %s7538_s24, 1  ;;  %v449_v3 = vld [vmem:[%s13746_s1 + $0x8] sm:$0xff]  ;;  %vm456_vm0 = vcmask 261120   ;;  %vm1292_vm1 = vcmask 523264  }
   0xe   : > { %565 = vmatpush.msra.mxu0 %v451_v1  ;;  %v448_v4 = vld [vmem:[%s13746_s1] sm:$0xff]  ;;  %vm1305_vm2 = vcmask 519168   ;;  %vm2598_vm3 = vcmask 1045504   ;;  %vm2474_vm4 = vcmask 637952   ;;  %vm6851_vm5 = vcmask 244736  }
   0xf   : > { %s14148_s24 = smov (!%p406_p3, %s7538_s24), 1  ;;  %v8931_v51 = vld [vmem:[%s13747_s2] ss:$0 sm:$0xff]  ;;  %vm7450_vm6 = vcmask 7168  }
  0x10   : > { %566 = vmatpush.msra.mxu0 %v450_v2  ;;  %s8573_s14 = sshll.u32 %s14148_s24, 8 }
  0x11   : > { %s8850_s17 = scalar_lea.vmem %s13745_s0, %s8573_s14  ;;  %s13539_s18 = scalar_lea.vmem %s13757_s12, %s8573_s14 }
  0x12   : > { %567 = vmatpush.msra.mxu0 %v449_v3  ;;  %v416_v5 = vld [vmem:[%s8850_s17] sm:$0xff]  ;;  %v417_v6 = vld [vmem:[%s8850_s17 + $0x8] sm:$0xff]  ;;  %v418_v7 = vld [vmem:[%s8850_s17 + $0x10] sm:$0xff] }
  0x13   : > { %v419_v8 = vld [vmem:[%s8850_s17 + $0x18] sm:$0xff]  ;;  %v420_v9 = vld [vmem:[%s8850_s17 + $0x20] sm:$0xff]  ;;  %v421_v10 = vld [vmem:[%s8850_s17 + $0x28] sm:$0xff] }
  0x14   : > { %568 = vmatpush.msra.mxu0 %v448_v4  ;;  %v422_v11 = vld [vmem:[%s8850_s17 + $0x30] sm:$0xff]  ;;  %v423_v12 = vld [vmem:[%s8850_s17 + $0x38] sm:$0xff]  ;;  %v424_v13 = vld [vmem:[%s8850_s17 + $0x40] sm:$0xff] }
  0x15   : > { %7547 = vmatmul.msk.f32.vlgmr.msra.gmra.mxu0 %vm456_vm0, %v416_v5  ;;  %v425_v14 = vld [vmem:[%s8850_s17 + $0x48] sm:$0xff]  ;;  %v426_v15 = vld [vmem:[%s8850_s17 + $0x50] sm:$0xff]  ;;  %v427_v16 = vld [vmem:[%s8850_s17 + $0x58] sm:$0xff] }
  0x16   : > { %v428_v17 = vld [vmem:[%s8850_s17 + $0x60] sm:$0xff]  ;;  %v429_v18 = vld [vmem:[%s8850_s17 + $0x68] sm:$0xff]  ;;  %v430_v19 = vld [vmem:[%s8850_s17 + $0x70] sm:$0xff] }
  0x17   : > { %v431_v20 = vld [vmem:[%s8850_s17 + $0x78] sm:$0xff]  ;;  %v432_v22 = vld [vmem:[%s8850_s17 + $0x80] sm:$0xff]  ;;  %v433_v24 = vld [vmem:[%s8850_s17 + $0x88] sm:$0xff] }
  0x18   : > { %v434_v26 = vld [vmem:[%s8850_s17 + $0x90] sm:$0xff]  ;;  %v435_v28 = vld [vmem:[%s8850_s17 + $0x98] sm:$0xff]  ;;  %v436_v30 = vld [vmem:[%s8850_s17 + $0xa0] sm:$0xff] }
  0x19   : > { %v437_v32 = vld [vmem:[%s8850_s17 + $0xa8] sm:$0xff]  ;;  %v438_v34 = vld [vmem:[%s8850_s17 + $0xb0] sm:$0xff]  ;;  %v439_v36 = vld [vmem:[%s8850_s17 + $0xb8] sm:$0xff] }
  0x1a   : > { %v440_v38 = vld [vmem:[%s8850_s17 + $0xc0] sm:$0xff]  ;;  %v441_v40 = vld [vmem:[%s8850_s17 + $0xc8] sm:$0xff]  ;;  %v442_v42 = vld [vmem:[%s8850_s17 + $0xd0] sm:$0xff] }
  0x1b   : > { %v443_v44 = vld [vmem:[%s8850_s17 + $0xd8] sm:$0xff]  ;;  %v444_v46 = vld [vmem:[%s8850_s17 + $0xe0] sm:$0xff]  ;;  %v445_v48 = vld [vmem:[%s8850_s17 + $0xe8] sm:$0xff] }
  0x1c   : > { %v446_v50 = vld [vmem:[%s8850_s17 + $0xf0] sm:$0xff]  ;;  %v447_v53 = vld [vmem:[%s8850_s17 + $0xf8] sm:$0xff] }
  0x1d   : > { %7548 = vmatmul.msk.f32.gmra.mxu0 %vm456_vm0, %v417_v6 }
  0x25   : > { %7549 = vmatmul.msk.f32.gmra.mxu0 %vm456_vm0, %v418_v7 }
  0x2d   : > { %7550 = vmatmul.msk.f32.gmra.mxu0 %vm456_vm0, %v419_v8 }
  0x35   : > { %7551 = vmatmul.msk.f32.gmra.mxu0 %vm456_vm0, %v420_v9 }
  0x3d   : > { %7552 = vmatmul.msk.f32.gmra.mxu0 %vm456_vm0, %v421_v10 }
  0x45   : > { %7553 = vmatmul.msk.f32.gmra.mxu0 %vm456_vm0, %v422_v11 }
  0x4d   : > { %7554 = vmatmul.msk.f32.gmra.mxu0 %vm456_vm0, %v423_v12 }
  0x55   : > { %7555 = vmatmul.msk.f32.gmra.mxu0 %vm456_vm0, %v424_v13 }
  0x5d   : > { %7556 = vmatmul.msk.f32.gmra.mxu0 %vm456_vm0, %v425_v14 }
  0x65   : > { %7557 = vmatmul.msk.f32.gmra.mxu0 %vm456_vm0, %v426_v15 }
  0x6d   : > { %7558 = vmatmul.msk.f32.gmra.mxu0 %vm456_vm0, %v427_v16 }
  0x75   : > { %7559 = vmatmul.msk.f32.gmra.mxu0 %vm456_vm0, %v428_v17 }
  0x7d   : > { %7560 = vmatmul.msk.f32.gmra.mxu0 %vm456_vm0, %v429_v18 }
  0x85   : > { %7561 = vmatmul.msk.f32.gmra.mxu0 %vm456_vm0, %v430_v19 }
  0x8d   : > { %7562 = vmatmul.msk.f32.gmra.mxu0 %vm456_vm0, %v431_v20 }
  0x92   : > { %v8884_v21 = vpop.f32.mrf.mxu0 }
  0x95   : > { %7563 = vmatmul.msk.f32.gmra.mxu0 %vm456_vm0, %v432_v22  ;;  %v571_v22 = vadd.f32 %v8931_v51, %v8884_v21 }
  0x9a   : > { %v8888_v23 = vpop.f32.mrf.mxu0 }
  0x9b   : > { %v574_v19 = vadd.f32 %v8931_v51, %v8888_v23 }
  0x9d   : > { %7564 = vmatmul.msk.f32.gmra.mxu0 %vm456_vm0, %v433_v24  ;;  %v9031_v23 = vmax.f32 %v574_v19, 0.0 }
  0xa2   : > { %v8892_v25 = vpop.f32.mrf.mxu0 }
  0xa3   : > { %v577_v17 = vadd.f32 %v8931_v51, %v8892_v25 }
  0xa5   : > { %7565 = vmatmul.msk.f32.gmra.mxu0 %vm456_vm0, %v434_v26  ;;  %v9026_v24 = vmax.f32 %v577_v17, 0.0  ;;  %v9038_v26 = vmax.f32 %v571_v22, 0.0  ;;  %v700_v22 = vld [vmem:[%s13754_s9 + $0x10] sm:$0xff] }
  0xaa   : > { %v8896_v27 = vpop.f32.mrf.mxu0 }
  0xab   : > { %v580_v14 = vadd.f32 %v8931_v51, %v8896_v27 }
  0xad   : > { %7566 = vmatmul.msk.f32.gmra.mxu0 %vm456_vm0, %v435_v28  ;;  %v9019_v20 = vmax.f32 %v580_v14, 0.0  ;;  %v702_v28 = vld [vmem:[%s13754_s9 + $0x20] sm:$0xff] }
  0xb2   : > { %v8900_v29 = vpop.f32.mrf.mxu0 }
  0xb3   : > { %v583_v12 = vadd.f32 %v8931_v51, %v8900_v29 }
  0xb5   : > { %7567 = vmatmul.msk.f32.gmra.mxu0 %vm456_vm0, %v436_v30  ;;  %v9012_v18 = vmax.f32 %v583_v12, 0.0  ;;  %v704_v30 = vld [vmem:[%s13754_s9 + $0x30] sm:$0xff] }
  0xba   : > { %v8904_v31 = vpop.f32.mrf.mxu0 }
  0xbb   : > { %v586_v10 = vadd.f32 %v8931_v51, %v8904_v31 }
  0xbd   : > { %7568 = vmatmul.msk.f32.gmra.mxu0 %vm456_vm0, %v437_v32  ;;  %v9003_v15 = vmax.f32 %v586_v10, 0.0  ;;  %v706_v32 = vld [vmem:[%s13754_s9 + $0x40] sm:$0xff] }
  0xc2   : > { %v8908_v33 = vpop.f32.mrf.mxu0 }
  0xc3   : > { %v589_v8 = vadd.f32 %v8931_v51, %v8908_v33 }
  0xc5   : > { %7569 = vmatmul.msk.f32.gmra.mxu0 %vm456_vm0, %v438_v34  ;;  %v8996_v13 = vmax.f32 %v589_v8, 0.0  ;;  %v708_v34 = vld [vmem:[%s13754_s9 + $0x50] sm:$0xff] }
  0xca   : > { %v591_v35 = vpop.f32.mrf.mxu0 }
  0xcb   : > { %v592_v5 = vadd.f32 %v8931_v51, %v591_v35 }
  0xcd   : > { %7570 = vmatmul.msk.f32.gmra.mxu0 %vm456_vm0, %v439_v36  ;;  %v8989_v11 = vmax.f32 %v592_v5, 0.0  ;;  %v710_v36 = vld [vmem:[%s13754_s9 + $0x60] sm:$0xff] }
  0xd2   : > { %v594_v37 = vpop.f32.mrf.mxu0 }
  0xd3   : > { %v595_v3 = vadd.f32 %v8931_v51, %v594_v37 }
  0xd5   : > { %7571 = vmatmul.msk.f32.gmra.mxu0 %vm456_vm0, %v440_v38  ;;  %v8982_v9 = vmax.f32 %v595_v3, 0.0  ;;  %v712_v38 = vld [vmem:[%s13754_s9 + $0x70] sm:$0xff] }
  0xda   : > { %v597_v39 = vpop.f32.mrf.mxu0 }
  0xdb   : > { %v598_v1 = vadd.f32 %v8931_v51, %v597_v39 }
  0xdd   : > { %7572 = vmatmul.msk.f32.gmra.mxu0 %vm456_vm0, %v441_v40  ;;  %v8973_v6 = vmax.f32 %v598_v1, 0.0  ;;  %v714_v40 = vld [vmem:[%s13754_s9 + $0x80] sm:$0xff] }
  0xde   : > { %v698_v1 = vld [vmem:[%s13754_s9] sm:$0xff] }
  0xe2   : > { %v600_v41 = vpop.f32.mrf.mxu0 }
  0xe3   : > { %v601_v63 = vadd.f32 %v8931_v51, %v600_v41 }
  0xe5   : > { %7573 = vmatmul.msk.f32.gmra.mxu0 %vm456_vm0, %v442_v42  ;;  %v8967_v4 = vmax.f32 %v601_v63, 0.0  ;;  %v716_v42 = vld [vmem:[%s13754_s9 + $0x90] sm:$0xff] }
  0xea   : > { %v603_v43 = vpop.f32.mrf.mxu0 }
  0xeb   : > { %v604_v60 = vadd.f32 %v8931_v51, %v603_v43 }
  0xed   : > { %7574 = vmatmul.msk.f32.gmra.mxu0 %vm456_vm0, %v443_v44  ;;  %v8961_v2 = vmax.f32 %v604_v60, 0.0  ;;  %v718_v44 = vld [vmem:[%s13754_s9 + $0xa0] sm:$0xff] }
  0xf2   : > { %v606_v45 = vpop.f32.mrf.mxu0 }
  0xf3   : > { %v607_v58 = vadd.f32 %v8931_v51, %v606_v45 }
  0xf5   : > { %7575 = vmatmul.msk.f32.gmra.mxu0 %vm456_vm0, %v444_v46  ;;  %v8955_v0 = vmax.f32 %v607_v58, 0.0  ;;  %v720_v46 = vld [vmem:[%s13754_s9 + $0xb0] sm:$0xff] }
  0xfa   : > { %v609_v47 = vpop.f32.mrf.mxu0 }
  0xfb   : > { %v610_v56 = vadd.f32 %v8931_v51, %v609_v47 }
  0xfd   : > { %7576 = vmatmul.msk.f32.gmra.mxu0 %vm456_vm0, %v445_v48  ;;  %v8947_v61 = vmax.f32 %v610_v56, 0.0 }
 0x102   : > { %v612_v49 = vpop.f32.mrf.mxu0 }
 0x103   : > { %v613_v54 = vadd.f32 %v8931_v51, %v612_v49 }
 0x105   : > { %7577 = vmatmul.msk.f32.gmra.mxu0 %vm456_vm0, %v446_v50  ;;  %v8941_v59 = vmax.f32 %v613_v54, 0.0  ;;  %v722_v50 = vld [vmem:[%s13754_s9 + $0xc0] sm:$0xf] }
 0x10a   : > { %v615_v52 = vpop.f32.mrf.mxu0 }
 0x10b   : > { %v616_v55 = vadd.f32 %v8931_v51, %v615_v52 }
 0x10d   : > { %v8937_v57 = vmax.f32 %v616_v55, 0.0  ;;  %7578 = vmatmul.msk.f32.gmra.mxu0 %vm456_vm0, %v447_v53 }
 0x10f   : > { %724 = vmatpush.msrb.mxu0 %v8937_v57  ;;  %8575 = vmatpush.msra.mxu1 %v8937_v57 }
 0x110   : > { %863 = vmatpush.msra.mxu3 %v8937_v57 }
 0x111   : > { %725 = vmatpush.msrb.mxu0 %v8941_v59  ;;  %8576 = vmatpush.msra.mxu1 %v8941_v59 }
 0x112   : > { %864 = vmatpush.msra.mxu3 %v8941_v59  ;;  %v8952_v62 = vpop.f32.mrf.mxu0 }
 0x113   : > { %726 = vmatpush.msrb.mxu0 %v8947_v61  ;;  %8577 = vmatpush.msra.mxu1 %v8947_v61 }
 0x114   : > { %865 = vmatpush.msra.mxu3 %v8947_v61 }
 0x115   : > { %727 = vmatpush.msrb.mxu0 %v8955_v0  ;;  %8578 = vmatpush.msra.mxu1 %v8955_v0 }
 0x116   : > { %866 = vmatpush.msra.mxu3 %v8955_v0 }
 0x117   : > { %728 = vmatpush.msrb.mxu0 %v8961_v2  ;;  %8579 = vmatpush.msra.mxu1 %v8961_v2 }
 0x118   : > { %867 = vmatpush.msra.mxu3 %v8961_v2 }
 0x119   : > { %729 = vmatpush.msrb.mxu0 %v8967_v4  ;;  %8580 = vmatpush.msra.mxu1 %v8967_v4 }
 0x11a   : > { %868 = vmatpush.msra.mxu3 %v8967_v4  ;;  %v8978_v7 = vpop.f32.mrf.mxu0 }
 0x11b   : > { %730 = vmatpush.msrb.mxu0 %v8973_v6  ;;  %8581 = vmatpush.msra.mxu1 %v8973_v6 }
 0x11c   : > { %869 = vmatpush.msra.mxu3 %v8973_v6 }
 0x11d   : > { %731 = vmatpush.msrb.mxu0 %v8982_v9  ;;  %8582 = vmatpush.msra.mxu1 %v8982_v9 }
 0x11e   : > { %870 = vmatpush.msra.mxu3 %v8982_v9 }
 0x11f   : > { %732 = vmatpush.msrb.mxu0 %v8989_v11  ;;  %8583 = vmatpush.msra.mxu1 %v8989_v11 }
 0x120   : > { %871 = vmatpush.msra.mxu3 %v8989_v11 }
 0x121   : > { %733 = vmatpush.msrb.mxu0 %v8996_v13  ;;  %8584 = vmatpush.msra.mxu1 %v8996_v13 }
 0x122   : > { %872 = vmatpush.msra.mxu3 %v8996_v13  ;;  %v9008_v16 = vpop.f32.mrf.mxu0 }
 0x123   : > { %734 = vmatpush.msrb.mxu0 %v9003_v15  ;;  %8585 = vmatpush.msra.mxu1 %v9003_v15 }
 0x124   : > { %873 = vmatpush.msra.mxu3 %v9003_v15 }
 0x125   : > { %735 = vmatpush.msrb.mxu0 %v9012_v18  ;;  %8586 = vmatpush.msra.mxu1 %v9012_v18 }
 0x126   : > { %874 = vmatpush.msra.mxu3 %v9012_v18 }
 0x127   : > { %736 = vmatpush.msrb.mxu0 %v9019_v20  ;;  %8587 = vmatpush.msra.mxu1 %v9019_v20 }
 0x128   : > { %875 = vmatpush.msra.mxu3 %v9019_v20 }
 0x129   : > { %737 = vmatpush.msrb.mxu0 %v9026_v24  ;;  %8588 = vmatpush.msra.mxu1 %v9026_v24 }
 0x12a   : > { %876 = vmatpush.msra.mxu3 %v9026_v24  ;;  %v9036_v25 = vpop.f32.mrf.mxu0 }
 0x12b   : > { %738 = vmatpush.msrb.mxu0 %v9031_v23  ;;  %8589 = vmatpush.msra.mxu1 %v9031_v23 }
 0x12c   : > { %877 = vmatpush.msra.mxu3 %v9031_v23 }
 0x12d   : > { %739 = vmatpush.msrb.mxu0 %v9038_v26  ;;  %8590 = vmatpush.msra.mxu1 %v9038_v26 }
 0x12e   : > { %878 = vmatpush.msra.mxu3 %v9038_v26  ;;  %746 = vmatmul.f32.vlgmr.msra.gmra.mxu1 %v702_v28 }
 0x12f   : > { %740 = vmatmul.f32.vlgmr.msrb.gmra.mxu0 %v698_v1  ;;  %v721_v1 = vld [vmem:[%s13754_s9 + $0xb8] sm:$0xff] }
 0x132   : > { %v9046_v21 = vpop.f32.mrf.mxu0 }
 0x136   : > { %749 = vmatmul.f32.gmra.mxu1 %v704_v30 }
 0x137   : > { %743 = vmatmul.f32.gmra.mxu0 %v700_v22  ;;  %v7606_v22 = vld [vmem:[%s13754_s9 + $0x1a8] sm:$0xff] }
 0x13a   : > { %v9048_v27 = vpop.f32.mrf.mxu0 }
 0x13b   : > { %v634_v28 = vadd.f32 %v8931_v51, %v9048_v27  ;;  %v628_v27 = vadd.f32 %v8931_v51, %v9036_v25  ;;  %v622_v25 = vadd.f32 %v8931_v51, %v8978_v7 }
 0x13d   : > { %v9181_v7 = vmax.f32 %v622_v25, 0.0 }
 0x13e   : > { %752 = vmatmul.f32.gmra.mxu1 %v706_v32  ;;  %v9155_v32 = vmax.f32 %v634_v28, 0.0 }
 0x142   : > { %v9053_v29 = vpop.f32.mrf.mxu0 }
 0x143   : > { %v637_v17 = vadd.f32 %v8931_v51, %v9053_v29  ;;  %v631_v29 = vadd.f32 %v8931_v51, %v9046_v21  ;;  %v625_v21 = vadd.f32 %v8931_v51, %v9008_v16  ;;  %v619_v16 = vadd.f32 %v8931_v51, %v8952_v62  ;;  %v7579_v62 = vld [vmem:[%s13754_s9 + $0xd0] sm:$0xff] }
 0x144   : > { %879 = vmatmul.f32.vlgmr.msra.gmra.mxu3 %v7579_v62  ;;  %v7614_v62 = vld [vmem:[%s13754_s9 + $0x1e8] sm:$0xff] }
 0x146   : > { %755 = vmatmul.f32.gmra.mxu1 %v708_v34  ;;  %v9169_v34 = vmax.f32 %v628_v27, 0.0  ;;  %v7610_v27 = vld [vmem:[%s13754_s9 + $0x1c8] sm:$0xff] }
 0x14a   : > { %v639_v31 = vpop.f32.mrf.mxu0 }
 0x14b   : > { %v640_v12 = vadd.f32 %v8931_v51, %v639_v31  ;;  %v9148_v31 = vmax.f32 %v637_v17, 0.0 }
 0x14d   : > { %v9141_v30 = vmax.f32 %v640_v12, 0.0  ;;  %v7603_v12 = vld [vmem:[%s13754_s9 + $0x190] sm:$0xf] }
 0x14e   : > { %758 = vmatmul.f32.gmra.mxu1 %v710_v36  ;;  %v9186_v36 = vmax.f32 %v619_v16, 0.0 }
 0x152   : > { %v642_v33 = vpop.f32.mrf.mxu0 }
 0x153   : > { %v643_v8 = vadd.f32 %v8931_v51, %v642_v33  ;;  %v9162_v33 = vmax.f32 %v631_v29, 0.0  ;;  %v7608_v29 = vld [vmem:[%s13754_s9 + $0x1b8] sm:$0xff] }
 0x155   : > { %v9131_v19 = vmax.f32 %v643_v8, 0.0 }
 0x156   : > { %761 = vmatmul.f32.gmra.mxu1 %v712_v38  ;;  %v701_v38 = vld [vmem:[%s13754_s9 + $0x18] sm:$0xff] }
 0x15a   : > { %v645_v35 = vpop.f32.mrf.mxu0 }
 0x15b   : > { %v646_v3 = vadd.f32 %v8931_v51, %v645_v35  ;;  %v9176_v35 = vmax.f32 %v625_v21, 0.0  ;;  %v7611_v21 = vld [vmem:[%s13754_s9 + $0x1d0] sm:$0xff] }
 0x15d   : > { %v9124_v14 = vmax.f32 %v646_v3, 0.0  ;;  %v7601_v3 = vld [vmem:[%s13754_s9 + $0x180] sm:$0xff] }
 0x15e   : > { %764 = vmatmul.f32.gmra.mxu1 %v714_v40  ;;  %v711_v40 = vld [vmem:[%s13754_s9 + $0x68] sm:$0xff] }
 0x162   : > { %v648_v37 = vpop.f32.mrf.mxu0 }
 0x163   : > { %v649_v60 = vadd.f32 %v8931_v51, %v648_v37  ;;  %v7580_v37 = vld [vmem:[%s13754_s9 + $0xd8] sm:$0xff] }
 0x165   : > { %v9118_v10 = vmax.f32 %v649_v60, 0.0 }
 0x166   : > { %767 = vmatmul.f32.gmra.mxu1 %v716_v42  ;;  %v7592_v42 = vld [vmem:[%s13754_s9 + $0x138] sm:$0xff] }
 0x16a   : > { %v651_v39 = vpop.f32.mrf.mxu0 }
 0x16b   : > { %v652_v56 = vadd.f32 %v8931_v51, %v651_v39  ;;  %v7581_v39 = vld [vmem:[%s13754_s9 + $0xe0] sm:$0xff] }
 0x16c   : > { %882 = vmatmul.f32.gmra.mxu3 %v7581_v39 }
 0x16d   : > { %v9112_v5 = vmax.f32 %v652_v56, 0.0  ;;  %v719_v56 = vld [vmem:[%s13754_s9 + $0xa8] sm:$0xff] }
 0x16e   : > { %770 = vmatmul.f32.gmra.mxu1 %v718_v44  ;;  %v713_v44 = vld [vmem:[%s13754_s9 + $0x78] sm:$0xff] }
 0x172   : > { %v654_v41 = vpop.f32.mrf.mxu0 }
 0x173   : > { %v655_v54 = vadd.f32 %v8931_v51, %v654_v41  ;;  %v7591_v41 = vld [vmem:[%s13754_s9 + $0x130] sm:$0xff] }
 0x175   : > { %v9103_v63 = vmax.f32 %v655_v54, 0.0  ;;  %v7597_v54 = vld [vmem:[%s13754_s9 + $0x160] sm:$0xff] }
 0x176   : > { %773 = vmatmul.f32.gmra.mxu1 %v720_v46  ;;  %v7594_v46 = vld [vmem:[%s13754_s9 + $0x148] sm:$0xff] }
 0x17a   : > { %v657_v43 = vpop.f32.mrf.mxu0 }
 0x17b   : > { %v658_v52 = vadd.f32 %v8931_v51, %v657_v43 }
 0x17d   : > { %v9097_v58 = vmax.f32 %v658_v52, 0.0 }
 0x17e   : > { %776 = vmatmul.f32.gmra.mxu1 %v722_v50  ;;  %v7596_v50 = vld [vmem:[%s13754_s9 + $0x158] sm:$0xff] }
 0x182   : > { %v660_v45 = vpop.f32.mrf.mxu0 }
 0x183   : > { %v661_v48 = vadd.f32 %v8931_v51, %v660_v45  ;;  %v7593_v45 = vld [vmem:[%s13754_s9 + $0x140] sm:$0xff] }
 0x185   : > { %v9091_v55 = vmax.f32 %v661_v48, 0.0  ;;  %v715_v48 = vld [vmem:[%s13754_s9 + $0x88] sm:$0xff] }
 0x18a   : > { %v663_v47 = vpop.f32.mrf.mxu0 }
 0x18b   : > { %v664_v49 = vadd.f32 %v8931_v51, %v663_v47  ;;  %v699_v51 = vld [vmem:[%s13754_s9 + $0x8] sm:$0xff] }
 0x18d   : > { %v9088_v53 = vmax.f32 %v664_v49, 0.0  ;;  %v7595_v49 = vld [vmem:[%s13754_s9 + $0x150] sm:$0xff] }
 0x18f   : > { %780 = vmatpush.msra.mxu2 %v9088_v53  ;;  %919 = vmatpush.msrb.mxu1 %v9088_v53 }
 0x190   : > { %1058 = vmatpush.msrb.mxu3 %v9088_v53 }
 0x191   : > { %781 = vmatpush.msra.mxu2 %v9091_v55  ;;  %920 = vmatpush.msrb.mxu1 %v9091_v55 }
 0x192   : > { %1059 = vmatpush.msrb.mxu3 %v9091_v55 }
 0x193   : > { %782 = vmatpush.msra.mxu2 %v9097_v58  ;;  %921 = vmatpush.msrb.mxu1 %v9097_v58 }
 0x194   : > { %1060 = vmatpush.msrb.mxu3 %v9097_v58 }
 0x195   : > { %783 = vmatpush.msra.mxu2 %v9103_v63  ;;  %922 = vmatpush.msrb.mxu1 %v9103_v63 }
 0x196   : > { %1061 = vmatpush.msrb.mxu3 %v9103_v63 }
 0x197   : > { %784 = vmatpush.msra.mxu2 %v9112_v5  ;;  %923 = vmatpush.msrb.mxu1 %v9112_v5 }
 0x198   : > { %1062 = vmatpush.msrb.mxu3 %v9112_v5 }
 0x199   : > { %785 = vmatpush.msra.mxu2 %v9118_v10  ;;  %924 = vmatpush.msrb.mxu1 %v9118_v10 }
 0x19a   : > { %1063 = vmatpush.msrb.mxu3 %v9118_v10 }
 0x19b   : > { %786 = vmatpush.msra.mxu2 %v9124_v14  ;;  %925 = vmatpush.msrb.mxu1 %v9124_v14 }
 0x19c   : > { %1064 = vmatpush.msrb.mxu3 %v9124_v14 }
 0x19d   : > { %787 = vmatpush.msra.mxu2 %v9131_v19  ;;  %926 = vmatpush.msrb.mxu1 %v9131_v19 }
 0x19e   : > { %1065 = vmatpush.msrb.mxu3 %v9131_v19 }
 0x19f   : > { %788 = vmatpush.msra.mxu2 %v9141_v30  ;;  %927 = vmatpush.msrb.mxu1 %v9141_v30 }
 0x1a0   : > { %1066 = vmatpush.msrb.mxu3 %v9141_v30 }
 0x1a1   : > { %789 = vmatpush.msra.mxu2 %v9148_v31  ;;  %928 = vmatpush.msrb.mxu1 %v9148_v31 }
 0x1a2   : > { %1067 = vmatpush.msrb.mxu3 %v9148_v31 }
 0x1a3   : > { %790 = vmatpush.msra.mxu2 %v9155_v32  ;;  %929 = vmatpush.msrb.mxu1 %v9155_v32 }
 0x1a4   : > { %1068 = vmatpush.msrb.mxu3 %v9155_v32 }
 0x1a5   : > { %791 = vmatpush.msra.mxu2 %v9162_v33  ;;  %930 = vmatpush.msrb.mxu1 %v9162_v33 }
 0x1a6   : > { %1069 = vmatpush.msrb.mxu3 %v9162_v33 }
 0x1a7   : > { %792 = vmatpush.msra.mxu2 %v9169_v34  ;;  %931 = vmatpush.msrb.mxu1 %v9169_v34 }
 0x1a8   : > { %1070 = vmatpush.msrb.mxu3 %v9169_v34 }
 0x1a9   : > { %793 = vmatpush.msra.mxu2 %v9176_v35  ;;  %932 = vmatpush.msrb.mxu1 %v9176_v35 }
 0x1aa   : > { %1071 = vmatpush.msrb.mxu3 %v9176_v35 }
 0x1ab   : > { %794 = vmatpush.msra.mxu2 %v9181_v7  ;;  %933 = vmatpush.msrb.mxu1 %v9181_v7 }
 0x1ac   : > { %1072 = vmatpush.msrb.mxu3 %v9181_v7  ;;  %v741_v25 = vpop.f32.mrf.mxu0 }
 0x1ad   : > { %795 = vmatpush.msra.mxu2 %v9186_v36  ;;  %934 = vmatpush.msrb.mxu1 %v9186_v36 }
 0x1ae   : > { %1073 = vmatpush.msrb.mxu3 %v9186_v36  ;;  %796 = vmatmul.f32.vlgmr.msra.gmra.mxu2 %v699_v51  ;;  %v7613_v51 = vld [vmem:[%s13754_s9 + $0x1e0] sm:$0xff] }
 0x1af   : > { %1002 = vmatpush.msrb.mxu2 %v8937_v57  ;;  %1141 = vmatpush.msra.mxu1 %v8937_v57  ;;  %v7582_v57 = vld [vmem:[%s13754_s9 + $0xe8] sm:$0xff] }
 0x1b0   : > { %935 = vmatmul.f32.vlgmr.msrb.gmra.mxu1 %v7580_v37  ;;  %v1321_v37 = vld [vmem:[%s13748_s3 + $0x20] sm:$0xff] }
 0x1b1   : > { %1003 = vmatpush.msrb.mxu2 %v8941_v59  ;;  %1142 = vmatpush.msra.mxu1 %v8941_v59  ;;  %v703_v59 = vld [vmem:[%s13754_s9 + $0x28] sm:$0xff] }
 0x1b3   : > { %1004 = vmatpush.msrb.mxu2 %v8947_v61  ;;  %1143 = vmatpush.msra.mxu1 %v8947_v61  ;;  %v7583_v61 = vld [vmem:[%s13754_s9 + $0xf0] sm:$0xff] }
 0x1b4   : > { %885 = vmatmul.f32.gmra.mxu3 %v7583_v61 }
 0x1b5   : > { %1005 = vmatpush.msrb.mxu2 %v8955_v0  ;;  %1144 = vmatpush.msra.mxu1 %v8955_v0  ;;  %v7584_v0 = vld [vmem:[%s13754_s9 + $0xf8] sm:$0xff] }
 0x1b6   : > { %799 = vmatmul.f32.gmra.mxu2 %v701_v38  ;;  %v744_v38 = vpop.f32.mrf.mxu0 }
 0x1b7   : > { %1006 = vmatpush.msrb.mxu2 %v8961_v2  ;;  %1145 = vmatpush.msra.mxu1 %v8961_v2  ;;  %v9239_v2 = vpop.f32.mrf.mxu1 }
 0x1b8   : > { %938 = vmatmul.f32.gmra.mxu1 %v7582_v57 }
 0x1b9   : > { %1007 = vmatpush.msrb.mxu2 %v8967_v4  ;;  %1146 = vmatpush.msra.mxu1 %v8967_v4  ;;  %v705_v4 = vld [vmem:[%s13754_s9 + $0x38] sm:$0xff] }
 0x1bb   : > { %1008 = vmatpush.msrb.mxu2 %v8973_v6  ;;  %1147 = vmatpush.msra.mxu1 %v8973_v6  ;;  %v7585_v6 = vld [vmem:[%s13754_s9 + $0x100] sm:$0xff] }
 0x1bc   : > { %888 = vmatmul.f32.gmra.mxu3 %v7585_v6  ;;  %v7616_v6 = vld [vmem:[%s13754_s9 + $0x1f8] sm:$0xff] }
 0x1bd   : > { %1009 = vmatpush.msrb.mxu2 %v8982_v9  ;;  %1148 = vmatpush.msra.mxu1 %v8982_v9  ;;  %v7586_v9 = vld [vmem:[%s13754_s9 + $0x108] sm:$0xff] }
 0x1be   : > { %802 = vmatmul.f32.gmra.mxu2 %v703_v59 }
 0x1bf   : > { %1010 = vmatpush.msrb.mxu2 %v8989_v11  ;;  %1149 = vmatpush.msra.mxu1 %v8989_v11  ;;  %v9260_v11 = vpop.f32.mrf.mxu1 }
 0x1c0   : > { %941 = vmatmul.f32.gmra.mxu1 %v7584_v0 }
 0x1c1   : > { %1011 = vmatpush.msrb.mxu2 %v8996_v13  ;;  %1150 = vmatpush.msra.mxu1 %v8996_v13  ;;  %v707_v13 = vld [vmem:[%s13754_s9 + $0x48] sm:$0xff] }
 0x1c3   : > { %1012 = vmatpush.msrb.mxu2 %v9003_v15  ;;  %1151 = vmatpush.msra.mxu1 %v9003_v15  ;;  %v7587_v15 = vld [vmem:[%s13754_s9 + $0x110] sm:$0xff] }
 0x1c4   : > { %891 = vmatmul.f32.gmra.mxu3 %v7587_v15  ;;  %v7617_v15 = vld [vmem:[%s13754_s9 + $0x200] sm:$0xff] }
 0x1c5   : > { %1013 = vmatpush.msrb.mxu2 %v9012_v18  ;;  %1152 = vmatpush.msra.mxu1 %v9012_v18  ;;  %v7588_v18 = vld [vmem:[%s13754_s9 + $0x118] sm:$0xff] }
 0x1c6   : > { %805 = vmatmul.f32.gmra.mxu2 %v705_v4  ;;  %v7615_v4 = vld [vmem:[%s13754_s9 + $0x1f0] sm:$0xff] }
 0x1c7   : > { %1014 = vmatpush.msrb.mxu2 %v9019_v20  ;;  %1153 = vmatpush.msra.mxu1 %v9019_v20  ;;  %v709_v20 = vld [vmem:[%s13754_s9 + $0x58] sm:$0xff] }
 0x1c8   : > { %944 = vmatmul.f32.gmra.mxu1 %v7586_v9 }
 0x1c9   : > { %1015 = vmatpush.msrb.mxu2 %v9026_v24  ;;  %1154 = vmatpush.msra.mxu1 %v9026_v24  ;;  %v7589_v24 = vld [vmem:[%s13754_s9 + $0x120] sm:$0xff] }
 0x1cb   : > { %1016 = vmatpush.msrb.mxu2 %v9031_v23  ;;  %1155 = vmatpush.msra.mxu1 %v9031_v23  ;;  %v9285_v23 = vpop.f32.mrf.mxu1 }
 0x1cc   : > { %894 = vmatmul.f32.gmra.mxu3 %v7589_v24  ;;  %v7619_v24 = vld [vmem:[%s13754_s9 + $0x210] sm:$0xff] }
 0x1cd   : > { %1017 = vmatpush.msrb.mxu2 %v9038_v26  ;;  %1156 = vmatpush.msra.mxu1 %v9038_v26  ;;  %v7590_v26 = vld [vmem:[%s13754_s9 + $0x128] sm:$0xff] }
 0x1ce   : > { %808 = vmatmul.f32.gmra.mxu2 %v707_v13 }
 0x1cf   : > { %1197 = vmatpush.msra.mxu2 %v9088_v53  ;;  %v717_v53 = vld [vmem:[%s13754_s9 + $0x98] sm:$0xff] }
 0x1d0   : > { %947 = vmatmul.f32.gmra.mxu1 %v7588_v18  ;;  %v7618_v18 = vld [vmem:[%s13754_s9 + $0x208] sm:$0xff] }
 0x1d1   : > { %1198 = vmatpush.msra.mxu2 %v9091_v55  ;;  %v7598_v55 = vld [vmem:[%s13754_s9 + $0x168] sm:$0xff] }
 0x1d3   : > { %1199 = vmatpush.msra.mxu2 %v9097_v58  ;;  %v9304_v43 = vpop.f32.mrf.mxu1  ;;  %v7599_v58 = vld [vmem:[%s13754_s9 + $0x170] sm:$0xff] }
 0x1d4   : > { %897 = vmatmul.f32.gmra.mxu3 %v7591_v41  ;;  %v7621_v41 = vld [vmem:[%s13754_s9 + $0x220] sm:$0xff] }
 0x1d5   : > { %1200 = vmatpush.msra.mxu2 %v9103_v63  ;;  %v7600_v63 = vld [vmem:[%s13754_s9 + $0x178] sm:$0xff] }
 0x1d6   : > { %811 = vmatmul.f32.gmra.mxu2 %v709_v20 }
 0x1d7   : > { %1201 = vmatpush.msra.mxu2 %v9112_v5  ;;  %v7602_v5 = vld [vmem:[%s13754_s9 + $0x188] sm:$0xff] }
 0x1d8   : > { %950 = vmatmul.f32.gmra.mxu1 %v7590_v26  ;;  %v7620_v26 = vld [vmem:[%s13754_s9 + $0x218] sm:$0xff] }
 0x1d9   : > { %1202 = vmatpush.msra.mxu2 %v9118_v10  ;;  %v723_v10 = vld [vmem:[%s13754_s9 + $0xc8] sm:$0xf] }
 0x1db   : > { %1203 = vmatpush.msra.mxu2 %v9124_v14  ;;  %v9320_v47 = vpop.f32.mrf.mxu1  ;;  %v7604_v14 = vld [vmem:[%s13754_s9 + $0x198] sm:$0xf] }
 0x1dc   : > { %900 = vmatmul.f32.gmra.mxu3 %v7593_v45  ;;  %v7623_v45 = vld [vmem:[%s13754_s9 + $0x230] sm:$0xff] }
 0x1dd   : > { %1204 = vmatpush.msra.mxu2 %v9131_v19  ;;  %v7605_v19 = vld [vmem:[%s13754_s9 + $0x1a0] sm:$0xff] }
 0x1de   : > { %814 = vmatmul.f32.gmra.mxu2 %v711_v40 }
 0x1df   : > { %1205 = vmatpush.msra.mxu2 %v9141_v30  ;;  %v7607_v30 = vld [vmem:[%s13754_s9 + $0x1b0] sm:$0xff] }
 0x1e0   : > { %953 = vmatmul.f32.gmra.mxu1 %v7592_v42  ;;  %v7622_v42 = vld [vmem:[%s13754_s9 + $0x228] sm:$0xff] }
 0x1e1   : > { %1206 = vmatpush.msra.mxu2 %v9148_v31  ;;  %v7609_v31 = vld [vmem:[%s13754_s9 + $0x1c0] sm:$0xff] }
 0x1e3   : > { %1207 = vmatpush.msra.mxu2 %v9155_v32  ;;  %v9333_v52 = vpop.f32.mrf.mxu1 }
 0x1e4   : > { %903 = vmatmul.f32.gmra.mxu3 %v7595_v49  ;;  %v7625_v49 = vld [vmem:[%s13754_s9 + $0x240] sm:$0xff] }
 0x1e5   : > { %1208 = vmatpush.msra.mxu2 %v9162_v33  ;;  %v7612_v33 = vld [vmem:[%s13754_s9 + $0x1d8] sm:$0xff] }
 0x1e6   : > { %817 = vmatmul.f32.gmra.mxu2 %v713_v44 }
 0x1e7   : > { %1209 = vmatpush.msra.mxu2 %v9169_v34 }
 0x1e8   : > { %956 = vmatmul.f32.gmra.mxu1 %v7594_v46  ;;  %v7624_v46 = vld [vmem:[%s13754_s9 + $0x238] sm:$0xff] }
 0x1e9   : > { %1210 = vmatpush.msra.mxu2 %v9176_v35 }
 0x1eb   : > { %1211 = vmatpush.msra.mxu2 %v9181_v7  ;;  %v9350_v60 = vpop.f32.mrf.mxu1  ;;  %v880_v7 = vpop.f32.mrf.mxu3 }
 0x1ec   : > { %906 = vmatmul.f32.gmra.mxu3 %v7597_v54 }
 0x1ed   : > { %1212 = vmatpush.msra.mxu2 %v9186_v36 }
 0x1ee   : > { %820 = vmatmul.f32.gmra.mxu2 %v715_v48 }
 0x1f0   : > { %959 = vmatmul.f32.gmra.mxu1 %v7596_v50  ;;  %v7626_v50 = vld [vmem:[%s13754_s9 + $0x248] sm:$0xff] }
 0x1f3   : > { %v9364_v8 = vpop.f32.mrf.mxu1  ;;  %v883_v61 = vpop.f32.mrf.mxu3 }
 0x1f4   : > { %909 = vmatmul.f32.gmra.mxu3 %v7599_v58  ;;  %v7633_v58 = vld [vmem:[%s13754_s9 + $0x280] sm:$0xff] }
 0x1f6   : > { %823 = vmatmul.f32.gmra.mxu2 %v717_v53  ;;  %v7631_v53 = vld [vmem:[%s13754_s9 + $0x270] sm:$0xff] }
 0x1f8   : > { %962 = vmatmul.f32.gmra.mxu1 %v7598_v55  ;;  %v7627_v55 = vld [vmem:[%s13754_s9 + $0x250] sm:$0xff] }
 0x1fb   : > { %v9375_v17 = vpop.f32.mrf.mxu1 }
 0x1fc   : > { %912 = vmatmul.f32.gmra.mxu3 %v7601_v3  ;;  %13765 = vst [vmem:[#allocation5_spill] sm:$0xff] %v9375_v17  ;;  %v7630_v3 = vld [vmem:[%s13754_s9 + $0x268] sm:$0xf] }
 0x1fe   : > { %826 = vmatmul.f32.gmra.mxu2 %v719_v56  ;;  %v7628_v56 = vld [vmem:[%s13754_s9 + $0x258] sm:$0xff] }
 0x200   : > { %965 = vmatmul.f32.gmra.mxu1 %v7600_v63 }
 0x203   : > { %v9383_v28 = vpop.f32.mrf.mxu1 }
 0x204   : > { %915 = vmatmul.f32.gmra.mxu3 %v7603_v12  ;;  %13766 = vst [vmem:[#allocation6_spill] sm:$0xff] %v9383_v28 }
 0x206   : > { %829 = vmatmul.f32.gmra.mxu2 %v721_v1  ;;  %v7629_v1 = vld [vmem:[%s13754_s9 + $0x260] sm:$0xf] }
 0x208   : > { %968 = vmatmul.f32.gmra.mxu1 %v7602_v5  ;;  %v7635_v5 = vld [vmem:[%s13754_s9 + $0x290] sm:$0xff] }
 0x20b   : > { %v9397_v32 = vpop.f32.mrf.mxu1 }
 0x20c   : > { %1074 = vmatmul.f32.vlgmr.msrb.gmra.mxu3 %v7606_v22  ;;  %13767 = vst [vmem:[#allocation7_spill] sm:$0xff] %v9397_v32  ;;  %v7632_v22 = vld [vmem:[%s13754_s9 + $0x278] sm:$0xff] }
 0x20e   : > { %832 = vmatmul.f32.gmra.mxu2 %v723_v10 }
 0x210   : > { %971 = vmatmul.f32.gmra.mxu1 %v7604_v14  ;;  %v7637_v14 = vld [vmem:[%s13754_s9 + $0x2a0] sm:$0xff] }
 0x214   : > { %1077 = vmatmul.f32.gmra.mxu3 %v7608_v29 }
 0x216   : > { %1018 = vmatmul.f32.vlgmr.msrb.gmra.mxu2 %v7605_v19 }
 0x218   : > { %1157 = vmatmul.f32.vlgmr.msra.gmra.mxu1 %v7631_v53 }
 0x21c   : > { %1080 = vmatmul.f32.gmra.mxu3 %v7610_v27  ;;  %v7634_v27 = vld [vmem:[%s13754_s9 + $0x288] sm:$0xff] }
 0x21e   : > { %1021 = vmatmul.f32.gmra.mxu2 %v7607_v30 }
 0x220   : > { %1160 = vmatmul.f32.gmra.mxu1 %v7633_v58 }
 0x224   : > { %1083 = vmatmul.f32.gmra.mxu3 %v7612_v33 }
 0x226   : > { %1024 = vmatmul.f32.gmra.mxu2 %v7609_v31  ;;  %v7639_v31 = vld [vmem:[%s13754_s9 + $0x2b0] sm:$0xff] }
 0x228   : > { %1163 = vmatmul.f32.gmra.mxu1 %v7635_v5  ;;  %v7653_v5 = vld [vmem:[%s13754_s9 + $0x320] sm:$0xff] }
 0x22c   : > { %1086 = vmatmul.f32.gmra.mxu3 %v7614_v62  ;;  %v7643_v62 = vld [vmem:[%s13754_s9 + $0x2d0] sm:$0xff] }
 0x22d   : > { %v936_v34 = vpop.f32.mrf.mxu1 }
 0x22e   : > { %1027 = vmatmul.f32.gmra.mxu2 %v7611_v21  ;;  %v9407_v36 = vadd.f32 %v936_v34, %v880_v7  ;;  %v7636_v34 = vld [vmem:[%s13754_s9 + $0x298] sm:$0xff] }
 0x230   : > { %1166 = vmatmul.f32.gmra.mxu1 %v7637_v14  ;;  %v7648_v14 = vld [vmem:[%s13754_s9 + $0x2f8] sm:$0xff] }
 0x231   : > { %v797_v16 = vpop.f32.mrf.mxu2 }
 0x232   : > { %v9405_v35 = vadd.f32 %v797_v16, %v741_v25  ;;  %v7641_v25 = vld [vmem:[%s13754_s9 + $0x2c0] sm:$0xff] }
 0x234   : > { %1089 = vmatmul.f32.gmra.mxu3 %v7616_v6  ;;  %v7640_v6 = vld [vmem:[%s13754_s9 + $0x2b8] sm:$0xff] }
 0x235   : > { %v939_v39 = vpop.f32.mrf.mxu1 }
 0x236   : > { %1030 = vmatmul.f32.gmra.mxu2 %v7613_v51  ;;  %v9419_v0 = vadd.f32 %v939_v39, %v883_v61 }
 0x237   : > { %v9494_v10 = vpop.f32.mrf.mxu3 }
 0x238   : > { %1169 = vmatmul.f32.gmra.mxu1 %v7639_v31 }
 0x239   : > { %v800_v57 = vpop.f32.mrf.mxu2 }
 0x23a   : > { %v9417_v59 = vadd.f32 %v800_v57, %v744_v38  ;;  %v7638_v38 = vld [vmem:[%s13754_s9 + $0x2a8] sm:$0xff] }
 0x23c   : > { %1092 = vmatmul.f32.gmra.mxu3 %v7618_v18 }
 0x23d   : > { %v9501_v19 = vpop.f32.mrf.mxu1 }
 0x23e   : > { %1033 = vmatmul.f32.gmra.mxu2 %v7615_v4  ;;  %v7645_v4 = vld [vmem:[%s13754_s9 + $0x2e0] sm:$0xff] }
 0x23f   : > { %v9508_v29 = vpop.f32.mrf.mxu3 }
 0x240   : > { %1172 = vmatmul.f32.gmra.mxu1 %v7641_v25  ;;  %v7655_v25 = vld [vmem:[%s13754_s9 + $0x330] sm:$0xf] }
 0x241   : > { %v9429_v13 = vpop.f32.mrf.mxu2 }
 0x244   : > { %1095 = vmatmul.f32.gmra.mxu3 %v7620_v26 }
 0x245   : > { %v9516_v21 = vpop.f32.mrf.mxu1 }
 0x246   : > { %1036 = vmatmul.f32.gmra.mxu2 %v7617_v15 }
 0x247   : > { %v9526_v16 = vpop.f32.mrf.mxu3 }
 0x248   : > { %1175 = vmatmul.f32.gmra.mxu1 %v7643_v62 }
 0x249   : > { %v9437_v20 = vpop.f32.mrf.mxu2 }
 0x24c   : > { %1098 = vmatmul.f32.gmra.mxu3 %v7622_v42 }
 0x24d   : > { %v9528_v7 = vpop.f32.mrf.mxu1 }
 0x24e   : > { %1039 = vmatmul.f32.gmra.mxu2 %v7619_v24  ;;  %v7647_v24 = vld [vmem:[%s13754_s9 + $0x2f0] sm:$0xff] }
 0x24f   : > { %v9538_v39 = vpop.f32.mrf.mxu3 }
 0x250   : > { %1178 = vmatmul.f32.gmra.mxu1 %v7645_v4 }
 0x251   : > { %v9445_v40 = vpop.f32.mrf.mxu2 }
 0x254   : > { %1101 = vmatmul.f32.gmra.mxu3 %v7624_v46  ;;  %v7649_v46 = vld [vmem:[%s13754_s9 + $0x300] sm:$0xff] }
 0x255   : > { %v9540_v57 = vpop.f32.mrf.mxu1 }
 0x256   : > { %1042 = vmatmul.f32.gmra.mxu2 %v7621_v41  ;;  %v7642_v41 = vld [vmem:[%s13754_s9 + $0x2c8] sm:$0xff] }
 0x257   : > { %v9550_v15 = vpop.f32.mrf.mxu3 }
 0x258   : > { %1181 = vmatmul.f32.gmra.mxu1 %v7647_v24 }
 0x259   : > { %v9453_v44 = vpop.f32.mrf.mxu2 }
 0x25c   : > { %1104 = vmatmul.f32.gmra.mxu3 %v7626_v50 }
 0x25d   : > { %v9557_v26 = vpop.f32.mrf.mxu1 }
 0x25e   : > { %1045 = vmatmul.f32.gmra.mxu2 %v7623_v45 }
 0x25f   : > { %v9564_v45 = vpop.f32.mrf.mxu3 }
 0x260   : > { %1184 = vmatmul.f32.gmra.mxu1 %v7649_v46  ;;  %v7654_v46 = vld [vmem:[%s13754_s9 + $0x328] sm:$0xff] }
 0x261   : > { %v9461_v48 = vpop.f32.mrf.mxu2 }
 0x264   : > { %1107 = vmatmul.f32.gmra.mxu3 %v7628_v56  ;;  %v7646_v56 = vld [vmem:[%s13754_s9 + $0x2e8] sm:$0xff] }
 0x265   : > { %v9572_v50 = vpop.f32.mrf.mxu1 }
 0x266   : > { %1048 = vmatmul.f32.gmra.mxu2 %v7625_v49  ;;  %v7644_v49 = vld [vmem:[%s13754_s9 + $0x2d8] sm:$0xff] }
 0x267   : > { %v9582_v58 = vpop.f32.mrf.mxu3 }
 0x269   : > { %v9472_v54 = vpop.f32.mrf.mxu2 }
 0x26c   : > { %1110 = vmatmul.f32.gmra.mxu3 %v7630_v3 }
 0x26e   : > { %1051 = vmatmul.f32.gmra.mxu2 %v7627_v55  ;;  %v7651_v55 = vld [vmem:[%s13754_s9 + $0x310] sm:$0xff] }
 0x26f   : > { %1187 = vmatmul.f32.gmra.mxu1 %v7651_v55 }
 0x271   : > { %v9483_v63 = vpop.f32.mrf.mxu2 }
 0x276   : > { %1054 = vmatmul.f32.gmra.mxu2 %v7629_v1  ;;  %v9584_v1 = vpop.f32.mrf.mxu1 }
 0x277   : > { %1190 = vmatmul.f32.gmra.mxu1 %v7653_v5 }
 0x279   : > { %v9496_v12 = vpop.f32.mrf.mxu2 }
 0x27e   : > { %1213 = vmatmul.f32.vlgmr.msra.gmra.mxu2 %v7632_v22  ;;  %v9594_v22 = vpop.f32.mrf.mxu3  ;;  %v9596_v31 = vpop.f32.mrf.mxu1 }
 0x27f   : > { %1193 = vmatmul.f32.gmra.mxu1 %v7655_v25 }
 0x281   : > { %v9506_v30 = vpop.f32.mrf.mxu2 }
 0x282   : > { %13768 = vst [vmem:[#allocation8_spill] sm:$0xff] %v9506_v30 }
 0x286   : > { %1216 = vmatmul.f32.gmra.mxu2 %v7634_v27  ;;  %v9606_v62 = vpop.f32.mrf.mxu3  ;;  %v9610_v4 = vpop.f32.mrf.mxu1 }
 0x287   : > { %13771 = vst [vmem:[#allocation11_spill] sm:$0xff] %v9606_v62 }
 0x288   : > { %13772 = vst [vmem:[#allocation12_spill] sm:$0xff] %v9610_v4 }
 0x289   : > { %v9518_v33 = vpop.f32.mrf.mxu2 }
 0x28a   : > { %13769 = vst [vmem:[#allocation9_spill] sm:$0xff] %v9518_v33  ;;  %v7722_v33 = vld [vmem:[%s13748_s3 + $0x108] sm:$0xff] }
 0x28e   : > { %1219 = vmatmul.f32.gmra.mxu2 %v7636_v34  ;;  %v7650_v34 = vld [vmem:[%s13754_s9 + $0x308] sm:$0xff] }
 0x291   : > { %v9530_v51 = vpop.f32.mrf.mxu2 }
 0x292   : > { %13770 = vst [vmem:[#allocation10_spill] sm:$0xff] %v9530_v51  ;;  %v1318_v51 = vld [vmem:[%s13748_s3 + $0x8] sm:$0xff] }
 0x296   : > { %1222 = vmatmul.f32.gmra.mxu2 %v7638_v38 }
 0x299   : > { %v9542_v61 = vpop.f32.mrf.mxu2 }
 0x29e   : > { %1225 = vmatmul.f32.gmra.mxu2 %v7640_v6  ;;  %v7652_v6 = vld [vmem:[%s13754_s9 + $0x318] sm:$0xff] }
 0x2a1   : > { %v9552_v18 = vpop.f32.mrf.mxu2 }
 0x2a6   : > { %1228 = vmatmul.f32.gmra.mxu2 %v7642_v41  ;;  %v9617_v41 = vpop.f32.mrf.mxu3 }
 0x2a7   : > { %13773 = vst [vmem:[#allocation13_spill] sm:$0xff] %v9617_v41 }
 0x2a9   : > { %v9562_v42 = vpop.f32.mrf.mxu2 }
 0x2ae   : > { %1231 = vmatmul.f32.gmra.mxu2 %v7644_v49  ;;  %v9622_v49 = vpop.f32.mrf.mxu1  ;;  %v9629_v5 = vpop.f32.mrf.mxu3 }
 0x2af   : > { %13774 = vst [vmem:[#allocation14_spill] sm:$0xff] %v9622_v49  ;;  %v7660_v49 = vld [vmem:[%s13748_s3 + $0x58] sm:$0xff] }
 0x2b0   : > { %13775 = vst [vmem:[#allocation15_spill] sm:$0xff] %v9629_v5  ;;  %v7662_v5 = vld [vmem:[%s13748_s3 + $0x68] sm:$0xff] }
 0x2b1   : > { %v9574_v53 = vpop.f32.mrf.mxu2 }
 0x2b6   : > { %1234 = vmatmul.f32.gmra.mxu2 %v7646_v56  ;;  %v7656_v56 = vld [vmem:[%s13754_s9 + $0x338] sm:$0xf]  ;;  %v1075_v9 = vpop.f32.mrf.mxu3 }
 0x2b9   : > { %v9586_v3 = vpop.f32.mrf.mxu2 }
 0x2be   : > { %1237 = vmatmul.f32.gmra.mxu2 %v7648_v14  ;;  %v9631_v14 = vpop.f32.mrf.mxu1 }
 0x2bf   : > { %13776 = vst [vmem:[#allocation16_spill] sm:$0xff] %v9631_v14 }
 0x2c1   : > { %v9598_v27 = vpop.f32.mrf.mxu2 }
 0x2c6   : > { %1240 = vmatmul.f32.gmra.mxu2 %v7650_v34  ;;  %v1324_v34 = vld [vmem:[%s13748_s3 + $0x38] sm:$0xff] }
 0x2c7   : > { %1459 = vmatpush.msra.mxu0 %v1324_v34  ;;  %v7664_v34 = vld [vmem:[%s13748_s3 + $0x78] sm:$0xff] }
 0x2c8   : > { %1382 = vmatpush.msra.mxu3 %v7664_v34  ;;  %v7661_v34 = vld [vmem:[%s13748_s3 + $0x60] sm:$0xff] }
 0x2c9   : > { %v9608_v38 = vpop.f32.mrf.mxu2 }
 0x2ce   : > { %1243 = vmatmul.f32.gmra.mxu2 %v7652_v6  ;;  %v1323_v6 = vld [vmem:[%s13748_s3 + $0x30] sm:$0xff] }
 0x2cf   : > { %1460 = vmatpush.msra.mxu0 %v1323_v6  ;;  %v1320_v6 = vld [vmem:[%s13748_s3 + $0x18] sm:$0xff] }
 0x2d1   : > { %v9615_v24 = vpop.f32.mrf.mxu2 }
 0x2d6   : > { %1246 = vmatmul.f32.gmra.mxu2 %v7654_v46  ;;  %v1322_v46 = vld [vmem:[%s13748_s3 + $0x28] sm:$0xff] }
 0x2d7   : > { %1461 = vmatpush.msra.mxu0 %v1322_v46  ;;  %v7663_v46 = vld [vmem:[%s13748_s3 + $0x70] sm:$0xff] }
 0x2d8   : > { %1383 = vmatpush.msra.mxu3 %v7663_v46  ;;  %v1078_v46 = vpop.f32.mrf.mxu3 }
 0x2d9   : > { %v9624_v55 = vpop.f32.mrf.mxu2  ;;  %1462 = vmatpush.msra.mxu0 %v1321_v37  ;;  %v1319_v37 = vld [vmem:[%s13748_s3 + $0x10] sm:$0xff]  ;;  %v1079_v30 = vadd.f32 %v1078_v46, %v9552_v18 }
 0x2da   : > { %1384 = vmatpush.msra.mxu3 %v7662_v5  ;;  %v7659_v5 = vld [vmem:[%s13748_s3 + $0x50] sm:$0xff] }
 0x2db   : > { %1463 = vmatpush.msra.mxu0 %v1320_v6  ;;  %v1317_v6 = vld [vmem:[%s13748_s3] sm:$0xff] }
 0x2dc   : > { %1385 = vmatpush.msra.mxu3 %v7661_v34  ;;  %v7727_v34 = vld [vmem:[%s13748_s3 + $0x130] sm:$0xff] }
 0x2dd   : > { %1464 = vmatpush.msra.mxu0 %v1319_v37 }
 0x2de   : > { %1249 = vmatmul.f32.gmra.mxu2 %v7656_v56  ;;  %v1158_v56 = vpop.f32.mrf.mxu1  ;;  %1386 = vmatpush.msra.mxu3 %v7660_v49  ;;  %v7657_v49 = vld [vmem:[%s13748_s3 + $0x40] sm:$0xff] }
 0x2df   : > { %1465 = vmatpush.msra.mxu0 %v1318_v51  ;;  %v7728_v51 = vld [vmem:[%s13748_s3 + $0x138] sm:$0xff] }
 0x2e0   : > { %1767 = vmatpush.msrb.mxu1 %v7728_v51  ;;  %1387 = vmatpush.msra.mxu3 %v7659_v5  ;;  %v7725_v51 = vld [vmem:[%s13748_s3 + $0x120] sm:$0xff]  ;;  %v1081_v41 = vpop.f32.mrf.mxu3 }
 0x2e1   : > { %v9633_v25 = vpop.f32.mrf.mxu2  ;;  %1466 = vmatpush.msra.mxu0 %v1317_v6  ;;  %v7658_v6 = vld [vmem:[%s13748_s3 + $0x48] sm:$0xff] }
 0x2e2   : > { %13777 = vst [vmem:[#allocation17_spill] sm:$0xff] %v9633_v25  ;;  %1768 = vmatpush.msrb.mxu1 %v7727_v34  ;;  %1388 = vmatpush.msra.mxu3 %v7658_v6  ;;  %v7724_v34 = vld [vmem:[%s13748_s3 + $0x118] sm:$0xff] }
 0x2e4   : > { %1389 = vmatpush.msra.mxu3 %v7657_v49  ;;  %v7721_v49 = vld [vmem:[%s13748_s3 + $0x100] sm:$0xff] }
 0x2e6   : > { %v1161_v32 = vpop.f32.mrf.mxu1 }
 0x2e8   : > { %v1084_v28 = vpop.f32.mrf.mxu3 }
 0x2e9   : > { %v9647_v14 = vpop.f32.mrf.mxu2 }
 0x2ea   : > { %13778 = vst [vmem:[#allocation18_spill] sm:$0xff] %v9647_v14 }
 0x2ee   : > { %v1164_v6 = vpop.f32.mrf.mxu1 }
 0x2f1   : > { %v9673_v37 = vpop.f32.mrf.mxu2 }
 0x2f2   : > { %13779 = vst [vmem:[#allocation19_spill] sm:$0xff] %v9673_v37  ;;  %v7726_v37 = vld [vmem:[%s13748_s3 + $0x128] sm:$0xff] }
 0x2f3   : > { %1769 = vmatpush.msrb.mxu1 %v7726_v37  ;;  %v7723_v37 = vld [vmem:[%s13748_s3 + $0x110] sm:$0xff] }
 0x2f5   : > { %1770 = vmatpush.msrb.mxu1 %v7725_v51 }
 0x2f6   : > { %v1167_v4 = vpop.f32.mrf.mxu1 }
 0x2f7   : > { %1771 = vmatpush.msrb.mxu1 %v7724_v34 }
 0x2f9   : > { %v9699_v5 = vpop.f32.mrf.mxu2  ;;  %1772 = vmatpush.msrb.mxu1 %v7723_v37  ;;  %v13781_v37 = vmax.f32 %v9405_v35, %v9407_v36  ;;  %v943_v35 = vadd.f32 %v9501_v19, %v9494_v10 }
 0x2fa   : > { %13780 = vst [vmem:[#allocation20_spill] sm:$0xff] %v9699_v5  ;;  %v1076_v5 = vadd.f32 %v1075_v9, %v9542_v61  ;;  %v13782_v9 = vmax.f32 %v9417_v59, %v9419_v0 }
 0x2fb   : > { %1773 = vmatpush.msrb.mxu1 %v7722_v33 }
 0x2fd   : > { %1774 = vmatpush.msrb.mxu1 %v7721_v49  ;;  %v1087_v49 = vpop.f32.mrf.mxu3 }
 0x301   : > { %v1214_v51 = vpop.f32.mrf.mxu2 }
 0x302   : > { %v1215_v34 = vadd.f32 %v1214_v51, %v1158_v56  ;;  %v804_v51 = vadd.f32 %v9429_v13, %v9239_v2  ;;  %v946_v2 = vadd.f32 %v9516_v21, %v9508_v29  ;;  %v810_v29 = vadd.f32 %v9445_v40, %v9285_v23 }
 0x303   : > { %v949_v21 = vadd.f32 %v9528_v7, %v9526_v16  ;;  %v813_v7 = vadd.f32 %v9453_v44, %v9304_v43 }
 0x304   : > { %v1266_v14 = vmax.f32 %v1076_v5, %v1215_v34  ;;  %v1170_v5 = vpop.f32.mrf.mxu1 }
 0x305   : > { %v1090_v13 = vpop.f32.mrf.mxu3 }
 0x306   : > { %v1279_v62 = vmax.f32 %v13781_v37, %v1266_v14  ;;  %v807_v14 = vadd.f32 %v9437_v20, %v9260_v11 }
 0x308   : > { %1293 = vst.msk [vmem:[#allocation2] sm:$0xff] %vm1292_vm1, %v1279_v62 }
 0x309   : > { %v1217_v33 = vpop.f32.mrf.mxu2 }
 0x30a   : > { %v1218_v17 = vadd.f32 %v1217_v33, %v1161_v32 }
 0x30c   : > { %v1267_v25 = vmax.f32 %v1079_v30, %v1218_v17  ;;  %v1082_v17 = vadd.f32 %v1081_v41, %v9562_v42  ;;  %v1255_v30 = vmax.f32 %v804_v51, %v943_v35  ;;  %v1173_v19 = vpop.f32.mrf.mxu1  ;;  %v1085_v42 = vadd.f32 %v1084_v28, %v9574_v53 }
 0x30d   : > { %v1088_v53 = vadd.f32 %v1087_v49, %v9586_v3  ;;  %v952_v51 = vadd.f32 %v9540_v57, %v9538_v39  ;;  %v1091_v49 = vadd.f32 %v1090_v13, %v9598_v27  ;;  %v816_v57 = vadd.f32 %v9461_v48, %v9320_v47  ;;  %v7709_v47 = vld [vmem:[%s13748_s3 + $0xf0] sm:$0xff] }
 0x30e   : > { %v1280_v61 = vmax.f32 %v13782_v9, %v1267_v25  ;;  %v1256_v25 = vmax.f32 %v807_v14, %v946_v2  ;;  %v1257_v9 = vmax.f32 %v810_v29, %v949_v21  ;;  %v7690_v29 = vld [vmem:[%s13748_s3 + $0xa8] sm:$0xff] }
 0x30f   : > { %v1307_v56 = vld [vmem:[#allocation2] sm:$0xff]  ;;  %v1258_v35 = vmax.f32 %v813_v7, %v952_v51  ;;  %v7745_v7 = vld [vmem:[%s13748_s3 + $0x170] sm:$0xff] }
 0x310   : > { %1294 = vst.msk [vmem:[#allocation2 + $0x8] sm:$0xff] %vm1292_vm1, %v1280_v61  ;;  %7675 = vmatmul.msk.f32.vlgmr.msra.gmra.mxu0 %vm1292_vm1, %v1307_v56 }
 0x311   : > { %v1220_v36 = vpop.f32.mrf.mxu2 }
 0x312   : > { %v1221_v32 = vadd.f32 %v1220_v36, %v1164_v6 }
 0x314   : > { %v1268_v18 = vmax.f32 %v1082_v17, %v1221_v32  ;;  %v1176_v33 = vpop.f32.mrf.mxu1 }
 0x316   : > { %v1281_v59 = vmax.f32 %v1255_v30, %v1268_v18  ;;  %v955_v18 = vadd.f32 %v9557_v26, %v9550_v15  ;;  %v7708_v26 = vld [vmem:[%s13748_s3 + $0xe8] sm:$0xff] }
 0x317   : > { %v1325_v0 = vld [vmem:[#allocation2 + $0x1] sm:$0xff] }
 0x318   : > { %v1308_v62 = vld [vmem:[#allocation2 + $0x8] sm:$0xff]  ;;  %1295 = vst.msk [vmem:[#allocation2 + $0x10] sm:$0xff] %vm1292_vm1, %v1281_v59  ;;  %7665 = vmatmul.msk.f32.vlgmr.msra.gmra.mxu3 %vm1292_vm1, %v1325_v0  ;;  %v7710_v59 = vld [vmem:[%s13748_s3 + $0xf8] sm:$0xff]  ;;  %v1259_v48 = vmax.f32 %v816_v57, %v955_v18 }
 0x319   : > { %7676 = vmatmul.msk.f32.gmra.mxu0 %vm1292_vm1, %v1308_v62  ;;  %v1223_v10 = vpop.f32.mrf.mxu2 }
 0x31a   : > { %v1224_v41 = vadd.f32 %v1223_v10, %v1167_v4  ;;  %v1093_v4 = vpop.f32.mrf.mxu3  ;;  %1661 = vmatpush.msrb.mxu0 %v7710_v59 }
 0x31b   : > { %v1094_v0 = vadd.f32 %v1093_v4, %v9608_v38 }
 0x31c   : > { %v1269_v46 = vmax.f32 %v1085_v42, %v1224_v41  ;;  %v1179_v32 = vpop.f32.mrf.mxu1  ;;  %1662 = vmatpush.msrb.mxu0 %v7709_v47  ;;  %v819_v42 = vadd.f32 %v9472_v54, %v9333_v52  ;;  %v958_v41 = vadd.f32 %v9572_v50, %v9564_v45  ;;  %v7692_v52 = vld [vmem:[%s13748_s3 + $0xb8] sm:$0xff]  ;;  %v7740_v47 = vld [vmem:[%s13748_s3 + $0x148] sm:$0xff] }
 0x31d   : > { %v7706_v54 = vld [vmem:[%s13748_s3 + $0xd8] sm:$0xff]  ;;  %1555 = vmatpush.msrb.mxu3 %v7692_v52 }
 0x31e   : > { %v1282_v6 = vmax.f32 %v1256_v25, %v1269_v46  ;;  %1663 = vmatpush.msrb.mxu0 %v7708_v26  ;;  %v7707_v25 = vld [vmem:[%s13748_s3 + $0xe0] sm:$0xff] }
 0x31f   : > { %v1326_v34 = vld [vmem:[#allocation2 + $0x9] sm:$0xff] }
 0x320   : > { %v1309_v11 = vld [vmem:[#allocation2 + $0x10] sm:$0xff]  ;;  %1296 = vst.msk [vmem:[#allocation2 + $0x18] sm:$0xff] %vm1292_vm1, %v1282_v6  ;;  %7666 = vmatmul.msk.f32.gmra.mxu3 %vm1292_vm1, %v1326_v34  ;;  %1664 = vmatpush.msrb.mxu0 %v7707_v25  ;;  %v13788_v25 = vld [vmem:[#allocation18_spill] sm:$0xff] }
 0x321   : > { %v1710_v20 = vld [vmem:[#allocation2 + $0xb] sm:$0xff]  ;;  %7677 = vmatmul.msk.f32.gmra.mxu0 %vm1292_vm1, %v1309_v11  ;;  %v1226_v28 = vpop.f32.mrf.mxu2  ;;  %v1260_v11 = vmax.f32 %v819_v42, %v958_v41  ;;  %v7739_v41 = vld [vmem:[%s13748_s3 + $0x140] sm:$0xff] }
 0x322   : > { %7729 = vmatmul.msk.f32.vlgmr.msrb.gmra.mxu1 %vm1292_vm1, %v1710_v20  ;;  %v1227_v37 = vadd.f32 %v1226_v28, %v1170_v5  ;;  %v1096_v36 = vpop.f32.mrf.mxu3  ;;  %1665 = vmatpush.msrb.mxu0 %v7706_v54  ;;  %v7691_v6 = vld [vmem:[%s13748_s3 + $0xb0] sm:$0xff] }
 0x323   : > { %v1097_v45 = vadd.f32 %v1096_v36, %v9615_v24  ;;  %v7705_v34 = vld [vmem:[%s13748_s3 + $0xd0] sm:$0xff]  ;;  %1556 = vmatpush.msrb.mxu3 %v7691_v6  ;;  %v7704_v24 = vld [vmem:[%s13748_s3 + $0xc8] sm:$0xff] }
 0x324   : > { %v1270_v61 = vmax.f32 %v1088_v53, %v1227_v37  ;;  %v1182_v38 = vpop.f32.mrf.mxu1  ;;  %1666 = vmatpush.msrb.mxu0 %v7705_v34  ;;  %v822_v37 = vadd.f32 %v9483_v63, %v9350_v60 }
 0x325   : > { %1557 = vmatpush.msrb.mxu3 %v7690_v29 }
 0x326   : > { %v1283_v23 = vmax.f32 %v1257_v9, %v1270_v61  ;;  %1667 = vmatpush.msrb.mxu0 %v7704_v24  ;;  %v7689_v61 = vld [vmem:[%s13748_s3 + $0xa0] sm:$0xff] }
 0x327   : > { %v1327_v40 = vld [vmem:[#allocation2 + $0x11] sm:$0xff]  ;;  %1558 = vmatpush.msrb.mxu3 %v7689_v61  ;;  %v13789_v24 = vld [vmem:[#allocation6_spill] sm:$0xff] }
 0x328   : > { %v1310_v56 = vld [vmem:[#allocation2 + $0x18] sm:$0xff]  ;;  %1297 = vst.msk [vmem:[#allocation2 + $0x20] sm:$0xff] %vm1292_vm1, %v1283_v23  ;;  %7667 = vmatmul.msk.f32.gmra.mxu3 %vm1292_vm1, %v1327_v40  ;;  %v7703_v23 = vld [vmem:[%s13748_s3 + $0xc0] sm:$0xff] }
 0x329   : > { %v1711_v16 = vld [vmem:[#allocation2 + $0x13] sm:$0xff]  ;;  %7678 = vmatmul.msk.f32.gmra.mxu0 %vm1292_vm1, %v1310_v56  ;;  %v1229_v3 = vpop.f32.mrf.mxu2 }
 0x32a   : > { %7730 = vmatmul.msk.f32.gmra.mxu1 %vm1292_vm1, %v1711_v16  ;;  %v1230_v5 = vadd.f32 %v1229_v3, %v1173_v19  ;;  %v1099_v14 = vpop.f32.mrf.mxu3  ;;  %1668 = vmatpush.msrb.mxu0 %v7703_v23  ;;  %v7687_v16 = vld [vmem:[%s13748_s3 + $0x90] sm:$0xff] }
 0x32b   : > { %v1100_v40 = vadd.f32 %v1099_v14, %v9624_v55  ;;  %v7686_v55 = vld [vmem:[%s13748_s3 + $0x88] sm:$0xff]  ;;  %v13784_v14 = vld [vmem:[#allocation5_spill] sm:$0xff] }
 0x32c   : > { %v1271_v17 = vmax.f32 %v1091_v49, %v1230_v5  ;;  %v1185_v63 = vpop.f32.mrf.mxu1  ;;  %v7744_v49 = vld [vmem:[%s13748_s3 + $0x168] sm:$0xff] }
 0x32e   : > { %v1284_v43 = vmax.f32 %v1258_v35, %v1271_v17 }
 0x32f   : > { %v1328_v44 = vld [vmem:[#allocation2 + $0x19] sm:$0xff] }
 0x330   : > { %v1311_v30 = vld [vmem:[#allocation2 + $0x20] sm:$0xff]  ;;  %1298 = vst.msk [vmem:[#allocation2 + $0x28] sm:$0xff] %vm1292_vm1, %v1284_v43  ;;  %7668 = vmatmul.msk.f32.gmra.mxu3 %vm1292_vm1, %v1328_v44  ;;  %v964_v43 = vadd.f32 %v9596_v31, %v9594_v22  ;;  %v13783_v22 = vld [vmem:[#allocation17_spill] sm:$0xff] }
 0x331   : > { %v1712_v39 = vld [vmem:[#allocation2 + $0x1b] sm:$0xff]  ;;  %7679 = vmatmul.msk.f32.gmra.mxu0 %vm1292_vm1, %v1311_v30  ;;  %v1232_v27 = vpop.f32.mrf.mxu2 }
 0x332   : > { %7731 = vmatmul.msk.f32.gmra.mxu1 %vm1292_vm1, %v1712_v39  ;;  %v1233_v62 = vadd.f32 %v1232_v27, %v1176_v33  ;;  %v961_v33 = vadd.f32 %v9584_v1, %v9582_v58  ;;  %v1102_v9 = vpop.f32.mrf.mxu3  ;;  %v7688_v58 = vld [vmem:[%s13748_s3 + $0x98] sm:$0xff]  ;;  %v7685_v44 = vld [vmem:[%s13748_s3 + $0x80] sm:$0xff]  ;;  %v7741_v27 = vld [vmem:[%s13748_s3 + $0x150] sm:$0xff] }
 0x333   : > { %v7746_v1 = vld [vmem:[%s13748_s3 + $0x178] sm:$0xff]  ;;  %1559 = vmatpush.msrb.mxu3 %v7688_v58  ;;  %v7743_v30 = vld [vmem:[%s13748_s3 + $0x160] sm:$0xff]  ;;  %v1103_v31 = vadd.f32 %v1102_v9, %v13783_v22 }
 0x334   : > { %v1272_v15 = vmax.f32 %v1094_v0, %v1233_v62  ;;  %1873 = vmatpush.msra.mxu1 %v7746_v1  ;;  %v1261_v51 = vmax.f32 %v822_v37, %v961_v33  ;;  %v1188_v18 = vpop.f32.mrf.mxu1  ;;  %v13793_v9 = vld [vmem:[#allocation19_spill] sm:$0xff]  ;;  %v1605_v22 = vld [vmem:[#allocation2 + $0x12] sm:$0xff] }
 0x335   : > { %1560 = vmatpush.msrb.mxu3 %v7687_v16 }
 0x336   : > { %v1285_v2 = vmax.f32 %v1259_v48, %v1272_v15  ;;  %1874 = vmatpush.msra.mxu1 %v7745_v7 }
 0x337   : > { %v1329_v13 = vld [vmem:[#allocation2 + $0x21] sm:$0xff]  ;;  %1561 = vmatpush.msrb.mxu3 %v7686_v55 }
 0x338   : > { %v1312_v10 = vld [vmem:[#allocation2 + $0x28] sm:$0xff]  ;;  %1299 = vst.msk [vmem:[#allocation2 + $0x30] sm:$0xff] %vm1292_vm1, %v1285_v2  ;;  %7669 = vmatmul.msk.f32.gmra.mxu3 %vm1292_vm1, %v1329_v13  ;;  %1875 = vmatpush.msra.mxu1 %v7744_v49 }
 0x339   : > { %v1713_v19 = vld [vmem:[#allocation2 + $0x23] sm:$0xff]  ;;  %7680 = vmatmul.msk.f32.gmra.mxu0 %vm1292_vm1, %v1312_v10  ;;  %v1235_v46 = vpop.f32.mrf.mxu2  ;;  %1562 = vmatpush.msrb.mxu3 %v7685_v44 }
 0x33a   : > { %7732 = vmatmul.msk.f32.gmra.mxu1 %vm1292_vm1, %v1713_v19  ;;  %v1236_v50 = vadd.f32 %v1235_v46, %v1179_v32  ;;  %v825_v32 = vadd.f32 %v9496_v12, %v9364_v8  ;;  %v7742_v12 = vld [vmem:[%s13748_s3 + $0x158] sm:$0xff]  ;;  %v1105_v57 = vpop.f32.mrf.mxu3  ;;  %v13785_v2 = vld [vmem:[#allocation8_spill] sm:$0xff]  ;;  %v13786_v10 = vld [vmem:[#allocation11_spill] sm:$0xff] }
 0x33b   : > { %1876 = vmatpush.msra.mxu1 %v7743_v30  ;;  %v828_v13 = vadd.f32 %v13785_v2, %v13784_v14  ;;  %v13787_v19 = vld [vmem:[#allocation12_spill] sm:$0xff]  ;;  %v1106_v46 = vadd.f32 %v1105_v57, %v13788_v25  ;;  %v13796_v49 = vld [vmem:[#allocation15_spill] sm:$0xff]  ;;  %v7764_v2 = vld [vmem:[%s13748_s3 + $0x1b8] sm:$0xff] }
 0x33c   : > { %v1273_v20 = vmax.f32 %v1097_v45, %v1236_v50  ;;  %v1262_v59 = vmax.f32 %v825_v32, %v964_v43  ;;  %v1191_v6 = vpop.f32.mrf.mxu1  ;;  %v1816_v57 = vld [vmem:[#allocation2 + $0xc] sm:$0xff]  ;;  %v9923_v14 = vld [vmem:[#allocation2 + $0x24] sm:$0xff]  ;;  %1979 = vmatpush.msra.mxu3 %v7764_v2 }
 0x33d   : > { %1877 = vmatpush.msra.mxu1 %v7742_v12  ;;  %v1498_v12 = vld [vmem:[#allocation2 + $0x2] sm:$0xff] }
 0x33e   : > { %v1286_v21 = vmax.f32 %v1260_v11, %v1273_v20  ;;  %v7761_v25 = vld [vmem:[%s13748_s3 + $0x1a0] sm:$0xff] }
 0x33f   : > { %v1330_v28 = vld [vmem:[#allocation2 + $0x29] sm:$0xff]  ;;  %1878 = vmatpush.msra.mxu1 %v7741_v27  ;;  %v9899_v27 = vld [vmem:[#allocation2 + $0x14] sm:$0xff]  ;;  %v2135_v2 = vld [vmem:[#allocation2 + $0x1e] sm:$0xff] }
 0x340   : > { %v1313_v53 = vld [vmem:[#allocation2 + $0x30] sm:$0xff]  ;;  %1300 = vst.msk [vmem:[#allocation2 + $0x38] sm:$0xff] %vm1292_vm1, %v1286_v21  ;;  %7670 = vmatmul.msk.f32.gmra.mxu3 %vm1292_vm1, %v1330_v28 }
 0x341   : > { %v1714_v4 = vld [vmem:[#allocation2 + $0x2b] sm:$0xff]  ;;  %7681 = vmatmul.msk.f32.gmra.mxu0 %vm1292_vm1, %v1313_v53  ;;  %v1238_v60 = vpop.f32.mrf.mxu2  ;;  %1879 = vmatpush.msra.mxu1 %v7740_v47 }
 0x342   : > { %7733 = vmatmul.msk.f32.gmra.mxu1 %vm1292_vm1, %v1714_v4  ;;  %v1239_v56 = vadd.f32 %v1238_v60, %v1182_v38  ;;  %v967_v38 = vadd.f32 %v13787_v19, %v13786_v10  ;;  %v1108_v50 = vpop.f32.mrf.mxu3  ;;  %v13790_v21 = vld [vmem:[#allocation9_spill] sm:$0xff]  ;;  %v13792_v4 = vld [vmem:[#allocation14_spill] sm:$0xff] }
 0x343   : > { %1880 = vmatpush.msra.mxu1 %v7739_v41  ;;  %v831_v28 = vadd.f32 %v13790_v21, %v13789_v24  ;;  %v13791_v53 = vld [vmem:[#allocation13_spill] sm:$0xff]  ;;  %v1109_v61 = vadd.f32 %v1108_v50, %v13793_v9  ;;  %v7776_v41 = vld [vmem:[%s13748_s3 + $0x1c8] sm:$0xff]  ;;  %v7757_v24 = vld [vmem:[%s13748_s3 + $0x180] sm:$0xff] }
 0x344   : > { %v1274_v3 = vmax.f32 %v1100_v40, %v1239_v56  ;;  %v1263_v54 = vmax.f32 %v828_v13, %v967_v38  ;;  %v970_v37 = vadd.f32 %v13792_v4, %v13791_v53  ;;  %v1604_v56 = vld [vmem:[#allocation2 + $0xa] sm:$0xff]  ;;  %v1194_v7 = vpop.f32.mrf.mxu1  ;;  %v7778_v13 = vld [vmem:[%s13748_s3 + $0x1d8] sm:$0xff] }
 0x345   : > { %v7781_v47 = vld [vmem:[%s13748_s3 + $0x1f0] sm:$0xff]  ;;  %v7800_v50 = vld [vmem:[%s13748_s3 + $0x238] sm:$0xff] }
 0x346   : > { %v1287_v5 = vmax.f32 %v1261_v51, %v1274_v3  ;;  %v1264_v60 = vmax.f32 %v831_v28, %v970_v37  ;;  %v13794_v51 = vld [vmem:[#allocation7_spill] sm:$0xff]  ;;  %v13795_v3 = vld [vmem:[#allocation10_spill] sm:$0xff]  ;;  %v7763_v10 = vld [vmem:[%s13748_s3 + $0x1b0] sm:$0xff]  ;;  %2191 = vmatpush.msrb.mxu1 %v7800_v50 }
 0x347   : > { %v1331_v35 = vld [vmem:[#allocation2 + $0x31] sm:$0xff]  ;;  %v834_v55 = vadd.f32 %v13795_v3, %v13794_v51  ;;  %1980 = vmatpush.msra.mxu3 %v7763_v10  ;;  %v7797_v28 = vld [vmem:[%s13748_s3 + $0x220] sm:$0xff] }
 0x348   : > { %v1314_v36 = vld [vmem:[#allocation2 + $0x38] sm:$0xff]  ;;  %1301 = vst.msk [vmem:[#allocation2 + $0x40] sm:$0xff] %vm1292_vm1, %v1287_v5  ;;  %7671 = vmatmul.msk.f32.gmra.mxu3 %vm1292_vm1, %v1331_v35  ;;  %v13797_v5 = vld [vmem:[#allocation16_spill] sm:$0xff] }
 0x349   : > { %v1715_v17 = vld [vmem:[#allocation2 + $0x33] sm:$0xff]  ;;  %7682 = vmatmul.msk.f32.gmra.mxu0 %vm1292_vm1, %v1314_v36  ;;  %v1241_v8 = vpop.f32.mrf.mxu2  ;;  %v973_v35 = vadd.f32 %v13797_v5, %v13796_v49 }
 0x34a   : > { %7734 = vmatmul.msk.f32.gmra.mxu1 %vm1292_vm1, %v1715_v17  ;;  %v1242_v39 = vadd.f32 %v1241_v8, %v1185_v63  ;;  %v1111_v1 = vpop.f32.mrf.mxu3  ;;  %v13798_v17 = vld [vmem:[#allocation20_spill] sm:$0xff]  ;;  %v9983_v53 = vld [vmem:[#allocation2 + $0x34] sm:$0xff] }
 0x34b   : > { %v1112_v32 = vadd.f32 %v1111_v1, %v13798_v17  ;;  %v1265_v44 = vmax.f32 %v834_v55, %v973_v35  ;;  %v7777_v19 = vld [vmem:[%s13748_s3 + $0x1d0] sm:$0xff]  ;;  %v7796_v4 = vld [vmem:[%s13748_s3 + $0x218] sm:$0xff]  ;;  %v7793_v1 = vld [vmem:[%s13748_s3 + $0x200] sm:$0xff] }
 0x34c   : > { %v1275_v0 = vmax.f32 %v1103_v31, %v1242_v39  ;;  %v1606_v39 = vld [vmem:[#allocation2 + $0x1a] sm:$0xff]  ;;  %v7795_v9 = vld [vmem:[%s13748_s3 + $0x210] sm:$0xff] }
 0x34d   : > { %v2028_v17 = vld [vmem:[#allocation2 + $0x15] sm:$0xff] }
 0x34e   : > { %v1288_v62 = vmax.f32 %v1262_v59, %v1275_v0  ;;  %v1608_v59 = vld [vmem:[#allocation2 + $0x2a] sm:$0xff]  ;;  %v9905_v0 = vld [vmem:[#allocation2 + $0x1c] sm:$0xff] }
 0x34f   : > { %v1332_v48 = vld [vmem:[#allocation2 + $0x39] sm:$0xff] }
 0x350   : > { %v1315_v15 = vld [vmem:[#allocation2 + $0x40] sm:$0xff]  ;;  %1302 = vst.msk [vmem:[#allocation2 + $0x48] sm:$0xff] %vm1292_vm1, %v1288_v62  ;;  %7672 = vmatmul.msk.f32.gmra.mxu3 %vm1292_vm1, %v1332_v48  ;;  %v7782_v62 = vld [vmem:[%s13748_s3 + $0x1f8] sm:$0xff]  ;;  %v7780_v48 = vld [vmem:[%s13748_s3 + $0x1e8] sm:$0xff] }
 0x351   : > { %v1716_v26 = vld [vmem:[#allocation2 + $0x3b] sm:$0xff]  ;;  %7683 = vmatmul.msk.f32.gmra.mxu0 %vm1292_vm1, %v1315_v15  ;;  %v1244_v42 = vpop.f32.mrf.mxu2 }
 0x352   : > { %7735 = vmatmul.msk.f32.gmra.mxu1 %vm1292_vm1, %v1716_v26  ;;  %v1245_v52 = vadd.f32 %v1244_v42, %v1188_v18  ;;  %v1607_v18 = vld [vmem:[#allocation2 + $0x22] sm:$0xff]  ;;  %2085 = vmatpush.msra.mxu0 %v7782_v62  ;;  %v1609_v26 = vld [vmem:[#allocation2 + $0x32] sm:$0xff] }
 0x353   : > { %v7779_v15 = vld [vmem:[%s13748_s3 + $0x1e0] sm:$0xff]  ;;  %v7762_v42 = vld [vmem:[%s13748_s3 + $0x1a8] sm:$0xff]  ;;  %v2134_v62 = vld [vmem:[#allocation2 + $0x16] sm:$0xff] }
 0x354   : > { %v1276_v45 = vmax.f32 %v1106_v46, %v1245_v52  ;;  %2086 = vmatpush.msra.mxu0 %v7781_v47  ;;  %v1610_v46 = vld [vmem:[#allocation2 + $0x3a] sm:$0xff]  ;;  %1981 = vmatpush.msra.mxu3 %v7762_v42 }
 0x355   : > { %v7775_v52 = vld [vmem:[%s13748_s3 + $0x1c0] sm:$0xff] }
 0x356   : > { %v1289_v34 = vmax.f32 %v1263_v54, %v1276_v45  ;;  %2087 = vmatpush.msra.mxu0 %v7780_v48  ;;  %v9953_v54 = vld [vmem:[#allocation2 + $0x2c] sm:$0xff]  ;;  %1982 = vmatpush.msra.mxu3 %v7761_v25  ;;  %v7760_v45 = vld [vmem:[%s13748_s3 + $0x198] sm:$0xff] }
 0x357   : > { %v1333_v11 = vld [vmem:[#allocation2 + $0x41] sm:$0xff]  ;;  %v1334_v40 = vld [vmem:[#allocation2 + $0x49] sm:$0x3f] }
 0x358   : > { %v1316_v20 = vld [vmem:[#allocation2 + $0x48] sm:$0x3f]  ;;  %1303 = vst.msk [vmem:[#allocation2 + $0x50] sm:$0xff] %vm1292_vm1, %v1289_v34  ;;  %7673 = vmatmul.msk.f32.gmra.mxu3 %vm1292_vm1, %v1333_v11  ;;  %2088 = vmatpush.msra.mxu0 %v7779_v15  ;;  %v7799_v34 = vld [vmem:[%s13748_s3 + $0x230] sm:$0xff]  ;;  %v2033_v25 = vld [vmem:[#allocation2 + $0x3d] sm:$0xff] }
 0x359   : > { %v1717_v29 = vld [vmem:[#allocation2 + $0x43] sm:$0xff]  ;;  %7684 = vmatmul.msk.f32.gmra.mxu0 %vm1292_vm1, %v1316_v20  ;;  %v1247_v33 = vpop.f32.mrf.mxu2  ;;  %1983 = vmatpush.msra.mxu3 %v7760_v45 }
 0x35a   : > { %7736 = vmatmul.msk.f32.gmra.mxu1 %vm1292_vm1, %v1717_v29  ;;  %v1248_v23 = vadd.f32 %v1247_v33, %v1191_v6  ;;  %2089 = vmatpush.msra.mxu0 %v7778_v13  ;;  %v7759_v6 = vld [vmem:[%s13748_s3 + $0x190] sm:$0xff]  ;;  %v7758_v20 = vld [vmem:[%s13748_s3 + $0x188] sm:$0xff] }
 0x35b   : > { %1984 = vmatpush.msra.mxu3 %v7759_v6  ;;  %2192 = vmatpush.msrb.mxu1 %v7799_v34  ;;  %v7798_v29 = vld [vmem:[%s13748_s3 + $0x228] sm:$0xff]  ;;  %v2138_v6 = vld [vmem:[#allocation2 + $0x36] sm:$0xff] }
 0x35c   : > { %v1277_v63 = vmax.f32 %v1109_v61, %v1248_v23  ;;  %2090 = vmatpush.msra.mxu0 %v7777_v19  ;;  %v1611_v21 = vld [vmem:[#allocation2 + $0x42] sm:$0xff]  ;;  %v2032_v19 = vld [vmem:[#allocation2 + $0x35] sm:$0xff] }
 0x35d   : > { %1985 = vmatpush.msra.mxu3 %v7758_v20  ;;  %2193 = vmatpush.msrb.mxu1 %v7798_v29  ;;  %v10015_v3 = vld [vmem:[#allocation2 + $0x44] sm:$0xff] }
 0x35e   : > { %v1290_v58 = vmax.f32 %v1264_v60, %v1277_v63  ;;  %2091 = vmatpush.msra.mxu0 %v7776_v41  ;;  %v7794_v63 = vld [vmem:[%s13748_s3 + $0x208] sm:$0xff] }
 0x35f   : > { %v1718_v16 = vld [vmem:[#allocation2 + $0x4b] sm:$0xff]  ;;  %1986 = vmatpush.msra.mxu3 %v7757_v24  ;;  %2194 = vmatpush.msrb.mxu1 %v7797_v28  ;;  %v2139_v24 = vld [vmem:[#allocation2 + $0x3e] sm:$0xff] }
 0x360   : > { %1304 = vst.msk [vmem:[#allocation2 + $0x58] sm:$0xff] %vm1292_vm1, %v1290_v58  ;;  %7674 = vmatmul.msk.f32.gmra.mxu3 %vm1292_vm1, %v1334_v40  ;;  %2092 = vmatpush.msra.mxu0 %v7775_v52  ;;  %v1612_v60 = vld [vmem:[#allocation2 + $0x4a] sm:$0xff]  ;;  %v10002_v58 = vld [vmem:[#allocation2 + $0x3c] sm:$0xff]  ;;  %v1613_v51 = vld [vmem:[#allocation2 + $0x52] sm:$0x3f] }
 0x361   : > { %7711 = vmatmul.msk.f32.vlgmr.msrb.gmra.mxu0 %vm1292_vm1, %v1604_v56  ;;  %v1250_v36 = vpop.f32.mrf.mxu2  ;;  %2195 = vmatpush.msrb.mxu1 %v7796_v4  ;;  %v2034_v50 = vld [vmem:[#allocation2 + $0x45] sm:$0xff]  ;;  %v2035_v29 = vld [vmem:[#allocation2 + $0x4d] sm:$0xff] }
 0x362   : > { %7737 = vmatmul.msk.f32.gmra.mxu1 %vm1292_vm1, %v1718_v16  ;;  %v1251_v43 = vadd.f32 %v1250_v36, %v1194_v7  ;;  %v1507_v36 = vld [vmem:[#allocation2 + $0x4a] sm:$0x3f] }
 0x363   : > { %2196 = vmatpush.msrb.mxu1 %v7795_v9 }
 0x364   : > { %v1278_v30 = vmax.f32 %v1112_v32, %v1251_v43  ;;  %v10024_v32 = vld [vmem:[#allocation2 + $0x4c] sm:$0xff] }
 0x365   : > { %2197 = vmatpush.msrb.mxu1 %v7794_v63 }
 0x366   : > { %v1291_v8 = vmax.f32 %v1265_v44, %v1278_v30 }
 0x367   : > { %v1719_v31 = vld [vmem:[#allocation2 + $0x53] sm:$0x3f]  ;;  %2198 = vmatpush.msrb.mxu1 %v7793_v1 }
 0x368   : > { %1306 = vst.msk [vmem:[#allocation2 + $0x60] sm:$0xf] %vm1305_vm2, %v1291_v8  ;;  %7693 = vmatmul.msk.f32.vlgmr.msrb.gmra.mxu3 %vm1292_vm1, %v1498_v12  ;;  %v2029_v12 = vld [vmem:[#allocation2 + $0x1d] sm:$0xff]  ;;  %v2036_v4 = vld [vmem:[#allocation2 + $0x55] sm:$0xff] }
 0x369   : > { %7712 = vmatmul.msk.f32.gmra.mxu0 %vm1292_vm1, %v1605_v22  ;;  %v1930_v63 = vld [vmem:[#allocation2 + $0x54] sm:$0xff] }
 0x36a   : > { %7738 = vmatmul.msk.f32.gmra.mxu1 %vm1292_vm1, %v1719_v31  ;;  %v2141_v1 = vld [vmem:[#allocation2 + $0x4e] sm:$0xff] }
 0x370   : > { %7694 = vmatmul.msk.f32.gmra.mxu3 %vm1292_vm1, %v1604_v56 }
 0x371   : > { %7713 = vmatmul.msk.f32.gmra.mxu0 %vm1292_vm1, %v1606_v39 }
 0x372   : > { %7747 = vmatmul.msk.f32.vlgmr.msra.gmra.mxu1 %vm1292_vm1, %v1816_v57 }
 0x378   : > { %7695 = vmatmul.msk.f32.gmra.mxu3 %vm1292_vm1, %v1605_v22  ;;  %v1825_v22 = vld [vmem:[#allocation2 + $0x54] sm:$0x3f] }
 0x379   : > { %7714 = vmatmul.msk.f32.gmra.mxu0 %vm1292_vm1, %v1607_v18 }
 0x37a   : > { %7748 = vmatmul.msk.f32.gmra.mxu1 %vm1292_vm1, %v9899_v27 }
 0x380   : > { %7696 = vmatmul.msk.f32.gmra.mxu3 %vm1292_vm1, %v1606_v39 }
 0x381   : > { %7715 = vmatmul.msk.f32.gmra.mxu0 %vm1292_vm1, %v1608_v59 }
 0x382   : > { %7749 = vmatmul.msk.f32.gmra.mxu1 %vm1292_vm1, %v9905_v0 }
 0x388   : > { %7697 = vmatmul.msk.f32.gmra.mxu3 %vm1292_vm1, %v1607_v18 }
 0x389   : > { %7716 = vmatmul.msk.f32.gmra.mxu0 %vm1292_vm1, %v1609_v26 }
 0x38a   : > { %7750 = vmatmul.msk.f32.gmra.mxu1 %vm1292_vm1, %v9923_v14 }
 0x38d   : > { %v1468_v38 = vpop.f32.mrf.mxu0 }
 0x390   : > { %7698 = vmatmul.msk.f32.gmra.mxu3 %vm1292_vm1, %v1608_v59  ;;  %v2030_v59 = vld [vmem:[#allocation2 + $0x25] sm:$0xff] }
 0x391   : > { %7717 = vmatmul.msk.f32.gmra.mxu0 %vm1292_vm1, %v1610_v46 }
 0x392   : > { %7751 = vmatmul.msk.f32.gmra.mxu1 %vm1292_vm1, %v9953_v54 }
 0x396   : > { %v1471_v11 = vpop.f32.mrf.mxu0 }
 0x398   : > { %7699 = vmatmul.msk.f32.gmra.mxu3 %vm1292_vm1, %v1609_v26  ;;  %v2031_v26 = vld [vmem:[#allocation2 + $0x2d] sm:$0xff] }
 0x399   : > { %7718 = vmatmul.msk.f32.gmra.mxu0 %vm1292_vm1, %v1611_v21 }
 0x39a   : > { %7752 = vmatmul.msk.f32.gmra.mxu1 %vm1292_vm1, %v9983_v53 }
 0x39b   : > { %v1391_v37 = vpop.f32.mrf.mxu3 }
 0x39c   : > { %v9990_v33 = vadd.f32 %v1468_v38, %v1391_v37  ;;  %v2136_v38 = vld [vmem:[#allocation2 + $0x26] sm:$0xff] }
 0x39d   : > { %v2140_v37 = vld [vmem:[#allocation2 + $0x46] sm:$0xff] }
 0x39e   : > { %v1474_v61 = vpop.f32.mrf.mxu0 }
 0x39f   : > { %v9995_v23 = vpop.f32.mrf.mxu1 }
 0x3a0   : > { %7700 = vmatmul.msk.f32.gmra.mxu3 %vm1292_vm1, %v1610_v46  ;;  %v2137_v46 = vld [vmem:[#allocation2 + $0x2e] sm:$0xff] }
 0x3a1   : > { %7719 = vmatmul.msk.f32.gmra.mxu0 %vm1292_vm1, %v1612_v60 }
 0x3a2   : > { %7753 = vmatmul.msk.f32.gmra.mxu1 %vm1292_vm1, %v10002_v58 }
 0x3a3   : > { %v1394_v40 = vpop.f32.mrf.mxu3 }
 0x3a4   : > { %v10009_v56 = vadd.f32 %v1471_v11, %v1394_v40 }
 0x3a6   : > { %v1477_v16 = vpop.f32.mrf.mxu0 }
 0x3a7   : > { %v10011_v7 = vpop.f32.mrf.mxu1 }
 0x3a8   : > { %7701 = vmatmul.msk.f32.gmra.mxu3 %vm1292_vm1, %v1611_v21 }
 0x3a9   : > { %7720 = vmatmul.msk.f32.gmra.mxu0 %vm1292_vm1, %v1613_v51 }
 0x3aa   : > { %7754 = vmatmul.msk.f32.gmra.mxu1 %vm1292_vm1, %v10015_v3 }
 0x3ab   : > { %v1397_v55 = vpop.f32.mrf.mxu3 }
 0x3ac   : > { %v10019_v49 = vadd.f32 %v1474_v61, %v1397_v55  ;;  %v2142_v55 = vld [vmem:[#allocation2 + $0x56] sm:$0xff] }
 0x3ae   : > { %v1480_v5 = vpop.f32.mrf.mxu0 }
 0x3af   : > { %v10021_v35 = vpop.f32.mrf.mxu1 }
 0x3b0   : > { %7702 = vmatmul.msk.f32.gmra.mxu3 %vm1292_vm1, %v1507_v36 }
 0x3b1   : > { %7783 = vmatmul.msk.f32.vlgmr.msra.gmra.mxu0 %vm1292_vm1, %v2028_v17 }
 0x3b2   : > { %7755 = vmatmul.msk.f32.gmra.mxu1 %vm1292_vm1, %v10024_v32 }
 0x3b3   : > { %v1400_v43 = vpop.f32.mrf.mxu3 }
 0x3b4   : > { %v10029_v44 = vadd.f32 %v1477_v16, %v1400_v43  ;;  %v2279_v43 = vld [vmem:[%s13750_s5 + $0x78] sm:$0xff] }
 0x3b5   : > { %2280 = vmatpush.msrb.mxu2 %v2279_v43  ;;  %v7817_v43 = vld [vmem:[%s13750_s5 + $0xb0] sm:$0xff] }
 0x3b6   : > { %v1483_v30 = vpop.f32.mrf.mxu0 }
 0x3b7   : > { %v10031_v8 = vpop.f32.mrf.mxu1 }
 0x3b8   : > { %7765 = vmatmul.msk.f32.vlgmr.msra.gmra.mxu3 %vm1292_vm1, %v9899_v27 }
 0x3b9   : > { %7784 = vmatmul.msk.f32.gmra.mxu0 %vm1292_vm1, %v2029_v12  ;;  %v2278_v12 = vld [vmem:[%s13750_s5 + $0x70] sm:$0xff] }
 0x3ba   : > { %7756 = vmatmul.msk.f32.gmra.mxu1 %vm1292_vm1, %v1825_v22  ;;  %2281 = vmatpush.msrb.mxu2 %v2278_v12  ;;  %v7816_v12 = vld [vmem:[%s13750_s5 + $0xa8] sm:$0xff] }
 0x3bb   : > { %v1403_v31 = vpop.f32.mrf.mxu3 }
 0x3bc   : > { %v10037_v39 = vadd.f32 %v1480_v5, %v1403_v31  ;;  %v7825_v31 = vld [vmem:[%s13750_s5 + $0xf0] sm:$0xff] }
 0x3be   : > { %v10039_v57 = vpop.f32.mrf.mxu0 }
 0x3bf   : > { %v10041_v18 = vpop.f32.mrf.mxu1 }
 0x3c0   : > { %7766 = vmatmul.msk.f32.gmra.mxu3 %vm1292_vm1, %v9905_v0 }
 0x3c1   : > { %7785 = vmatmul.msk.f32.gmra.mxu0 %vm1292_vm1, %v2030_v59 }
 0x3c2   : > { %7801 = vmatmul.msk.f32.vlgmr.msrb.gmra.mxu1 %vm1292_vm1, %v2134_v62 }
 0x3c3   : > { %v1406_v27 = vpop.f32.mrf.mxu3 }
 0x3c4   : > { %v10047_v47 = vadd.f32 %v1483_v30, %v1406_v27  ;;  %v7826_v30 = vld [vmem:[%s13750_s5 + $0xf8] sm:$0xff]  ;;  %v2277_v27 = vld [vmem:[%s13750_s5 + $0x68] sm:$0xff] }
 0x3c5   : > { %2385 = vmatpush.msrb.mxu3 %v7826_v30  ;;  %2282 = vmatpush.msrb.mxu2 %v2277_v27  ;;  %v2269_v30 = vld [vmem:[%s13750_s5 + $0x28] sm:$0xff] }
 0x3c6   : > { %v10049_v48 = vpop.f32.mrf.mxu0 }
 0x3c7   : > { %v10051_v15 = vpop.f32.mrf.mxu1  ;;  %2386 = vmatpush.msrb.mxu3 %v7825_v31 }
 0x3c8   : > { %7767 = vmatmul.msk.f32.gmra.mxu3 %vm1292_vm1, %v9923_v14 }
 0x3c9   : > { %7786 = vmatmul.msk.f32.gmra.mxu0 %vm1292_vm1, %v2031_v26  ;;  %v7824_v26 = vld [vmem:[%s13750_s5 + $0xe8] sm:$0xff] }
 0x3ca   : > { %7802 = vmatmul.msk.f32.gmra.mxu1 %vm1292_vm1, %v2135_v2  ;;  %2387 = vmatpush.msrb.mxu3 %v7824_v26  ;;  %v2276_v2 = vld [vmem:[%s13750_s5 + $0x60] sm:$0xff] }
 0x3cb   : > { %v10057_v0 = vpop.f32.mrf.mxu3  ;;  %2283 = vmatpush.msrb.mxu2 %v2276_v2  ;;  %v2268_v26 = vld [vmem:[%s13750_s5 + $0x20] sm:$0xff] }
 0x3cc   : > { %v7815_v2 = vld [vmem:[%s13750_s5 + $0xa0] sm:$0xff] }
 0x3ce   : > { %v10059_v13 = vpop.f32.mrf.mxu0 }
 0x3cf   : > { %v10061_v10 = vpop.f32.mrf.mxu1 }
 0x3d0   : > { %7768 = vmatmul.msk.f32.gmra.mxu3 %vm1292_vm1, %v9953_v54 }
 0x3d1   : > { %7787 = vmatmul.msk.f32.gmra.mxu0 %vm1292_vm1, %v2032_v19  ;;  %v7823_v19 = vld [vmem:[%s13750_s5 + $0xe0] sm:$0xff] }
 0x3d2   : > { %7803 = vmatmul.msk.f32.gmra.mxu1 %vm1292_vm1, %v2136_v38  ;;  %2388 = vmatpush.msrb.mxu3 %v7823_v19  ;;  %v2275_v38 = vld [vmem:[%s13750_s5 + $0x58] sm:$0xff] }
 0x3d3   : > { %v10067_v14 = vpop.f32.mrf.mxu3  ;;  %2284 = vmatpush.msrb.mxu2 %v2275_v38  ;;  %v2267_v19 = vld [vmem:[%s13750_s5 + $0x18] sm:$0xff] }
 0x3d4   : > { %v7814_v38 = vld [vmem:[%s13750_s5 + $0x98] sm:$0xff] }
 0x3d6   : > { %v10069_v42 = vpop.f32.mrf.mxu0 }
 0x3d7   : > { %v10071_v41 = vpop.f32.mrf.mxu1 }
 0x3d8   : > { %7769 = vmatmul.msk.f32.gmra.mxu3 %vm1292_vm1, %v9983_v53 }
 0x3d9   : > { %7788 = vmatmul.msk.f32.gmra.mxu0 %vm1292_vm1, %v2033_v25  ;;  %v7822_v25 = vld [vmem:[%s13750_s5 + $0xd8] sm:$0xff] }
 0x3da   : > { %7804 = vmatmul.msk.f32.gmra.mxu1 %vm1292_vm1, %v2137_v46  ;;  %v2274_v46 = vld [vmem:[%s13750_s5 + $0x50] sm:$0xff]  ;;  %2389 = vmatpush.msrb.mxu3 %v7822_v25 }
 0x3db   : > { %v10077_v52 = vpop.f32.mrf.mxu3  ;;  %2285 = vmatpush.msrb.mxu2 %v2274_v46  ;;  %v2266_v46 = vld [vmem:[%s13750_s5 + $0x10] sm:$0xff] }
 0x3de   : > { %v10079_v54 = vpop.f32.mrf.mxu0 }
 0x3df   : > { %v10081_v45 = vpop.f32.mrf.mxu1 }
 0x3e0   : > { %7770 = vmatmul.msk.f32.gmra.mxu3 %vm1292_vm1, %v10002_v58  ;;  %v2037_v58 = vld [vmem:[#allocation2 + $0x5d] sm:$0x3f] }
 0x3e1   : > { %7789 = vmatmul.msk.f32.gmra.mxu0 %vm1292_vm1, %v2034_v50 }
 0x3e2   : > { %7805 = vmatmul.msk.f32.gmra.mxu1 %vm1292_vm1, %v2138_v6  ;;  %v7821_v6 = vld [vmem:[%s13750_s5 + $0xd0] sm:$0xff] }
 0x3e3   : > { %v10087_v34 = vpop.f32.mrf.mxu3  ;;  %2390 = vmatpush.msrb.mxu3 %v7821_v6  ;;  %v7813_v6 = vld [vmem:[%s13750_s5 + $0x90] sm:$0xff] }
 0x3e6   : > { %v10089_v11 = vpop.f32.mrf.mxu0 }
 0x3e7   : > { %v10091_v20 = vpop.f32.mrf.mxu1 }
 0x3e8   : > { %7771 = vmatmul.msk.f32.gmra.mxu3 %vm1292_vm1, %v10015_v3  ;;  %v1931_v3 = vld [vmem:[#allocation2 + $0x5c] sm:$0x3f] }
 0x3e9   : > { %7790 = vmatmul.msk.f32.gmra.mxu0 %vm1292_vm1, %v2035_v29 }
 0x3ea   : > { %7806 = vmatmul.msk.f32.gmra.mxu1 %vm1292_vm1, %v2139_v24 }
 0x3eb   : > { %v10097_v21 = vpop.f32.mrf.mxu3 }
 0x3ee   : > { %v10099_v28 = vpop.f32.mrf.mxu0 }
 0x3ef   : > { %v10101_v53 = vpop.f32.mrf.mxu1 }
 0x3f0   : > { %7772 = vmatmul.msk.f32.gmra.mxu3 %vm1292_vm1, %v10024_v32  ;;  %v2143_v32 = vld [vmem:[#allocation2 + $0x5e] sm:$0x3f] }
 0x3f1   : > { %7791 = vmatmul.msk.f32.gmra.mxu0 %vm1292_vm1, %v2036_v4  ;;  %v2273_v4 = vld [vmem:[%s13750_s5 + $0x48] sm:$0xff] }
 0x3f2   : > { %7807 = vmatmul.msk.f32.gmra.mxu1 %vm1292_vm1, %v2140_v37  ;;  %v7820_v37 = vld [vmem:[%s13750_s5 + $0xc8] sm:$0xff]  ;;  %2286 = vmatpush.msrb.mxu2 %v2273_v4 }
 0x3f3   : > { %v10107_v9 = vpop.f32.mrf.mxu3  ;;  %2391 = vmatpush.msrb.mxu3 %v7820_v37  ;;  %v2265_v4 = vld [vmem:[%s13750_s5 + $0x8] sm:$0xff] }
 0x3f6   : > { %v10109_v61 = vpop.f32.mrf.mxu0 }
 0x3f7   : > { %v10111_v60 = vpop.f32.mrf.mxu1 }
 0x3f8   : > { %7773 = vmatmul.msk.f32.gmra.mxu3 %vm1292_vm1, %v1930_v63  ;;  %v2272_v63 = vld [vmem:[%s13750_s5 + $0x40] sm:$0xff] }
 0x3f9   : > { %7792 = vmatmul.msk.f32.gmra.mxu0 %vm1292_vm1, %v2037_v58  ;;  %v7819_v58 = vld [vmem:[%s13750_s5 + $0xc0] sm:$0xff]  ;;  %2287 = vmatpush.msrb.mxu2 %v2272_v63  ;;  %v7812_v63 = vld [vmem:[%s13750_s5 + $0x88] sm:$0xff] }
 0x3fa   : > { %7808 = vmatmul.msk.f32.gmra.mxu1 %vm1292_vm1, %v2141_v1  ;;  %2392 = vmatpush.msrb.mxu3 %v7819_v58  ;;  %v2271_v1 = vld [vmem:[%s13750_s5 + $0x38] sm:$0xff] }
 0x3fb   : > { %v10116_v40 = vpop.f32.mrf.mxu3  ;;  %2288 = vmatpush.msrb.mxu2 %v2271_v1  ;;  %v2264_v1 = vld [vmem:[%s13750_s5] sm:$0xff] }
 0x3fe   : > { %v10118_v16 = vpop.f32.mrf.mxu0 }
 0x3ff   : > { %v10120_v51 = vpop.f32.mrf.mxu1 }
 0x400   : > { %7774 = vmatmul.msk.f32.gmra.mxu3 %vm1292_vm1, %v1931_v3  ;;  %v7818_v3 = vld [vmem:[%s13750_s5 + $0xb8] sm:$0xff] }
 0x401   : > { %2393 = vmatpush.msrb.mxu3 %v7818_v3  ;;  %v7811_v3 = vld [vmem:[%s13750_s5 + $0x80] sm:$0xff] }
 0x402   : > { %7809 = vmatmul.msk.f32.gmra.mxu1 %vm1292_vm1, %v2142_v55  ;;  %v2270_v55 = vld [vmem:[%s13750_s5 + $0x30] sm:$0xff] }
 0x403   : > { %v10124_v5 = vpop.f32.mrf.mxu3  ;;  %2289 = vmatpush.msrb.mxu2 %v2270_v55  ;;  %2394 = vmatpush.msrb.mxu3 %v7817_v43 }
 0x405   : > { %2290 = vmatpush.msrb.mxu2 %v2269_v30  ;;  %2395 = vmatpush.msrb.mxu3 %v7816_v12  ;;  %v1594_v30 = vadd.f32 %v10097_v21, %v9990_v33 }
 0x406   : > { %v10126_v36 = vpop.f32.mrf.mxu0 }
 0x407   : > { %v10128_v17 = vpop.f32.mrf.mxu1  ;;  %2291 = vmatpush.msrb.mxu2 %v2268_v26  ;;  %2396 = vmatpush.msrb.mxu3 %v7815_v2  ;;  %v1700_v26 = vadd.f32 %v10079_v54, %v1594_v30  ;;  %v1596_v54 = vadd.f32 %v10116_v40, %v10019_v49  ;;  %v1597_v40 = vadd.f32 %v10124_v5, %v10029_v44 }
 0x409   : > { %2292 = vmatpush.msrb.mxu2 %v2267_v19  ;;  %2397 = vmatpush.msrb.mxu3 %v7814_v38  ;;  %v1806_v38 = vadd.f32 %v9995_v23, %v1700_v26  ;;  %v10273_v23 = vld [vmem:[%s13749_s4] ss:$0 sm:$0xff] }
 0x40a   : > { %7810 = vmatmul.msk.f32.gmra.mxu1 %vm1292_vm1, %v2143_v32 }
 0x40b   : > { %v10140_v22 = vpop.f32.mrf.mxu3  ;;  %2293 = vmatpush.msrb.mxu2 %v2266_v46  ;;  %2398 = vmatpush.msrb.mxu3 %v7813_v6  ;;  %v1595_v46 = vadd.f32 %v10107_v9, %v10009_v56 }
 0x40c   : > { %v1598_v5 = vadd.f32 %v10140_v22, %v10037_v39 }
 0x40d   : > { %2294 = vmatpush.msrb.mxu2 %v2265_v4  ;;  %2399 = vmatpush.msrb.mxu3 %v7812_v63  ;;  %v1912_v4 = vadd.f32 %v10101_v53, %v1806_v38  ;;  %v1701_v63 = vadd.f32 %v10089_v11, %v1595_v46  ;;  %v1702_v11 = vadd.f32 %v10099_v28, %v1596_v54 }
 0x40e   : > { %v10145_v59 = vpop.f32.mrf.mxu0 }
 0x40f   : > { %v10147_v62 = vpop.f32.mrf.mxu1  ;;  %2295 = vmatpush.msrb.mxu2 %v2264_v1  ;;  %2400 = vmatpush.msrb.mxu3 %v7811_v3  ;;  %v1807_v21 = vadd.f32 %v10011_v7, %v1701_v63  ;;  %v1808_v49 = vadd.f32 %v10021_v35, %v1702_v11 }
 0x411   : > { %v1913_v53 = vadd.f32 %v10111_v60, %v1807_v21  ;;  %v1914_v28 = vadd.f32 %v10120_v51, %v1808_v49 }
 0x413   : > { %v10170_v50 = vpop.f32.mrf.mxu3 }
 0x414   : > { %v1599_v22 = vadd.f32 %v10170_v50, %v10047_v47  ;;  %v1487_v47 = vadd.f32 %v10039_v57, %v10057_v0 }
 0x416   : > { %v10175_v29 = vpop.f32.mrf.mxu0 }
 0x417   : > { %v10177_v24 = vpop.f32.mrf.mxu1 }
 0x41b   : > { %v10200_v32 = vpop.f32.mrf.mxu3 }
 0x41c   : > { %v1600_v57 = vadd.f32 %v10200_v32, %v1487_v47 }
 0x41e   : > { %v10211_v31 = vpop.f32.mrf.mxu0  ;;  %v1706_v32 = vadd.f32 %v10145_v59, %v1600_v57  ;;  %v10356_v59 = vld [vmem:[%s13750_s5 + $0x150] sm:$0xff] }
 0x41f   : > { %v10213_v27 = vpop.f32.mrf.mxu1 }
 0x423   : > { %v10227_v25 = vpop.f32.mrf.mxu3 }
 0x426   : > { %v10238_v37 = vpop.f32.mrf.mxu0 }
 0x427   : > { %v10243_v58 = vpop.f32.mrf.mxu1 }
 0x42b   : > { %v10251_v55 = vpop.f32.mrf.mxu3 }
 0x42e   : > { %v2094_v43 = vpop.f32.mrf.mxu0 }
 0x42f   : > { %v10255_v12 = vpop.f32.mrf.mxu1 }
 0x433   : > { %v10258_v2 = vpop.f32.mrf.mxu3 }
 0x436   : > { %v2097_v19 = vpop.f32.mrf.mxu0 }
 0x437   : > { %v10263_v6 = vpop.f32.mrf.mxu1 }
 0x43b   : > { %v1988_v1 = vpop.f32.mrf.mxu3 }
 0x43c   : > { %v2018_v33 = vadd.f32 %v1988_v1, %v1912_v4  ;;  %v1703_v1 = vadd.f32 %v10109_v61, %v1597_v40 }
 0x43e   : > { %v2124_v3 = vadd.f32 %v2094_v43, %v2018_v33  ;;  %v2100_v56 = vpop.f32.mrf.mxu0  ;;  %v1809_v44 = vadd.f32 %v10031_v8, %v1703_v1  ;;  %v10337_v1 = vld [vmem:[%s13750_s5 + $0x160] sm:$0xff] }
 0x43f   : > { %v2200_v30 = vpop.f32.mrf.mxu1 }
 0x440   : > { %v2230_v9 = vadd.f32 %v2200_v30, %v2124_v3  ;;  %v1915_v61 = vadd.f32 %v10128_v17, %v1809_v44  ;;  %v1704_v30 = vadd.f32 %v10118_v16, %v1598_v5  ;;  %v1490_v44 = vadd.f32 %v10049_v48, %v10067_v14 }
 0x442   : > { %v2244_v26 = vadd.f32 %v10273_v23, %v2230_v9  ;;  %v1810_v39 = vadd.f32 %v10041_v18, %v1704_v30  ;;  %v10311_v18 = vld [vmem:[%s13750_s5 + $0x178] sm:$0xff] }
 0x443   : > { %v1991_v38 = vpop.f32.mrf.mxu3  ;;  %8591 = vmatpush.msra.mxu2 %v10311_v18 }
 0x444   : > { %v10278_v7 = vmax.f32 %v2244_v26, 0.0  ;;  %v2019_v46 = vadd.f32 %v1991_v38, %v1913_v53  ;;  %v1916_v16 = vadd.f32 %v10147_v62, %v1810_v39  ;;  %v10326_v62 = vld [vmem:[%s13750_s5 + $0x168] sm:$0xff]  ;;  %v1493_v39 = vadd.f32 %v10059_v13, %v10077_v52 }
 0x446   : > { %v2125_v43 = vadd.f32 %v2097_v19, %v2019_v46  ;;  %2296 = vmatmul.f32.vlgmr.msrb.gmra.mxu2 %v10278_v7  ;;  %2401 = vmatmul.f32.vlgmr.msrb.gmra.mxu3 %v10278_v7  ;;  %v2103_v63 = vpop.f32.mrf.mxu0  ;;  %v1705_v46 = vadd.f32 %v10126_v36, %v1599_v22  ;;  %v10321_v36 = vld [vmem:[%s13750_s5 + $0x170] sm:$0xff] }
 0x447   : > { %v2203_v4 = vpop.f32.mrf.mxu1  ;;  %8592 = vmatpush.msra.mxu2 %v10321_v36 }
 0x448   : > { %v2231_v60 = vadd.f32 %v2203_v4, %v2125_v43 }
 0x449   : > { %8593 = vmatpush.msra.mxu2 %v10326_v62 }
 0x44a   : > { %v2245_v33 = vadd.f32 %v10273_v23, %v2231_v60  ;;  %v1811_v60 = vadd.f32 %v10051_v15, %v1705_v46 }
 0x44b   : > { %v1994_v21 = vpop.f32.mrf.mxu3  ;;  %8594 = vmatpush.msra.mxu2 %v10337_v1 }
 0x44c   : > { %v10288_v54 = vmax.f32 %v2245_v33, 0.0  ;;  %v2020_v35 = vadd.f32 %v1994_v21, %v1914_v28  ;;  %v1917_v15 = vadd.f32 %v10177_v24, %v1811_v60  ;;  %v10346_v21 = vld [vmem:[%s13750_s5 + $0x158] sm:$0xff]  ;;  %v10361_v24 = vld [vmem:[%s13750_s5 + $0x148] sm:$0xff]  ;;  %v1496_v60 = vadd.f32 %v10069_v42, %v10087_v34  ;;  %v10441_v42 = vld [vmem:[%s13750_s5 + $0x100] sm:$0xff] }
 0x44d   : > { %8595 = vmatpush.msra.mxu2 %v10346_v21 }
 0x44e   : > { %v2126_v19 = vadd.f32 %v2100_v56, %v2020_v35  ;;  %2299 = vmatmul.f32.gmra.mxu2 %v10288_v54  ;;  %2404 = vmatmul.f32.gmra.mxu3 %v10288_v54  ;;  %v2106_v53 = vpop.f32.mrf.mxu0 }
 0x44f   : > { %v2206_v3 = vpop.f32.mrf.mxu1  ;;  %8596 = vmatpush.msra.mxu2 %v10356_v59 }
 0x450   : > { %v2232_v51 = vadd.f32 %v2206_v3, %v2126_v19  ;;  %v1812_v3 = vadd.f32 %v10061_v10, %v1706_v32 }
 0x451   : > { %8597 = vmatpush.msra.mxu2 %v10361_v24 }
 0x452   : > { %v2246_v9 = vadd.f32 %v10273_v23, %v2232_v51  ;;  %v1601_v51 = vadd.f32 %v10227_v25, %v1490_v44  ;;  %v1918_v10 = vadd.f32 %v10213_v27, %v1812_v3  ;;  %v10396_v27 = vld [vmem:[%s13750_s5 + $0x128] sm:$0xff] }
 0x453   : > { %v1997_v11 = vpop.f32.mrf.mxu3 }
 0x454   : > { %v10298_v26 = vmax.f32 %v2246_v9, 0.0  ;;  %v2021_v8 = vadd.f32 %v1997_v11, %v1915_v61  ;;  %v10372_v9 = vld [vmem:[%s13750_s5 + $0x140] sm:$0xff]  ;;  %v1707_v25 = vadd.f32 %v10175_v29, %v1601_v51  ;;  %v10381_v11 = vld [vmem:[%s13750_s5 + $0x138] sm:$0xff]  ;;  %v10391_v29 = vld [vmem:[%s13750_s5 + $0x130] sm:$0xff] }
 0x455   : > { %8598 = vmatpush.msra.mxu2 %v10372_v9 }
 0x456   : > { %v2127_v56 = vadd.f32 %v2103_v63, %v2021_v8  ;;  %2302 = vmatmul.f32.gmra.mxu2 %v10298_v26  ;;  %2407 = vmatmul.f32.gmra.mxu3 %v10298_v26  ;;  %v2109_v4 = vpop.f32.mrf.mxu0 }
 0x457   : > { %v2209_v38 = vpop.f32.mrf.mxu1  ;;  %8599 = vmatpush.msra.mxu2 %v10381_v11 }
 0x458   : > { %v2233_v17 = vadd.f32 %v2209_v38, %v2127_v56  ;;  %v1813_v38 = vadd.f32 %v10071_v41, %v1707_v25  ;;  %v10412_v41 = vld [vmem:[%s13750_s5 + $0x118] sm:$0xff] }
 0x459   : > { %8600 = vmatpush.msra.mxu2 %v10391_v29 }
 0x45a   : > { %v2247_v49 = vadd.f32 %v10273_v23, %v2233_v17  ;;  %v1602_v17 = vadd.f32 %v10251_v55, %v1493_v39 }
 0x45b   : > { %v2000_v40 = vpop.f32.mrf.mxu3  ;;  %8601 = vmatpush.msra.mxu2 %v10396_v27 }
 0x45c   : > { %v10316_v50 = vmax.f32 %v2247_v49, 0.0  ;;  %v2022_v43 = vadd.f32 %v2000_v40, %v1916_v16  ;;  %v10406_v16 = vld [vmem:[%s13750_s5 + $0x120] sm:$0xff]  ;;  %v1919_v49 = vadd.f32 %v10243_v58, %v1813_v38  ;;  %v1708_v40 = vadd.f32 %v10211_v31, %v1602_v17  ;;  %v10431_v31 = vld [vmem:[%s13750_s5 + $0x108] sm:$0xff]  ;;  %v8065_v38 = vld [vmem:[%s13750_s5 + $0x1f0] sm:$0xff] }
 0x45d   : > { %8602 = vmatpush.msra.mxu2 %v10406_v16  ;;  %v8063_v17 = vld [vmem:[%s13750_s5 + $0x1e0] sm:$0xff] }
 0x45e   : > { %v2128_v0 = vadd.f32 %v2106_v53, %v2022_v43  ;;  %2305 = vmatmul.f32.gmra.mxu2 %v10316_v50  ;;  %2410 = vmatmul.f32.gmra.mxu3 %v10316_v50  ;;  %v2112_v61 = vpop.f32.mrf.mxu0  ;;  %v10421_v43 = vld [vmem:[%s13750_s5 + $0x110] sm:$0xff]  ;;  %v1814_v58 = vadd.f32 %v10081_v45, %v1708_v40 }
 0x45f   : > { %v2212_v63 = vpop.f32.mrf.mxu1  ;;  %8603 = vmatpush.msra.mxu2 %v10412_v41  ;;  %v8057_v40 = vld [vmem:[%s13750_s5 + $0x1b0] sm:$0xff] }
 0x460   : > { %v2234_v28 = vadd.f32 %v2212_v63, %v2128_v0  ;;  %v1603_v63 = vadd.f32 %v10258_v2, %v1496_v60  ;;  %v1920_v45 = vadd.f32 %v10255_v12, %v1814_v58  ;;  %v8054_v60 = vld [vmem:[%s13750_s5 + $0x198] sm:$0xff]  ;;  %v8052_v58 = vld [vmem:[%s13750_s5 + $0x188] sm:$0xff] }
 0x461   : > { %8604 = vmatpush.msra.mxu2 %v10421_v43 }
 0x462   : > { %v2248_v33 = vadd.f32 %v10273_v23, %v2234_v28  ;;  %v1709_v2 = vadd.f32 %v10238_v37, %v1603_v63  ;;  %v8051_v63 = vld [vmem:[%s13750_s5 + $0x180] sm:$0xff] }
 0x463   : > { %v2003_v35 = vpop.f32.mrf.mxu3  ;;  %8605 = vmatpush.msra.mxu2 %v10431_v31 }
 0x464   : > { %v10351_v5 = vmax.f32 %v2248_v33, 0.0  ;;  %v2023_v19 = vadd.f32 %v2003_v35, %v1917_v15  ;;  %v1815_v3 = vadd.f32 %v10091_v20, %v1709_v2 }
 0x465   : > { %8606 = vmatpush.msra.mxu2 %v10441_v42 }
 0x466   : > { %v2129_v48 = vadd.f32 %v2109_v4, %v2023_v19  ;;  %2308 = vmatmul.f32.gmra.mxu2 %v10351_v5  ;;  %2413 = vmatmul.f32.gmra.mxu3 %v10351_v5  ;;  %v2115_v55 = vpop.f32.mrf.mxu0  ;;  %v1921_v12 = vadd.f32 %v10263_v6, %v1815_v3  ;;  %v8066_v6 = vld [vmem:[%s13750_s5 + $0x1f8] sm:$0xff] }
 0x467   : > { %v2215_v14 = vpop.f32.mrf.mxu1  ;;  %3438 = vmatpush.msrb.mxu2 %v8066_v6  ;;  %v7835_v6 = vld [vmem:[%s13755_s10 + $0x188] sm:$0xff] }
 0x468   : > { %v2235_v30 = vadd.f32 %v2215_v14, %v2129_v48 }
 0x469   : > { %3439 = vmatpush.msrb.mxu2 %v8065_v38  ;;  %v2335_v38 = vld [vmem:[%s13755_s10 + $0x40] sm:$0xff] }
 0x46a   : > { %v2249_v53 = vadd.f32 %v10273_v23, %v2235_v30 }
 0x46b   : > { %v2006_v8 = vpop.f32.mrf.mxu3 }
 0x46c   : > { %v10386_v22 = vmax.f32 %v2249_v53, 0.0  ;;  %v2024_v56 = vadd.f32 %v2006_v8, %v1918_v10 }
 0x46e   : > { %v2130_v13 = vadd.f32 %v2112_v61, %v2024_v56  ;;  %2311 = vmatmul.f32.gmra.mxu2 %v10386_v22  ;;  %2416 = vmatmul.f32.gmra.mxu3 %v10386_v22  ;;  %v2118_v33 = vpop.f32.mrf.mxu0 }
 0x46f   : > { %v2218_v52 = vpop.f32.mrf.mxu1 }
 0x470   : > { %v2236_v46 = vadd.f32 %v2218_v52, %v2130_v13  ;;  %v8062_v13 = vld [vmem:[%s13750_s5 + $0x1d8] sm:$0xff]  ;;  %v8061_v52 = vld [vmem:[%s13750_s5 + $0x1d0] sm:$0xff] }
 0x472   : > { %v2250_v47 = vadd.f32 %v10273_v23, %v2236_v46  ;;  %v8060_v46 = vld [vmem:[%s13750_s5 + $0x1c8] sm:$0xff] }
 0x473   : > { %v2009_v4 = vpop.f32.mrf.mxu3 }
 0x474   : > { %v10426_v57 = vmax.f32 %v2250_v47, 0.0  ;;  %v2025_v0 = vadd.f32 %v2009_v4, %v1919_v49  ;;  %v8058_v49 = vld [vmem:[%s13750_s5 + $0x1b8] sm:$0xff]  ;;  %v8056_v47 = vld [vmem:[%s13750_s5 + $0x1a8] sm:$0xff]  ;;  %v8055_v4 = vld [vmem:[%s13750_s5 + $0x1a0] sm:$0xff] }
 0x476   : > { %v2131_v28 = vadd.f32 %v2115_v55, %v2025_v0  ;;  %2314 = vmatmul.f32.gmra.mxu2 %v10426_v57  ;;  %2419 = vmatmul.f32.gmra.mxu3 %v10426_v57  ;;  %v2121_v25 = vpop.f32.mrf.mxu0  ;;  %v8059_v55 = vld [vmem:[%s13750_s5 + $0x1c0] sm:$0xff]  ;;  %v8053_v0 = vld [vmem:[%s13750_s5 + $0x190] sm:$0xff] }
 0x477   : > { %v2221_v15 = vpop.f32.mrf.mxu1 }
 0x478   : > { %v2237_v34 = vadd.f32 %v2221_v15, %v2131_v28 }
 0x47a   : > { %v2251_v32 = vadd.f32 %v10273_v23, %v2237_v34 }
 0x47b   : > { %v2012_v35 = vpop.f32.mrf.mxu3 }
 0x47c   : > { %v10448_v44 = vmax.f32 %v2251_v32, 0.0  ;;  %v2026_v19 = vadd.f32 %v2012_v35, %v1920_v45 }
 0x47e   : > { %v2132_v51 = vadd.f32 %v2118_v33, %v2026_v19  ;;  %2317 = vmatmul.f32.gmra.mxu2 %v10448_v44  ;;  %2422 = vmatmul.f32.gmra.mxu3 %v10448_v44 }
 0x47f   : > { %v2224_v48 = vpop.f32.mrf.mxu1 }
 0x480   : > { %v2238_v14 = vadd.f32 %v2224_v48, %v2132_v51 }
 0x482   : > { %v2252_v37 = vadd.f32 %v10273_v23, %v2238_v14 }
 0x483   : > { %v2015_v61 = vpop.f32.mrf.mxu3 }
 0x484   : > { %v10455_v30 = vmax.f32 %v2252_v37, 0.0  ;;  %v2027_v10 = vadd.f32 %v2015_v61, %v1921_v12 }
 0x486   : > { %v2133_v53 = vadd.f32 %v2121_v25, %v2027_v10  ;;  %2320 = vmatmul.f32.gmra.mxu2 %v10455_v30  ;;  %2425 = vmatmul.f32.gmra.mxu3 %v10455_v30 }
 0x487   : > { %v2227_v20 = vpop.f32.mrf.mxu1 }
 0x488   : > { %v2239_v8 = vadd.f32 %v2227_v20, %v2133_v53  ;;  %v2328_v20 = vld [vmem:[%s13755_s10 + $0x8] sm:$0xff] }
 0x48a   : > { %v2253_v39 = vadd.f32 %v10273_v23, %v2239_v8  ;;  %v8064_v23 = vld [vmem:[%s13750_s5 + $0x1e8] sm:$0xff]  ;;  %v2329_v8 = vld [vmem:[%s13755_s10 + $0x10] sm:$0xff] }
 0x48b   : > { %3440 = vmatpush.msrb.mxu2 %v8064_v23 }
 0x48c   : > { %v10460_v56 = vmax.f32 %v2253_v39, 0.0  ;;  %v2334_v39 = vld [vmem:[%s13755_s10 + $0x38] sm:$0xff] }
 0x48d   : > { %3441 = vmatpush.msrb.mxu2 %v8063_v17  ;;  %v7836_v17 = vld [vmem:[%s13755_s10 + $0x190] sm:$0xff] }
 0x48e   : > { %2323 = vmatmul.f32.gmra.mxu2 %v10460_v56  ;;  %2428 = vmatmul.f32.gmra.mxu3 %v10460_v56 }
 0x48f   : > { %3442 = vmatpush.msrb.mxu2 %v8062_v13  ;;  %v2336_v13 = vld [vmem:[%s13755_s10 + $0x48] sm:$0xff] }
 0x491   : > { %3443 = vmatpush.msrb.mxu2 %v8061_v52 }
 0x493   : > { %3444 = vmatpush.msrb.mxu2 %v8060_v46  ;;  %v7837_v46 = vld [vmem:[%s13755_s10 + $0x198] sm:$0xff] }
 0x495   : > { %3445 = vmatpush.msrb.mxu2 %v8059_v55  ;;  %v2337_v55 = vld [vmem:[%s13755_s10 + $0x50] sm:$0xff] }
 0x496   : > { %3047 = vmatmul.f32.vlgmr.msra.gmra.mxu2 %v10298_v26 }
 0x497   : > { %3446 = vmatpush.msrb.mxu2 %v8058_v49 }
 0x499   : > { %3447 = vmatpush.msrb.mxu2 %v8057_v40  ;;  %v7838_v40 = vld [vmem:[%s13755_s10 + $0x1a0] sm:$0xff] }
 0x49b   : > { %3448 = vmatpush.msrb.mxu2 %v8056_v47  ;;  %v2338_v47 = vld [vmem:[%s13755_s10 + $0x58] sm:$0xff] }
 0x49d   : > { %3449 = vmatpush.msrb.mxu2 %v8055_v4 }
 0x49e   : > { %3050 = vmatmul.f32.gmra.mxu2 %v10316_v50 }
 0x49f   : > { %3450 = vmatpush.msrb.mxu2 %v8054_v60  ;;  %v7839_v60 = vld [vmem:[%s13755_s10 + $0x1a8] sm:$0xff] }
 0x4a1   : > { %3451 = vmatpush.msrb.mxu2 %v8053_v0  ;;  %v2339_v0 = vld [vmem:[%s13755_s10 + $0x60] sm:$0xff] }
 0x4a3   : > { %3452 = vmatpush.msrb.mxu2 %v8052_v58 }
 0x4a5   : > { %3453 = vmatpush.msrb.mxu2 %v8051_v63  ;;  %v7840_v63 = vld [vmem:[%s13755_s10 + $0x1b0] sm:$0xff] }
 0x4a6   : > { %3053 = vmatmul.f32.gmra.mxu2 %v10351_v5 }
 0x4ae   : > { %3056 = vmatmul.f32.gmra.mxu2 %v10386_v22 }
 0x4b6   : > { %3059 = vmatmul.f32.gmra.mxu2 %v10426_v57 }
 0x4be   : > { %3062 = vmatmul.f32.gmra.mxu2 %v10448_v44 }
 0x4c6   : > { %3065 = vmatmul.f32.gmra.mxu2 %v10455_v30 }
 0x4c9   : > { %v2297_v28 = vpop.f32.mrf.mxu2  ;;  %v2402_v15 = vpop.f32.mrf.mxu3 }
 0x4ce   : > { %3068 = vmatmul.f32.gmra.mxu2 %v10460_v56 }
 0x4d1   : > { %v2300_v34 = vpop.f32.mrf.mxu2  ;;  %v2405_v45 = vpop.f32.mrf.mxu3 }
 0x4d6   : > { %3454 = vmatmul.f32.vlgmr.msrb.gmra.mxu2 %v10278_v7 }
 0x4d9   : > { %v2303_v2 = vpop.f32.mrf.mxu2  ;;  %v2408_v32 = vpop.f32.mrf.mxu3 }
 0x4de   : > { %3457 = vmatmul.f32.gmra.mxu2 %v10288_v54 }
 0x4e1   : > { %v2306_v33 = vpop.f32.mrf.mxu2  ;;  %v2411_v35 = vpop.f32.mrf.mxu3 }
 0x4e6   : > { %3460 = vmatmul.f32.gmra.mxu2 %v10298_v26 }
 0x4e9   : > { %v2309_v19 = vpop.f32.mrf.mxu2  ;;  %v2414_v3 = vpop.f32.mrf.mxu3 }
 0x4ee   : > { %3463 = vmatmul.f32.gmra.mxu2 %v10316_v50 }
 0x4f1   : > { %v2312_v51 = vpop.f32.mrf.mxu2  ;;  %v2417_v48 = vpop.f32.mrf.mxu3 }
 0x4f6   : > { %3466 = vmatmul.f32.gmra.mxu2 %v10351_v5 }
 0x4f9   : > { %v2315_v14 = vpop.f32.mrf.mxu2  ;;  %v2420_v12 = vpop.f32.mrf.mxu3 }
 0x4fe   : > { %3469 = vmatmul.f32.gmra.mxu2 %v10386_v22  ;;  %v7827_v22 = vld [vmem:[%s13755_s10 + $0x148] sm:$0xff] }
 0x501   : > { %v2318_v37 = vpop.f32.mrf.mxu2  ;;  %v2423_v61 = vpop.f32.mrf.mxu3 }
 0x506   : > { %3472 = vmatmul.f32.gmra.mxu2 %v10426_v57  ;;  %v2327_v57 = vld [vmem:[%s13755_s10] sm:$0xff] }
 0x509   : > { %v2321_v10 = vpop.f32.mrf.mxu2  ;;  %v2426_v25 = vpop.f32.mrf.mxu3 }
 0x50e   : > { %3475 = vmatmul.f32.gmra.mxu2 %v10448_v44 }
 0x511   : > { %v2324_v26 = vpop.f32.mrf.mxu2  ;;  %v2429_v53 = vpop.f32.mrf.mxu3 }
 0x512   : > { %7868 = vmatpush.msk.msrb.mxu0 %vm2598_vm3, %v2429_v53  ;;  %7910 = vmatpush.msk.msra.mxu1 %vm2598_vm3, %v2324_v26  ;;  %v7846_v26 = vld [vmem:[%s13755_s10 + $0x1e0] sm:$0xff]  ;;  %v2346_v53 = vld [vmem:[%s13755_s10 + $0x98] sm:$0xff] }
 0x514   : > { %2609 = vmatpush.msrb.mxu0 %v2426_v25  ;;  %2875 = vmatpush.msra.mxu1 %v2321_v10  ;;  %v2345_v10 = vld [vmem:[%s13755_s10 + $0x90] sm:$0xff] }
 0x516   : > { %2610 = vmatpush.msrb.mxu0 %v2423_v61  ;;  %2876 = vmatpush.msra.mxu1 %v2318_v37  ;;  %v7845_v61 = vld [vmem:[%s13755_s10 + $0x1d8] sm:$0xff] }
 0x517   : > { %3478 = vmatmul.f32.gmra.mxu2 %v10455_v30  ;;  %v7828_v30 = vld [vmem:[%s13755_s10 + $0x150] sm:$0xff] }
 0x518   : > { %2611 = vmatpush.msrb.mxu0 %v2420_v12  ;;  %2877 = vmatpush.msra.mxu1 %v2315_v14  ;;  %v7844_v14 = vld [vmem:[%s13755_s10 + $0x1d0] sm:$0xff]  ;;  %v2344_v12 = vld [vmem:[%s13755_s10 + $0x88] sm:$0xff] }
 0x519   : > { %v10531_v50 = vpop.f32.mrf.mxu2 }
 0x51a   : > { %2612 = vmatpush.msrb.mxu0 %v2417_v48  ;;  %2878 = vmatpush.msra.mxu1 %v2312_v51  ;;  %v2343_v51 = vld [vmem:[%s13755_s10 + $0x80] sm:$0xff] }
 0x51c   : > { %2613 = vmatpush.msrb.mxu0 %v2414_v3  ;;  %2879 = vmatpush.msra.mxu1 %v2309_v19  ;;  %v7843_v3 = vld [vmem:[%s13755_s10 + $0x1c8] sm:$0xff] }
 0x51e   : > { %2614 = vmatpush.msrb.mxu0 %v2411_v35  ;;  %2880 = vmatpush.msra.mxu1 %v2306_v33  ;;  %v2342_v33 = vld [vmem:[%s13755_s10 + $0x78] sm:$0xff] }
 0x51f   : > { %3481 = vmatmul.f32.gmra.mxu2 %v10460_v56 }
 0x520   : > { %2615 = vmatpush.msrb.mxu0 %v2408_v32  ;;  %2881 = vmatpush.msra.mxu1 %v2303_v2  ;;  %v7842_v32 = vld [vmem:[%s13755_s10 + $0x1c0] sm:$0xff] }
 0x521   : > { %v10534_v5 = vpop.f32.mrf.mxu2 }
 0x522   : > { %2616 = vmatpush.msrb.mxu0 %v2405_v45  ;;  %2882 = vmatpush.msra.mxu1 %v2300_v34  ;;  %v7841_v34 = vld [vmem:[%s13755_s10 + $0x1b8] sm:$0xff]  ;;  %v2341_v45 = vld [vmem:[%s13755_s10 + $0x70] sm:$0xff] }
 0x524   : > { %2617 = vmatpush.msrb.mxu0 %v2402_v15  ;;  %2883 = vmatpush.msra.mxu1 %v2297_v28  ;;  %v2340_v28 = vld [vmem:[%s13755_s10 + $0x68] sm:$0xff] }
 0x525   : > { %7869 = vmatmul.msk.f32.vlgmr.msrb.gmra.mxu0 %vm2474_vm4, %v7827_v22  ;;  %7911 = vmatmul.msk.f32.vlgmr.msra.gmra.mxu1 %vm2474_vm4, %v2327_v57  ;;  %v2347_v22 = vld [vmem:[%s13755_s10 + $0xa0] sm:$0xff] }
 0x526   : > { %3025 = vmatpush.msra.mxu0 %v10311_v18 }
 0x528   : > { %3026 = vmatpush.msra.mxu0 %v10321_v36  ;;  %v7829_v36 = vld [vmem:[%s13755_s10 + $0x158] sm:$0xff] }
 0x529   : > { %v3054_v44 = vpop.f32.mrf.mxu2 }
 0x52a   : > { %3027 = vmatpush.msra.mxu0 %v10326_v62 }
 0x52c   : > { %3028 = vmatpush.msra.mxu0 %v10337_v1  ;;  %v7830_v1 = vld [vmem:[%s13755_s10 + $0x160] sm:$0xff] }
 0x52d   : > { %7870 = vmatmul.msk.f32.gmra.mxu0 %vm2474_vm4, %v7828_v30  ;;  %7912 = vmatmul.msk.f32.gmra.mxu1 %vm2474_vm4, %v2328_v20  ;;  %v7848_v30 = vld [vmem:[%s13755_s10 + $0x1f0] sm:$0xff]  ;;  %v2348_v20 = vld [vmem:[%s13755_s10 + $0xa8] sm:$0xff] }
 0x52e   : > { %3029 = vmatpush.msra.mxu0 %v10346_v21  ;;  %v2330_v21 = vld [vmem:[%s13755_s10 + $0x18] sm:$0xff] }
 0x530   : > { %3030 = vmatpush.msra.mxu0 %v10356_v59 }
 0x531   : > { %v3057_v18 = vpop.f32.mrf.mxu2 }
 0x532   : > { %3031 = vmatpush.msra.mxu0 %v10361_v24  ;;  %v7831_v24 = vld [vmem:[%s13755_s10 + $0x168] sm:$0xff] }
 0x534   : > { %3032 = vmatpush.msra.mxu0 %v10372_v9  ;;  %v2331_v9 = vld [vmem:[%s13755_s10 + $0x20] sm:$0xff] }
 0x535   : > { %7871 = vmatmul.msk.f32.gmra.mxu0 %vm2474_vm4, %v7829_v36  ;;  %7913 = vmatmul.msk.f32.gmra.mxu1 %vm2474_vm4, %v2329_v8  ;;  %v7849_v8 = vld [vmem:[%s13755_s10 + $0x1f8] sm:$0xff] }
 0x536   : > { %3033 = vmatpush.msra.mxu0 %v10381_v11 }
 0x538   : > { %3034 = vmatpush.msra.mxu0 %v10391_v29  ;;  %v7832_v29 = vld [vmem:[%s13755_s10 + $0x170] sm:$0xff] }
 0x539   : > { %v3060_v62 = vpop.f32.mrf.mxu2 }
 0x53a   : > { %3035 = vmatpush.msra.mxu0 %v10396_v27  ;;  %v2332_v27 = vld [vmem:[%s13755_s10 + $0x28] sm:$0xff] }
 0x53c   : > { %3036 = vmatpush.msra.mxu0 %v10406_v16 }
 0x53d   : > { %7872 = vmatmul.msk.f32.gmra.mxu0 %vm2474_vm4, %v7830_v1  ;;  %7914 = vmatmul.msk.f32.gmra.mxu1 %vm2474_vm4, %v2330_v21 }
 0x53e   : > { %3037 = vmatpush.msra.mxu0 %v10412_v41  ;;  %v7833_v41 = vld [vmem:[%s13755_s10 + $0x178] sm:$0xff] }
 0x540   : > { %3038 = vmatpush.msra.mxu0 %v10421_v43  ;;  %v2333_v43 = vld [vmem:[%s13755_s10 + $0x30] sm:$0xff] }
 0x541   : > { %v3063_v59 = vpop.f32.mrf.mxu2 }
 0x542   : > { %3039 = vmatpush.msra.mxu0 %v10431_v31 }
 0x544   : > { %3040 = vmatpush.msra.mxu0 %v10441_v42  ;;  %v7834_v42 = vld [vmem:[%s13755_s10 + $0x180] sm:$0xff] }
 0x545   : > { %7873 = vmatmul.msk.f32.gmra.mxu0 %vm2474_vm4, %v7831_v24  ;;  %7915 = vmatmul.msk.f32.gmra.mxu1 %vm2474_vm4, %v2331_v9  ;;  %v2350_v24 = vld [vmem:[%s13755_s10 + $0xb8] sm:$0xff] }
 0x549   : > { %v3066_v11 = vpop.f32.mrf.mxu2 }
 0x54d   : > { %7874 = vmatmul.msk.f32.gmra.mxu0 %vm2474_vm4, %v7832_v29  ;;  %7916 = vmatmul.msk.f32.gmra.mxu1 %vm2474_vm4, %v2332_v27  ;;  %v2351_v29 = vld [vmem:[%s13755_s10 + $0xc0] sm:$0xff] }
 0x551   : > { %v3069_v16 = vpop.f32.mrf.mxu2 }
 0x552   : > { %8009 = vmatpush.msk.msra.mxu3 %vm2598_vm3, %v3069_v16 }
 0x554   : > { %3247 = vmatpush.msra.mxu3 %v3066_v11  ;;  %v7851_v11 = vld [vmem:[%s13755_s10 + $0x208] sm:$0xff] }
 0x555   : > { %7875 = vmatmul.msk.f32.gmra.mxu0 %vm2474_vm4, %v7833_v41  ;;  %7917 = vmatmul.msk.f32.gmra.mxu1 %vm2474_vm4, %v2333_v43  ;;  %v7852_v41 = vld [vmem:[%s13755_s10 + $0x210] sm:$0xff]  ;;  %v2352_v43 = vld [vmem:[%s13755_s10 + $0xc8] sm:$0xff] }
 0x556   : > { %3248 = vmatpush.msra.mxu3 %v3063_v59  ;;  %v7850_v59 = vld [vmem:[%s13755_s10 + $0x200] sm:$0xff] }
 0x558   : > { %3249 = vmatpush.msra.mxu3 %v3060_v62  ;;  %v2349_v62 = vld [vmem:[%s13755_s10 + $0xb0] sm:$0xff] }
 0x559   : > { %v10609_v31 = vpop.f32.mrf.mxu2 }
 0x55a   : > { %3250 = vmatpush.msra.mxu3 %v3057_v18 }
 0x55c   : > { %3251 = vmatpush.msra.mxu3 %v3054_v44 }
 0x55d   : > { %7876 = vmatmul.msk.f32.gmra.mxu0 %vm2474_vm4, %v7834_v42  ;;  %7918 = vmatmul.msk.f32.gmra.mxu1 %vm2474_vm4, %v2334_v39  ;;  %v7853_v39 = vld [vmem:[%s13755_s10 + $0x218] sm:$0xff] }
 0x55e   : > { %3252 = vmatpush.msra.mxu3 %v10534_v5  ;;  %v7847_v5 = vld [vmem:[%s13755_s10 + $0x1e8] sm:$0xff] }
 0x560   : > { %3253 = vmatpush.msra.mxu3 %v10531_v50 }
 0x561   : > { %v3458_v56 = vpop.f32.mrf.mxu2 }
 0x565   : > { %7877 = vmatmul.msk.f32.gmra.mxu0 %vm2474_vm4, %v7835_v6  ;;  %7919 = vmatmul.msk.f32.gmra.mxu1 %vm2474_vm4, %v2335_v38 }
 0x569   : > { %v3461_v23 = vpop.f32.mrf.mxu2 }
 0x56d   : > { %7878 = vmatmul.msk.f32.gmra.mxu0 %vm2474_vm4, %v7836_v17  ;;  %7920 = vmatmul.msk.f32.gmra.mxu1 %vm2474_vm4, %v2336_v13  ;;  %v2354_v17 = vld [vmem:[%s13755_s10 + $0xd8] sm:$0xff] }
 0x571   : > { %v3464_v52 = vpop.f32.mrf.mxu2 }
 0x575   : > { %7879 = vmatmul.msk.f32.gmra.mxu0 %vm2474_vm4, %v7837_v46  ;;  %7921 = vmatmul.msk.f32.gmra.mxu1 %vm2474_vm4, %v2337_v55  ;;  %v7855_v46 = vld [vmem:[%s13755_s10 + $0x228] sm:$0xff]  ;;  %v2355_v55 = vld [vmem:[%s13755_s10 + $0xe0] sm:$0xff] }
 0x579   : > { %v3467_v49 = vpop.f32.mrf.mxu2 }
 0x57d   : > { %7880 = vmatmul.msk.f32.gmra.mxu0 %vm2474_vm4, %v7838_v40  ;;  %7922 = vmatmul.msk.f32.gmra.mxu1 %vm2474_vm4, %v2338_v47  ;;  %v7856_v40 = vld [vmem:[%s13755_s10 + $0x230] sm:$0xff]  ;;  %v2356_v47 = vld [vmem:[%s13755_s10 + $0xe8] sm:$0xff] }
 0x581   : > { %v3470_v4 = vpop.f32.mrf.mxu2 }
 0x585   : > { %7881 = vmatmul.msk.f32.gmra.mxu0 %vm2474_vm4, %v7839_v60  ;;  %7923 = vmatmul.msk.f32.gmra.mxu1 %vm2474_vm4, %v2339_v0  ;;  %v7857_v0 = vld [vmem:[%s13755_s10 + $0x238] sm:$0xff] }
 0x589   : > { %v3473_v58 = vpop.f32.mrf.mxu2 }
 0x58d   : > { %7882 = vmatmul.msk.f32.gmra.mxu0 %vm2474_vm4, %v7840_v63  ;;  %7924 = vmatmul.msk.f32.gmra.mxu1 %vm2474_vm4, %v2340_v28 }
 0x591   : > { %v3476_v15 = vpop.f32.mrf.mxu2 }
 0x595   : > { %7883 = vmatmul.msk.f32.gmra.mxu0 %vm2474_vm4, %v7841_v34  ;;  %7925 = vmatmul.msk.f32.gmra.mxu1 %vm2474_vm4, %v2341_v45  ;;  %v2358_v34 = vld [vmem:[%s13755_s10 + $0xf8] sm:$0xff] }
 0x59a   : > { %v3479_v2 = vpop.f32.mrf.mxu2 }
 0x59d   : > { %7884 = vmatmul.msk.f32.gmra.mxu0 %vm2474_vm4, %v7842_v32  ;;  %7926 = vmatmul.msk.f32.gmra.mxu1 %vm2474_vm4, %v2342_v33  ;;  %v7859_v32 = vld [vmem:[%s13755_s10 + $0x248] sm:$0xff]  ;;  %v2359_v33 = vld [vmem:[%s13755_s10 + $0x100] sm:$0xff] }
 0x5a2   : > { %v3482_v35 = vpop.f32.mrf.mxu2  ;;  %v10685_v19 = vpop.f32.mrf.mxu0 }
 0x5a3   : > { %8108 = vmatpush.msk.msra.mxu2 %vm2598_vm3, %v3482_v35  ;;  %v10736_v57 = vpop.f32.mrf.mxu1 }
 0x5a5   : > { %3660 = vmatpush.msra.mxu2 %v3479_v2  ;;  %7885 = vmatmul.msk.f32.gmra.mxu0 %vm2474_vm4, %v7843_v3 }
 0x5a6   : > { %7927 = vmatmul.msk.f32.gmra.mxu1 %vm2474_vm4, %v2343_v51  ;;  %v7860_v51 = vld [vmem:[%s13755_s10 + $0x250] sm:$0xff] }
 0x5a7   : > { %3661 = vmatpush.msra.mxu2 %v3476_v15  ;;  %v7858_v15 = vld [vmem:[%s13755_s10 + $0x240] sm:$0xff] }
 0x5a9   : > { %3662 = vmatpush.msra.mxu2 %v3473_v58  ;;  %v2357_v58 = vld [vmem:[%s13755_s10 + $0xf0] sm:$0xff] }
 0x5aa   : > { %v10696_v48 = vpop.f32.mrf.mxu0 }
 0x5ab   : > { %3663 = vmatpush.msra.mxu2 %v3470_v4  ;;  %v10749_v18 = vpop.f32.mrf.mxu1 }
 0x5ad   : > { %3664 = vmatpush.msra.mxu2 %v3467_v49  ;;  %7886 = vmatmul.msk.f32.gmra.mxu0 %vm2474_vm4, %v7844_v14  ;;  %v2360_v14 = vld [vmem:[%s13755_s10 + $0x108] sm:$0xff] }
 0x5ae   : > { %7928 = vmatmul.msk.f32.gmra.mxu1 %vm2474_vm4, %v2344_v12 }
 0x5af   : > { %3665 = vmatpush.msra.mxu2 %v3464_v52 }
 0x5b1   : > { %3666 = vmatpush.msra.mxu2 %v3461_v23  ;;  %v7854_v23 = vld [vmem:[%s13755_s10 + $0x220] sm:$0xff] }
 0x5b2   : > { %v10706_v37 = vpop.f32.mrf.mxu0 }
 0x5b3   : > { %3667 = vmatpush.msra.mxu2 %v3458_v56  ;;  %v10761_v1 = vpop.f32.mrf.mxu1  ;;  %v2353_v56 = vld [vmem:[%s13755_s10 + $0xd0] sm:$0xff] }
 0x5b5   : > { %3668 = vmatpush.msra.mxu2 %v10609_v31  ;;  %7887 = vmatmul.msk.f32.gmra.mxu0 %vm2474_vm4, %v7845_v61  ;;  %v7861_v61 = vld [vmem:[%s13755_s10 + $0x258] sm:$0xff] }
 0x5b6   : > { %7929 = vmatmul.msk.f32.gmra.mxu1 %vm2474_vm4, %v2345_v10  ;;  %v2361_v10 = vld [vmem:[%s13755_s10 + $0x110] sm:$0xff] }
 0x5ba   : > { %v10717_v25 = vpop.f32.mrf.mxu0 }
 0x5bb   : > { %v10781_v27 = vpop.f32.mrf.mxu1 }
 0x5bd   : > { %7888 = vmatmul.msk.f32.gmra.mxu0 %vm2474_vm4, %v7846_v26 }
 0x5be   : > { %7930 = vmatmul.msk.f32.gmra.mxu1 %vm2474_vm4, %v2346_v53 }
 0x5c2   : > { %v10727_v50 = vpop.f32.mrf.mxu0 }
 0x5c3   : > { %v10794_v31 = vpop.f32.mrf.mxu1 }
 0x5c5   : > { %7889 = vmatmul.msk.f32.gmra.mxu0 %vm2474_vm4, %v7847_v5  ;;  %v7862_v5 = vld [vmem:[%s13755_s10 + $0x260] sm:$0xff] }
 0x5c6   : > { %7931 = vmatmul.msk.f32.gmra.mxu1 %vm2474_vm4, %v2347_v22  ;;  %v2362_v22 = vld [vmem:[%s13755_s10 + $0x118] sm:$0xff] }
 0x5ca   : > { %v10739_v44 = vpop.f32.mrf.mxu0 }
 0x5cb   : > { %v10807_v6 = vpop.f32.mrf.mxu1 }
 0x5cd   : > { %7890 = vmatmul.msk.f32.gmra.mxu0 %vm2474_vm4, %v7848_v30  ;;  %v8067_v30 = vld [vmem:[%s13755_s10 + $0x3d8] sm:$0xff] }
 0x5ce   : > { %7932 = vmatmul.msk.f32.gmra.mxu1 %vm2474_vm4, %v2348_v20  ;;  %8109 = vmatmul.msk.f32.vlgmr.msra.gmra.mxu2 %vm2474_vm4, %v8067_v30 }
 0x5d2   : > { %v10751_v36 = vpop.f32.mrf.mxu0 }
 0x5d3   : > { %v10819_v13 = vpop.f32.mrf.mxu1 }
 0x5d5   : > { %7891 = vmatmul.msk.f32.gmra.mxu0 %vm2474_vm4, %v7849_v8 }
 0x5d6   : > { %7933 = vmatmul.msk.f32.gmra.mxu1 %vm2474_vm4, %v2349_v62  ;;  %v7863_v62 = vld [vmem:[%s13755_s10 + $0x268] sm:$0xff] }
 0x5da   : > { %v10763_v21 = vpop.f32.mrf.mxu0 }
 0x5db   : > { %v10839_v4 = vpop.f32.mrf.mxu1 }
 0x5dd   : > { %7892 = vmatmul.msk.f32.gmra.mxu0 %vm2474_vm4, %v7850_v59  ;;  %v2363_v59 = vld [vmem:[%s13755_s10 + $0x120] sm:$0xff] }
 0x5de   : > { %7934 = vmatmul.msk.f32.gmra.mxu1 %vm2474_vm4, %v2350_v24  ;;  %v8068_v24 = vld [vmem:[%s13755_s10 + $0x3e0] sm:$0xff] }
 0x5df   : > { %8110 = vmatmul.msk.f32.gmra.mxu2 %vm2474_vm4, %v8068_v24 }
 0x5e2   : > { %v10773_v9 = vpop.f32.mrf.mxu0 }
 0x5e3   : > { %v10852_v63 = vpop.f32.mrf.mxu1 }
 0x5e5   : > { %7893 = vmatmul.msk.f32.gmra.mxu0 %vm2474_vm4, %v7851_v11 }
 0x5e6   : > { %7935 = vmatmul.msk.f32.gmra.mxu1 %vm2474_vm4, %v2351_v29 }
 0x5ea   : > { %v10785_v16 = vpop.f32.mrf.mxu0 }
 0x5eb   : > { %v10865_v45 = vpop.f32.mrf.mxu1 }
 0x5ed   : > { %7894 = vmatmul.msk.f32.gmra.mxu0 %vm2474_vm4, %v7852_v41  ;;  %v7864_v41 = vld [vmem:[%s13755_s10 + $0x270] sm:$0xff] }
 0x5ee   : > { %7936 = vmatmul.msk.f32.gmra.mxu1 %vm2474_vm4, %v2352_v43  ;;  %v2364_v43 = vld [vmem:[%s13755_s10 + $0x128] sm:$0xff] }
 0x5f2   : > { %v10797_v42 = vpop.f32.mrf.mxu0 }
 0x5f3   : > { %v10877_v35 = vpop.f32.mrf.mxu1 }
 0x5f5   : > { %7895 = vmatmul.msk.f32.gmra.mxu0 %vm2474_vm4, %v7853_v39  ;;  %v8069_v39 = vld [vmem:[%s13755_s10 + $0x3e8] sm:$0xff] }
 0x5f6   : > { %7937 = vmatmul.msk.f32.gmra.mxu1 %vm2474_vm4, %v2353_v56  ;;  %8111 = vmatmul.msk.f32.gmra.mxu2 %vm2474_vm4, %v8069_v39 }
 0x5fa   : > { %v10809_v38 = vpop.f32.mrf.mxu0 }
 0x5fb   : > { %v10897_v26 = vpop.f32.mrf.mxu1 }
 0x5fd   : > { %7896 = vmatmul.msk.f32.gmra.mxu0 %vm2474_vm4, %v7854_v23 }
 0x5fe   : > { %7938 = vmatmul.msk.f32.gmra.mxu1 %vm2474_vm4, %v2354_v17  ;;  %v7865_v17 = vld [vmem:[%s13755_s10 + $0x278] sm:$0xff] }
 0x602   : > { %v10821_v52 = vpop.f32.mrf.mxu0 }
 0x603   : > { %v10914_v20 = vpop.f32.mrf.mxu1 }
 0x605   : > { %7897 = vmatmul.msk.f32.gmra.mxu0 %vm2474_vm4, %v7855_v46  ;;  %v2365_v46 = vld [vmem:[%s13755_s10 + $0x130] sm:$0xff] }
 0x606   : > { %7939 = vmatmul.msk.f32.gmra.mxu1 %vm2474_vm4, %v2355_v55  ;;  %v8070_v55 = vld [vmem:[%s13755_s10 + $0x3f0] sm:$0xff] }
 0x607   : > { %8112 = vmatmul.msk.f32.gmra.mxu2 %vm2474_vm4, %v8070_v55  ;;  %v8080_v55 = vld [vmem:[%s13755_s10 + $0x440] sm:$0xff] }
 0x60a   : > { %v10831_v49 = vpop.f32.mrf.mxu0 }
 0x60b   : > { %v10931_v11 = vpop.f32.mrf.mxu1 }
 0x60d   : > { %7898 = vmatmul.msk.f32.gmra.mxu0 %vm2474_vm4, %v7856_v40 }
 0x60e   : > { %7940 = vmatmul.msk.f32.gmra.mxu1 %vm2474_vm4, %v2356_v47  ;;  %v7866_v47 = vld [vmem:[%s13755_s10 + $0x280] sm:$0xff] }
 0x612   : > { %v10843_v60 = vpop.f32.mrf.mxu0 }
 0x613   : > { %v10947_v56 = vpop.f32.mrf.mxu1 }
 0x615   : > { %7899 = vmatmul.msk.f32.gmra.mxu0 %vm2474_vm4, %v7857_v0  ;;  %v2366_v0 = vld [vmem:[%s13755_s10 + $0x138] sm:$0xff] }
 0x616   : > { %7941 = vmatmul.msk.f32.gmra.mxu1 %vm2474_vm4, %v2357_v58 }
 0x61a   : > { %v10855_v28 = vpop.f32.mrf.mxu0 }
 0x61b   : > { %v10971_v58 = vpop.f32.mrf.mxu1 }
 0x61d   : > { %7900 = vmatmul.msk.f32.gmra.mxu0 %vm2474_vm4, %v7858_v15  ;;  %v8071_v15 = vld [vmem:[%s13755_s10 + $0x3f8] sm:$0xff] }
 0x61e   : > { %7942 = vmatmul.msk.f32.gmra.mxu1 %vm2474_vm4, %v2358_v34  ;;  %8113 = vmatmul.msk.f32.gmra.mxu2 %vm2474_vm4, %v8071_v15 }
 0x622   : > { %v10867_v2 = vpop.f32.mrf.mxu0 }
 0x625   : > { %7901 = vmatmul.msk.f32.gmra.mxu0 %vm2474_vm4, %v7859_v32  ;;  %v7867_v32 = vld [vmem:[%s13755_s10 + $0x288] sm:$0xf] }
 0x626   : > { %7943 = vmatmul.msk.f32.gmra.mxu1 %vm2474_vm4, %v2359_v33  ;;  %v2367_v33 = vld [vmem:[%s13755_s10 + $0x140] sm:$0xf] }
 0x62a   : > { %v10879_v3 = vpop.f32.mrf.mxu0 }
 0x62d   : > { %7902 = vmatmul.msk.f32.gmra.mxu0 %vm2474_vm4, %v7860_v51  ;;  %v8072_v51 = vld [vmem:[%s13755_s10 + $0x400] sm:$0xff] }
 0x62e   : > { %7944 = vmatmul.msk.f32.gmra.mxu1 %vm2474_vm4, %v2360_v14  ;;  %8114 = vmatmul.msk.f32.gmra.mxu2 %vm2474_vm4, %v8072_v51  ;;  %v10992_v14 = vpop.f32.mrf.mxu1  ;;  %v8083_v51 = vld [vmem:[%s13755_s10 + $0x458] sm:$0xff] }
 0x632   : > { %v10889_v12 = vpop.f32.mrf.mxu0 }
 0x635   : > { %7903 = vmatmul.msk.f32.gmra.mxu0 %vm2474_vm4, %v7861_v61 }
 0x636   : > { %7945 = vmatmul.msk.f32.gmra.mxu1 %vm2474_vm4, %v2361_v10  ;;  %v8073_v10 = vld [vmem:[%s13755_s10 + $0x408] sm:$0xff] }
 0x637   : > { %8115 = vmatmul.msk.f32.gmra.mxu2 %vm2474_vm4, %v8073_v10 }
 0x63a   : > { %v10901_v53 = vpop.f32.mrf.mxu0 }
 0x63b   : > { %13799 = vst [vmem:[#allocation17_spill] sm:$0xff] %v10901_v53 }
 0x63d   : > { %7904 = vmatmul.msk.f32.gmra.mxu0 %vm2474_vm4, %v7862_v5 }
 0x63e   : > { %7946 = vmatmul.msk.f32.gmra.mxu1 %vm2474_vm4, %v2362_v22  ;;  %v8074_v22 = vld [vmem:[%s13755_s10 + $0x410] sm:$0xff] }
 0x63f   : > { %8116 = vmatmul.msk.f32.gmra.mxu2 %vm2474_vm4, %v8074_v22 }
 0x642   : > { %v10917_v8 = vpop.f32.mrf.mxu0 }
 0x643   : > { %13800 = vst [vmem:[#allocation5_spill] sm:$0xff] %v10917_v8 }
 0x645   : > { %7905 = vmatmul.msk.f32.gmra.mxu0 %vm2474_vm4, %v7863_v62  ;;  %v8075_v62 = vld [vmem:[%s13755_s10 + $0x418] sm:$0xff] }
 0x646   : > { %7947 = vmatmul.msk.f32.gmra.mxu1 %vm2474_vm4, %v2363_v59  ;;  %v8076_v59 = vld [vmem:[%s13755_s10 + $0x420] sm:$0xff] }
 0x647   : > { %8117 = vmatmul.msk.f32.gmra.mxu2 %vm2474_vm4, %v8075_v62  ;;  %v8084_v62 = vld [vmem:[%s13755_s10 + $0x460] sm:$0xff] }
 0x64a   : > { %v10933_v29 = vpop.f32.mrf.mxu0 }
 0x64b   : > { %13801 = vst [vmem:[#allocation8_spill] sm:$0xff] %v10933_v29  ;;  %v7978_v29 = vld [vmem:[%s13755_s10 + $0x2e0] sm:$0xff] }
 0x64d   : > { %7906 = vmatmul.msk.f32.gmra.mxu0 %vm2474_vm4, %v7864_v41 }
 0x64e   : > { %7948 = vmatmul.msk.f32.gmra.mxu1 %vm2474_vm4, %v2364_v43  ;;  %v8078_v43 = vld [vmem:[%s13755_s10 + $0x430] sm:$0xff] }
 0x64f   : > { %8118 = vmatmul.msk.f32.gmra.mxu2 %vm2474_vm4, %v8076_v59 }
 0x651   : > { %v11063_v10 = vpop.f32.mrf.mxu2 }
 0x652   : > { %v10949_v23 = vpop.f32.mrf.mxu0 }
 0x653   : > { %13802 = vst [vmem:[#allocation11_spill] sm:$0xff] %v10949_v23 }
 0x655   : > { %7907 = vmatmul.msk.f32.gmra.mxu0 %vm2474_vm4, %v7865_v17  ;;  %v8079_v17 = vld [vmem:[%s13755_s10 + $0x438] sm:$0xff] }
 0x656   : > { %7949 = vmatmul.msk.f32.gmra.mxu1 %vm2474_vm4, %v2365_v46 }
 0x65a   : > { %v10963_v40 = vpop.f32.mrf.mxu0 }
 0x65b   : > { %13803 = vst [vmem:[#allocation12_spill] sm:$0xff] %v10963_v40 }
 0x65d   : > { %7908 = vmatmul.msk.f32.gmra.mxu0 %vm2474_vm4, %v7866_v47 }
 0x65e   : > { %7950 = vmatmul.msk.f32.gmra.mxu1 %vm2474_vm4, %v2366_v0  ;;  %v8081_v0 = vld [vmem:[%s13755_s10 + $0x448] sm:$0xff] }
 0x662   : > { %v10979_v34 = vpop.f32.mrf.mxu0  ;;  %v11071_v59 = vpop.f32.mrf.mxu2 }
 0x663   : > { %13804 = vst [vmem:[#allocation18_spill] sm:$0xff] %v10979_v34 }
 0x665   : > { %7909 = vmatmul.msk.f32.gmra.mxu0 %vm2474_vm4, %v7867_v32  ;;  %v8082_v32 = vld [vmem:[%s13755_s10 + $0x450] sm:$0xff] }
 0x666   : > { %7951 = vmatmul.msk.f32.gmra.mxu1 %vm2474_vm4, %v2367_v33 }
 0x66a   : > { %v10995_v61 = vpop.f32.mrf.mxu0 }
 0x66b   : > { %13805 = vst [vmem:[#allocation6_spill] sm:$0xff] %v10995_v61 }
 0x66d   : > { %3041 = vmatmul.f32.vlgmr.msra.gmra.mxu0 %v10278_v7 }
 0x672   : > { %v11002_v5 = vpop.f32.mrf.mxu0 }
 0x673   : > { %13806 = vst [vmem:[#allocation9_spill] sm:$0xff] %v11002_v5 }
 0x675   : > { %3044 = vmatmul.f32.gmra.mxu0 %v10288_v54  ;;  %v8077_v54 = vld [vmem:[%s13755_s10 + $0x428] sm:$0xff] }
 0x676   : > { %8119 = vmatmul.msk.f32.gmra.mxu2 %vm2474_vm4, %v8077_v54 }
 0x67a   : > { %v11009_v30 = vpop.f32.mrf.mxu0 }
 0x67b   : > { %13807 = vst [vmem:[#allocation13_spill] sm:$0xff] %v11009_v30 }
 0x67e   : > { %8120 = vmatmul.msk.f32.gmra.mxu2 %vm2474_vm4, %v8078_v43  ;;  %v8085_v43 = vld [vmem:[%s13755_s10 + $0x468] sm:$0xff] }
 0x682   : > { %v11015_v7 = vpop.f32.mrf.mxu0 }
 0x683   : > { %13808 = vst [vmem:[#allocation14_spill] sm:$0xff] %v11015_v7  ;;  %v7974_v7 = vld [vmem:[%s13755_s10 + $0x2c0] sm:$0xff] }
 0x686   : > { %8121 = vmatmul.msk.f32.gmra.mxu2 %vm2474_vm4, %v8079_v17  ;;  %v11079_v17 = vpop.f32.mrf.mxu2 }
 0x68a   : > { %v11021_v24 = vpop.f32.mrf.mxu0 }
 0x68b   : > { %13809 = vst [vmem:[#allocation19_spill] sm:$0xff] %v11021_v24 }
 0x68e   : > { %8122 = vmatmul.msk.f32.gmra.mxu2 %vm2474_vm4, %v8080_v55 }
 0x692   : > { %v11027_v41 = vpop.f32.mrf.mxu0 }
 0x693   : > { %13810 = vst [vmem:[#allocation7_spill] sm:$0xff] %v11027_v41 }
 0x696   : > { %8123 = vmatmul.msk.f32.gmra.mxu2 %vm2474_vm4, %v8081_v0  ;;  %v8086_v0 = vld [vmem:[%s13755_s10 + $0x470] sm:$0xff] }
 0x69a   : > { %v11033_v39 = vpop.f32.mrf.mxu0 }
 0x69b   : > { %13811 = vst [vmem:[#allocation10_spill] sm:$0xff] %v11033_v39  ;;  %v11159_v39 = vpop.f32.mrf.mxu1 }
 0x69e   : > { %8124 = vmatmul.msk.f32.gmra.mxu2 %vm2474_vm4, %v8082_v32  ;;  %v11087_v32 = vpop.f32.mrf.mxu2 }
 0x6a2   : > { %v11039_v46 = vpop.f32.mrf.mxu0 }
 0x6a3   : > { %13812 = vst [vmem:[#allocation15_spill] sm:$0xff] %v11039_v46 }
 0x6a6   : > { %8125 = vmatmul.msk.f32.gmra.mxu2 %vm2474_vm4, %v8083_v51 }
 0x6aa   : > { %v11045_v47 = vpop.f32.mrf.mxu0 }
 0x6ab   : > { %13813 = vst [vmem:[#allocation16_spill] sm:$0xff] %v11045_v47  ;;  %v7969_v47 = vld [vmem:[%s13755_s10 + $0x298] sm:$0xff] }
 0x6ae   : > { %8126 = vmatmul.msk.f32.gmra.mxu2 %vm2474_vm4, %v8084_v62  ;;  %v8087_v62 = vld [vmem:[%s13755_s10 + $0x478] sm:$0xff] }
 0x6b2   : > { %v11051_v15 = vpop.f32.mrf.mxu0 }
 0x6b3   : > { %13814 = vst [vmem:[#allocation20_spill] sm:$0xff] %v11051_v15 }
 0x6b6   : > { %8127 = vmatmul.msk.f32.gmra.mxu2 %vm2474_vm4, %v8085_v43  ;;  %v11095_v43 = vpop.f32.mrf.mxu2 }
 0x6ba   : > { %v11057_v33 = vpop.f32.mrf.mxu0 }
 0x6bb   : > { %13815 = vst [vmem:[#allocation21_spill] sm:$0xff] %v11057_v33 }
 0x6be   : > { %8128 = vmatmul.msk.f32.gmra.mxu2 %vm2474_vm4, %v8086_v0  ;;  %v11103_v0 = vpop.f32.mrf.mxu2 }
 0x6c2   : > { %v11065_v22 = vpop.f32.mrf.mxu0 }
 0x6c3   : > { %13816 = vst [vmem:[#allocation22_spill] sm:$0xff] %v11065_v22 }
 0x6c6   : > { %8129 = vmatmul.msk.f32.gmra.mxu2 %vm2474_vm4, %v8087_v62  ;;  %v11109_v62 = vpop.f32.mrf.mxu2 }
 0x6ca   : > { %v11073_v54 = vpop.f32.mrf.mxu0 }
 0x6cb   : > { %13817 = vst [vmem:[#allocation23_spill] sm:$0xff] %v11073_v54 }
 0x6ce   : > { %v11119_v15 = vpop.f32.mrf.mxu2 }
 0x6d2   : > { %v11081_v55 = vpop.f32.mrf.mxu0 }
 0x6d3   : > { %13818 = vst [vmem:[#allocation24_spill] sm:$0xff] %v11081_v55  ;;  %v8088_v55 = vld [vmem:[%s13755_s10 + $0x480] sm:$0xff] }
 0x6d4   : > { %8130 = vmatmul.msk.f32.gmra.mxu2 %vm2474_vm4, %v8088_v55  ;;  %v7968_v55 = vld [vmem:[%s13755_s10 + $0x290] sm:$0xff] }
 0x6da   : > { %v11089_v51 = vpop.f32.mrf.mxu0 }
 0x6db   : > { %13819 = vst [vmem:[#allocation25_spill] sm:$0xff] %v11089_v51  ;;  %v8089_v51 = vld [vmem:[%s13755_s10 + $0x488] sm:$0xff] }
 0x6dc   : > { %8131 = vmatmul.msk.f32.gmra.mxu2 %vm2474_vm4, %v8089_v51  ;;  %v8091_v51 = vld [vmem:[%s13755_s10 + $0x498] sm:$0xff] }
 0x6e2   : > { %v11097_v54 = vpop.f32.mrf.mxu0 }
 0x6e3   : > { %13820 = vst [vmem:[#allocation26_spill] sm:$0xff] %v11097_v54  ;;  %v8090_v54 = vld [vmem:[%s13755_s10 + $0x490] sm:$0xff] }
 0x6e4   : > { %8132 = vmatmul.msk.f32.gmra.mxu2 %vm2474_vm4, %v8090_v54  ;;  %v7970_v54 = vld [vmem:[%s13755_s10 + $0x2a0] sm:$0xff] }
 0x6ea   : > { %v3042_v22 = vpop.f32.mrf.mxu0 }
 0x6ec   : > { %8133 = vmatmul.msk.f32.gmra.mxu2 %vm2474_vm4, %v8091_v51  ;;  %v7971_v51 = vld [vmem:[%s13755_s10 + $0x2a8] sm:$0xff] }
 0x6f2   : > { %v3045_v33 = vpop.f32.mrf.mxu0 }
 0x6f3   : > { %3254 = vmatpush.msra.mxu3 %v3045_v33  ;;  %v11129_v33 = vpop.f32.mrf.mxu2 }
 0x6f5   : > { %3255 = vmatpush.msra.mxu3 %v3042_v22  ;;  %v8092_v22 = vld [vmem:[%s13755_s10 + $0x4a0] sm:$0xff] }
 0x6f6   : > { %8010 = vmatmul.msk.f32.vlgmr.msra.gmra.mxu3 %vm2474_vm4, %v7968_v55  ;;  %8134 = vmatmul.msk.f32.gmra.mxu2 %vm2474_vm4, %v8092_v22  ;;  %v8094_v22 = vld [vmem:[%s13755_s10 + $0x4b0] sm:$0xff] }
 0x6fb   : > { %v11139_v55 = vpop.f32.mrf.mxu2 }
 0x6fe   : > { %8011 = vmatmul.msk.f32.gmra.mxu3 %vm2474_vm4, %v7969_v47  ;;  %v8093_v47 = vld [vmem:[%s13755_s10 + $0x4a8] sm:$0xff] }
 0x6ff   : > { %8135 = vmatmul.msk.f32.gmra.mxu2 %vm2474_vm4, %v8093_v47  ;;  %v8095_v47 = vld [vmem:[%s13755_s10 + $0x4b8] sm:$0xff] }
 0x703   : > { %v11149_v46 = vpop.f32.mrf.mxu2 }
 0x706   : > { %8012 = vmatmul.msk.f32.gmra.mxu3 %vm2474_vm4, %v7970_v54  ;;  %v7972_v54 = vld [vmem:[%s13755_s10 + $0x2b0] sm:$0xff] }
 0x707   : > { %8136 = vmatmul.msk.f32.gmra.mxu2 %vm2474_vm4, %v8094_v22  ;;  %v11173_v22 = vpop.f32.mrf.mxu1 }
 0x70b   : > { %v11161_v41 = vpop.f32.mrf.mxu2 }
 0x70e   : > { %8013 = vmatmul.msk.f32.gmra.mxu3 %vm2474_vm4, %v7971_v51  ;;  %v7973_v51 = vld [vmem:[%s13755_s10 + $0x2b8] sm:$0xff] }
 0x70f   : > { %8137 = vmatmul.msk.f32.gmra.mxu2 %vm2474_vm4, %v8095_v47  ;;  %v8097_v47 = vld [vmem:[%s13755_s10 + $0x4c8] sm:$0xff]  ;;  %v11191_v5 = vpop.f32.mrf.mxu1 }
 0x710   : > { %13821 = vst [vmem:[#allocation27_spill] sm:$0xff] %v11191_v5 }
 0x713   : > { %v11171_v24 = vpop.f32.mrf.mxu2 }
 0x716   : > { %8014 = vmatmul.msk.f32.gmra.mxu3 %vm2474_vm4, %v7972_v54  ;;  %v8096_v54 = vld [vmem:[%s13755_s10 + $0x4c0] sm:$0xff] }
 0x717   : > { %8138 = vmatmul.msk.f32.gmra.mxu2 %vm2474_vm4, %v8096_v54  ;;  %v7976_v54 = vld [vmem:[%s13755_s10 + $0x2d0] sm:$0xff]  ;;  %v11204_v34 = vpop.f32.mrf.mxu1 }
 0x718   : > { %13822 = vst [vmem:[#allocation28_spill] sm:$0xff] %v11204_v34 }
 0x71b   : > { %v11183_v30 = vpop.f32.mrf.mxu2 }
 0x71e   : > { %8015 = vmatmul.msk.f32.gmra.mxu3 %vm2474_vm4, %v7973_v51  ;;  %v7975_v51 = vld [vmem:[%s13755_s10 + $0x2c8] sm:$0xff] }
 0x71f   : > { %8139 = vmatmul.msk.f32.gmra.mxu2 %vm2474_vm4, %v8097_v47  ;;  %v8099_v47 = vld [vmem:[%s13755_s10 + $0x4d8] sm:$0xff]  ;;  %v11217_v23 = vpop.f32.mrf.mxu1 }
 0x720   : > { %13823 = vst [vmem:[#allocation29_spill] sm:$0xff] %v11217_v23  ;;  %v7979_v23 = vld [vmem:[%s13755_s10 + $0x2e8] sm:$0xff] }
 0x723   : > { %v11195_v61 = vpop.f32.mrf.mxu2 }
 0x726   : > { %8016 = vmatmul.msk.f32.gmra.mxu3 %vm2474_vm4, %v7974_v7  ;;  %v8098_v7 = vld [vmem:[%s13755_s10 + $0x4d0] sm:$0xff] }
 0x727   : > { %8140 = vmatmul.msk.f32.gmra.mxu2 %vm2474_vm4, %v8098_v7 }
 0x72b   : > { %v11207_v40 = vpop.f32.mrf.mxu2 }
 0x72e   : > { %8017 = vmatmul.msk.f32.gmra.mxu3 %vm2474_vm4, %v7975_v51  ;;  %v7977_v51 = vld [vmem:[%s13755_s10 + $0x2d8] sm:$0xff] }
 0x72f   : > { %8141 = vmatmul.msk.f32.gmra.mxu2 %vm2474_vm4, %v8099_v47  ;;  %v11231_v47 = vpop.f32.mrf.mxu1 }
 0x730   : > { %13824 = vst [vmem:[#allocation30_spill] sm:$0xff] %v11231_v47 }
 0x733   : > { %v11219_v7 = vpop.f32.mrf.mxu2 }
 0x736   : > { %8018 = vmatmul.msk.f32.gmra.mxu3 %vm2474_vm4, %v7976_v54  ;;  %v8100_v54 = vld [vmem:[%s13755_s10 + $0x4e0] sm:$0xff] }
 0x737   : > { %8142 = vmatmul.msk.f32.gmra.mxu2 %vm2474_vm4, %v8100_v54  ;;  %v7980_v54 = vld [vmem:[%s13755_s10 + $0x2f0] sm:$0xff]  ;;  %v11249_v47 = vpop.f32.mrf.mxu1 }
 0x738   : > { %13826 = vst [vmem:[#allocation32_spill] sm:$0xff] %v11249_v47 }
 0x73b   : > { %v11229_v34 = vpop.f32.mrf.mxu2 }
 0x73e   : > { %8019 = vmatmul.msk.f32.gmra.mxu3 %vm2474_vm4, %v7977_v51  ;;  %v8101_v51 = vld [vmem:[%s13755_s10 + $0x4e8] sm:$0xff] }
 0x73f   : > { %8143 = vmatmul.msk.f32.gmra.mxu2 %vm2474_vm4, %v8101_v51  ;;  %v8103_v51 = vld [vmem:[%s13755_s10 + $0x4f8] sm:$0xff]  ;;  %v11261_v53 = vpop.f32.mrf.mxu1 }
 0x740   : > { %13828 = vst [vmem:[#allocation34_spill] sm:$0xff] %v11261_v53  ;;  %v4039_v53 = vld [vmem:[%s13752_s7 + $0x28] sm:$0xff] }
 0x743   : > { %v11241_v8 = vpop.f32.mrf.mxu2 }
 0x744   : > { %13825 = vst [vmem:[#allocation31_spill] sm:$0xff] %v11241_v8 }
 0x746   : > { %8020 = vmatmul.msk.f32.gmra.mxu3 %vm2474_vm4, %v7978_v29  ;;  %v8102_v29 = vld [vmem:[%s13755_s10 + $0x4f0] sm:$0xff] }
 0x747   : > { %8144 = vmatmul.msk.f32.gmra.mxu2 %vm2474_vm4, %v8102_v29  ;;  %v4041_v29 = vld [vmem:[%s13752_s7 + $0x38] sm:$0xff] }
 0x748   : > { %4436 = vmatpush.msrb.mxu1 %v4041_v29  ;;  %v8104_v29 = vld [vmem:[%s13755_s10 + $0x500] sm:$0xff] }
 0x74b   : > { %v11253_v5 = vpop.f32.mrf.mxu2 }
 0x74c   : > { %13827 = vst [vmem:[#allocation33_spill] sm:$0xff] %v11253_v5  ;;  %v8155_v5 = vld [vmem:[%s13752_s7 + $0x68] sm:$0xff] }
 0x74e   : > { %8021 = vmatmul.msk.f32.gmra.mxu3 %vm2474_vm4, %v7979_v23  ;;  %v7981_v23 = vld [vmem:[%s13755_s10 + $0x2f8] sm:$0xff] }
 0x74f   : > { %8145 = vmatmul.msk.f32.gmra.mxu2 %vm2474_vm4, %v8103_v51  ;;  %v4038_v51 = vld [vmem:[%s13752_s7 + $0x20] sm:$0xff] }
 0x753   : > { %v11271_v47 = vpop.f32.mrf.mxu2 }
 0x754   : > { %13829 = vst [vmem:[#allocation35_spill] sm:$0xff] %v11271_v47  ;;  %v11293_v47 = vpop.f32.mrf.mxu1 }
 0x755   : > { %13830 = vst [vmem:[#allocation36_spill] sm:$0xff] %v11293_v47  ;;  %v8154_v47 = vld [vmem:[%s13752_s7 + $0x60] sm:$0xff] }
 0x756   : > { %8022 = vmatmul.msk.f32.gmra.mxu3 %vm2474_vm4, %v7980_v54  ;;  %v4040_v54 = vld [vmem:[%s13752_s7 + $0x30] sm:$0xff] }
 0x757   : > { %4437 = vmatpush.msrb.mxu1 %v4040_v54  ;;  %8146 = vmatmul.msk.f32.gmra.mxu2 %vm2474_vm4, %v8104_v29  ;;  %v8157_v54 = vld [vmem:[%s13752_s7 + $0x78] sm:$0xff] }
 0x758   : > { %4203 = vmatpush.msrb.mxu0 %v8157_v54  ;;  %v4035_v54 = vld [vmem:[%s13752_s7 + $0x8] sm:$0xff] }
 0x759   : > { %4438 = vmatpush.msrb.mxu1 %v4039_v53  ;;  %v4037_v53 = vld [vmem:[%s13752_s7 + $0x18] sm:$0xff] }
 0x75b   : > { %4439 = vmatpush.msrb.mxu1 %v4038_v51  ;;  %v8156_v51 = vld [vmem:[%s13752_s7 + $0x70] sm:$0xff]  ;;  %v11301_v29 = vpop.f32.mrf.mxu2 }
 0x75c   : > { %13831 = vst [vmem:[#allocation37_spill] sm:$0xff] %v11301_v29  ;;  %4204 = vmatpush.msrb.mxu0 %v8156_v51  ;;  %v4034_v51 = vld [vmem:[%s13752_s7] sm:$0xff] }
 0x75d   : > { %4440 = vmatpush.msrb.mxu1 %v4037_v53  ;;  %v7983_v53 = vld [vmem:[%s13755_s10 + $0x308] sm:$0xff] }
 0x75e   : > { %8023 = vmatmul.msk.f32.gmra.mxu3 %vm2474_vm4, %v7981_v23  ;;  %v7982_v23 = vld [vmem:[%s13755_s10 + $0x300] sm:$0xff]  ;;  %4205 = vmatpush.msrb.mxu0 %v8155_v5  ;;  %v8153_v5 = vld [vmem:[%s13752_s7 + $0x58] sm:$0xff] }
 0x760   : > { %4206 = vmatpush.msrb.mxu0 %v8154_v47  ;;  %v11331_v47 = vpop.f32.mrf.mxu1 }
 0x761   : > { %13833 = vst [vmem:[#allocation39_spill] sm:$0xff] %v11331_v47 }
 0x762   : > { %4207 = vmatpush.msrb.mxu0 %v8153_v5  ;;  %v8106_v5 = vld [vmem:[%s13755_s10 + $0x510] sm:$0xff] }
 0x763   : > { %v11329_v29 = vpop.f32.mrf.mxu2 }
 0x764   : > { %13832 = vst [vmem:[#allocation38_spill] sm:$0xff] %v11329_v29 }
 0x766   : > { %8024 = vmatmul.msk.f32.gmra.mxu3 %vm2474_vm4, %v7982_v23  ;;  %v4036_v23 = vld [vmem:[%s13752_s7 + $0x10] sm:$0xff] }
 0x767   : > { %4441 = vmatpush.msrb.mxu1 %v4036_v23  ;;  %v8105_v23 = vld [vmem:[%s13755_s10 + $0x508] sm:$0xff] }
 0x768   : > { %8147 = vmatmul.msk.f32.gmra.mxu2 %vm2474_vm4, %v8105_v23  ;;  %v8150_v23 = vld [vmem:[%s13752_s7 + $0x40] sm:$0xff] }
 0x769   : > { %4442 = vmatpush.msrb.mxu1 %v4035_v54  ;;  %v8152_v54 = vld [vmem:[%s13752_s7 + $0x50] sm:$0xff] }
 0x76a   : > { %4208 = vmatpush.msrb.mxu0 %v8152_v54  ;;  %v8281_v54 = vld [vmem:[%s13752_s7 + $0xf8] sm:$0xff] }
 0x76b   : > { %4443 = vmatpush.msrb.mxu1 %v4034_v51  ;;  %v7984_v51 = vld [vmem:[%s13755_s10 + $0x310] sm:$0xff]  ;;  %5028 = vmatpush.msrb.mxu2 %v8281_v54  ;;  %v11355_v29 = vpop.f32.mrf.mxu2 }
 0x76c   : > { %13834 = vst [vmem:[#allocation40_spill] sm:$0xff] %v11355_v29 }
 0x76e   : > { %8025 = vmatmul.msk.f32.gmra.mxu3 %vm2474_vm4, %v7983_v53  ;;  %v8151_v53 = vld [vmem:[%s13752_s7 + $0x48] sm:$0xff] }
 0x76f   : > { %4209 = vmatpush.msrb.mxu0 %v8151_v53  ;;  %v2886_v53 = vadd.f32 %v10736_v57, %v10685_v19  ;;  %v7985_v19 = vld [vmem:[%s13755_s10 + $0x318] sm:$0xff]  ;;  %v11366_v57 = vpop.f32.mrf.mxu1 }
 0x770   : > { %8148 = vmatmul.msk.f32.gmra.mxu2 %vm2474_vm4, %v8106_v5  ;;  %v3834_v5 = vld [vmem:[%s13751_s6] sm:$0xff]  ;;  %13835 = vst [vmem:[#allocation41_spill] sm:$0xff] %v11366_v57 }
 0x771   : > { %4210 = vmatpush.msrb.mxu0 %v8150_v23  ;;  %v8280_v23 = vld [vmem:[%s13752_s7 + $0xf0] sm:$0xff] }
 0x772   : > { %5029 = vmatpush.msrb.mxu2 %v8280_v23 }
 0x773   : > { %v11385_v29 = vpop.f32.mrf.mxu2 }
 0x774   : > { %13836 = vst [vmem:[#allocation42_spill] sm:$0xff] %v11385_v29 }
 0x776   : > { %8026 = vmatmul.msk.f32.gmra.mxu3 %vm2474_vm4, %v7984_v51  ;;  %v8279_v51 = vld [vmem:[%s13752_s7 + $0xe8] sm:$0xff] }
 0x777   : > { %5030 = vmatpush.msrb.mxu2 %v8279_v51  ;;  %v8277_v51 = vld [vmem:[%s13752_s7 + $0xd8] sm:$0xff] }
 0x779   : > { %v3257_v47 = vpop.f32.mrf.mxu3 }
 0x77a   : > { %v3380_v8 = vadd.f32 %v3257_v47, %v2886_v53  ;;  %v8278_v47 = vld [vmem:[%s13752_s7 + $0xe0] sm:$0xff]  ;;  %v8107_v53 = vld [vmem:[%s13755_s10 + $0x518] sm:$0xf] }
 0x77b   : > { %5031 = vmatpush.msrb.mxu2 %v8278_v47  ;;  %v8276_v47 = vld [vmem:[%s13752_s7 + $0xd0] sm:$0xff]  ;;  %v11406_v29 = vpop.f32.mrf.mxu2 }
 0x77c   : > { %v3793_v54 = vadd.f32 %v11063_v10, %v3380_v8  ;;  %8149 = vmatmul.msk.f32.gmra.mxu2 %vm2474_vm4, %v8107_v53  ;;  %v2889_v8 = vadd.f32 %v10749_v18, %v10696_v48  ;;  %v3835_v48 = vld [vmem:[%s13751_s6 + $0x8] sm:$0xff]  ;;  %v7986_v18 = vld [vmem:[%s13755_s10 + $0x320] sm:$0xff] }
 0x77d   : > { %5032 = vmatpush.msrb.mxu2 %v8277_v51  ;;  %v8274_v53 = vld [vmem:[%s13752_s7 + $0xc0] sm:$0xff]  ;;  %v2892_v51 = vadd.f32 %v10761_v1, %v10706_v37 }
 0x77e   : > { %v3875_v23 = vadd.f32 %v3834_v5, %v3793_v54  ;;  %8027 = vmatmul.msk.f32.gmra.mxu3 %vm2474_vm4, %v7985_v19  ;;  %v8275_v19 = vld [vmem:[%s13752_s7 + $0xc8] sm:$0xff] }
 0x77f   : > { %5033 = vmatpush.msrb.mxu2 %v8276_v47 }
 0x780   : > { %v3916_v10 = vmax.f32 %v3875_v23, 0.0 }
 0x781   : > { %v3260_v57 = vpop.f32.mrf.mxu3  ;;  %5034 = vmatpush.msrb.mxu2 %v8275_v19  ;;  %v7987_v19 = vld [vmem:[%s13755_s10 + $0x328] sm:$0xff] }
 0x782   : > { %3957 = vst.msk [vmem:[#allocation3] sm:$0xff] %vm1292_vm1, %v3916_v10  ;;  %v3381_v5 = vadd.f32 %v3260_v57, %v2889_v8  ;;  %v11401_v57 = vpop.f32.mrf.mxu1 }
 0x783   : > { %5035 = vmatpush.msrb.mxu2 %v8274_v53 }
 0x784   : > { %v3794_v54 = vadd.f32 %v11071_v59, %v3381_v5  ;;  %v3836_v5 = vld [vmem:[%s13751_s6 + $0x10] sm:$0xff] }
 0x786   : > { %v3876_v23 = vadd.f32 %v3835_v48, %v3794_v54  ;;  %8028 = vmatmul.msk.f32.gmra.mxu3 %vm2474_vm4, %v7986_v18  ;;  %v2895_v48 = vadd.f32 %v10781_v27, %v10717_v25  ;;  %v7988_v25 = vld [vmem:[%s13755_s10 + $0x330] sm:$0xff] }
 0x788   : > { %v3917_v8 = vmax.f32 %v3876_v23, 0.0 }
 0x789   : > { %v3263_v10 = vpop.f32.mrf.mxu3  ;;  %v3998_v47 = vld [vmem:[#allocation3] sm:$0xff] }
 0x78a   : > { %3958 = vst.msk [vmem:[#allocation3 + $0x8] sm:$0xff] %vm1292_vm1, %v3917_v8  ;;  %v3382_v59 = vadd.f32 %v3263_v10, %v2892_v51  ;;  %8194 = vmatmul.msk.f32.vlgmr.msrb.gmra.mxu1 %vm1292_vm1, %v3998_v47  ;;  %v11420_v18 = vpop.f32.mrf.mxu1  ;;  %v11422_v8 = vpop.f32.mrf.mxu2 }
 0x78c   : > { %v3795_v37 = vadd.f32 %v11079_v17, %v3382_v59  ;;  %v3837_v17 = vld [vmem:[%s13751_s6 + $0x18] sm:$0xff]  ;;  %v2898_v59 = vadd.f32 %v10794_v31, %v10727_v50 }
 0x78d   : > { %v7989_v50 = vld [vmem:[%s13755_s10 + $0x338] sm:$0xff] }
 0x78e   : > { %v3877_v1 = vadd.f32 %v3836_v5, %v3795_v37  ;;  %8029 = vmatmul.msk.f32.gmra.mxu3 %vm2474_vm4, %v7987_v19 }
 0x790   : > { %v3918_v54 = vmax.f32 %v3877_v1, 0.0 }
 0x791   : > { %v3266_v53 = vpop.f32.mrf.mxu3  ;;  %v4042_v23 = vld [vmem:[#allocation3 + $0x1] sm:$0xff] }
 0x792   : > { %v3999_v51 = vld [vmem:[#allocation3 + $0x8] sm:$0xff]  ;;  %3959 = vst.msk [vmem:[#allocation3 + $0x10] sm:$0xff] %vm1292_vm1, %v3918_v54  ;;  %v3383_v10 = vadd.f32 %v3266_v53, %v2895_v48  ;;  %8158 = vmatmul.msk.f32.vlgmr.msrb.gmra.mxu0 %vm1292_vm1, %v4042_v23  ;;  %v11440_v54 = vpop.f32.mrf.mxu2  ;;  %v3838_v53 = vld [vmem:[%s13751_s6 + $0x20] sm:$0xff] }
 0x793   : > { %8195 = vmatmul.msk.f32.gmra.mxu1 %vm1292_vm1, %v3999_v51  ;;  %v2901_v51 = vadd.f32 %v10807_v6, %v10739_v44  ;;  %v7990_v44 = vld [vmem:[%s13755_s10 + $0x340] sm:$0xff] }
 0x794   : > { %v3796_v27 = vadd.f32 %v11087_v32, %v3383_v10  ;;  %v11442_v32 = vpop.f32.mrf.mxu1 }
 0x796   : > { %v3878_v47 = vadd.f32 %v3837_v17, %v3796_v27  ;;  %8030 = vmatmul.msk.f32.gmra.mxu3 %vm2474_vm4, %v7988_v25 }
 0x798   : > { %v3919_v5 = vmax.f32 %v3878_v47, 0.0 }
 0x799   : > { %v3269_v19 = vpop.f32.mrf.mxu3  ;;  %v4043_v37 = vld [vmem:[#allocation3 + $0x9] sm:$0xff] }
 0x79a   : > { %v4000_v1 = vld [vmem:[#allocation3 + $0x10] sm:$0xff]  ;;  %3960 = vst.msk [vmem:[#allocation3 + $0x18] sm:$0xff] %vm1292_vm1, %v3919_v5  ;;  %v3384_v48 = vadd.f32 %v3269_v19, %v2898_v59  ;;  %8159 = vmatmul.msk.f32.gmra.mxu0 %vm1292_vm1, %v4043_v37  ;;  %v11468_v5 = vpop.f32.mrf.mxu2 }
 0x79b   : > { %8196 = vmatmul.msk.f32.gmra.mxu1 %vm1292_vm1, %v4000_v1  ;;  %v2904_v1 = vadd.f32 %v10819_v13, %v10751_v36  ;;  %v7991_v36 = vld [vmem:[%s13755_s10 + $0x348] sm:$0xff] }
 0x79c   : > { %v3797_v31 = vadd.f32 %v11095_v43, %v3384_v48  ;;  %v3839_v43 = vld [vmem:[%s13751_s6 + $0x28] sm:$0xff]  ;;  %v11470_v19 = vpop.f32.mrf.mxu1 }
 0x79e   : > { %v3879_v23 = vadd.f32 %v3838_v53, %v3797_v31  ;;  %8031 = vmatmul.msk.f32.gmra.mxu3 %vm2474_vm4, %v7989_v50 }
 0x7a0   : > { %v3920_v10 = vmax.f32 %v3879_v23, 0.0 }
 0x7a1   : > { %v3272_v17 = vpop.f32.mrf.mxu3  ;;  %v4044_v25 = vld [vmem:[#allocation3 + $0x11] sm:$0xff] }
 0x7a2   : > { %v4001_v27 = vld [vmem:[#allocation3 + $0x18] sm:$0xff]  ;;  %3961 = vst.msk [vmem:[#allocation3 + $0x20] sm:$0xff] %vm1292_vm1, %v3920_v10  ;;  %v3385_v59 = vadd.f32 %v3272_v17, %v2901_v51  ;;  %8160 = vmatmul.msk.f32.gmra.mxu0 %vm1292_vm1, %v4044_v25  ;;  %v11490_v17 = vpop.f32.mrf.mxu2 }
 0x7a3   : > { %v11454_v47 = vld [vmem:[#allocation3 + $0x12] sm:$0xff]  ;;  %8197 = vmatmul.msk.f32.gmra.mxu1 %vm1292_vm1, %v4001_v27  ;;  %v2907_v27 = vadd.f32 %v10839_v4, %v10763_v21  ;;  %v7992_v21 = vld [vmem:[%s13755_s10 + $0x350] sm:$0xff] }
 0x7a4   : > { %8282 = vmatmul.msk.f32.vlgmr.msrb.gmra.mxu2 %vm1292_vm1, %v11454_v47  ;;  %v3798_v6 = vadd.f32 %v11103_v0, %v3385_v59  ;;  %v3840_v0 = vld [vmem:[%s13751_s6 + $0x30] sm:$0xff]  ;;  %v11492_v25 = vpop.f32.mrf.mxu1 }
 0x7a6   : > { %v3880_v37 = vadd.f32 %v3839_v43, %v3798_v6  ;;  %8032 = vmatmul.msk.f32.gmra.mxu3 %vm2474_vm4, %v7990_v44 }
 0x7a8   : > { %v3921_v48 = vmax.f32 %v3880_v37, 0.0 }
 0x7a9   : > { %v3275_v53 = vpop.f32.mrf.mxu3  ;;  %v4045_v50 = vld [vmem:[#allocation3 + $0x19] sm:$0xff] }
 0x7aa   : > { %v4002_v31 = vld [vmem:[#allocation3 + $0x20] sm:$0xff]  ;;  %3962 = vst.msk [vmem:[#allocation3 + $0x28] sm:$0xff] %vm1292_vm1, %v3921_v48  ;;  %v3386_v51 = vadd.f32 %v3275_v53, %v2904_v1  ;;  %8161 = vmatmul.msk.f32.gmra.mxu0 %vm1292_vm1, %v4045_v50  ;;  %v2910_v53 = vadd.f32 %v10852_v63, %v10773_v9  ;;  %v3842_v9 = vld [vmem:[%s13751_s6 + $0x40] sm:$0xff]  ;;  %v7993_v63 = vld [vmem:[%s13755_s10 + $0x358] sm:$0xff] }
 0x7ab   : > { %v11475_v23 = vld [vmem:[#allocation3 + $0x1a] sm:$0xff]  ;;  %8198 = vmatmul.msk.f32.gmra.mxu1 %vm1292_vm1, %v4002_v31  ;;  %v11513_v31 = vpop.f32.mrf.mxu2 }
 0x7ac   : > { %8283 = vmatmul.msk.f32.gmra.mxu2 %vm1292_vm1, %v11475_v23  ;;  %v3799_v13 = vadd.f32 %v11109_v62, %v3386_v51  ;;  %v3841_v62 = vld [vmem:[%s13751_s6 + $0x38] sm:$0xff]  ;;  %v11515_v51 = vpop.f32.mrf.mxu1 }
 0x7ae   : > { %v3881_v10 = vadd.f32 %v3840_v0, %v3799_v13  ;;  %8033 = vmatmul.msk.f32.gmra.mxu3 %vm2474_vm4, %v7991_v36 }
 0x7b0   : > { %v3922_v59 = vmax.f32 %v3881_v10, 0.0 }
 0x7b1   : > { %v3278_v43 = vpop.f32.mrf.mxu3  ;;  %v4046_v44 = vld [vmem:[#allocation3 + $0x21] sm:$0xff] }
 0x7b2   : > { %v4003_v6 = vld [vmem:[#allocation3 + $0x28] sm:$0xff]  ;;  %3963 = vst.msk [vmem:[#allocation3 + $0x30] sm:$0xff] %vm1292_vm1, %v3922_v59  ;;  %v3387_v1 = vadd.f32 %v3278_v43, %v2907_v27  ;;  %8162 = vmatmul.msk.f32.gmra.mxu0 %vm1292_vm1, %v4046_v44  ;;  %v2913_v43 = vadd.f32 %v10865_v45, %v10785_v16  ;;  %v3843_v16 = vld [vmem:[%s13751_s6 + $0x48] sm:$0xff]  ;;  %v7994_v45 = vld [vmem:[%s13755_s10 + $0x360] sm:$0xff] }
 0x7b3   : > { %v11496_v37 = vld [vmem:[#allocation3 + $0x22] sm:$0xff]  ;;  %8199 = vmatmul.msk.f32.gmra.mxu1 %vm1292_vm1, %v4003_v6 }
 0x7b4   : > { %8284 = vmatmul.msk.f32.gmra.mxu2 %vm1292_vm1, %v11496_v37  ;;  %v3800_v4 = vadd.f32 %v11119_v15, %v3387_v1 }
 0x7b6   : > { %v3882_v48 = vadd.f32 %v3841_v62, %v3800_v4  ;;  %8034 = vmatmul.msk.f32.gmra.mxu3 %vm2474_vm4, %v7992_v21 }
 0x7b8   : > { %v3923_v50 = vmax.f32 %v3882_v48, 0.0  ;;  %v11541_v48 = vpop.f32.mrf.mxu1 }
 0x7b9   : > { %v3281_v0 = vpop.f32.mrf.mxu3  ;;  %v4047_v36 = vld [vmem:[#allocation3 + $0x29] sm:$0xff] }
 0x7ba   : > { %v4004_v13 = vld [vmem:[#allocation3 + $0x30] sm:$0xff]  ;;  %3964 = vst.msk [vmem:[#allocation3 + $0x38] sm:$0xff] %vm1292_vm1, %v3923_v50  ;;  %v3388_v27 = vadd.f32 %v3281_v0, %v2910_v53  ;;  %8163 = vmatmul.msk.f32.gmra.mxu0 %vm1292_vm1, %v4047_v36  ;;  %v2916_v0 = vadd.f32 %v10877_v35, %v10797_v42  ;;  %v7995_v42 = vld [vmem:[%s13755_s10 + $0x368] sm:$0xff] }
 0x7bb   : > { %v11517_v10 = vld [vmem:[#allocation3 + $0x2a] sm:$0xff]  ;;  %8200 = vmatmul.msk.f32.gmra.mxu1 %vm1292_vm1, %v4004_v13 }
 0x7bc   : > { %8285 = vmatmul.msk.f32.gmra.mxu2 %vm1292_vm1, %v11517_v10  ;;  %v3801_v15 = vadd.f32 %v11129_v33, %v3388_v27  ;;  %v11539_v33 = vpop.f32.mrf.mxu2 }
 0x7be   : > { %v3883_v59 = vadd.f32 %v3842_v9, %v3801_v15  ;;  %8035 = vmatmul.msk.f32.gmra.mxu3 %vm2474_vm4, %v7993_v63 }
 0x7c0   : > { %v3924_v44 = vmax.f32 %v3883_v59, 0.0 }
 0x7c1   : > { %v3284_v6 = vpop.f32.mrf.mxu3  ;;  %v4048_v1 = vld [vmem:[#allocation3 + $0x31] sm:$0xff] }
 0x7c2   : > { %v4005_v62 = vld [vmem:[#allocation3 + $0x38] sm:$0xff]  ;;  %3965 = vst.msk [vmem:[#allocation3 + $0x40] sm:$0xff] %vm1292_vm1, %v3924_v44  ;;  %v3389_v4 = vadd.f32 %v3284_v6, %v2913_v43  ;;  %8164 = vmatmul.msk.f32.gmra.mxu0 %vm1292_vm1, %v4048_v1  ;;  %v11571_v43 = vpop.f32.mrf.mxu1  ;;  %v2919_v6 = vadd.f32 %v10897_v26, %v10809_v38  ;;  %v7996_v38 = vld [vmem:[%s13755_s10 + $0x370] sm:$0xff] }
 0x7c3   : > { %v11534_v21 = vld [vmem:[#allocation3 + $0x32] sm:$0xff]  ;;  %8201 = vmatmul.msk.f32.gmra.mxu1 %vm1292_vm1, %v4005_v62 }
 0x7c4   : > { %8286 = vmatmul.msk.f32.gmra.mxu2 %vm1292_vm1, %v11534_v21  ;;  %v3802_v53 = vadd.f32 %v11139_v55, %v3389_v4  ;;  %v3844_v55 = vld [vmem:[%s13751_s6 + $0x50] sm:$0xff]  ;;  %v11569_v59 = vpop.f32.mrf.mxu2 }
 0x7c6   : > { %v3884_v50 = vadd.f32 %v3843_v16, %v3802_v53  ;;  %8036 = vmatmul.msk.f32.gmra.mxu3 %vm2474_vm4, %v7994_v45 }
 0x7c8   : > { %v3925_v36 = vmax.f32 %v3884_v50, 0.0 }
 0x7c9   : > { %v3287_v13 = vpop.f32.mrf.mxu3  ;;  %v4049_v27 = vld [vmem:[#allocation3 + $0x39] sm:$0xff] }
 0x7ca   : > { %v4006_v9 = vld [vmem:[#allocation3 + $0x40] sm:$0xff]  ;;  %3966 = vst.msk [vmem:[#allocation3 + $0x48] sm:$0xff] %vm1292_vm1, %v3925_v36  ;;  %v3390_v15 = vadd.f32 %v3287_v13, %v2916_v0  ;;  %8165 = vmatmul.msk.f32.gmra.mxu0 %vm1292_vm1, %v4049_v27  ;;  %v11593_v36 = vpop.f32.mrf.mxu1  ;;  %v2922_v13 = vadd.f32 %v10914_v20, %v10821_v52  ;;  %v7997_v52 = vld [vmem:[%s13755_s10 + $0x378] sm:$0xff] }
 0x7cb   : > { %v11555_v63 = vld [vmem:[#allocation3 + $0x3a] sm:$0xff]  ;;  %8202 = vmatmul.msk.f32.gmra.mxu1 %vm1292_vm1, %v4006_v9 }
 0x7cc   : > { %8287 = vmatmul.msk.f32.gmra.mxu2 %vm1292_vm1, %v11555_v63  ;;  %v3803_v35 = vadd.f32 %v11149_v46, %v3390_v15  ;;  %v3845_v46 = vld [vmem:[%s13751_s6 + $0x58] sm:$0xff]  ;;  %v11591_v0 = vpop.f32.mrf.mxu2 }
 0x7ce   : > { %v3885_v44 = vadd.f32 %v3844_v55, %v3803_v35  ;;  %8037 = vmatmul.msk.f32.gmra.mxu3 %vm2474_vm4, %v7995_v42 }
 0x7d0   : > { %v3926_v1 = vmax.f32 %v3885_v44, 0.0 }
 0x7d1   : > { %v3290_v62 = vpop.f32.mrf.mxu3  ;;  %v4050_v4 = vld [vmem:[#allocation3 + $0x41] sm:$0xff] }
 0x7d2   : > { %v4007_v16 = vld [vmem:[#allocation3 + $0x48] sm:$0xff]  ;;  %3967 = vst.msk [vmem:[#allocation3 + $0x50] sm:$0xff] %vm1292_vm1, %v3926_v1  ;;  %v3391_v53 = vadd.f32 %v3290_v62, %v2919_v6  ;;  %8166 = vmatmul.msk.f32.gmra.mxu0 %vm1292_vm1, %v4050_v4  ;;  %v2925_v6 = vadd.f32 %v10931_v11, %v10831_v49  ;;  %v11616_v4 = vpop.f32.mrf.mxu1  ;;  %v3847_v49 = vld [vmem:[%s13751_s6 + $0x68] sm:$0xff]  ;;  %v7998_v11 = vld [vmem:[%s13755_s10 + $0x380] sm:$0xff] }
 0x7d3   : > { %v11576_v45 = vld [vmem:[#allocation3 + $0x42] sm:$0xff]  ;;  %8203 = vmatmul.msk.f32.gmra.mxu1 %vm1292_vm1, %v4007_v16 }
 0x7d4   : > { %8288 = vmatmul.msk.f32.gmra.mxu2 %vm1292_vm1, %v11576_v45  ;;  %v3804_v26 = vadd.f32 %v11161_v41, %v3391_v53  ;;  %v3846_v41 = vld [vmem:[%s13751_s6 + $0x60] sm:$0xff]  ;;  %v11614_v62 = vpop.f32.mrf.mxu2 }
 0x7d6   : > { %v3886_v50 = vadd.f32 %v3845_v46, %v3804_v26  ;;  %8038 = vmatmul.msk.f32.gmra.mxu3 %vm2474_vm4, %v7996_v38 }
 0x7d8   : > { %v3927_v27 = vmax.f32 %v3886_v50, 0.0 }
 0x7d9   : > { %v3293_v9 = vpop.f32.mrf.mxu3  ;;  %v4051_v15 = vld [vmem:[#allocation3 + $0x49] sm:$0xff] }
 0x7da   : > { %v4008_v55 = vld [vmem:[#allocation3 + $0x50] sm:$0xff]  ;;  %3968 = vst.msk [vmem:[#allocation3 + $0x58] sm:$0xff] %vm1292_vm1, %v3927_v27  ;;  %v3392_v35 = vadd.f32 %v3293_v9, %v2922_v13  ;;  %8167 = vmatmul.msk.f32.gmra.mxu0 %vm1292_vm1, %v4051_v15  ;;  %v2928_v13 = vadd.f32 %v10947_v56, %v10843_v60  ;;  %v3848_v60 = vld [vmem:[%s13751_s6 + $0x70] sm:$0xff]  ;;  %v7999_v56 = vld [vmem:[%s13755_s10 + $0x388] sm:$0xff] }
 0x7db   : > { %v11597_v42 = vld [vmem:[#allocation3 + $0x4a] sm:$0xff]  ;;  %8204 = vmatmul.msk.f32.gmra.mxu1 %vm1292_vm1, %v4008_v55 }
 0x7dc   : > { %8289 = vmatmul.msk.f32.gmra.mxu2 %vm1292_vm1, %v11597_v42  ;;  %v3805_v20 = vadd.f32 %v11171_v24, %v3392_v35 }
 0x7de   : > { %v3887_v44 = vadd.f32 %v3846_v41, %v3805_v20  ;;  %8039 = vmatmul.msk.f32.gmra.mxu3 %vm2474_vm4, %v7997_v52  ;;  %v11642_v52 = vpop.f32.mrf.mxu1 }
 0x7e0   : > { %v3928_v1 = vmax.f32 %v3887_v44, 0.0 }
 0x7e1   : > { %v3296_v16 = vpop.f32.mrf.mxu3  ;;  %v4052_v53 = vld [vmem:[#allocation3 + $0x51] sm:$0xff] }
 0x7e2   : > { %v4009_v46 = vld [vmem:[#allocation3 + $0x58] sm:$0xff]  ;;  %3969 = vst.msk [vmem:[#allocation3 + $0x60] sm:$0xff] %vm1292_vm1, %v3928_v1  ;;  %v3393_v26 = vadd.f32 %v3296_v16, %v2925_v6  ;;  %8168 = vmatmul.msk.f32.gmra.mxu0 %vm1292_vm1, %v4052_v53  ;;  %v2931_v6 = vadd.f32 %v10971_v58, %v10855_v28  ;;  %v8000_v28 = vld [vmem:[%s13755_s10 + $0x390] sm:$0xff] }
 0x7e3   : > { %v11618_v38 = vld [vmem:[#allocation3 + $0x52] sm:$0xff]  ;;  %8205 = vmatmul.msk.f32.gmra.mxu1 %vm1292_vm1, %v4009_v46 }
 0x7e4   : > { %8290 = vmatmul.msk.f32.gmra.mxu2 %vm1292_vm1, %v11618_v38  ;;  %v3806_v24 = vadd.f32 %v11183_v30, %v3393_v26  ;;  %v11640_v30 = vpop.f32.mrf.mxu2 }
 0x7e6   : > { %v3888_v50 = vadd.f32 %v3847_v49, %v3806_v24  ;;  %8040 = vmatmul.msk.f32.gmra.mxu3 %vm2474_vm4, %v7998_v11  ;;  %v11672_v24 = vpop.f32.mrf.mxu1 }
 0x7e8   : > { %v3929_v27 = vmax.f32 %v3888_v50, 0.0 }
 0x7e9   : > { %v3299_v9 = vpop.f32.mrf.mxu3  ;;  %v4053_v15 = vld [vmem:[#allocation3 + $0x59] sm:$0xff] }
 0x7ea   : > { %v4010_v55 = vld [vmem:[#allocation3 + $0x60] sm:$0xff]  ;;  %3970 = vst.msk [vmem:[#allocation3 + $0x68] sm:$0xff] %vm1292_vm1, %v3929_v27  ;;  %v3394_v41 = vadd.f32 %v3299_v9, %v2928_v13  ;;  %8169 = vmatmul.msk.f32.gmra.mxu0 %vm1292_vm1, %v4053_v15  ;;  %v2934_v13 = vadd.f32 %v10992_v14, %v10867_v2  ;;  %v8001_v2 = vld [vmem:[%s13755_s10 + $0x398] sm:$0xff] }
 0x7eb   : > { %v11635_v35 = vld [vmem:[#allocation3 + $0x5a] sm:$0xff]  ;;  %8206 = vmatmul.msk.f32.gmra.mxu1 %vm1292_vm1, %v4010_v55 }
 0x7ec   : > { %8291 = vmatmul.msk.f32.gmra.mxu2 %vm1292_vm1, %v11635_v35  ;;  %v3807_v20 = vadd.f32 %v11195_v61, %v3394_v41  ;;  %v3849_v61 = vld [vmem:[%s13751_s6 + $0x78] sm:$0xff]  ;;  %v11670_v11 = vpop.f32.mrf.mxu2 }
 0x7ee   : > { %v3889_v44 = vadd.f32 %v3848_v60, %v3807_v20  ;;  %8041 = vmatmul.msk.f32.gmra.mxu3 %vm2474_vm4, %v7999_v56 }
 0x7f0   : > { %v3930_v1 = vmax.f32 %v3889_v44, 0.0  ;;  %v11694_v44 = vpop.f32.mrf.mxu1 }
 0x7f1   : > { %v3302_v16 = vpop.f32.mrf.mxu3  ;;  %v4054_v53 = vld [vmem:[#allocation3 + $0x61] sm:$0xff] }
 0x7f2   : > { %v4011_v46 = vld [vmem:[#allocation3 + $0x68] sm:$0xff]  ;;  %3971 = vst.msk [vmem:[#allocation3 + $0x70] sm:$0xff] %vm1292_vm1, %v3930_v1  ;;  %v3395_v49 = vadd.f32 %v3302_v16, %v2931_v6  ;;  %8170 = vmatmul.msk.f32.gmra.mxu0 %vm1292_vm1, %v4054_v53  ;;  %v2937_v6 = vadd.f32 %v11159_v39, %v10879_v3  ;;  %v8002_v3 = vld [vmem:[%s13755_s10 + $0x3a0] sm:$0xff] }
 0x7f3   : > { %v11656_v26 = vld [vmem:[#allocation3 + $0x62] sm:$0xff]  ;;  %8207 = vmatmul.msk.f32.gmra.mxu1 %vm1292_vm1, %v4011_v46 }
 0x7f4   : > { %8292 = vmatmul.msk.f32.gmra.mxu2 %vm1292_vm1, %v11656_v26  ;;  %v3808_v58 = vadd.f32 %v11207_v40, %v3395_v49  ;;  %v3850_v40 = vld [vmem:[%s13751_s6 + $0x80] sm:$0xff]  ;;  %v11692_v20 = vpop.f32.mrf.mxu2 }
 0x7f6   : > { %v3890_v50 = vadd.f32 %v3849_v61, %v3808_v58  ;;  %8042 = vmatmul.msk.f32.gmra.mxu3 %vm2474_vm4, %v8000_v28 }
 0x7f8   : > { %v3931_v27 = vmax.f32 %v3890_v50, 0.0  ;;  %v2940_v50 = vadd.f32 %v11173_v22, %v10889_v12  ;;  %v8003_v12 = vld [vmem:[%s13755_s10 + $0x3a8] sm:$0xff] }
 0x7f9   : > { %v3305_v9 = vpop.f32.mrf.mxu3  ;;  %v4055_v15 = vld [vmem:[#allocation3 + $0x69] sm:$0xff]  ;;  %v13837_v22 = vld [vmem:[#allocation31_spill] sm:$0xff] }
 0x7fa   : > { %v4012_v55 = vld [vmem:[#allocation3 + $0x70] sm:$0xff]  ;;  %3972 = vst.msk [vmem:[#allocation3 + $0x78] sm:$0xff] %vm1292_vm1, %v3931_v27  ;;  %v3396_v60 = vadd.f32 %v3305_v9, %v2934_v13  ;;  %8171 = vmatmul.msk.f32.gmra.mxu0 %vm1292_vm1, %v4055_v15 }
 0x7fb   : > { %v11677_v41 = vld [vmem:[#allocation3 + $0x6a] sm:$0xff]  ;;  %8208 = vmatmul.msk.f32.gmra.mxu1 %vm1292_vm1, %v4012_v55 }
 0x7fc   : > { %8293 = vmatmul.msk.f32.gmra.mxu2 %vm1292_vm1, %v11677_v41  ;;  %v3809_v14 = vadd.f32 %v11219_v7, %v3396_v60  ;;  %v3851_v7 = vld [vmem:[%s13751_s6 + $0x88] sm:$0xff]  ;;  %v11717_v27 = vpop.f32.mrf.mxu2 }
 0x7fe   : > { %v3891_v56 = vadd.f32 %v3850_v40, %v3809_v14  ;;  %8043 = vmatmul.msk.f32.gmra.mxu3 %vm2474_vm4, %v8001_v2 }
 0x800   : > { %v3932_v1 = vmax.f32 %v3891_v56, 0.0 }
 0x801   : > { %v3308_v16 = vpop.f32.mrf.mxu3  ;;  %v4056_v53 = vld [vmem:[#allocation3 + $0x71] sm:$0xff] }
 0x802   : > { %v4013_v46 = vld [vmem:[#allocation3 + $0x78] sm:$0xff]  ;;  %3973 = vst.msk [vmem:[#allocation3 + $0x80] sm:$0xff] %vm1292_vm1, %v3932_v1  ;;  %v3397_v61 = vadd.f32 %v3308_v16, %v2937_v6  ;;  %8172 = vmatmul.msk.f32.gmra.mxu0 %vm1292_vm1, %v4056_v53  ;;  %v13839_v1 = vld [vmem:[#allocation17_spill] sm:$0xff] }
 0x803   : > { %v11698_v49 = vld [vmem:[#allocation3 + $0x72] sm:$0xff]  ;;  %8209 = vmatmul.msk.f32.gmra.mxu1 %vm1292_vm1, %v4013_v46 }
 0x804   : > { %8294 = vmatmul.msk.f32.gmra.mxu2 %vm1292_vm1, %v11698_v49  ;;  %v3810_v39 = vadd.f32 %v11229_v34, %v3397_v61  ;;  %v3852_v34 = vld [vmem:[%s13751_s6 + $0x90] sm:$0xff]  ;;  %v13840_v16 = vld [vmem:[#allocation27_spill] sm:$0xff] }
 0x805   : > { %v2943_v53 = vadd.f32 %v13840_v16, %v13839_v1  ;;  %v13844_v1 = vld [vmem:[#allocation5_spill] sm:$0xff]  ;;  %v13845_v16 = vld [vmem:[#allocation28_spill] sm:$0xff] }
 0x806   : > { %v3892_v28 = vadd.f32 %v3851_v7, %v3810_v39  ;;  %8044 = vmatmul.msk.f32.gmra.mxu3 %vm2474_vm4, %v8002_v3 }
 0x807   : > { %v11713_v58 = vpop.f32.mrf.mxu1 }
 0x808   : > { %v3933_v13 = vmax.f32 %v3892_v28, 0.0 }
 0x809   : > { %v3311_v9 = vpop.f32.mrf.mxu3  ;;  %v4057_v15 = vld [vmem:[#allocation3 + $0x79] sm:$0xff] }
 0x80a   : > { %v4014_v55 = vld [vmem:[#allocation3 + $0x80] sm:$0xff]  ;;  %3974 = vst.msk [vmem:[#allocation3 + $0x88] sm:$0xff] %vm1292_vm1, %v3933_v13  ;;  %v3398_v40 = vadd.f32 %v3311_v9, %v2940_v50  ;;  %8173 = vmatmul.msk.f32.gmra.mxu0 %vm1292_vm1, %v4057_v15  ;;  %v11745_v50 = vpop.f32.mrf.mxu2  ;;  %v8237_v13 = vld [vmem:[%s13752_s7 + $0xb8] sm:$0xff]  ;;  %v8004_v15 = vld [vmem:[%s13755_s10 + $0x3b0] sm:$0xff] }
 0x80b   : > { %v11719_v60 = vld [vmem:[#allocation3 + $0x7a] sm:$0xff]  ;;  %8210 = vmatmul.msk.f32.gmra.mxu1 %vm1292_vm1, %v4014_v55  ;;  %v3853_v9 = vld [vmem:[%s13751_s6 + $0x98] sm:$0xff]  ;;  %4714 = vmatpush.msrb.mxu3 %v8237_v13 }
 0x80c   : > { %8295 = vmatmul.msk.f32.gmra.mxu2 %vm1292_vm1, %v11719_v60  ;;  %v3811_v2 = vadd.f32 %v13837_v22, %v3398_v40  ;;  %v13841_v55 = vld [vmem:[#allocation33_spill] sm:$0xff]  ;;  %v8235_v22 = vld [vmem:[%s13752_s7 + $0xa8] sm:$0xff] }
 0x80e   : > { %v3893_v14 = vadd.f32 %v3852_v34, %v3811_v2  ;;  %8045 = vmatmul.msk.f32.gmra.mxu3 %vm2474_vm4, %v8003_v12  ;;  %v8236_v34 = vld [vmem:[%s13752_s7 + $0xb0] sm:$0xff] }
 0x80f   : > { %v11734_v56 = vpop.f32.mrf.mxu0  ;;  %4715 = vmatpush.msrb.mxu3 %v8236_v34  ;;  %v13846_v34 = vld [vmem:[#allocation35_spill] sm:$0xff] }
 0x810   : > { %v11736_v6 = vpop.f32.mrf.mxu1  ;;  %v3934_v46 = vmax.f32 %v3893_v14, 0.0 }
 0x811   : > { %13838 = vst [vmem:[#allocation31_spill] sm:$0xff] %v11736_v6  ;;  %v3314_v61 = vpop.f32.mrf.mxu3  ;;  %v4058_v7 = vld [vmem:[#allocation3 + $0x81] sm:$0xff]  ;;  %4716 = vmatpush.msrb.mxu3 %v8235_v22 }
 0x812   : > { %v4015_v3 = vld [vmem:[#allocation3 + $0x88] sm:$0xff]  ;;  %3975 = vst.msk [vmem:[#allocation3 + $0x90] sm:$0xff] %vm1292_vm1, %v3934_v46  ;;  %v3399_v28 = vadd.f32 %v3314_v61, %v2943_v53  ;;  %8174 = vmatmul.msk.f32.gmra.mxu0 %vm1292_vm1, %v4058_v7  ;;  %v2946_v53 = vadd.f32 %v13845_v16, %v13844_v1  ;;  %v8234_v61 = vld [vmem:[%s13752_s7 + $0xa0] sm:$0xff]  ;;  %v11792_v22 = vpop.f32.mrf.mxu2 }
 0x813   : > { %v11740_v39 = vld [vmem:[#allocation3 + $0x82] sm:$0xff]  ;;  %8211 = vmatmul.msk.f32.gmra.mxu1 %vm1292_vm1, %v4015_v3  ;;  %4717 = vmatpush.msrb.mxu3 %v8234_v61 }
 0x814   : > { %8296 = vmatmul.msk.f32.gmra.mxu2 %vm1292_vm1, %v11740_v39  ;;  %v3812_v40 = vadd.f32 %v13841_v55, %v3399_v28  ;;  %v3854_v55 = vld [vmem:[%s13751_s6 + $0xa0] sm:$0xff]  ;;  %v8232_v1 = vld [vmem:[%s13752_s7 + $0x90] sm:$0xff] }
 0x816   : > { %v3894_v12 = vadd.f32 %v3853_v9, %v3812_v40  ;;  %8046 = vmatmul.msk.f32.gmra.mxu3 %vm2474_vm4, %v8004_v15  ;;  %v8233_v15 = vld [vmem:[%s13752_s7 + $0x98] sm:$0xff] }
 0x817   : > { %v11766_v2 = vpop.f32.mrf.mxu0  ;;  %v8005_v40 = vld [vmem:[%s13755_s10 + $0x3b8] sm:$0xff]  ;;  %4718 = vmatpush.msrb.mxu3 %v8233_v15  ;;  %v8230_v15 = vld [vmem:[%s13752_s7 + $0x80] sm:$0xff] }
 0x818   : > { %13842 = vst [vmem:[#allocation17_spill] sm:$0xff] %v11766_v2  ;;  %v11768_v14 = vpop.f32.mrf.mxu1  ;;  %v3935_v46 = vmax.f32 %v3894_v12, 0.0 }
 0x819   : > { %13843 = vst [vmem:[#allocation27_spill] sm:$0xff] %v11768_v14  ;;  %v3317_v7 = vpop.f32.mrf.mxu3  ;;  %v4059_v3 = vld [vmem:[#allocation3 + $0x89] sm:$0xff]  ;;  %4719 = vmatpush.msrb.mxu3 %v8232_v1 }
 0x81a   : > { %v4016_v28 = vld [vmem:[#allocation3 + $0x90] sm:$0xff]  ;;  %3976 = vst.msk [vmem:[#allocation3 + $0x98] sm:$0xff] %vm1292_vm1, %v3935_v46  ;;  %v3400_v9 = vadd.f32 %v3317_v7, %v2946_v53  ;;  %8175 = vmatmul.msk.f32.gmra.mxu0 %vm1292_vm1, %v4059_v3  ;;  %v8231_v53 = vld [vmem:[%s13752_s7 + $0x88] sm:$0xff] }
 0x81b   : > { %v11775_v13 = vld [vmem:[#allocation3 + $0x8a] sm:$0xff]  ;;  %8212 = vmatmul.msk.f32.gmra.mxu1 %vm1292_vm1, %v4016_v28  ;;  %4720 = vmatpush.msrb.mxu3 %v8231_v53  ;;  %v13849_v7 = vld [vmem:[#allocation8_spill] sm:$0xff]  ;;  %v8006_v53 = vld [vmem:[%s13755_s10 + $0x3c0] sm:$0xff] }
 0x81c   : > { %8297 = vmatmul.msk.f32.gmra.mxu2 %vm1292_vm1, %v11775_v13  ;;  %v3813_v12 = vadd.f32 %v13846_v34, %v3400_v9  ;;  %v13850_v3 = vld [vmem:[#allocation29_spill] sm:$0xff] }
 0x81d   : > { %v2949_v28 = vadd.f32 %v13850_v3, %v13849_v7  ;;  %4721 = vmatpush.msrb.mxu3 %v8230_v15  ;;  %v13852_v7 = vld [vmem:[#allocation37_spill] sm:$0xff] }
 0x81e   : > { %v3895_v16 = vadd.f32 %v3854_v55, %v3813_v12  ;;  %8047 = vmatmul.msk.f32.gmra.mxu3 %vm2474_vm4, %v8005_v40 }
 0x81f   : > { %v11801_v46 = vpop.f32.mrf.mxu0 }
 0x820   : > { %13847 = vst [vmem:[#allocation33_spill] sm:$0xff] %v11801_v46  ;;  %v11803_v61 = vpop.f32.mrf.mxu1  ;;  %v3936_v9 = vmax.f32 %v3895_v16, 0.0  ;;  %v3855_v16 = vld [vmem:[%s13751_s6 + $0xa8] sm:$0xff] }
 0x821   : > { %13848 = vst [vmem:[#allocation5_spill] sm:$0xff] %v11803_v61  ;;  %v3320_v55 = vpop.f32.mrf.mxu3  ;;  %v4060_v34 = vld [vmem:[#allocation3 + $0x91] sm:$0xff] }
 0x822   : > { %v4017_v40 = vld [vmem:[#allocation3 + $0x98] sm:$0xff]  ;;  %3977 = vst.msk [vmem:[#allocation3 + $0xa0] sm:$0xff] %vm1292_vm1, %v3936_v9  ;;  %v3401_v1 = vadd.f32 %v3320_v55, %v2949_v28  ;;  %8176 = vmatmul.msk.f32.gmra.mxu0 %vm1292_vm1, %v4060_v34 }
 0x823   : > { %v11810_v12 = vld [vmem:[#allocation3 + $0x92] sm:$0xff]  ;;  %8213 = vmatmul.msk.f32.gmra.mxu1 %vm1292_vm1, %v4017_v40 }
 0x824   : > { %13851 = vst [vmem:[#allocation28_spill] sm:$0xff] %v11810_v12  ;;  %8298 = vmatmul.msk.f32.gmra.mxu2 %vm1292_vm1, %v11810_v12  ;;  %v3814_v3 = vadd.f32 %v13852_v7, %v3401_v1  ;;  %v13856_v34 = vld [vmem:[#allocation11_spill] sm:$0xff]  ;;  %v13857_v40 = vld [vmem:[#allocation30_spill] sm:$0xff] }
 0x825   : > { %v2952_v61 = vadd.f32 %v13857_v40, %v13856_v34  ;;  %v13859_v7 = vld [vmem:[#allocation38_spill] sm:$0xff] }
 0x826   : > { %v3896_v15 = vadd.f32 %v3855_v16, %v3814_v3  ;;  %8048 = vmatmul.msk.f32.gmra.mxu3 %vm2474_vm4, %v8006_v53  ;;  %v3856_v16 = vld [vmem:[%s13751_s6 + $0xb0] sm:$0xff]  ;;  %v8007_v53 = vld [vmem:[%s13755_s10 + $0x3c8] sm:$0xff] }
 0x827   : > { %v11824_v9 = vpop.f32.mrf.mxu2  ;;  %v11827_v28 = vpop.f32.mrf.mxu0 }
 0x828   : > { %13853 = vst [vmem:[#allocation35_spill] sm:$0xff] %v11824_v9  ;;  %v11829_v55 = vpop.f32.mrf.mxu1  ;;  %v3937_v14 = vmax.f32 %v3896_v15, 0.0 }
 0x829   : > { %13854 = vst [vmem:[#allocation8_spill] sm:$0xff] %v11827_v28  ;;  %v3323_v46 = vpop.f32.mrf.mxu3  ;;  %v4061_v12 = vld [vmem:[#allocation3 + $0x99] sm:$0xff] }
 0x82a   : > { %13855 = vst [vmem:[#allocation29_spill] sm:$0xff] %v11829_v55  ;;  %v4018_v6 = vld [vmem:[#allocation3 + $0xa0] sm:$0xff]  ;;  %v3402_v1 = vadd.f32 %v3323_v46, %v2952_v61  ;;  %8177 = vmatmul.msk.f32.gmra.mxu0 %vm1292_vm1, %v4061_v12 }
 0x82b   : > { %v11833_v2 = vld [vmem:[#allocation3 + $0x9a] sm:$0xff]  ;;  %3978 = vst.msk [vmem:[#allocation3 + $0xa8] sm:$0xff] %vm1292_vm1, %v3937_v14  ;;  %8214 = vmatmul.msk.f32.gmra.mxu1 %vm1292_vm1, %v4018_v6 }
 0x82c   : > { %13858 = vst [vmem:[#allocation37_spill] sm:$0xff] %v11833_v2  ;;  %8299 = vmatmul.msk.f32.gmra.mxu2 %vm1292_vm1, %v11833_v2  ;;  %v3815_v3 = vadd.f32 %v13859_v7, %v3402_v1  ;;  %v13863_v61 = vld [vmem:[#allocation12_spill] sm:$0xff] }
 0x82d   : > { %v13864_v12 = vld [vmem:[#allocation32_spill] sm:$0xff] }
 0x82e   : > { %v3897_v15 = vadd.f32 %v3856_v16, %v3815_v3  ;;  %8049 = vmatmul.msk.f32.gmra.mxu3 %vm2474_vm4, %v8007_v53  ;;  %v2955_v34 = vadd.f32 %v13864_v12, %v13863_v61  ;;  %v3857_v16 = vld [vmem:[%s13751_s6 + $0xb8] sm:$0xff]  ;;  %v8008_v53 = vld [vmem:[%s13755_s10 + $0x3d0] sm:$0xf] }
 0x82f   : > { %v11847_v14 = vpop.f32.mrf.mxu2  ;;  %v11850_v46 = vpop.f32.mrf.mxu0  ;;  %v13866_v7 = vld [vmem:[#allocation40_spill] sm:$0xff]  ;;  %v13871_v12 = vld [vmem:[#allocation34_spill] sm:$0xff] }
 0x830   : > { %13860 = vst [vmem:[#allocation11_spill] sm:$0xff] %v11847_v14  ;;  %v11852_v6 = vpop.f32.mrf.mxu1  ;;  %v3938_v40 = vmax.f32 %v3897_v15, 0.0 }
 0x831   : > { %13861 = vst [vmem:[#allocation30_spill] sm:$0xff] %v11850_v46  ;;  %v3326_v9 = vpop.f32.mrf.mxu3 }
 0x832   : > { %13862 = vst [vmem:[#allocation38_spill] sm:$0xff] %v11852_v6  ;;  %v4062_v55 = vld [vmem:[#allocation3 + $0xa1] sm:$0xff]  ;;  %v3403_v1 = vadd.f32 %v3326_v9, %v2955_v34 }
 0x833   : > { %v4019_v28 = vld [vmem:[#allocation3 + $0xa8] sm:$0xff]  ;;  %3979 = vst.msk [vmem:[#allocation3 + $0xb0] sm:$0xff] %vm1292_vm1, %v3938_v40  ;;  %8178 = vmatmul.msk.f32.gmra.mxu0 %vm1292_vm1, %v4062_v55  ;;  %v13870_v55 = vld [vmem:[#allocation18_spill] sm:$0xff] }
 0x834   : > { %v11856_v2 = vld [vmem:[#allocation3 + $0xa2] sm:$0xff]  ;;  %8215 = vmatmul.msk.f32.gmra.mxu1 %vm1292_vm1, %v4019_v28  ;;  %v3816_v3 = vadd.f32 %v13866_v7, %v3403_v1  ;;  %v2958_v34 = vadd.f32 %v13871_v12, %v13870_v55 }
 0x835   : > { %13865 = vst [vmem:[#allocation12_spill] sm:$0xff] %v11856_v2  ;;  %8300 = vmatmul.msk.f32.gmra.mxu2 %vm1292_vm1, %v11856_v2  ;;  %v13878_v12 = vld [vmem:[#allocation36_spill] sm:$0xff] }
 0x836   : > { %v3898_v15 = vadd.f32 %v3857_v16, %v3816_v3  ;;  %8050 = vmatmul.msk.f32.gmra.mxu3 %vm2474_vm4, %v8008_v53  ;;  %v3858_v16 = vld [vmem:[%s13751_s6 + $0xc0] sm:$0xff]  ;;  %v4553_v3 = vld [vmem:[#allocation3 + $0x2] sm:$0xff] }
 0x837   : > { %v11870_v61 = vpop.f32.mrf.mxu2  ;;  %v11873_v9 = vpop.f32.mrf.mxu0  ;;  %v13873_v53 = vld [vmem:[#allocation42_spill] sm:$0xff] }
 0x838   : > { %13867 = vst [vmem:[#allocation32_spill] sm:$0xff] %v11870_v61  ;;  %v11875_v28 = vpop.f32.mrf.mxu1  ;;  %v3939_v40 = vmax.f32 %v3898_v15, 0.0 }
 0x839   : > { %13868 = vst [vmem:[#allocation40_spill] sm:$0xff] %v11873_v9  ;;  %v3329_v14 = vpop.f32.mrf.mxu3 }
 0x83a   : > { %13869 = vst [vmem:[#allocation43_spill] sm:$0xff] %v11875_v28  ;;  %v4063_v6 = vld [vmem:[#allocation3 + $0xa9] sm:$0xff]  ;;  %v3404_v1 = vadd.f32 %v3329_v14, %v2958_v34 }
 0x83b   : > { %v4020_v46 = vld [vmem:[#allocation3 + $0xb0] sm:$0xff]  ;;  %3980 = vst.msk [vmem:[#allocation3 + $0xb8] sm:$0xff] %vm1292_vm1, %v3939_v40  ;;  %8179 = vmatmul.msk.f32.gmra.mxu0 %vm1292_vm1, %v4063_v6 }
 0x83c   : > { %v11879_v2 = vld [vmem:[#allocation3 + $0xaa] sm:$0xff]  ;;  %8216 = vmatmul.msk.f32.gmra.mxu1 %vm1292_vm1, %v4020_v46  ;;  %v3817_v7 = vadd.f32 %v13873_v53, %v3404_v1 }
 0x83d   : > { %13872 = vst [vmem:[#allocation18_spill] sm:$0xff] %v11879_v2  ;;  %8301 = vmatmul.msk.f32.gmra.mxu2 %vm1292_vm1, %v11879_v2  ;;  %v13877_v46 = vld [vmem:[#allocation6_spill] sm:$0xff] }
 0x83e   : > { %v3899_v15 = vadd.f32 %v3858_v16, %v3817_v7  ;;  %8238 = vmatmul.msk.f32.vlgmr.msrb.gmra.mxu3 %vm1292_vm1, %v4553_v3  ;;  %v2961_v34 = vadd.f32 %v13878_v12, %v13877_v46  ;;  %v3859_v16 = vld [vmem:[%s13751_s6 + $0xc8] sm:$0xff]  ;;  %v4554_v7 = vld [vmem:[#allocation3 + $0xa] sm:$0xff] }
 0x83f   : > { %v11890_v55 = vpop.f32.mrf.mxu2  ;;  %v11893_v14 = vpop.f32.mrf.mxu0  ;;  %v13882_v46 = vld [vmem:[#allocation39_spill] sm:$0xff] }
 0x840   : > { %13874 = vst [vmem:[#allocation34_spill] sm:$0xff] %v11890_v55  ;;  %v11895_v6 = vpop.f32.mrf.mxu1  ;;  %v3940_v40 = vmax.f32 %v3899_v15, 0.0 }
 0x841   : > { %13875 = vst [vmem:[#allocation42_spill] sm:$0xff] %v11893_v14  ;;  %v3332_v61 = vpop.f32.mrf.mxu3 }
 0x842   : > { %13876 = vst [vmem:[#allocation44_spill] sm:$0xff] %v11895_v6  ;;  %v4064_v28 = vld [vmem:[#allocation3 + $0xb1] sm:$0xff]  ;;  %v3405_v1 = vadd.f32 %v3332_v61, %v2961_v34 }
 0x843   : > { %v4021_v9 = vld [vmem:[#allocation3 + $0xb8] sm:$0xff]  ;;  %3981 = vst.msk [vmem:[#allocation3 + $0xc0] sm:$0xff] %vm1292_vm1, %v3940_v40  ;;  %8180 = vmatmul.msk.f32.gmra.mxu0 %vm1292_vm1, %v4064_v28 }
 0x844   : > { %v11899_v2 = vld [vmem:[#allocation3 + $0xb2] sm:$0xff]  ;;  %8217 = vmatmul.msk.f32.gmra.mxu1 %vm1292_vm1, %v4021_v9  ;;  %v3818_v53 = vadd.f32 %v11406_v29, %v3405_v1  ;;  %v13881_v9 = vld [vmem:[#allocation9_spill] sm:$0xff] }
 0x845   : > { %8302 = vmatmul.msk.f32.gmra.mxu2 %vm1292_vm1, %v11899_v2  ;;  %v2964_v12 = vadd.f32 %v13882_v46, %v13881_v9  ;;  %v3860_v1 = vld [vmem:[%s13751_s6 + $0xd0] sm:$0xff] }
 0x846   : > { %v3900_v3 = vadd.f32 %v3859_v16, %v3818_v53  ;;  %8239 = vmatmul.msk.f32.gmra.mxu3 %vm1292_vm1, %v4554_v7  ;;  %v13885_v9 = vld [vmem:[#allocation41_spill] sm:$0xff] }
 0x847   : > { %v11910_v15 = vpop.f32.mrf.mxu2  ;;  %v11913_v61 = vpop.f32.mrf.mxu0 }
 0x848   : > { %13879 = vst [vmem:[#allocation6_spill] sm:$0xff] %v11910_v15  ;;  %v11915_v28 = vpop.f32.mrf.mxu1  ;;  %v3941_v34 = vmax.f32 %v3900_v3, 0.0 }
 0x849   : > { %13880 = vst [vmem:[#allocation36_spill] sm:$0xff] %v11915_v28  ;;  %v3335_v40 = vpop.f32.mrf.mxu3 }
 0x84a   : > { %v4065_v55 = vld [vmem:[#allocation3 + $0xb9] sm:$0xff]  ;;  %3982 = vst.msk [vmem:[#allocation3 + $0xc8] sm:$0xff] %vm1292_vm1, %v3941_v34  ;;  %v3406_v29 = vadd.f32 %v3335_v40, %v2964_v12 }
 0x84b   : > { %v4022_v6 = vld [vmem:[#allocation3 + $0xc0] sm:$0xff]  ;;  %8181 = vmatmul.msk.f32.gmra.mxu0 %vm1292_vm1, %v4065_v55 }
 0x84c   : > { %v11919_v14 = vld [vmem:[#allocation3 + $0xba] sm:$0xff]  ;;  %8218 = vmatmul.msk.f32.gmra.mxu1 %vm1292_vm1, %v4022_v6  ;;  %v3819_v16 = vadd.f32 %v11422_v8, %v3406_v29  ;;  %v13884_v6 = vld [vmem:[#allocation13_spill] sm:$0xff] }
 0x84d   : > { %8303 = vmatmul.msk.f32.gmra.mxu2 %vm1292_vm1, %v11919_v14  ;;  %v2967_v46 = vadd.f32 %v13885_v9, %v13884_v6 }
 0x84e   : > { %v3901_v53 = vadd.f32 %v3860_v1, %v3819_v16  ;;  %8240 = vmatmul.msk.f32.gmra.mxu3 %vm1292_vm1, %v11454_v47  ;;  %v3861_v47 = vld [vmem:[%s13751_s6 + $0xd8] sm:$0xff] }
 0x84f   : > { %v11930_v7 = vpop.f32.mrf.mxu2  ;;  %v11934_v3 = vpop.f32.mrf.mxu0 }
 0x850   : > { %13883 = vst [vmem:[#allocation9_spill] sm:$0xff] %v11930_v7  ;;  %v11936_v55 = vpop.f32.mrf.mxu1  ;;  %v3942_v12 = vmax.f32 %v3901_v53, 0.0 }
 0x851   : > { %v3338_v34 = vpop.f32.mrf.mxu3  ;;  %v4066_v40 = vld [vmem:[#allocation3 + $0xc1] sm:$0xff] }
 0x852   : > { %v4023_v15 = vld [vmem:[#allocation3 + $0xc8] sm:$0xff]  ;;  %3983 = vst.msk [vmem:[#allocation3 + $0xd0] sm:$0xff] %vm1292_vm1, %v3942_v12  ;;  %v3407_v8 = vadd.f32 %v3338_v34, %v2967_v46 }
 0x853   : > { %v11940_v28 = vld [vmem:[#allocation3 + $0xc2] sm:$0xff]  ;;  %8182 = vmatmul.msk.f32.gmra.mxu0 %vm1292_vm1, %v4066_v40 }
 0x854   : > { %8219 = vmatmul.msk.f32.gmra.mxu1 %vm1292_vm1, %v4023_v15  ;;  %v3820_v29 = vadd.f32 %v11440_v54, %v3407_v8  ;;  %v13887_v15 = vld [vmem:[#allocation14_spill] sm:$0xff] }
 0x855   : > { %8304 = vmatmul.msk.f32.gmra.mxu2 %vm1292_vm1, %v11940_v28  ;;  %v2970_v9 = vadd.f32 %v11401_v57, %v13887_v15  ;;  %v13889_v15 = vld [vmem:[#allocation19_spill] sm:$0xff] }
 0x856   : > { %v3902_v1 = vadd.f32 %v3861_v47, %v3820_v29  ;;  %8241 = vmatmul.msk.f32.gmra.mxu3 %vm1292_vm1, %v11475_v23  ;;  %v3862_v23 = vld [vmem:[%s13751_s6 + $0xe0] sm:$0xff] }
 0x857   : > { %v11951_v16 = vpop.f32.mrf.mxu2  ;;  %v11955_v53 = vpop.f32.mrf.mxu0 }
 0x858   : > { %13886 = vst [vmem:[#allocation39_spill] sm:$0xff] %v11951_v16  ;;  %v11957_v6 = vpop.f32.mrf.mxu1  ;;  %v3943_v46 = vmax.f32 %v3902_v1, 0.0 }
 0x859   : > { %v3341_v12 = vpop.f32.mrf.mxu3  ;;  %v4067_v34 = vld [vmem:[#allocation3 + $0xc9] sm:$0xff] }
 0x85a   : > { %v4024_v40 = vld [vmem:[#allocation3 + $0xd0] sm:$0xff]  ;;  %3984 = vst.msk [vmem:[#allocation3 + $0xd8] sm:$0xff] %vm1292_vm1, %v3943_v46  ;;  %v3408_v54 = vadd.f32 %v3341_v12, %v2970_v9  ;;  %v2973_v9 = vadd.f32 %v11420_v18, %v13889_v15  ;;  %v13891_v15 = vld [vmem:[#allocation7_spill] sm:$0xff] }
 0x85b   : > { %v11961_v7 = vld [vmem:[#allocation3 + $0xca] sm:$0xff]  ;;  %8183 = vmatmul.msk.f32.gmra.mxu0 %vm1292_vm1, %v4067_v34 }
 0x85c   : > { %8220 = vmatmul.msk.f32.gmra.mxu1 %vm1292_vm1, %v4024_v40  ;;  %v3821_v57 = vadd.f32 %v11468_v5, %v3408_v54 }
 0x85d   : > { %8305 = vmatmul.msk.f32.gmra.mxu2 %vm1292_vm1, %v11961_v7 }
 0x85e   : > { %v3903_v8 = vadd.f32 %v3862_v23, %v3821_v57  ;;  %8242 = vmatmul.msk.f32.gmra.mxu3 %vm1292_vm1, %v11496_v37  ;;  %v3863_v37 = vld [vmem:[%s13751_s6 + $0xe8] sm:$0xff] }
 0x85f   : > { %v11972_v47 = vpop.f32.mrf.mxu2  ;;  %v11976_v29 = vpop.f32.mrf.mxu0 }
 0x860   : > { %13888 = vst [vmem:[#allocation13_spill] sm:$0xff] %v11972_v47  ;;  %v11978_v1 = vpop.f32.mrf.mxu1  ;;  %v3944_v46 = vmax.f32 %v3903_v8, 0.0 }
 0x861   : > { %v3344_v12 = vpop.f32.mrf.mxu3  ;;  %v4068_v34 = vld [vmem:[#allocation3 + $0xd1] sm:$0xff] }
 0x862   : > { %v4025_v40 = vld [vmem:[#allocation3 + $0xd8] sm:$0xff]  ;;  %3985 = vst.msk [vmem:[#allocation3 + $0xe0] sm:$0xff] %vm1292_vm1, %v3944_v46  ;;  %v3409_v5 = vadd.f32 %v3344_v12, %v2973_v9  ;;  %v2976_v9 = vadd.f32 %v11442_v32, %v13891_v15 }
 0x863   : > { %v11982_v16 = vld [vmem:[#allocation3 + $0xd2] sm:$0xff]  ;;  %8184 = vmatmul.msk.f32.gmra.mxu0 %vm1292_vm1, %v4068_v34 }
 0x864   : > { %8221 = vmatmul.msk.f32.gmra.mxu1 %vm1292_vm1, %v4025_v40  ;;  %v3822_v18 = vadd.f32 %v11490_v17, %v3409_v5  ;;  %v13893_v15 = vld [vmem:[#allocation10_spill] sm:$0xff] }
 0x865   : > { %8306 = vmatmul.msk.f32.gmra.mxu2 %vm1292_vm1, %v11982_v16 }
 0x866   : > { %v3904_v54 = vadd.f32 %v3863_v37, %v3822_v18  ;;  %8243 = vmatmul.msk.f32.gmra.mxu3 %vm1292_vm1, %v11517_v10  ;;  %v3864_v10 = vld [vmem:[%s13751_s6 + $0xf0] sm:$0xff] }
 0x867   : > { %v11993_v23 = vpop.f32.mrf.mxu2  ;;  %v11997_v57 = vpop.f32.mrf.mxu0 }
 0x868   : > { %13890 = vst [vmem:[#allocation41_spill] sm:$0xff] %v11993_v23  ;;  %v11999_v8 = vpop.f32.mrf.mxu1  ;;  %v3945_v46 = vmax.f32 %v3904_v54, 0.0 }
 0x869   : > { %v3347_v12 = vpop.f32.mrf.mxu3  ;;  %v4069_v34 = vld [vmem:[#allocation3 + $0xd9] sm:$0xff] }
 0x86a   : > { %v4026_v40 = vld [vmem:[#allocation3 + $0xe0] sm:$0xff]  ;;  %3986 = vst.msk [vmem:[#allocation3 + $0xe8] sm:$0xff] %vm1292_vm1, %v3945_v46  ;;  %v3410_v17 = vadd.f32 %v3347_v12, %v2976_v9  ;;  %v2979_v9 = vadd.f32 %v11470_v19, %v13893_v15 }
 0x86b   : > { %v12003_v47 = vld [vmem:[#allocation3 + $0xda] sm:$0xff]  ;;  %8185 = vmatmul.msk.f32.gmra.mxu0 %vm1292_vm1, %v4069_v34 }
 0x86c   : > { %8222 = vmatmul.msk.f32.gmra.mxu1 %vm1292_vm1, %v4026_v40  ;;  %v3823_v32 = vadd.f32 %v11513_v31, %v3410_v17  ;;  %v13895_v15 = vld [vmem:[#allocation15_spill] sm:$0xff] }
 0x86d   : > { %8307 = vmatmul.msk.f32.gmra.mxu2 %vm1292_vm1, %v12003_v47 }
 0x86e   : > { %v3905_v5 = vadd.f32 %v3864_v10, %v3823_v32  ;;  %8244 = vmatmul.msk.f32.gmra.mxu3 %vm1292_vm1, %v11534_v21  ;;  %v3865_v21 = vld [vmem:[%s13751_s6 + $0xf8] sm:$0xff] }
 0x86f   : > { %v12014_v37 = vpop.f32.mrf.mxu2  ;;  %v12018_v18 = vpop.f32.mrf.mxu0 }
 0x870   : > { %13892 = vst [vmem:[#allocation14_spill] sm:$0xff] %v12014_v37  ;;  %v12020_v54 = vpop.f32.mrf.mxu1  ;;  %v3946_v46 = vmax.f32 %v3905_v5, 0.0 }
 0x871   : > { %v3350_v12 = vpop.f32.mrf.mxu3  ;;  %v4070_v34 = vld [vmem:[#allocation3 + $0xe1] sm:$0xff] }
 0x872   : > { %v4027_v40 = vld [vmem:[#allocation3 + $0xe8] sm:$0xff]  ;;  %3987 = vst.msk [vmem:[#allocation3 + $0xf0] sm:$0xff] %vm1292_vm1, %v3946_v46  ;;  %v3411_v31 = vadd.f32 %v3350_v12, %v2979_v9  ;;  %v2982_v9 = vadd.f32 %v11492_v25, %v13895_v15 }
 0x873   : > { %v12024_v23 = vld [vmem:[#allocation3 + $0xe2] sm:$0xff]  ;;  %8186 = vmatmul.msk.f32.gmra.mxu0 %vm1292_vm1, %v4070_v34 }
 0x874   : > { %8223 = vmatmul.msk.f32.gmra.mxu1 %vm1292_vm1, %v4027_v40  ;;  %v3824_v19 = vadd.f32 %v11539_v33, %v3411_v31 }
 0x875   : > { %8308 = vmatmul.msk.f32.gmra.mxu2 %vm1292_vm1, %v12024_v23 }
 0x876   : > { %v3906_v17 = vadd.f32 %v3865_v21, %v3824_v19  ;;  %8245 = vmatmul.msk.f32.gmra.mxu3 %vm1292_vm1, %v11555_v63  ;;  %v3866_v63 = vld [vmem:[%s13751_s6 + $0x100] sm:$0xff]  ;;  %v8369_v19 = vld [vmem:[%s13752_s7 + $0x178] sm:$0xff] }
 0x877   : > { %v12035_v10 = vpop.f32.mrf.mxu2  ;;  %v12039_v32 = vpop.f32.mrf.mxu0  ;;  %5656 = vmatpush.msra.mxu1 %v8369_v19  ;;  %v8366_v19 = vld [vmem:[%s13752_s7 + $0x160] sm:$0xff] }
 0x878   : > { %13894 = vst [vmem:[#allocation19_spill] sm:$0xff] %v12035_v10  ;;  %v12041_v5 = vpop.f32.mrf.mxu1  ;;  %v3947_v46 = vmax.f32 %v3906_v17, 0.0  ;;  %v5495_v10 = vld [vmem:[#allocation3 + $0x14] sm:$0xff] }
 0x879   : > { %v3353_v12 = vpop.f32.mrf.mxu3  ;;  %v4071_v34 = vld [vmem:[#allocation3 + $0xe9] sm:$0xff] }
 0x87a   : > { %v4028_v40 = vld [vmem:[#allocation3 + $0xf0] sm:$0xff]  ;;  %3988 = vst.msk [vmem:[#allocation3 + $0xf8] sm:$0xff] %vm1292_vm1, %v3947_v46  ;;  %v3412_v33 = vadd.f32 %v3353_v12, %v2982_v9  ;;  %v13897_v9 = vld [vmem:[#allocation16_spill] sm:$0xff] }
 0x87b   : > { %v12045_v37 = vld [vmem:[#allocation3 + $0xea] sm:$0xff]  ;;  %8187 = vmatmul.msk.f32.gmra.mxu0 %vm1292_vm1, %v4071_v34  ;;  %v2985_v46 = vadd.f32 %v11515_v51, %v13897_v9  ;;  %v8367_v51 = vld [vmem:[%s13752_s7 + $0x168] sm:$0xff] }
 0x87c   : > { %8224 = vmatmul.msk.f32.gmra.mxu1 %vm1292_vm1, %v4028_v40  ;;  %v3825_v25 = vadd.f32 %v11569_v59, %v3412_v33  ;;  %v8368_v59 = vld [vmem:[%s13752_s7 + $0x170] sm:$0xff] }
 0x87d   : > { %8309 = vmatmul.msk.f32.gmra.mxu2 %vm1292_vm1, %v12045_v37  ;;  %5657 = vmatpush.msra.mxu1 %v8368_v59  ;;  %v8365_v59 = vld [vmem:[%s13752_s7 + $0x158] sm:$0xff] }
 0x87e   : > { %v3907_v31 = vadd.f32 %v3866_v63, %v3825_v25  ;;  %8246 = vmatmul.msk.f32.gmra.mxu3 %vm1292_vm1, %v11576_v45  ;;  %v3867_v25 = vld [vmem:[%s13751_s6 + $0x108] sm:$0xff] }
 0x87f   : > { %v12056_v21 = vpop.f32.mrf.mxu2  ;;  %v12063_v17 = vpop.f32.mrf.mxu0  ;;  %5658 = vmatpush.msra.mxu1 %v8367_v51  ;;  %v8364_v51 = vld [vmem:[%s13752_s7 + $0x150] sm:$0xff] }
 0x880   : > { %13896 = vst [vmem:[#allocation7_spill] sm:$0xff] %v12056_v21  ;;  %v12065_v15 = vpop.f32.mrf.mxu1  ;;  %v3948_v12 = vmax.f32 %v3907_v31, 0.0 }
 0x881   : > { %v3356_v34 = vpop.f32.mrf.mxu3  ;;  %v4072_v40 = vld [vmem:[#allocation3 + $0xf1] sm:$0xff]  ;;  %5659 = vmatpush.msra.mxu1 %v8366_v19 }
 0x882   : > { %v4029_v45 = vld [vmem:[#allocation3 + $0xf8] sm:$0xff]  ;;  %3989 = vst.msk [vmem:[#allocation3 + $0x100] sm:$0xff] %vm1292_vm1, %v3948_v12  ;;  %v3413_v63 = vadd.f32 %v3356_v34, %v2985_v46  ;;  %v8325_v12 = vld [vmem:[%s13752_s7 + $0x138] sm:$0xff] }
 0x883   : > { %v12072_v33 = vld [vmem:[#allocation3 + $0xf2] sm:$0xff]  ;;  %8188 = vmatmul.msk.f32.gmra.mxu0 %vm1292_vm1, %v4072_v40  ;;  %5660 = vmatpush.msra.mxu1 %v8365_v59  ;;  %v13899_v40 = vld [vmem:[#allocation20_spill] sm:$0xff] }
 0x884   : > { %8225 = vmatmul.msk.f32.gmra.mxu1 %vm1292_vm1, %v4029_v45  ;;  %v3826_v31 = vadd.f32 %v11591_v0, %v3413_v63  ;;  %5342 = vmatpush.msra.mxu0 %v8325_v12  ;;  %v2988_v45 = vadd.f32 %v11541_v48, %v13899_v40  ;;  %v8323_v48 = vld [vmem:[%s13752_s7 + $0x128] sm:$0xff]  ;;  %v3868_v59 = vld [vmem:[%s13751_s6 + $0x110] sm:$0xff] }
 0x885   : > { %8310 = vmatmul.msk.f32.gmra.mxu2 %vm1292_vm1, %v12072_v33  ;;  %5661 = vmatpush.msra.mxu1 %v8364_v51 }
 0x886   : > { %v3908_v9 = vadd.f32 %v3867_v25, %v3826_v31  ;;  %8247 = vmatmul.msk.f32.gmra.mxu3 %vm1292_vm1, %v11597_v42  ;;  %v8324_v42 = vld [vmem:[%s13752_s7 + $0x130] sm:$0xff] }
 0x887   : > { %v12089_v46 = vpop.f32.mrf.mxu2  ;;  %v12099_v0 = vpop.f32.mrf.mxu0  ;;  %5343 = vmatpush.msra.mxu0 %v8324_v42 }
 0x888   : > { %13898 = vst [vmem:[#allocation10_spill] sm:$0xff] %v12089_v46  ;;  %v12101_v34 = vpop.f32.mrf.mxu1  ;;  %v3949_v63 = vmax.f32 %v3908_v9, 0.0  ;;  %v8363_v9 = vld [vmem:[%s13752_s7 + $0x148] sm:$0xff] }
 0x889   : > { %v3359_v25 = vpop.f32.mrf.mxu3  ;;  %v4073_v31 = vld [vmem:[#allocation3 + $0xf9] sm:$0xff]  ;;  %5344 = vmatpush.msra.mxu0 %v8323_v48  ;;  %5662 = vmatpush.msra.mxu1 %v8363_v9  ;;  %v8320_v9 = vld [vmem:[%s13752_s7 + $0x110] sm:$0xff] }
 0x88a   : > { %v4030_v19 = vld [vmem:[#allocation3 + $0x100] sm:$0xff]  ;;  %3990 = vst.msk [vmem:[#allocation3 + $0x108] sm:$0xff] %vm1292_vm1, %v3949_v63  ;;  %v3414_v12 = vadd.f32 %v3359_v25, %v2988_v45  ;;  %v8322_v45 = vld [vmem:[%s13752_s7 + $0x120] sm:$0xff] }
 0x88b   : > { %v12111_v46 = vld [vmem:[#allocation3 + $0xfa] sm:$0xff]  ;;  %8189 = vmatmul.msk.f32.gmra.mxu0 %vm1292_vm1, %v4073_v31 }
 0x88c   : > { %8226 = vmatmul.msk.f32.gmra.mxu1 %vm1292_vm1, %v4030_v19  ;;  %v3827_v40 = vadd.f32 %v11614_v62, %v3414_v12  ;;  %v8362_v63 = vld [vmem:[%s13752_s7 + $0x140] sm:$0xff]  ;;  %5345 = vmatpush.msra.mxu0 %v8322_v45  ;;  %v8321_v62 = vld [vmem:[%s13752_s7 + $0x118] sm:$0xff] }
 0x88d   : > { %8311 = vmatmul.msk.f32.gmra.mxu2 %vm1292_vm1, %v12111_v46  ;;  %5663 = vmatpush.msra.mxu1 %v8362_v63  ;;  %v13901_v19 = vld [vmem:[#allocation21_spill] sm:$0xff] }
 0x88e   : > { %v3909_v42 = vadd.f32 %v3868_v59, %v3827_v40  ;;  %8248 = vmatmul.msk.f32.gmra.mxu3 %vm1292_vm1, %v11618_v38  ;;  %5346 = vmatpush.msra.mxu0 %v8321_v62  ;;  %v2991_v12 = vadd.f32 %v11571_v43, %v13901_v19  ;;  %v8319_v43 = vld [vmem:[%s13752_s7 + $0x108] sm:$0xff]  ;;  %v8318_v19 = vld [vmem:[%s13752_s7 + $0x100] sm:$0xff] }
 0x88f   : > { %v12134_v51 = vpop.f32.mrf.mxu2  ;;  %v12141_v25 = vpop.f32.mrf.mxu0 }
 0x890   : > { %13900 = vst [vmem:[#allocation15_spill] sm:$0xff] %v12134_v51  ;;  %v12143_v31 = vpop.f32.mrf.mxu1  ;;  %v3950_v48 = vmax.f32 %v3909_v42, 0.0  ;;  %5347 = vmatpush.msra.mxu0 %v8320_v9  ;;  %v3869_v42 = vld [vmem:[%s13751_s6 + $0x118] sm:$0xff] }
 0x891   : > { %v3362_v59 = vpop.f32.mrf.mxu3  ;;  %v4074_v38 = vld [vmem:[#allocation3 + $0x101] sm:$0xff]  ;;  %v8457_v9 = vld [vmem:[%s13752_s7 + $0x1f8] sm:$0xff] }
 0x892   : > { %v4031_v40 = vld [vmem:[#allocation3 + $0x108] sm:$0xff]  ;;  %3991 = vst.msk [vmem:[#allocation3 + $0x110] sm:$0xff] %vm1292_vm1, %v3950_v48  ;;  %v3415_v63 = vadd.f32 %v3362_v59, %v2991_v12  ;;  %5348 = vmatpush.msra.mxu0 %v8319_v43  ;;  %6284 = vmatpush.msra.mxu2 %v8457_v9 }
 0x893   : > { %v12150_v45 = vld [vmem:[#allocation3 + $0x102] sm:$0xff]  ;;  %8190 = vmatmul.msk.f32.gmra.mxu0 %vm1292_vm1, %v4074_v38 }
 0x894   : > { %8227 = vmatmul.msk.f32.gmra.mxu1 %vm1292_vm1, %v4031_v40  ;;  %v3828_v62 = vadd.f32 %v11640_v30, %v3415_v63  ;;  %5349 = vmatpush.msra.mxu0 %v8318_v19  ;;  %v13903_v30 = vld [vmem:[#allocation22_spill] sm:$0xff]  ;;  %v8456_v43 = vld [vmem:[%s13752_s7 + $0x1f0] sm:$0xff] }
 0x895   : > { %8312 = vmatmul.msk.f32.gmra.mxu2 %vm1292_vm1, %v12150_v45  ;;  %v2994_v40 = vadd.f32 %v11593_v36, %v13903_v30  ;;  %v8455_v36 = vld [vmem:[%s13752_s7 + $0x1e8] sm:$0xff]  ;;  %v8454_v30 = vld [vmem:[%s13752_s7 + $0x1e0] sm:$0xff] }
 0x896   : > { %v3910_v12 = vadd.f32 %v3869_v42, %v3828_v62  ;;  %8249 = vmatmul.msk.f32.gmra.mxu3 %vm1292_vm1, %v11635_v35  ;;  %6285 = vmatpush.msra.mxu2 %v8456_v43  ;;  %v8453_v43 = vld [vmem:[%s13752_s7 + $0x1d8] sm:$0xff] }
 0x897   : > { %v12167_v48 = vpop.f32.mrf.mxu2  ;;  %v12174_v59 = vpop.f32.mrf.mxu0 }
 0x898   : > { %13902 = vst [vmem:[#allocation16_spill] sm:$0xff] %v12167_v48  ;;  %v12176_v38 = vpop.f32.mrf.mxu1  ;;  %v3951_v63 = vmax.f32 %v3910_v12, 0.0  ;;  %v3870_v12 = vld [vmem:[%s13751_s6 + $0x120] sm:$0xff]  ;;  %6286 = vmatpush.msra.mxu2 %v8455_v36  ;;  %v8452_v36 = vld [vmem:[%s13752_s7 + $0x1d0] sm:$0xff] }
 0x899   : > { %v3365_v42 = vpop.f32.mrf.mxu3  ;;  %v4075_v62 = vld [vmem:[#allocation3 + $0x109] sm:$0xff] }
 0x89a   : > { %v4032_v35 = vld [vmem:[#allocation3 + $0x110] sm:$0xff]  ;;  %3992 = vst.msk [vmem:[#allocation3 + $0x118] sm:$0xff] %vm1292_vm1, %v3951_v63  ;;  %v3416_v51 = vadd.f32 %v3365_v42, %v2994_v40  ;;  %6287 = vmatpush.msra.mxu2 %v8454_v30 }
 0x89b   : > { %v12183_v19 = vld [vmem:[#allocation3 + $0x10a] sm:$0xff]  ;;  %8191 = vmatmul.msk.f32.gmra.mxu0 %vm1292_vm1, %v4075_v62 }
 0x89c   : > { %8228 = vmatmul.msk.f32.gmra.mxu1 %vm1292_vm1, %v4032_v35  ;;  %v3829_v9 = vadd.f32 %v11670_v11, %v3416_v51  ;;  %v13905_v11 = vld [vmem:[#allocation23_spill] sm:$0xff]  ;;  %6288 = vmatpush.msra.mxu2 %v8453_v43 }
 0x89d   : > { %8313 = vmatmul.msk.f32.gmra.mxu2 %vm1292_vm1, %v12183_v19  ;;  %v2997_v51 = vadd.f32 %v11616_v4, %v13905_v11  ;;  %v3871_v4 = vld [vmem:[%s13751_s6 + $0x128] sm:$0xff]  ;;  %v8450_v11 = vld [vmem:[%s13752_s7 + $0x1c0] sm:$0xff] }
 0x89e   : > { %v3911_v40 = vadd.f32 %v3870_v12, %v3829_v9  ;;  %8250 = vmatmul.msk.f32.gmra.mxu3 %vm1292_vm1, %v11656_v26  ;;  %6289 = vmatpush.msra.mxu2 %v8452_v36 }
 0x89f   : > { %v12200_v63 = vpop.f32.mrf.mxu2  ;;  %v12207_v42 = vpop.f32.mrf.mxu0 }
 0x8a0   : > { %13904 = vst [vmem:[#allocation20_spill] sm:$0xff] %v12200_v63  ;;  %v12209_v62 = vpop.f32.mrf.mxu1  ;;  %v3952_v35 = vmax.f32 %v3911_v40, 0.0  ;;  %v8451_v40 = vld [vmem:[%s13752_s7 + $0x1c8] sm:$0xff] }
 0x8a1   : > { %v3368_v12 = vpop.f32.mrf.mxu3  ;;  %v4076_v26 = vld [vmem:[#allocation3 + $0x111] sm:$0xff]  ;;  %6290 = vmatpush.msra.mxu2 %v8451_v40  ;;  %v4077_v36 = vld [vmem:[#allocation3 + $0x119] sm:$0x3f] }
 0x8a2   : > { %v4033_v9 = vld [vmem:[#allocation3 + $0x118] sm:$0x3f]  ;;  %3993 = vst.msk [vmem:[#allocation3 + $0x120] sm:$0xff] %vm1292_vm1, %v3952_v35  ;;  %v3417_v48 = vadd.f32 %v3368_v12, %v2997_v51 }
 0x8a3   : > { %v12216_v30 = vld [vmem:[#allocation3 + $0x112] sm:$0xff]  ;;  %8192 = vmatmul.msk.f32.gmra.mxu0 %vm1292_vm1, %v4076_v26  ;;  %6291 = vmatpush.msra.mxu2 %v8450_v11 }
 0x8a4   : > { %8229 = vmatmul.msk.f32.gmra.mxu1 %vm1292_vm1, %v4033_v9  ;;  %v3830_v43 = vadd.f32 %v11692_v20, %v3417_v48  ;;  %v13907_v9 = vld [vmem:[#allocation24_spill] sm:$0xff] }
 0x8a5   : > { %8314 = vmatmul.msk.f32.gmra.mxu2 %vm1292_vm1, %v12216_v30  ;;  %v3000_v63 = vadd.f32 %v11642_v52, %v13907_v9 }
 0x8a6   : > { %v3912_v51 = vadd.f32 %v3871_v4, %v3830_v43  ;;  %8251 = vmatmul.msk.f32.gmra.mxu3 %vm1292_vm1, %v11677_v41  ;;  %v3872_v41 = vld [vmem:[%s13751_s6 + $0x130] sm:$0xff] }
 0x8a7   : > { %v12233_v35 = vpop.f32.mrf.mxu2  ;;  %v12237_v12 = vpop.f32.mrf.mxu0 }
 0x8a8   : > { %13906 = vst [vmem:[#allocation21_spill] sm:$0xff] %v12233_v35  ;;  %v12239_v26 = vpop.f32.mrf.mxu1  ;;  %v3953_v20 = vmax.f32 %v3912_v51, 0.0  ;;  %v13909_v51 = vld [vmem:[#allocation25_spill] sm:$0xff]  ;;  %v13928_v35 = vld [vmem:[#allocation8_spill] sm:$0xff] }
 0x8a9   : > { %v3371_v48 = vpop.f32.mrf.mxu3  ;;  %v4900_v21 = vld [vmem:[#allocation3 + $0x11a] sm:$0xff] }
 0x8aa   : > { %3994 = vst.msk [vmem:[#allocation3 + $0x128] sm:$0xff] %vm1292_vm1, %v3953_v20  ;;  %v3418_v4 = vadd.f32 %v3371_v48, %v3000_v63 }
 0x8ab   : > { %8193 = vmatmul.msk.f32.gmra.mxu0 %vm1292_vm1, %v4077_v36  ;;  %v5181_v36 = vld [vmem:[#allocation3 + $0x13] sm:$0xff] }
 0x8ac   : > { %8370 = vmatmul.msk.f32.vlgmr.msra.gmra.mxu1 %vm1292_vm1, %v5495_v10  ;;  %v3831_v52 = vadd.f32 %v11717_v27, %v3418_v4  ;;  %v3003_v10 = vadd.f32 %v11672_v24, %v13909_v51 }
 0x8ad   : > { %8315 = vmatmul.msk.f32.gmra.mxu2 %vm1292_vm1, %v4900_v21  ;;  %v5496_v21 = vld [vmem:[#allocation3 + $0x1c] sm:$0xff] }
 0x8ae   : > { %v3913_v40 = vadd.f32 %v3872_v41, %v3831_v52  ;;  %8252 = vmatmul.msk.f32.gmra.mxu3 %vm1292_vm1, %v11698_v49  ;;  %v3873_v49 = vld [vmem:[%s13751_s6 + $0x138] sm:$0xff] }
 0x8af   : > { %v12251_v43 = vpop.f32.mrf.mxu2 }
 0x8b0   : > { %13908 = vst [vmem:[#allocation22_spill] sm:$0xff] %v12251_v43  ;;  %v12255_v11 = vpop.f32.mrf.mxu0  ;;  %v3954_v9 = vmax.f32 %v3913_v40, 0.0  ;;  %v13910_v40 = vld [vmem:[#allocation26_spill] sm:$0xff] }
 0x8b1   : > { %v12257_v63 = vpop.f32.mrf.mxu1  ;;  %v3374_v20 = vpop.f32.mrf.mxu3  ;;  %v4901_v48 = vld [vmem:[#allocation3 + $0x122] sm:$0xff]  ;;  %v3006_v51 = vadd.f32 %v11694_v44, %v13910_v40  ;;  %v3874_v44 = vld [vmem:[%s13751_s6 + $0x140] sm:$0xf] }
 0x8b2   : > { %3995 = vst.msk [vmem:[#allocation3 + $0x130] sm:$0xff] %vm1292_vm1, %v3954_v9  ;;  %v3419_v27 = vadd.f32 %v3374_v20, %v3003_v10 }
 0x8b3   : > { %8326 = vmatmul.msk.f32.vlgmr.msra.gmra.mxu0 %vm1292_vm1, %v5181_v36  ;;  %v5182_v36 = vld [vmem:[#allocation3 + $0x1b] sm:$0xff] }
 0x8b4   : > { %8371 = vmatmul.msk.f32.gmra.mxu1 %vm1292_vm1, %v5496_v21  ;;  %v3832_v24 = vadd.f32 %v11745_v50, %v3419_v27  ;;  %v12279_v21 = vld [vmem:[#allocation3 + $0x24] sm:$0xff] }
 0x8b5   : > { %8316 = vmatmul.msk.f32.gmra.mxu2 %vm1292_vm1, %v4901_v48  ;;  %v4902_v48 = vld [vmem:[#allocation3 + $0x12a] sm:$0x3f] }
 0x8b6   : > { %v3914_v4 = vadd.f32 %v3873_v49, %v3832_v24  ;;  %8253 = vmatmul.msk.f32.gmra.mxu3 %vm1292_vm1, %v11719_v60 }
 0x8b8   : > { %v12271_v41 = vpop.f32.mrf.mxu0  ;;  %v3955_v10 = vmax.f32 %v3914_v4, 0.0  ;;  %v12277_v9 = vpop.f32.mrf.mxu2  ;;  %v4446_v4 = vadd.f32 %v11713_v58, %v11734_v56 }
 0x8b9   : > { %v12273_v52 = vpop.f32.mrf.mxu1  ;;  %13911 = vst [vmem:[#allocation23_spill] sm:$0xff] %v12277_v9  ;;  %v3377_v20 = vpop.f32.mrf.mxu3  ;;  %v12335_v9 = vld [vmem:[#allocation3 + $0x3c] sm:$0xff] }
 0x8ba   : > { %3996 = vst.msk [vmem:[#allocation3 + $0x138] sm:$0xff] %vm1292_vm1, %v3955_v10  ;;  %v3420_v50 = vadd.f32 %v3377_v20, %v3006_v51  ;;  %v5183_v10 = vld [vmem:[#allocation3 + $0x23] sm:$0xff]  ;;  %v12298_v20 = vld [vmem:[#allocation3 + $0x2c] sm:$0xff] }
 0x8bb   : > { %8327 = vmatmul.msk.f32.gmra.mxu0 %vm1292_vm1, %v5182_v36 }
 0x8bc   : > { %8372 = vmatmul.msk.f32.gmra.mxu1 %vm1292_vm1, %v12279_v21  ;;  %v3833_v60 = vadd.f32 %v11792_v22, %v3420_v50  ;;  %v13916_v50 = vld [vmem:[#allocation17_spill] sm:$0xff] }
 0x8bd   : > { %8317 = vmatmul.msk.f32.gmra.mxu2 %vm1292_vm1, %v4902_v48  ;;  %v13917_v48 = vld [vmem:[#allocation31_spill] sm:$0xff] }
 0x8be   : > { %v3915_v27 = vadd.f32 %v3874_v44, %v3833_v60  ;;  %8254 = vmatmul.msk.f32.gmra.mxu3 %vm1292_vm1, %v11740_v39  ;;  %v6123_v39 = vld [vmem:[#allocation3 + $0x25] sm:$0xff]  ;;  %v4449_v44 = vadd.f32 %v13917_v48, %v13916_v50 }
 0x8bf   : > { %v13922_v48 = vld [vmem:[#allocation33_spill] sm:$0xff] }
 0x8c0   : > { %v12292_v49 = vpop.f32.mrf.mxu0  ;;  %v3956_v40 = vmax.f32 %v3915_v27, 0.0  ;;  %v12301_v36 = vpop.f32.mrf.mxu2  ;;  %v5184_v27 = vld [vmem:[#allocation3 + $0x2b] sm:$0xff] }
 0x8c1   : > { %v12294_v24 = vpop.f32.mrf.mxu1  ;;  %v4723_v51 = vpop.f32.mrf.mxu3  ;;  %13913 = vst [vmem:[#allocation25_spill] sm:$0xff] %v12301_v36 }
 0x8c2   : > { %13912 = vst [vmem:[#allocation24_spill] sm:$0xff] %v12294_v24  ;;  %v12303_v22 = vadd.f32 %v4723_v51, %v4446_v4  ;;  %v12317_v4 = vld [vmem:[#allocation3 + $0x34] sm:$0xff]  ;;  %v12371_v24 = vld [vmem:[#allocation3 + $0x4c] sm:$0xff] }
 0x8c3   : > { %3997 = vst.msk [vmem:[#allocation3 + $0x140] sm:$0xf] %vm1305_vm2, %v3956_v40  ;;  %8328 = vmatmul.msk.f32.gmra.mxu0 %vm1292_vm1, %v5183_v10  ;;  %v6124_v51 = vld [vmem:[#allocation3 + $0x2d] sm:$0xff]  ;;  %v13919_v10 = vld [vmem:[#allocation28_spill] sm:$0xff] }
 0x8c4   : > { %8373 = vmatmul.msk.f32.gmra.mxu1 %vm1292_vm1, %v12298_v20 }
 0x8c5   : > { %8458 = vmatmul.msk.f32.vlgmr.msra.gmra.mxu2 %vm1292_vm1, %v6123_v39 }
 0x8c6   : > { %8255 = vmatmul.msk.f32.gmra.mxu3 %vm1292_vm1, %v11775_v13 }
 0x8c8   : > { %v12311_v58 = vpop.f32.mrf.mxu0  ;;  %v12325_v13 = vpop.f32.mrf.mxu2 }
 0x8c9   : > { %13914 = vst [vmem:[#allocation26_spill] sm:$0xff] %v12311_v58  ;;  %v12313_v56 = vpop.f32.mrf.mxu1  ;;  %v4726_v60 = vpop.f32.mrf.mxu3  ;;  %v12387_v58 = vld [vmem:[#allocation3 + $0x54] sm:$0xff] }
 0x8ca   : > { %13915 = vst [vmem:[#allocation45_spill] sm:$0xff] %v12313_v56  ;;  %v12319_v40 = vadd.f32 %v4726_v60, %v4449_v44  ;;  %v13923_v44 = vld [vmem:[#allocation27_spill] sm:$0xff]  ;;  %v12353_v56 = vld [vmem:[#allocation3 + $0x44] sm:$0xff] }
 0x8cb   : > { %8329 = vmatmul.msk.f32.gmra.mxu0 %vm1292_vm1, %v5184_v27  ;;  %13918 = vst [vmem:[#allocation17_spill] sm:$0xff] %v12325_v13  ;;  %v4452_v60 = vadd.f32 %v13923_v44, %v13922_v48  ;;  %v5185_v27 = vld [vmem:[#allocation3 + $0x33] sm:$0xff]  ;;  %v13925_v13 = vld [vmem:[#allocation37_spill] sm:$0xff] }
 0x8cc   : > { %8374 = vmatmul.msk.f32.gmra.mxu1 %vm1292_vm1, %v12317_v4  ;;  %13930 = vst [vmem:[#allocation8_spill] sm:$0xff] %v12353_v56 }
 0x8cd   : > { %8459 = vmatmul.msk.f32.gmra.mxu2 %vm1292_vm1, %v6124_v51  ;;  %v6125_v51 = vld [vmem:[#allocation3 + $0x35] sm:$0xff] }
 0x8ce   : > { %8256 = vmatmul.msk.f32.gmra.mxu3 %vm1292_vm1, %v13919_v10 }
 0x8d0   : > { %v12329_v39 = vpop.f32.mrf.mxu0  ;;  %v12343_v10 = vpop.f32.mrf.mxu2 }
 0x8d1   : > { %13920 = vst [vmem:[#allocation31_spill] sm:$0xff] %v12329_v39  ;;  %v12331_v50 = vpop.f32.mrf.mxu1  ;;  %v4729_v36 = vpop.f32.mrf.mxu3 }
 0x8d2   : > { %13921 = vst [vmem:[#allocation28_spill] sm:$0xff] %v12331_v50  ;;  %v12337_v43 = vadd.f32 %v4729_v36, %v4452_v60  ;;  %v13929_v36 = vld [vmem:[#allocation5_spill] sm:$0xff] }
 0x8d3   : > { %8330 = vmatmul.msk.f32.gmra.mxu0 %vm1292_vm1, %v5185_v27  ;;  %13924 = vst [vmem:[#allocation33_spill] sm:$0xff] %v12343_v10  ;;  %v4455_v60 = vadd.f32 %v13929_v36, %v13928_v35  ;;  %v5186_v27 = vld [vmem:[#allocation3 + $0x3b] sm:$0xff]  ;;  %v13934_v36 = vld [vmem:[#allocation30_spill] sm:$0xff] }
 0x8d4   : > { %8375 = vmatmul.msk.f32.gmra.mxu1 %vm1292_vm1, %v12335_v9 }
 0x8d5   : > { %8460 = vmatmul.msk.f32.gmra.mxu2 %vm1292_vm1, %v6125_v51  ;;  %v6126_v51 = vld [vmem:[#allocation3 + $0x3d] sm:$0xff] }
 0x8d6   : > { %8257 = vmatmul.msk.f32.gmra.mxu3 %vm1292_vm1, %v13925_v13  ;;  %v13931_v13 = vld [vmem:[#allocation12_spill] sm:$0xff] }
 0x8d8   : > { %v12347_v48 = vpop.f32.mrf.mxu0 }
 0x8d9   : > { %13926 = vst [vmem:[#allocation27_spill] sm:$0xff] %v12347_v48  ;;  %v12349_v44 = vpop.f32.mrf.mxu1  ;;  %v4732_v50 = vpop.f32.mrf.mxu3 }
 0x8da   : > { %13927 = vst [vmem:[#allocation37_spill] sm:$0xff] %v12349_v44  ;;  %v12355_v39 = vadd.f32 %v4732_v50, %v4455_v60  ;;  %v13935_v44 = vld [vmem:[#allocation29_spill] sm:$0xff]  ;;  %v12369_v50 = vpop.f32.mrf.mxu2 }
 0x8db   : > { %8331 = vmatmul.msk.f32.gmra.mxu0 %vm1292_vm1, %v5186_v27  ;;  %v4458_v48 = vadd.f32 %v13935_v44, %v13934_v36  ;;  %13936 = vst [vmem:[#allocation30_spill] sm:$0xff] %v12369_v50  ;;  %v5187_v27 = vld [vmem:[#allocation3 + $0x43] sm:$0xff] }
 0x8dc   : > { %8376 = vmatmul.msk.f32.gmra.mxu1 %vm1292_vm1, %v12353_v56  ;;  %13937 = vst [vmem:[#allocation29_spill] sm:$0xff] %v12371_v24  ;;  %v13941_v50 = vld [vmem:[#allocation40_spill] sm:$0xff] }
 0x8dd   : > { %8461 = vmatmul.msk.f32.gmra.mxu2 %vm1292_vm1, %v6126_v51  ;;  %v6127_v51 = vld [vmem:[#allocation3 + $0x45] sm:$0xff] }
 0x8de   : > { %8258 = vmatmul.msk.f32.gmra.mxu3 %vm1292_vm1, %v13931_v13  ;;  %v13938_v13 = vld [vmem:[#allocation18_spill] sm:$0xff] }
 0x8e0   : > { %v12363_v10 = vpop.f32.mrf.mxu0 }
 0x8e1   : > { %13932 = vst [vmem:[#allocation5_spill] sm:$0xff] %v12363_v10  ;;  %v12365_v35 = vpop.f32.mrf.mxu1  ;;  %v4735_v60 = vpop.f32.mrf.mxu3 }
 0x8e2   : > { %13933 = vst [vmem:[#allocation12_spill] sm:$0xff] %v12365_v35  ;;  %v12373_v56 = vadd.f32 %v4735_v60, %v4458_v48  ;;  %v13942_v35 = vld [vmem:[#allocation38_spill] sm:$0xff] }
 0x8e3   : > { %8332 = vmatmul.msk.f32.gmra.mxu0 %vm1292_vm1, %v5187_v27  ;;  %v4461_v10 = vadd.f32 %v13942_v35, %v13941_v50  ;;  %v5188_v60 = vld [vmem:[#allocation3 + $0x4b] sm:$0xff]  ;;  %v12389_v27 = vpop.f32.mrf.mxu2 }
 0x8e4   : > { %8377 = vmatmul.msk.f32.gmra.mxu1 %vm1292_vm1, %v12371_v24  ;;  %13943 = vst [vmem:[#allocation40_spill] sm:$0xff] %v12389_v27 }
 0x8e5   : > { %8462 = vmatmul.msk.f32.gmra.mxu2 %vm1292_vm1, %v6127_v51  ;;  %v6128_v51 = vld [vmem:[#allocation3 + $0x4d] sm:$0xff] }
 0x8e6   : > { %8259 = vmatmul.msk.f32.gmra.mxu3 %vm1292_vm1, %v13938_v13  ;;  %v13946_v13 = vld [vmem:[#allocation42_spill] sm:$0xff] }
 0x8e8   : > { %v12381_v44 = vpop.f32.mrf.mxu0 }
 0x8e9   : > { %13939 = vst [vmem:[#allocation18_spill] sm:$0xff] %v12381_v44  ;;  %v12383_v36 = vpop.f32.mrf.mxu1  ;;  %v4738_v48 = vpop.f32.mrf.mxu3  ;;  %v12405_v44 = vld [vmem:[#allocation3 + $0x5c] sm:$0xff] }
 0x8ea   : > { %13940 = vst [vmem:[#allocation46_spill] sm:$0xff] %v12383_v36  ;;  %v12391_v24 = vadd.f32 %v4738_v48, %v4461_v10  ;;  %v13947_v36 = vld [vmem:[#allocation43_spill] sm:$0xff] }
 0x8eb   : > { %8333 = vmatmul.msk.f32.gmra.mxu0 %vm1292_vm1, %v5188_v60  ;;  %v4464_v27 = vadd.f32 %v13947_v36, %v13946_v13  ;;  %v5189_v48 = vld [vmem:[#allocation3 + $0x53] sm:$0xff]  ;;  %13948 = vst [vmem:[#allocation42_spill] sm:$0xff] %v12405_v44 }
 0x8ec   : > { %8378 = vmatmul.msk.f32.gmra.mxu1 %vm1292_vm1, %v12387_v58 }
 0x8ed   : > { %8463 = vmatmul.msk.f32.gmra.mxu2 %vm1292_vm1, %v6128_v51  ;;  %v6129_v51 = vld [vmem:[#allocation3 + $0x55] sm:$0xff] }
 0x8ee   : > { %8260 = vmatmul.msk.f32.gmra.mxu3 %vm1292_vm1, %v11899_v2  ;;  %v12413_v2 = vpop.f32.mrf.mxu2 }
 0x8ef   : > { %13949 = vst [vmem:[#allocation43_spill] sm:$0xff] %v12413_v2 }
 0x8f0   : > { %v12399_v35 = vpop.f32.mrf.mxu0 }
 0x8f1   : > { %13944 = vst [vmem:[#allocation38_spill] sm:$0xff] %v12399_v35  ;;  %v12401_v50 = vpop.f32.mrf.mxu1  ;;  %v4741_v10 = vpop.f32.mrf.mxu3  ;;  %v12423_v35 = vld [vmem:[#allocation3 + $0x64] sm:$0xff] }
 0x8f2   : > { %13945 = vst [vmem:[#allocation47_spill] sm:$0xff] %v12401_v50  ;;  %v12407_v60 = vadd.f32 %v4741_v10, %v4464_v27  ;;  %v13952_v27 = vld [vmem:[#allocation44_spill] sm:$0xff] }
 0x8f3   : > { %8334 = vmatmul.msk.f32.gmra.mxu0 %vm1292_vm1, %v5189_v48  ;;  %v4467_v10 = vadd.f32 %v13952_v27, %v11913_v61  ;;  %v5190_v48 = vld [vmem:[#allocation3 + $0x5b] sm:$0xff] }
 0x8f4   : > { %8379 = vmatmul.msk.f32.gmra.mxu1 %vm1292_vm1, %v12405_v44 }
 0x8f5   : > { %8464 = vmatmul.msk.f32.gmra.mxu2 %vm1292_vm1, %v6129_v51  ;;  %v6130_v51 = vld [vmem:[#allocation3 + $0x5d] sm:$0xff] }
 0x8f6   : > { %8261 = vmatmul.msk.f32.gmra.mxu3 %vm1292_vm1, %v11919_v14  ;;  %v12431_v14 = vpop.f32.mrf.mxu2 }
 0x8f7   : > { %13953 = vst [vmem:[#allocation44_spill] sm:$0xff] %v12431_v14  ;;  %v12459_v14 = vld [vmem:[#allocation3 + $0x74] sm:$0xff] }
 0x8f8   : > { %v12417_v36 = vpop.f32.mrf.mxu0 }
 0x8f9   : > { %13950 = vst [vmem:[#allocation48_spill] sm:$0xff] %v12417_v36  ;;  %v12419_v13 = vpop.f32.mrf.mxu1  ;;  %v4744_v50 = vpop.f32.mrf.mxu3 }
 0x8fa   : > { %13951 = vst [vmem:[#allocation49_spill] sm:$0xff] %v12419_v13  ;;  %v12425_v44 = vadd.f32 %v4744_v50, %v4467_v10  ;;  %v13955_v50 = vld [vmem:[#allocation36_spill] sm:$0xff]  ;;  %v12441_v13 = vld [vmem:[#allocation3 + $0x6c] sm:$0xff] }
 0x8fb   : > { %8335 = vmatmul.msk.f32.gmra.mxu0 %vm1292_vm1, %v5190_v48  ;;  %v4470_v10 = vadd.f32 %v13955_v50, %v11934_v3  ;;  %v5191_v48 = vld [vmem:[#allocation3 + $0x63] sm:$0xff]  ;;  %v4473_v50 = vadd.f32 %v11936_v55, %v11955_v53 }
 0x8fc   : > { %8380 = vmatmul.msk.f32.gmra.mxu1 %vm1292_vm1, %v12423_v35 }
 0x8fd   : > { %8465 = vmatmul.msk.f32.gmra.mxu2 %vm1292_vm1, %v6130_v51  ;;  %v6131_v51 = vld [vmem:[#allocation3 + $0x65] sm:$0xff] }
 0x8fe   : > { %8262 = vmatmul.msk.f32.gmra.mxu3 %vm1292_vm1, %v11940_v28 }
 0x900   : > { %v12435_v61 = vpop.f32.mrf.mxu0 }
 0x901   : > { %v12437_v27 = vpop.f32.mrf.mxu1  ;;  %v4747_v2 = vpop.f32.mrf.mxu3 }
 0x902   : > { %13954 = vst [vmem:[#allocation50_spill] sm:$0xff] %v12437_v27  ;;  %v12443_v36 = vadd.f32 %v4747_v2, %v4470_v10  ;;  %v12457_v2 = vpop.f32.mrf.mxu2 }
 0x903   : > { %8336 = vmatmul.msk.f32.gmra.mxu0 %vm1292_vm1, %v5191_v48  ;;  %13957 = vst [vmem:[#allocation51_spill] sm:$0xff] %v12457_v2  ;;  %v5192_v48 = vld [vmem:[#allocation3 + $0x6b] sm:$0xff]  ;;  %v12475_v2 = vld [vmem:[#allocation3 + $0x7c] sm:$0xff] }
 0x904   : > { %8381 = vmatmul.msk.f32.gmra.mxu1 %vm1292_vm1, %v12441_v13 }
 0x905   : > { %8466 = vmatmul.msk.f32.gmra.mxu2 %vm1292_vm1, %v6131_v51  ;;  %v4476_v51 = vadd.f32 %v11957_v6, %v11976_v29 }
 0x906   : > { %8263 = vmatmul.msk.f32.gmra.mxu3 %vm1292_vm1, %v11961_v7  ;;  %v6132_v7 = vld [vmem:[#allocation3 + $0x6d] sm:$0xff] }
 0x908   : > { %v12451_v28 = vpop.f32.mrf.mxu0 }
 0x909   : > { %v12453_v3 = vpop.f32.mrf.mxu1  ;;  %v4750_v10 = vpop.f32.mrf.mxu3 }
 0x90a   : > { %13956 = vst [vmem:[#allocation36_spill] sm:$0xff] %v12453_v3  ;;  %v12461_v27 = vadd.f32 %v4750_v10, %v4473_v50  ;;  %v5193_v10 = vld [vmem:[#allocation3 + $0x73] sm:$0xff] }
 0x90b   : > { %8337 = vmatmul.msk.f32.gmra.mxu0 %vm1292_vm1, %v5192_v48  ;;  %v12477_v48 = vpop.f32.mrf.mxu2 }
 0x90c   : > { %8382 = vmatmul.msk.f32.gmra.mxu1 %vm1292_vm1, %v12459_v14  ;;  %13959 = vst [vmem:[#allocation53_spill] sm:$0xff] %v12477_v48  ;;  %v12493_v48 = vld [vmem:[#allocation3 + $0x84] sm:$0xff] }
 0x90d   : > { %8467 = vmatmul.msk.f32.gmra.mxu2 %vm1292_vm1, %v6132_v7  ;;  %v4479_v7 = vadd.f32 %v11978_v1, %v11997_v57 }
 0x90e   : > { %8264 = vmatmul.msk.f32.gmra.mxu3 %vm1292_vm1, %v11982_v16  ;;  %v6133_v16 = vld [vmem:[#allocation3 + $0x75] sm:$0xff] }
 0x910   : > { %v12469_v55 = vpop.f32.mrf.mxu0 }
 0x911   : > { %v12471_v53 = vpop.f32.mrf.mxu1  ;;  %v4753_v50 = vpop.f32.mrf.mxu3 }
 0x912   : > { %13958 = vst [vmem:[#allocation52_spill] sm:$0xff] %v12471_v53  ;;  %v12479_v3 = vadd.f32 %v4753_v50, %v4476_v51  ;;  %v5194_v50 = vld [vmem:[#allocation3 + $0x7b] sm:$0xff] }
 0x913   : > { %8338 = vmatmul.msk.f32.gmra.mxu0 %vm1292_vm1, %v5193_v10 }
 0x914   : > { %8383 = vmatmul.msk.f32.gmra.mxu1 %vm1292_vm1, %v12475_v2 }
 0x915   : > { %8468 = vmatmul.msk.f32.gmra.mxu2 %vm1292_vm1, %v6133_v16  ;;  %v6134_v16 = vld [vmem:[#allocation3 + $0x7d] sm:$0xff] }
 0x916   : > { %8265 = vmatmul.msk.f32.gmra.mxu3 %vm1292_vm1, %v12003_v47  ;;  %v12501_v47 = vpop.f32.mrf.mxu2 }
 0x917   : > { %13961 = vst [vmem:[#allocation55_spill] sm:$0xff] %v12501_v47  ;;  %v5196_v47 = vld [vmem:[#allocation3 + $0x8b] sm:$0xff] }
 0x918   : > { %v12487_v6 = vpop.f32.mrf.mxu0 }
 0x919   : > { %v12489_v29 = vpop.f32.mrf.mxu1  ;;  %v4756_v51 = vpop.f32.mrf.mxu3 }
 0x91a   : > { %13960 = vst [vmem:[#allocation54_spill] sm:$0xff] %v12489_v29  ;;  %v12495_v10 = vadd.f32 %v4756_v51, %v4479_v7  ;;  %v4482_v7 = vadd.f32 %v11999_v8, %v12018_v18  ;;  %v12511_v29 = vld [vmem:[#allocation3 + $0x8c] sm:$0xff] }
 0x91b   : > { %8339 = vmatmul.msk.f32.gmra.mxu0 %vm1292_vm1, %v5194_v50  ;;  %v5195_v50 = vld [vmem:[#allocation3 + $0x83] sm:$0xff] }
 0x91c   : > { %8384 = vmatmul.msk.f32.gmra.mxu1 %vm1292_vm1, %v12493_v48 }
 0x91d   : > { %8469 = vmatmul.msk.f32.gmra.mxu2 %vm1292_vm1, %v6134_v16  ;;  %v6135_v16 = vld [vmem:[#allocation3 + $0x85] sm:$0xff] }
 0x91e   : > { %8266 = vmatmul.msk.f32.gmra.mxu3 %vm1292_vm1, %v12024_v23  ;;  %v12519_v23 = vpop.f32.mrf.mxu2 }
 0x91f   : > { %13964 = vst [vmem:[#allocation58_spill] sm:$0xff] %v12519_v23 }
 0x920   : > { %v12505_v1 = vpop.f32.mrf.mxu0 }
 0x921   : > { %v12507_v57 = vpop.f32.mrf.mxu1  ;;  %v4759_v51 = vpop.f32.mrf.mxu3 }
 0x922   : > { %13962 = vst [vmem:[#allocation56_spill] sm:$0xff] %v12507_v57  ;;  %v12513_v53 = vadd.f32 %v4759_v51, %v4482_v7  ;;  %v4485_v7 = vadd.f32 %v12020_v54, %v12039_v32 }
 0x923   : > { %8340 = vmatmul.msk.f32.gmra.mxu0 %vm1292_vm1, %v5195_v50  ;;  %v12527_v50 = vld [vmem:[#allocation3 + $0x94] sm:$0xff] }
 0x924   : > { %13963 = vst [vmem:[#allocation57_spill] sm:$0xff] %v12513_v53  ;;  %8385 = vmatmul.msk.f32.gmra.mxu1 %vm1292_vm1, %v12511_v29 }
 0x925   : > { %8470 = vmatmul.msk.f32.gmra.mxu2 %vm1292_vm1, %v6135_v16  ;;  %v6136_v16 = vld [vmem:[#allocation3 + $0x8d] sm:$0xff] }
 0x926   : > { %8267 = vmatmul.msk.f32.gmra.mxu3 %vm1292_vm1, %v12045_v37  ;;  %v13967_v37 = vld [vmem:[#allocation35_spill] sm:$0xff] }
 0x927   : > { %v5145_v54 = vadd.f32 %v13967_v37, %v12303_v22  ;;  %v13969_v37 = vld [vmem:[#allocation11_spill] sm:$0xff] }
 0x928   : > { %v12523_v8 = vpop.f32.mrf.mxu0 }
 0x929   : > { %13965 = vst [vmem:[#allocation59_spill] sm:$0xff] %v12523_v8  ;;  %v5665_v18 = vpop.f32.mrf.mxu1  ;;  %v4762_v51 = vpop.f32.mrf.mxu3  ;;  %v12546_v8 = vld [vmem:[#allocation3 + $0x9c] sm:$0xff] }
 0x92a   : > { %v12529_v53 = vadd.f32 %v4762_v51, %v4485_v7  ;;  %v4488_v7 = vadd.f32 %v12041_v5, %v12063_v17  ;;  %v12541_v51 = vpop.f32.mrf.mxu2  ;;  %v6137_v5 = vld [vmem:[#allocation3 + $0x95] sm:$0xff]  ;;  %v8412_v17 = vld [vmem:[%s13752_s7 + $0x1b0] sm:$0xff] }
 0x92b   : > { %8341 = vmatmul.msk.f32.gmra.mxu0 %vm1292_vm1, %v5196_v47  ;;  %13968 = vst [vmem:[#allocation35_spill] sm:$0xff] %v12541_v51 }
 0x92c   : > { %13966 = vst [vmem:[#allocation60_spill] sm:$0xff] %v12529_v53  ;;  %8386 = vmatmul.msk.f32.gmra.mxu1 %vm1292_vm1, %v12527_v50  ;;  %v8413_v53 = vld [vmem:[%s13752_s7 + $0x1b8] sm:$0xff] }
 0x92d   : > { %8471 = vmatmul.msk.f32.gmra.mxu2 %vm1292_vm1, %v6136_v16  ;;  %v5197_v16 = vld [vmem:[#allocation3 + $0x93] sm:$0xff]  ;;  %5970 = vmatpush.msra.mxu3 %v8413_v53  ;;  %v8411_v53 = vld [vmem:[%s13752_s7 + $0x1a8] sm:$0xff] }
 0x92e   : > { %8268 = vmatmul.msk.f32.gmra.mxu3 %vm1292_vm1, %v12072_v33 }
 0x92f   : > { %5971 = vmatpush.msra.mxu3 %v8412_v17  ;;  %v5198_v17 = vld [vmem:[#allocation3 + $0x9b] sm:$0xff] }
 0x930   : > { %v5351_v32 = vpop.f32.mrf.mxu0 }
 0x931   : > { %v5668_v23 = vpop.f32.mrf.mxu1  ;;  %v5459_v47 = vadd.f32 %v5351_v32, %v5145_v54  ;;  %v4765_v57 = vpop.f32.mrf.mxu3  ;;  %5972 = vmatpush.msra.mxu3 %v8411_v53  ;;  %v5146_v54 = vadd.f32 %v13969_v37, %v12319_v40  ;;  %v12574_v53 = vld [vmem:[#allocation3 + $0xa4] sm:$0xff]  ;;  %v8406_v37 = vld [vmem:[%s13752_s7 + $0x180] sm:$0xff] }
 0x932   : > { %v12548_v33 = vadd.f32 %v4765_v57, %v4488_v7  ;;  %v8410_v57 = vld [vmem:[%s13752_s7 + $0x1a0] sm:$0xff]  ;;  %v4491_v7 = vadd.f32 %v12065_v15, %v12099_v0  ;;  %v8408_v0 = vld [vmem:[%s13752_s7 + $0x190] sm:$0xff] }
 0x933   : > { %8342 = vmatmul.msk.f32.gmra.mxu0 %vm1292_vm1, %v5197_v16  ;;  %v12556_v22 = vadd.f32 %v5665_v18, %v5459_v47  ;;  %5973 = vmatpush.msra.mxu3 %v8410_v57  ;;  %v8409_v16 = vld [vmem:[%s13752_s7 + $0x198] sm:$0xff]  ;;  %v6138_v15 = vld [vmem:[#allocation3 + $0x9d] sm:$0xff] }
 0x934   : > { %8387 = vmatmul.msk.f32.gmra.mxu1 %vm1292_vm1, %v12546_v8  ;;  %v8407_v57 = vld [vmem:[%s13752_s7 + $0x188] sm:$0xff] }
 0x935   : > { %8472 = vmatmul.msk.f32.gmra.mxu2 %vm1292_vm1, %v6137_v5  ;;  %5974 = vmatpush.msra.mxu3 %v8409_v16 }
 0x936   : > { %8269 = vmatmul.msk.f32.gmra.mxu3 %vm1292_vm1, %v12111_v46  ;;  %v12576_v46 = vpop.f32.mrf.mxu2 }
 0x937   : > { %13970 = vst [vmem:[#allocation11_spill] sm:$0xff] %v12576_v46  ;;  %5975 = vmatpush.msra.mxu3 %v8408_v0  ;;  %v5208_v46 = vld [vmem:[#allocation3 + $0xeb] sm:$0xff] }
 0x938   : > { %v5354_v18 = vpop.f32.mrf.mxu0 }
 0x939   : > { %v5671_v32 = vpop.f32.mrf.mxu1  ;;  %v5460_v47 = vadd.f32 %v5354_v18, %v5146_v54  ;;  %v4768_v5 = vpop.f32.mrf.mxu3  ;;  %5976 = vmatpush.msra.mxu3 %v8407_v57  ;;  %v13971_v54 = vld [vmem:[#allocation32_spill] sm:$0xff] }
 0x93a   : > { %v12578_v51 = vadd.f32 %v4768_v5, %v4491_v7  ;;  %v5147_v18 = vadd.f32 %v13971_v54, %v12337_v43 }
 0x93b   : > { %8343 = vmatmul.msk.f32.gmra.mxu0 %vm1292_vm1, %v5198_v17  ;;  %v12586_v40 = vadd.f32 %v5668_v23, %v5460_v47  ;;  %5977 = vmatpush.msra.mxu3 %v8406_v37  ;;  %v4494_v47 = vadd.f32 %v12101_v34, %v12141_v25  ;;  %v5199_v17 = vld [vmem:[#allocation3 + $0xa3] sm:$0xff]  ;;  %v13973_v34 = vld [vmem:[#allocation34_spill] sm:$0xff] }
 0x93c   : > { %8388 = vmatmul.msk.f32.gmra.mxu1 %vm1292_vm1, %v12574_v53  ;;  %v5148_v25 = vadd.f32 %v13973_v34, %v12355_v39 }
 0x93d   : > { %8473 = vmatmul.msk.f32.gmra.mxu2 %vm1292_vm1, %v6138_v15  ;;  %v12601_v15 = vld [vmem:[#allocation3 + $0xac] sm:$0xff] }
 0x93e   : > { %8270 = vmatmul.msk.f32.gmra.mxu3 %vm1292_vm1, %v12150_v45  ;;  %v6139_v45 = vld [vmem:[#allocation3 + $0xa5] sm:$0xff]  ;;  %v12611_v57 = vpop.f32.mrf.mxu2 }
 0x93f   : > { %13972 = vst [vmem:[#allocation32_spill] sm:$0xff] %v12611_v57 }
 0x940   : > { %v5357_v23 = vpop.f32.mrf.mxu0 }
 0x941   : > { %v5674_v7 = vpop.f32.mrf.mxu1  ;;  %v5461_v16 = vadd.f32 %v5357_v23, %v5147_v18  ;;  %v4771_v5 = vpop.f32.mrf.mxu3  ;;  %v4497_v18 = vadd.f32 %v12143_v31, %v12174_v59  ;;  %v13975_v31 = vld [vmem:[#allocation6_spill] sm:$0xff] }
 0x942   : > { %v12603_v0 = vadd.f32 %v4771_v5, %v4494_v47  ;;  %v5200_v5 = vld [vmem:[#allocation3 + $0xab] sm:$0xff]  ;;  %v5149_v59 = vadd.f32 %v13975_v31, %v12373_v56  ;;  %v4588_v56 = vld [vmem:[#allocation3 + $0x11a] sm:$0x3f] }
 0x943   : > { %8344 = vmatmul.msk.f32.gmra.mxu0 %vm1292_vm1, %v5199_v17  ;;  %v12608_v43 = vadd.f32 %v5671_v32, %v5461_v16  ;;  %v12619_v32 = vld [vmem:[#allocation3 + $0xb4] sm:$0xff] }
 0x944   : > { %8389 = vmatmul.msk.f32.gmra.mxu1 %vm1292_vm1, %v12601_v15 }
 0x945   : > { %8474 = vmatmul.msk.f32.gmra.mxu2 %vm1292_vm1, %v6139_v45 }
 0x946   : > { %8271 = vmatmul.msk.f32.gmra.mxu3 %vm1292_vm1, %v12183_v19  ;;  %v6140_v19 = vld [vmem:[#allocation3 + $0xad] sm:$0xff]  ;;  %v12629_v39 = vpop.f32.mrf.mxu2 }
 0x947   : > { %13974 = vst [vmem:[#allocation34_spill] sm:$0xff] %v12629_v39 }
 0x948   : > { %v5360_v37 = vpop.f32.mrf.mxu0 }
 0x949   : > { %v5677_v54 = vpop.f32.mrf.mxu1  ;;  %v5462_v23 = vadd.f32 %v5360_v37, %v5148_v25  ;;  %v4774_v47 = vpop.f32.mrf.mxu3  ;;  %v4500_v25 = vadd.f32 %v12176_v38, %v12207_v42  ;;  %v13976_v38 = vld [vmem:[#allocation9_spill] sm:$0xff] }
 0x94a   : > { %v12621_v16 = vadd.f32 %v4774_v47, %v4497_v18  ;;  %v5201_v47 = vld [vmem:[#allocation3 + $0xb3] sm:$0xff]  ;;  %v5150_v42 = vadd.f32 %v13976_v38, %v12391_v24  ;;  %v6142_v24 = vld [vmem:[#allocation3 + $0xbd] sm:$0xff]  ;;  %v4506_v38 = vadd.f32 %v12239_v26, %v12255_v11  ;;  %v13982_v26 = vld [vmem:[#allocation13_spill] sm:$0xff] }
 0x94b   : > { %8345 = vmatmul.msk.f32.gmra.mxu0 %vm1292_vm1, %v5200_v5  ;;  %v12626_v17 = vadd.f32 %v5674_v7, %v5462_v23  ;;  %v12637_v7 = vld [vmem:[#allocation3 + $0xbc] sm:$0xff]  ;;  %v5152_v11 = vadd.f32 %v13982_v26, %v12425_v44  ;;  %v4512_v26 = vadd.f32 %v12273_v52, %v12292_v49  ;;  %v13987_v52 = vld [vmem:[#allocation14_spill] sm:$0xff] }
 0x94c   : > { %8390 = vmatmul.msk.f32.gmra.mxu1 %vm1292_vm1, %v12619_v32  ;;  %v5154_v49 = vadd.f32 %v13987_v52, %v12461_v27  ;;  %v13993_v52 = vld [vmem:[#allocation19_spill] sm:$0xff] }
 0x94d   : > { %8475 = vmatmul.msk.f32.gmra.mxu2 %vm1292_vm1, %v6140_v19 }
 0x94e   : > { %8272 = vmatmul.msk.f32.gmra.mxu3 %vm1292_vm1, %v12216_v30  ;;  %v6141_v30 = vld [vmem:[#allocation3 + $0xb5] sm:$0xff] }
 0x950   : > { %v5363_v45 = vpop.f32.mrf.mxu0 }
 0x951   : > { %v5680_v34 = vpop.f32.mrf.mxu1  ;;  %v5463_v37 = vadd.f32 %v5363_v45, %v5149_v59  ;;  %v4777_v18 = vpop.f32.mrf.mxu3  ;;  %v4503_v59 = vadd.f32 %v12209_v62, %v12237_v12  ;;  %v13979_v62 = vld [vmem:[#allocation39_spill] sm:$0xff] }
 0x952   : > { %v12639_v23 = vadd.f32 %v4777_v18, %v4500_v25  ;;  %v12652_v25 = vpop.f32.mrf.mxu2  ;;  %v5151_v12 = vadd.f32 %v13979_v62, %v12407_v60  ;;  %v4509_v62 = vadd.f32 %v12257_v63, %v12271_v41  ;;  %v13985_v63 = vld [vmem:[#allocation41_spill] sm:$0xff] }
 0x953   : > { %8346 = vmatmul.msk.f32.gmra.mxu0 %vm1292_vm1, %v5201_v47  ;;  %v12644_v5 = vadd.f32 %v5677_v54, %v5463_v37  ;;  %13977 = vst [vmem:[#allocation6_spill] sm:$0xff] %v12652_v25  ;;  %v5202_v47 = vld [vmem:[#allocation3 + $0xbb] sm:$0xff]  ;;  %v12654_v54 = vld [vmem:[#allocation3 + $0xc4] sm:$0xff]  ;;  %v5153_v41 = vadd.f32 %v13985_v63, %v12443_v36  ;;  %v13989_v63 = vld [vmem:[#allocation26_spill] sm:$0xff] }
 0x954   : > { %8391 = vmatmul.msk.f32.gmra.mxu1 %vm1292_vm1, %v12637_v7  ;;  %v5207_v25 = vld [vmem:[#allocation3 + $0xe3] sm:$0xff] }
 0x955   : > { %8476 = vmatmul.msk.f32.gmra.mxu2 %vm1292_vm1, %v6141_v30 }
 0x956   : > { %8273 = vmatmul.msk.f32.gmra.mxu3 %vm1292_vm1, %v4588_v56 }
 0x958   : > { %v5366_v19 = vpop.f32.mrf.mxu0 }
 0x959   : > { %v5683_v31 = vpop.f32.mrf.mxu1  ;;  %v5464_v45 = vadd.f32 %v5366_v19, %v5150_v42  ;;  %v4780_v18 = vpop.f32.mrf.mxu3 }
 0x95a   : > { %v12656_v37 = vadd.f32 %v4780_v18, %v4503_v59  ;;  %v5203_v18 = vld [vmem:[#allocation3 + $0xc3] sm:$0xff]  ;;  %v12679_v60 = vpop.f32.mrf.mxu2 }
 0x95b   : > { %8347 = vmatmul.msk.f32.gmra.mxu0 %vm1292_vm1, %v5202_v47  ;;  %v12661_v30 = vadd.f32 %v5680_v34, %v5464_v45  ;;  %v12670_v47 = vld [vmem:[#allocation3 + $0xcc] sm:$0xff]  ;;  %13981 = vst [vmem:[#allocation61_spill] sm:$0xff] %v12679_v60 }
 0x95c   : > { %13978 = vst [vmem:[#allocation9_spill] sm:$0xff] %v12656_v37  ;;  %8392 = vmatmul.msk.f32.gmra.mxu1 %vm1292_vm1, %v12654_v54  ;;  %v6467_v37 = vld [vmem:[#allocation3 + $0x116] sm:$0xff] }
 0x95d   : > { %8477 = vmatmul.msk.f32.gmra.mxu2 %vm1292_vm1, %v6142_v24 }
 0x95e   : > { %8414 = vmatmul.msk.f32.vlgmr.msra.gmra.mxu3 %vm1292_vm1, %v12279_v21  ;;  %v6143_v21 = vld [vmem:[#allocation3 + $0xc5] sm:$0xff] }
 0x960   : > { %v5369_v56 = vpop.f32.mrf.mxu0 }
 0x961   : > { %v5465_v42 = vadd.f32 %v5369_v56, %v5151_v12  ;;  %v5686_v19 = vpop.f32.mrf.mxu1  ;;  %v4783_v59 = vpop.f32.mrf.mxu3 }
 0x962   : > { %v12672_v34 = vadd.f32 %v4783_v59, %v4506_v38  ;;  %v5204_v38 = vld [vmem:[#allocation3 + $0xcb] sm:$0xff]  ;;  %v12688_v59 = vld [vmem:[#allocation3 + $0xd4] sm:$0xff] }
 0x963   : > { %8348 = vmatmul.msk.f32.gmra.mxu0 %vm1292_vm1, %v5203_v18  ;;  %v12677_v45 = vadd.f32 %v5683_v31, %v5465_v42  ;;  %v12698_v18 = vpop.f32.mrf.mxu2 }
 0x964   : > { %13980 = vst [vmem:[#allocation39_spill] sm:$0xff] %v12672_v34  ;;  %8393 = vmatmul.msk.f32.gmra.mxu1 %vm1292_vm1, %v12670_v47 }
 0x965   : > { %8478 = vmatmul.msk.f32.gmra.mxu2 %vm1292_vm1, %v6143_v21  ;;  %13984 = vst [vmem:[#allocation62_spill] sm:$0xff] %v12698_v18  ;;  %v12878_v18 = vld [vmem:[#allocation3 + $0x124] sm:$0xff] }
 0x966   : > { %8415 = vmatmul.msk.f32.gmra.mxu3 %vm1292_vm1, %v12298_v20  ;;  %v6144_v20 = vld [vmem:[#allocation3 + $0xcd] sm:$0xff] }
 0x968   : > { %v5372_v24 = vpop.f32.mrf.mxu0 }
 0x969   : > { %v5466_v12 = vadd.f32 %v5372_v24, %v5152_v11  ;;  %v4786_v56 = vpop.f32.mrf.mxu3  ;;  %v5689_v44 = vpop.f32.mrf.mxu1 }
 0x96a   : > { %v12690_v31 = vadd.f32 %v4786_v56, %v4509_v62  ;;  %v5205_v62 = vld [vmem:[#allocation3 + $0xd3] sm:$0xff] }
 0x96b   : > { %8349 = vmatmul.msk.f32.gmra.mxu0 %vm1292_vm1, %v5204_v38  ;;  %v12695_v42 = vadd.f32 %v5686_v19, %v5466_v12  ;;  %v12706_v19 = vld [vmem:[#allocation3 + $0xdc] sm:$0xff]  ;;  %v12720_v38 = vpop.f32.mrf.mxu2 }
 0x96c   : > { %13983 = vst [vmem:[#allocation13_spill] sm:$0xff] %v12690_v31  ;;  %8394 = vmatmul.msk.f32.gmra.mxu1 %vm1292_vm1, %v12688_v59  ;;  %v12833_v31 = vld [vmem:[#allocation3 + $0x114] sm:$0xff] }
 0x96d   : > { %8479 = vmatmul.msk.f32.gmra.mxu2 %vm1292_vm1, %v6144_v20  ;;  %13988 = vst [vmem:[#allocation14_spill] sm:$0xff] %v12720_v38 }
 0x96e   : > { %8416 = vmatmul.msk.f32.gmra.mxu3 %vm1292_vm1, %v12317_v4  ;;  %v6145_v4 = vld [vmem:[#allocation3 + $0xd5] sm:$0xff] }
 0x970   : > { %v5375_v21 = vpop.f32.mrf.mxu0 }
 0x971   : > { %v5467_v11 = vadd.f32 %v5375_v21, %v5153_v41  ;;  %v4789_v24 = vpop.f32.mrf.mxu3  ;;  %v5692_v36 = vpop.f32.mrf.mxu1  ;;  %v13990_v41 = vld [vmem:[#allocation24_spill] sm:$0xff] }
 0x972   : > { %v12708_v12 = vadd.f32 %v4789_v24, %v4512_v26  ;;  %v4515_v21 = vadd.f32 %v13990_v41, %v13989_v63  ;;  %v13994_v41 = vld [vmem:[#allocation31_spill] sm:$0xff] }
 0x973   : > { %8350 = vmatmul.msk.f32.gmra.mxu0 %vm1292_vm1, %v5205_v62  ;;  %v12713_v56 = vadd.f32 %v5689_v44, %v5467_v11  ;;  %v5206_v62 = vld [vmem:[#allocation3 + $0xdb] sm:$0xff]  ;;  %v12724_v44 = vld [vmem:[#allocation3 + $0xe4] sm:$0xff]  ;;  %v12740_v57 = vpop.f32.mrf.mxu2 }
 0x974   : > { %13986 = vst [vmem:[#allocation41_spill] sm:$0xff] %v12708_v12  ;;  %8395 = vmatmul.msk.f32.gmra.mxu1 %vm1292_vm1, %v12706_v19  ;;  %v5212_v12 = vld [vmem:[#allocation3 + $0x10b] sm:$0xff] }
 0x975   : > { %8480 = vmatmul.msk.f32.gmra.mxu2 %vm1292_vm1, %v6145_v4  ;;  %v13992_v4 = vld [vmem:[#allocation8_spill] sm:$0xff]  ;;  %13996 = vst [vmem:[#allocation24_spill] sm:$0xff] %v12740_v57 }
 0x976   : > { %8417 = vmatmul.msk.f32.gmra.mxu3 %vm1292_vm1, %v12335_v9  ;;  %v6146_v9 = vld [vmem:[#allocation3 + $0xdd] sm:$0xff] }
 0x978   : > { %v5378_v20 = vpop.f32.mrf.mxu0 }
 0x979   : > { %v5468_v26 = vadd.f32 %v5378_v20, %v5154_v49  ;;  %v4792_v24 = vpop.f32.mrf.mxu3  ;;  %v5155_v49 = vadd.f32 %v13993_v52, %v12479_v3  ;;  %v5695_v20 = vpop.f32.mrf.mxu1  ;;  %v6147_v3 = vld [vmem:[#allocation3 + $0xe5] sm:$0xff]  ;;  %v13999_v52 = vld [vmem:[#allocation7_spill] sm:$0xff] }
 0x97a   : > { %v12726_v11 = vadd.f32 %v4792_v24, %v4515_v21  ;;  %v13995_v21 = vld [vmem:[#allocation45_spill] sm:$0xff] }
 0x97b   : > { %8351 = vmatmul.msk.f32.gmra.mxu0 %vm1292_vm1, %v5206_v62  ;;  %v12731_v27 = vadd.f32 %v5692_v36, %v5468_v26  ;;  %v4518_v24 = vadd.f32 %v13995_v21, %v13994_v41  ;;  %v12742_v36 = vld [vmem:[#allocation3 + $0xec] sm:$0xff]  ;;  %v14000_v41 = vld [vmem:[#allocation27_spill] sm:$0xff] }
 0x97c   : > { %13991 = vst [vmem:[#allocation26_spill] sm:$0xff] %v12726_v11  ;;  %8396 = vmatmul.msk.f32.gmra.mxu1 %vm1292_vm1, %v12724_v44 }
 0x97d   : > { %8481 = vmatmul.msk.f32.gmra.mxu2 %vm1292_vm1, %v6146_v9 }
 0x97e   : > { %8418 = vmatmul.msk.f32.gmra.mxu3 %vm1292_vm1, %v13992_v4  ;;  %v13998_v4 = vld [vmem:[#allocation29_spill] sm:$0xff] }
 0x980   : > { %v5381_v63 = vpop.f32.mrf.mxu0 }
 0x981   : > { %v5469_v62 = vadd.f32 %v5381_v63, %v5155_v49  ;;  %v4795_v39 = vpop.f32.mrf.mxu3  ;;  %v5156_v49 = vadd.f32 %v13999_v52, %v12495_v10  ;;  %v12767_v10 = vpop.f32.mrf.mxu2  ;;  %v14004_v52 = vld [vmem:[#allocation5_spill] sm:$0xff] }
 0x982   : > { %v12744_v26 = vadd.f32 %v4795_v39, %v4518_v24  ;;  %v14001_v39 = vld [vmem:[#allocation28_spill] sm:$0xff]  ;;  %14003 = vst [vmem:[#allocation31_spill] sm:$0xff] %v12767_v10 }
 0x983   : > { %8352 = vmatmul.msk.f32.gmra.mxu0 %vm1292_vm1, %v5207_v25  ;;  %v12749_v9 = vadd.f32 %v5695_v20, %v5469_v62  ;;  %v4521_v21 = vadd.f32 %v14001_v39, %v14000_v41  ;;  %v5698_v25 = vpop.f32.mrf.mxu1  ;;  %v6148_v62 = vld [vmem:[#allocation3 + $0xed] sm:$0xff]  ;;  %v12776_v41 = vld [vmem:[#allocation3 + $0xfc] sm:$0xff] }
 0x984   : > { %13997 = vst [vmem:[#allocation8_spill] sm:$0xff] %v12744_v26  ;;  %8397 = vmatmul.msk.f32.gmra.mxu1 %vm1292_vm1, %v12742_v36  ;;  %v12758_v26 = vld [vmem:[#allocation3 + $0xf4] sm:$0xff] }
 0x985   : > { %8482 = vmatmul.msk.f32.gmra.mxu2 %vm1292_vm1, %v6147_v3 }
 0x986   : > { %8419 = vmatmul.msk.f32.gmra.mxu3 %vm1292_vm1, %v13998_v4 }
 0x988   : > { %v5384_v63 = vpop.f32.mrf.mxu0 }
 0x989   : > { %v5470_v24 = vadd.f32 %v5384_v63, %v5156_v49  ;;  %v4798_v60 = vpop.f32.mrf.mxu3 }
 0x98a   : > { %v12760_v20 = vadd.f32 %v4798_v60, %v4521_v21  ;;  %v14005_v60 = vld [vmem:[#allocation37_spill] sm:$0xff]  ;;  %v6149_v21 = vld [vmem:[#allocation3 + $0xf5] sm:$0xff] }
 0x98b   : > { %8353 = vmatmul.msk.f32.gmra.mxu0 %vm1292_vm1, %v5208_v46  ;;  %v12765_v3 = vadd.f32 %v5698_v25, %v5470_v24  ;;  %v4524_v49 = vadd.f32 %v14005_v60, %v14004_v52  ;;  %v5209_v46 = vld [vmem:[#allocation3 + $0xf3] sm:$0xff]  ;;  %v14010_v52 = vld [vmem:[#allocation12_spill] sm:$0xff] }
 0x98c   : > { %14002 = vst [vmem:[#allocation19_spill] sm:$0xff] %v12760_v20  ;;  %8398 = vmatmul.msk.f32.gmra.mxu1 %vm1292_vm1, %v12758_v26  ;;  %v14008_v24 = vld [vmem:[#allocation42_spill] sm:$0xff]  ;;  %v12792_v20 = vld [vmem:[#allocation3 + $0x104] sm:$0xff] }
 0x98d   : > { %8483 = vmatmul.msk.f32.gmra.mxu2 %vm1292_vm1, %v6148_v62  ;;  %v14009_v62 = vld [vmem:[#allocation18_spill] sm:$0xff] }
 0x98e   : > { %8420 = vmatmul.msk.f32.gmra.mxu3 %vm1292_vm1, %v12387_v58  ;;  %v12784_v58 = vpop.f32.mrf.mxu2  ;;  %v4527_v60 = vadd.f32 %v14010_v52, %v14009_v62  ;;  %v14013_v52 = vld [vmem:[#allocation38_spill] sm:$0xff] }
 0x98f   : > { %14007 = vst [vmem:[#allocation29_spill] sm:$0xff] %v12784_v58  ;;  %v14066_v58 = vld [vmem:[#allocation60_spill] sm:$0xff] }
 0x990   : > { %v12772_v4 = vpop.f32.mrf.mxu0 }
 0x991   : > { %v4801_v63 = vpop.f32.mrf.mxu3 }
 0x992   : > { %v12778_v39 = vadd.f32 %v4801_v63, %v4524_v49  ;;  %v5210_v63 = vld [vmem:[#allocation3 + $0xfb] sm:$0xff] }
 0x993   : > { %8354 = vmatmul.msk.f32.gmra.mxu0 %vm1292_vm1, %v5209_v46 }
 0x994   : > { %14006 = vst [vmem:[#allocation45_spill] sm:$0xff] %v12778_v39  ;;  %8399 = vmatmul.msk.f32.gmra.mxu1 %vm1292_vm1, %v12776_v41  ;;  %v14014_v39 = vld [vmem:[#allocation46_spill] sm:$0xff] }
 0x995   : > { %8484 = vmatmul.msk.f32.gmra.mxu2 %vm1292_vm1, %v6149_v21  ;;  %v6150_v21 = vld [vmem:[#allocation3 + $0xfd] sm:$0xff]  ;;  %v4530_v11 = vadd.f32 %v14014_v39, %v14013_v52 }
 0x996   : > { %8421 = vmatmul.msk.f32.gmra.mxu3 %vm1292_vm1, %v14008_v24  ;;  %v12802_v24 = vpop.f32.mrf.mxu2  ;;  %v14016_v52 = vld [vmem:[#allocation48_spill] sm:$0xff] }
 0x997   : > { %14012 = vst [vmem:[#allocation27_spill] sm:$0xff] %v12802_v24 }
 0x998   : > { %v12788_v25 = vpop.f32.mrf.mxu0 }
 0x999   : > { %v4804_v49 = vpop.f32.mrf.mxu3 }
 0x99a   : > { %v12794_v46 = vadd.f32 %v4804_v49, %v4527_v60  ;;  %v5211_v49 = vld [vmem:[#allocation3 + $0x103] sm:$0xff] }
 0x99b   : > { %8355 = vmatmul.msk.f32.gmra.mxu0 %vm1292_vm1, %v5210_v63 }
 0x99c   : > { %14011 = vst [vmem:[#allocation7_spill] sm:$0xff] %v12794_v46  ;;  %8400 = vmatmul.msk.f32.gmra.mxu1 %vm1292_vm1, %v12792_v20  ;;  %v12808_v46 = vld [vmem:[#allocation3 + $0x10c] sm:$0xff] }
 0x99d   : > { %8485 = vmatmul.msk.f32.gmra.mxu2 %vm1292_vm1, %v6150_v21  ;;  %v6151_v21 = vld [vmem:[#allocation3 + $0x105] sm:$0xff] }
 0x99e   : > { %8422 = vmatmul.msk.f32.gmra.mxu3 %vm1292_vm1, %v12423_v35  ;;  %v8501_v35 = vld [vmem:[%s13752_s7 + $0x238] sm:$0xff] }
 0x99f   : > { %6598 = vmatpush.msrb.mxu0 %v8501_v35 }
 0x9a0   : > { %v12804_v62 = vpop.f32.mrf.mxu0 }
 0x9a1   : > { %v4807_v60 = vpop.f32.mrf.mxu3 }
 0x9a2   : > { %v12810_v63 = vadd.f32 %v4807_v60, %v4530_v11  ;;  %v8500_v11 = vld [vmem:[%s13752_s7 + $0x230] sm:$0xff]  ;;  %v14017_v60 = vld [vmem:[#allocation47_spill] sm:$0xff] }
 0x9a3   : > { %8356 = vmatmul.msk.f32.gmra.mxu0 %vm1292_vm1, %v5211_v49  ;;  %v4533_v49 = vadd.f32 %v14017_v60, %v14016_v52  ;;  %v8498_v52 = vld [vmem:[%s13752_s7 + $0x220] sm:$0xff]  ;;  %v8497_v60 = vld [vmem:[%s13752_s7 + $0x218] sm:$0xff] }
 0x9a4   : > { %14015 = vst [vmem:[#allocation28_spill] sm:$0xff] %v12810_v63  ;;  %8401 = vmatmul.msk.f32.gmra.mxu1 %vm1292_vm1, %v12808_v46  ;;  %6599 = vmatpush.msrb.mxu0 %v8500_v11  ;;  %v12831_v63 = vpop.f32.mrf.mxu2  ;;  %v6152_v11 = vld [vmem:[#allocation3 + $0x10d] sm:$0xff] }
 0x9a5   : > { %8486 = vmatmul.msk.f32.gmra.mxu2 %vm1292_vm1, %v6151_v21  ;;  %v8499_v21 = vld [vmem:[%s13752_s7 + $0x228] sm:$0xff] }
 0x9a6   : > { %8423 = vmatmul.msk.f32.gmra.mxu3 %vm1292_vm1, %v12441_v13  ;;  %6600 = vmatpush.msrb.mxu0 %v8499_v21  ;;  %v14019_v21 = vld [vmem:[#allocation49_spill] sm:$0xff] }
 0x9a8   : > { %v12824_v39 = vpop.f32.mrf.mxu0  ;;  %6601 = vmatpush.msrb.mxu0 %v8498_v52 }
 0x9a9   : > { %v4810_v35 = vpop.f32.mrf.mxu3 }
 0x9aa   : > { %v12835_v13 = vadd.f32 %v4810_v35, %v4533_v49  ;;  %6602 = vmatpush.msrb.mxu0 %v8497_v60  ;;  %v4536_v35 = vadd.f32 %v14019_v21, %v12435_v61  ;;  %v12859_v60 = vld [vmem:[#allocation3 + $0x11c] sm:$0xff] }
 0x9ab   : > { %8357 = vmatmul.msk.f32.gmra.mxu0 %vm1292_vm1, %v5212_v12  ;;  %v8496_v12 = vld [vmem:[%s13752_s7 + $0x210] sm:$0xff]  ;;  %v8494_v61 = vld [vmem:[%s13752_s7 + $0x200] sm:$0xff] }
 0x9ac   : > { %14018 = vst [vmem:[#allocation5_spill] sm:$0xff] %v12835_v13  ;;  %8402 = vmatmul.msk.f32.gmra.mxu1 %vm1292_vm1, %v12833_v31  ;;  %6603 = vmatpush.msrb.mxu0 %v8496_v12  ;;  %v5213_v13 = vld [vmem:[#allocation3 + $0x113] sm:$0xff]  ;;  %v12869_v21 = vpop.f32.mrf.mxu2 }
 0x9ad   : > { %8487 = vmatmul.msk.f32.gmra.mxu2 %vm1292_vm1, %v6152_v11  ;;  %v8495_v11 = vld [vmem:[%s13752_s7 + $0x208] sm:$0xff]  ;;  %v6153_v12 = vld [vmem:[#allocation3 + $0x115] sm:$0xff] }
 0x9ae   : > { %8424 = vmatmul.msk.f32.gmra.mxu3 %vm1292_vm1, %v12459_v14  ;;  %6604 = vmatpush.msrb.mxu0 %v8495_v11 }
 0x9b0   : > { %v12852_v49 = vpop.f32.mrf.mxu0  ;;  %6605 = vmatpush.msrb.mxu0 %v8494_v61  ;;  %v14023_v61 = vld [vmem:[#allocation36_spill] sm:$0xff] }
 0x9b1   : > { %v4813_v52 = vpop.f32.mrf.mxu3 }
 0x9b2   : > { %v12861_v14 = vadd.f32 %v4813_v52, %v4536_v35 }
 0x9b3   : > { %8358 = vmatmul.msk.f32.gmra.mxu0 %vm1292_vm1, %v5213_v13  ;;  %v14021_v13 = vld [vmem:[#allocation50_spill] sm:$0xff] }
 0x9b4   : > { %14020 = vst [vmem:[#allocation37_spill] sm:$0xff] %v12861_v14  ;;  %8403 = vmatmul.msk.f32.gmra.mxu1 %vm1292_vm1, %v12859_v60  ;;  %v4539_v11 = vadd.f32 %v14021_v13, %v12451_v28  ;;  %v5214_v14 = vld [vmem:[#allocation3 + $0x11b] sm:$0xff]  ;;  %v4542_v13 = vadd.f32 %v14023_v61, %v12469_v55 }
 0x9b5   : > { %8488 = vmatmul.msk.f32.gmra.mxu2 %vm1292_vm1, %v6153_v12  ;;  %v6154_v12 = vld [vmem:[#allocation3 + $0x11d] sm:$0xff] }
 0x9b6   : > { %8425 = vmatmul.msk.f32.gmra.mxu3 %vm1292_vm1, %v12475_v2  ;;  %v12886_v2 = vpop.f32.mrf.mxu2  ;;  %v14026_v55 = vld [vmem:[#allocation52_spill] sm:$0xff] }
 0x9b7   : > { %v4545_v61 = vadd.f32 %v14026_v55, %v12487_v6  ;;  %v6437_v55 = vld [vmem:[#allocation3 + $0x26] sm:$0xff] }
 0x9b8   : > { %v12874_v35 = vpop.f32.mrf.mxu0 }
 0x9b9   : > { %v4816_v52 = vpop.f32.mrf.mxu3 }
 0x9ba   : > { %v12880_v38 = vadd.f32 %v4816_v52, %v4539_v11  ;;  %v5215_v52 = vld [vmem:[#allocation3 + $0x123] sm:$0xff] }
 0x9bb   : > { %8359 = vmatmul.msk.f32.gmra.mxu0 %vm1292_vm1, %v5214_v14 }
 0x9bc   : > { %14022 = vst [vmem:[#allocation42_spill] sm:$0xff] %v12880_v38  ;;  %8404 = vmatmul.msk.f32.gmra.mxu1 %vm1292_vm1, %v12878_v18  ;;  %v5530_v38 = vld [vmem:[#allocation3 + $0x12c] sm:$0x3f] }
 0x9bd   : > { %8489 = vmatmul.msk.f32.gmra.mxu2 %vm1292_vm1, %v6154_v12  ;;  %v6155_v12 = vld [vmem:[#allocation3 + $0x125] sm:$0xff] }
 0x9be   : > { %8426 = vmatmul.msk.f32.gmra.mxu3 %vm1292_vm1, %v12493_v48  ;;  %v12901_v48 = vpop.f32.mrf.mxu2 }
 0x9c0   : > { %v12890_v28 = vpop.f32.mrf.mxu0 }
 0x9c1   : > { %v4819_v11 = vpop.f32.mrf.mxu3 }
 0x9c2   : > { %v12894_v14 = vadd.f32 %v4819_v11, %v4542_v13  ;;  %v5216_v13 = vld [vmem:[#allocation3 + $0x12b] sm:$0x3f] }
 0x9c3   : > { %8360 = vmatmul.msk.f32.gmra.mxu0 %vm1292_vm1, %v5215_v52  ;;  %v14029_v52 = vld [vmem:[#allocation54_spill] sm:$0xff] }
 0x9c4   : > { %14024 = vst [vmem:[#allocation18_spill] sm:$0xff] %v12894_v14  ;;  %8405 = vmatmul.msk.f32.gmra.mxu1 %vm1292_vm1, %v5530_v38  ;;  %v6156_v38 = vld [vmem:[#allocation3 + $0x12d] sm:$0xff] }
 0x9c5   : > { %8490 = vmatmul.msk.f32.gmra.mxu2 %vm1292_vm1, %v6155_v12  ;;  %v4548_v12 = vadd.f32 %v14029_v52, %v12505_v1  ;;  %v6438_v52 = vld [vmem:[#allocation3 + $0x2e] sm:$0xff] }
 0x9c6   : > { %8427 = vmatmul.msk.f32.gmra.mxu3 %vm1292_vm1, %v12511_v29  ;;  %v12917_v14 = vpop.f32.mrf.mxu2 }
 0x9c8   : > { %v12903_v34 = vpop.f32.mrf.mxu0 }
 0x9c9   : > { %14025 = vst [vmem:[#allocation12_spill] sm:$0xff] %v12903_v34  ;;  %v4822_v57 = vpop.f32.mrf.mxu3 }
 0x9ca   : > { %v12907_v11 = vadd.f32 %v4822_v57, %v4545_v61  ;;  %v6157_v57 = vld [vmem:[#allocation3 + $0x135] sm:$0xff] }
 0x9cb   : > { %8361 = vmatmul.msk.f32.gmra.mxu0 %vm1292_vm1, %v5216_v13  ;;  %v14032_v61 = vld [vmem:[#allocation59_spill] sm:$0xff]  ;;  %v14033_v13 = vld [vmem:[#allocation56_spill] sm:$0xff] }
 0x9cc   : > { %14027 = vst [vmem:[#allocation38_spill] sm:$0xff] %v12907_v11 }
 0x9cd   : > { %8491 = vmatmul.msk.f32.gmra.mxu2 %vm1292_vm1, %v6156_v38  ;;  %v4551_v38 = vadd.f32 %v14033_v13, %v14032_v61 }
 0x9ce   : > { %8428 = vmatmul.msk.f32.gmra.mxu3 %vm1292_vm1, %v12527_v50 }
 0x9d0   : > { %v12913_v29 = vpop.f32.mrf.mxu0 }
 0x9d1   : > { %14028 = vst [vmem:[#allocation46_spill] sm:$0xff] %v12913_v29  ;;  %v4825_v6 = vpop.f32.mrf.mxu3  ;;  %v6158_v29 = vld [vmem:[#allocation3 + $0x13d] sm:$0x3f] }
 0x9d2   : > { %v12919_v10 = vadd.f32 %v4825_v6, %v4548_v12  ;;  %v12932_v12 = vpop.f32.mrf.mxu2 }
 0x9d3   : > { %8502 = vmatmul.msk.f32.vlgmr.msrb.gmra.mxu0 %vm1292_vm1, %v6437_v55  ;;  %v6439_v55 = vld [vmem:[#allocation3 + $0x36] sm:$0xff] }
 0x9d4   : > { %14030 = vst [vmem:[#allocation48_spill] sm:$0xff] %v12919_v10 }
 0x9d5   : > { %8492 = vmatmul.msk.f32.gmra.mxu2 %vm1292_vm1, %v6157_v57 }
 0x9d6   : > { %8429 = vmatmul.msk.f32.gmra.mxu3 %vm1292_vm1, %v12546_v8 }
 0x9d8   : > { %v12925_v50 = vpop.f32.mrf.mxu0 }
 0x9d9   : > { %14031 = vst [vmem:[#allocation47_spill] sm:$0xff] %v12925_v50  ;;  %v4828_v1 = vpop.f32.mrf.mxu3 }
 0x9da   : > { %v12929_v11 = vadd.f32 %v4828_v1, %v4551_v38  ;;  %v6440_v38 = vld [vmem:[#allocation3 + $0x3e] sm:$0xff]  ;;  %v6441_v1 = vld [vmem:[#allocation3 + $0x46] sm:$0xff] }
 0x9db   : > { %8503 = vmatmul.msk.f32.gmra.mxu0 %vm1292_vm1, %v6438_v52 }
 0x9dc   : > { %14034 = vst [vmem:[#allocation49_spill] sm:$0xff] %v12929_v11 }
 0x9dd   : > { %8493 = vmatmul.msk.f32.gmra.mxu2 %vm1292_vm1, %v6158_v29 }
 0x9de   : > { %8430 = vmatmul.msk.f32.gmra.mxu3 %vm1292_vm1, %v12574_v53 }
 0x9e0   : > { %v12937_v8 = vpop.f32.mrf.mxu0 }
 0x9e1   : > { %14035 = vst [vmem:[#allocation50_spill] sm:$0xff] %v12937_v8  ;;  %v5979_v6 = vpop.f32.mrf.mxu3 }
 0x9e2   : > { %v12940_v57 = vadd.f32 %v5979_v6, %v12556_v22  ;;  %v6442_v6 = vld [vmem:[#allocation3 + $0x4e] sm:$0xff] }
 0x9e3   : > { %8504 = vmatmul.msk.f32.gmra.mxu0 %vm1292_vm1, %v6439_v55 }
 0x9e4   : > { %14036 = vst [vmem:[#allocation36_spill] sm:$0xff] %v12940_v57 }
 0x9e6   : > { %8431 = vmatmul.msk.f32.gmra.mxu3 %vm1292_vm1, %v12601_v15 }
 0x9e8   : > { %v12945_v61 = vpop.f32.mrf.mxu0 }
 0x9e9   : > { %14037 = vst [vmem:[#allocation52_spill] sm:$0xff] %v12945_v61  ;;  %v5982_v13 = vpop.f32.mrf.mxu3 }
 0x9ea   : > { %v12948_v29 = vadd.f32 %v5982_v13, %v12586_v40  ;;  %v6443_v13 = vld [vmem:[#allocation3 + $0x56] sm:$0xff] }
 0x9eb   : > { %8505 = vmatmul.msk.f32.gmra.mxu0 %vm1292_vm1, %v6440_v38 }
 0x9ec   : > { %14038 = vst [vmem:[#allocation54_spill] sm:$0xff] %v12948_v29  ;;  %v6466_v29 = vld [vmem:[#allocation3 + $0x10e] sm:$0xff] }
 0x9ee   : > { %8432 = vmatmul.msk.f32.gmra.mxu3 %vm1292_vm1, %v12619_v32 }
 0x9f0   : > { %v12953_v53 = vpop.f32.mrf.mxu0 }
 0x9f1   : > { %14039 = vst [vmem:[#allocation59_spill] sm:$0xff] %v12953_v53  ;;  %v5985_v22 = vpop.f32.mrf.mxu3 }
 0x9f2   : > { %v12956_v52 = vadd.f32 %v5985_v22, %v12608_v43  ;;  %v6444_v22 = vld [vmem:[#allocation3 + $0x5e] sm:$0xff] }
 0x9f3   : > { %8506 = vmatmul.msk.f32.gmra.mxu0 %vm1292_vm1, %v6441_v1 }
 0x9f4   : > { %14040 = vst [vmem:[#allocation56_spill] sm:$0xff] %v12956_v52 }
 0x9f6   : > { %8433 = vmatmul.msk.f32.gmra.mxu3 %vm1292_vm1, %v12637_v7 }
 0x9f8   : > { %v12961_v15 = vpop.f32.mrf.mxu0 }
 0x9f9   : > { %14041 = vst [vmem:[#allocation63_spill] sm:$0xff] %v12961_v15  ;;  %v5988_v40 = vpop.f32.mrf.mxu3 }
 0x9fa   : > { %v12964_v55 = vadd.f32 %v5988_v40, %v12626_v17  ;;  %v6445_v40 = vld [vmem:[#allocation3 + $0x66] sm:$0xff] }
 0x9fb   : > { %8507 = vmatmul.msk.f32.gmra.mxu0 %vm1292_vm1, %v6442_v6 }
 0x9fc   : > { %14042 = vst [vmem:[#allocation64_spill] sm:$0xff] %v12964_v55 }
 0x9fe   : > { %8434 = vmatmul.msk.f32.gmra.mxu3 %vm1292_vm1, %v12654_v54 }
 0xa00   : > { %v12969_v32 = vpop.f32.mrf.mxu0 }
 0xa01   : > { %14043 = vst [vmem:[#allocation65_spill] sm:$0xff] %v12969_v32  ;;  %v5991_v43 = vpop.f32.mrf.mxu3 }
 0xa02   : > { %v12972_v38 = vadd.f32 %v5991_v43, %v12644_v5  ;;  %v6446_v43 = vld [vmem:[#allocation3 + $0x6e] sm:$0xff] }
 0xa03   : > { %8508 = vmatmul.msk.f32.gmra.mxu0 %vm1292_vm1, %v6443_v13 }
 0xa04   : > { %14044 = vst [vmem:[#allocation66_spill] sm:$0xff] %v12972_v38 }
 0xa06   : > { %8435 = vmatmul.msk.f32.gmra.mxu3 %vm1292_vm1, %v12670_v47 }
 0xa08   : > { %v12977_v7 = vpop.f32.mrf.mxu0 }
 0xa09   : > { %14045 = vst [vmem:[#allocation67_spill] sm:$0xff] %v12977_v7  ;;  %v5994_v17 = vpop.f32.mrf.mxu3  ;;  %v6461_v7 = vld [vmem:[#allocation3 + $0xe6] sm:$0xff] }
 0xa0a   : > { %v12980_v1 = vadd.f32 %v5994_v17, %v12661_v30  ;;  %v6447_v17 = vld [vmem:[#allocation3 + $0x76] sm:$0xff] }
 0xa0b   : > { %8509 = vmatmul.msk.f32.gmra.mxu0 %vm1292_vm1, %v6444_v22 }
 0xa0c   : > { %14046 = vst [vmem:[#allocation68_spill] sm:$0xff] %v12980_v1 }
 0xa0e   : > { %8436 = vmatmul.msk.f32.gmra.mxu3 %vm1292_vm1, %v12688_v59 }
 0xa10   : > { %v12985_v54 = vpop.f32.mrf.mxu0 }
 0xa11   : > { %14047 = vst [vmem:[#allocation69_spill] sm:$0xff] %v12985_v54  ;;  %v5997_v5 = vpop.f32.mrf.mxu3 }
 0xa12   : > { %v12988_v6 = vadd.f32 %v5997_v5, %v12677_v45  ;;  %v6448_v5 = vld [vmem:[#allocation3 + $0x7e] sm:$0xff] }
 0xa13   : > { %8510 = vmatmul.msk.f32.gmra.mxu0 %vm1292_vm1, %v6445_v40 }
 0xa16   : > { %8437 = vmatmul.msk.f32.gmra.mxu3 %vm1292_vm1, %v12706_v19 }
 0xa18   : > { %v12993_v47 = vpop.f32.mrf.mxu0 }
 0xa19   : > { %14048 = vst [vmem:[#allocation70_spill] sm:$0xff] %v12993_v47  ;;  %v6000_v30 = vpop.f32.mrf.mxu3 }
 0xa1a   : > { %v12996_v13 = vadd.f32 %v6000_v30, %v12695_v42  ;;  %v6449_v30 = vld [vmem:[#allocation3 + $0x86] sm:$0xff] }
 0xa1b   : > { %8511 = vmatmul.msk.f32.gmra.mxu0 %vm1292_vm1, %v6446_v43 }
 0xa1e   : > { %8438 = vmatmul.msk.f32.gmra.mxu3 %vm1292_vm1, %v12724_v44 }
 0xa20   : > { %v13001_v59 = vpop.f32.mrf.mxu0 }
 0xa21   : > { %14049 = vst [vmem:[#allocation71_spill] sm:$0xff] %v13001_v59  ;;  %v6003_v45 = vpop.f32.mrf.mxu3 }
 0xa22   : > { %v13004_v22 = vadd.f32 %v6003_v45, %v12713_v56  ;;  %v6450_v45 = vld [vmem:[#allocation3 + $0x8e] sm:$0xff] }
 0xa23   : > { %8512 = vmatmul.msk.f32.gmra.mxu0 %vm1292_vm1, %v6447_v17 }
 0xa26   : > { %8439 = vmatmul.msk.f32.gmra.mxu3 %vm1292_vm1, %v12742_v36 }
 0xa28   : > { %v13009_v19 = vpop.f32.mrf.mxu0 }
 0xa29   : > { %14050 = vst [vmem:[#allocation72_spill] sm:$0xff] %v13009_v19  ;;  %v6006_v42 = vpop.f32.mrf.mxu3  ;;  %v6462_v19 = vld [vmem:[#allocation3 + $0xee] sm:$0xff] }
 0xa2a   : > { %v13012_v40 = vadd.f32 %v6006_v42, %v12731_v27  ;;  %v6452_v42 = vld [vmem:[#allocation3 + $0x9e] sm:$0xff] }
 0xa2b   : > { %8513 = vmatmul.msk.f32.gmra.mxu0 %vm1292_vm1, %v6448_v5  ;;  %v6453_v5 = vld [vmem:[#allocation3 + $0xa6] sm:$0xff] }
 0xa2e   : > { %8440 = vmatmul.msk.f32.gmra.mxu3 %vm1292_vm1, %v12758_v26 }
 0xa30   : > { %v13017_v44 = vpop.f32.mrf.mxu0 }
 0xa31   : > { %14051 = vst [vmem:[#allocation73_spill] sm:$0xff] %v13017_v44  ;;  %v6009_v56 = vpop.f32.mrf.mxu3  ;;  %v6459_v44 = vld [vmem:[#allocation3 + $0xd6] sm:$0xff] }
 0xa32   : > { %v13020_v43 = vadd.f32 %v6009_v56, %v12749_v9  ;;  %v6451_v9 = vld [vmem:[#allocation3 + $0x96] sm:$0xff]  ;;  %v6454_v56 = vld [vmem:[#allocation3 + $0xae] sm:$0xff] }
 0xa33   : > { %8514 = vmatmul.msk.f32.gmra.mxu0 %vm1292_vm1, %v6449_v30  ;;  %v6455_v30 = vld [vmem:[#allocation3 + $0xb6] sm:$0xff] }
 0xa36   : > { %8441 = vmatmul.msk.f32.gmra.mxu3 %vm1292_vm1, %v12776_v41 }
 0xa38   : > { %v13025_v36 = vpop.f32.mrf.mxu0 }
 0xa39   : > { %14052 = vst [vmem:[#allocation74_spill] sm:$0xff] %v13025_v36  ;;  %v6012_v27 = vpop.f32.mrf.mxu3 }
 0xa3a   : > { %v13028_v17 = vadd.f32 %v6012_v27, %v12765_v3 }
 0xa3b   : > { %8515 = vmatmul.msk.f32.gmra.mxu0 %vm1292_vm1, %v6450_v45  ;;  %v6456_v45 = vld [vmem:[#allocation3 + $0xbe] sm:$0xff] }
 0xa3e   : > { %8442 = vmatmul.msk.f32.gmra.mxu3 %vm1292_vm1, %v12792_v20 }
 0xa40   : > { %v13033_v26 = vpop.f32.mrf.mxu0 }
 0xa41   : > { %14053 = vst [vmem:[#allocation75_spill] sm:$0xff] %v13033_v26 }
 0xa43   : > { %8516 = vmatmul.msk.f32.gmra.mxu0 %vm1292_vm1, %v6451_v9 }
 0xa46   : > { %8443 = vmatmul.msk.f32.gmra.mxu3 %vm1292_vm1, %v12808_v46 }
 0xa48   : > { %v13038_v41 = vpop.f32.mrf.mxu0 }
 0xa49   : > { %14054 = vst [vmem:[#allocation76_spill] sm:$0xff] %v13038_v41  ;;  %v6460_v41 = vld [vmem:[#allocation3 + $0xde] sm:$0xff] }
 0xa4b   : > { %8517 = vmatmul.msk.f32.gmra.mxu0 %vm1292_vm1, %v6452_v42  ;;  %v6457_v42 = vld [vmem:[#allocation3 + $0xc6] sm:$0xff] }
 0xa4e   : > { %8444 = vmatmul.msk.f32.gmra.mxu3 %vm1292_vm1, %v12833_v31  ;;  %v5842_v31 = vld [vmem:[#allocation3 + $0x12c] sm:$0xff] }
 0xa50   : > { %v13043_v3 = vpop.f32.mrf.mxu0 }
 0xa51   : > { %14055 = vst [vmem:[#allocation77_spill] sm:$0xff] %v13043_v3 }
 0xa53   : > { %8518 = vmatmul.msk.f32.gmra.mxu0 %vm1292_vm1, %v6453_v5 }
 0xa56   : > { %8445 = vmatmul.msk.f32.gmra.mxu3 %vm1292_vm1, %v12859_v60  ;;  %v5843_v60 = vld [vmem:[#allocation3 + $0x134] sm:$0xff] }
 0xa58   : > { %v13048_v20 = vpop.f32.mrf.mxu0 }
 0xa59   : > { %14056 = vst [vmem:[#allocation78_spill] sm:$0xff] %v13048_v20 }
 0xa5b   : > { %8519 = vmatmul.msk.f32.gmra.mxu0 %vm1292_vm1, %v6454_v56  ;;  %v13067_v56 = vpop.f32.mrf.mxu1 }
 0xa5e   : > { %8446 = vmatmul.msk.f32.gmra.mxu3 %vm1292_vm1, %v12878_v18  ;;  %v5844_v18 = vld [vmem:[#allocation3 + $0x13c] sm:$0x3f] }
 0xa60   : > { %v13053_v46 = vpop.f32.mrf.mxu0 }
 0xa61   : > { %14057 = vst [vmem:[#allocation79_spill] sm:$0xff] %v13053_v46 }
 0xa63   : > { %8520 = vmatmul.msk.f32.gmra.mxu0 %vm1292_vm1, %v6455_v30  ;;  %v13069_v30 = vpop.f32.mrf.mxu3  ;;  %v5704_v36 = vpop.f32.mrf.mxu1 }
 0xa66   : > { %8447 = vmatmul.msk.f32.gmra.mxu3 %vm1292_vm1, %v5842_v31  ;;  %v6458_v31 = vld [vmem:[#allocation3 + $0xce] sm:$0xff] }
 0xa68   : > { %v13057_v27 = vpop.f32.mrf.mxu0 }
 0xa69   : > { %14058 = vst [vmem:[#allocation80_spill] sm:$0xff] %v13057_v27  ;;  %v14063_v27 = vld [vmem:[#allocation20_spill] sm:$0xff] }
 0xa6a   : > { %v5160_v52 = vadd.f32 %v14063_v27, %v12578_v51  ;;  %v14069_v51 = vld [vmem:[#allocation57_spill] sm:$0xff]  ;;  %v14070_v27 = vld [vmem:[#allocation10_spill] sm:$0xff] }
 0xa6b   : > { %8521 = vmatmul.msk.f32.gmra.mxu0 %vm1292_vm1, %v6456_v45  ;;  %v13072_v45 = vpop.f32.mrf.mxu2  ;;  %v5707_v10 = vpop.f32.mrf.mxu1 }
 0xa6e   : > { %8448 = vmatmul.msk.f32.gmra.mxu3 %vm1292_vm1, %v5843_v60 }
 0xa70   : > { %v13061_v9 = vpop.f32.mrf.mxu0 }
 0xa71   : > { %14059 = vst [vmem:[#allocation81_spill] sm:$0xff] %v13061_v9  ;;  %v14065_v9 = vld [vmem:[#allocation16_spill] sm:$0xff] }
 0xa72   : > { %v5159_v55 = vadd.f32 %v14065_v9, %v12548_v33 }
 0xa73   : > { %8522 = vmatmul.msk.f32.gmra.mxu0 %vm1292_vm1, %v6457_v42  ;;  %v6018_v42 = vpop.f32.mrf.mxu3  ;;  %v5710_v54 = vpop.f32.mrf.mxu1 }
 0xa74   : > { %v5473_v34 = vadd.f32 %v12804_v62, %v5159_v55 }
 0xa76   : > { %8449 = vmatmul.msk.f32.gmra.mxu3 %vm1292_vm1, %v5844_v18  ;;  %v13079_v18 = vpop.f32.mrf.mxu2 }
 0xa78   : > { %v13065_v5 = vpop.f32.mrf.mxu0 }
 0xa79   : > { %14060 = vst [vmem:[#allocation82_spill] sm:$0xff] %v13065_v5  ;;  %v5474_v5 = vadd.f32 %v12824_v39, %v5160_v52  ;;  %v14071_v39 = vld [vmem:[#allocation21_spill] sm:$0xff] }
 0xa7a   : > { %v5161_v52 = vadd.f32 %v14071_v39, %v12603_v0 }
 0xa7b   : > { %8523 = vmatmul.msk.f32.gmra.mxu0 %vm1292_vm1, %v6458_v31  ;;  %v6021_v11 = vpop.f32.mrf.mxu3  ;;  %v6409_v31 = vadd.f32 %v12886_v2, %v13004_v22  ;;  %v5713_v61 = vpop.f32.mrf.mxu1  ;;  %v6463_v2 = vld [vmem:[#allocation3 + $0xf6] sm:$0xff] }
 0xa7c   : > { %v5475_v62 = vadd.f32 %v12852_v49, %v5161_v52 }
 0xa7e   : > { %v5789_v0 = vadd.f32 %v5713_v61, %v5475_v62 }
 0xa80   : > { %v13074_v60 = vpop.f32.mrf.mxu0 }
 0xa81   : > { %14061 = vst [vmem:[#allocation83_spill] sm:$0xff] %v13074_v60 }
 0xa83   : > { %8524 = vmatmul.msk.f32.gmra.mxu0 %vm1292_vm1, %v6459_v44  ;;  %v6335_v44 = vpop.f32.mrf.mxu2  ;;  %v6024_v47 = vpop.f32.mrf.mxu3 }
 0xa88   : > { %v13077_v26 = vpop.f32.mrf.mxu0 }
 0xa8b   : > { %8525 = vmatmul.msk.f32.gmra.mxu0 %vm1292_vm1, %v6460_v41  ;;  %v6338_v41 = vpop.f32.mrf.mxu2  ;;  %v6027_v8 = vpop.f32.mrf.mxu3 }
 0xa90   : > { %v6631_v15 = vpop.f32.mrf.mxu0 }
 0xa91   : > { %v13084_v32 = vadd.f32 %v6631_v15, %v6409_v31  ;;  %v5716_v31 = vpop.f32.mrf.mxu1 }
 0xa93   : > { %8526 = vmatmul.msk.f32.gmra.mxu0 %vm1292_vm1, %v6461_v7  ;;  %v6341_v15 = vpop.f32.mrf.mxu2  ;;  %v6464_v7 = vld [vmem:[#allocation3 + $0xfe] sm:$0xff]  ;;  %v13096_v50 = vpop.f32.mrf.mxu3 }
 0xa98   : > { %v13087_v59 = vpop.f32.mrf.mxu0 }
 0xa99   : > { %v13101_v57 = vpop.f32.mrf.mxu1 }
 0xa9b   : > { %8527 = vmatmul.msk.f32.gmra.mxu0 %vm1292_vm1, %v6462_v19  ;;  %v13098_v20 = vpop.f32.mrf.mxu2  ;;  %v6465_v19 = vld [vmem:[#allocation3 + $0x106] sm:$0xff]  ;;  %v13103_v46 = vpop.f32.mrf.mxu3 }
 0xa9c   : > { %14062 = vst [vmem:[#allocation84_spill] sm:$0xff] %v13103_v46  ;;  %v5788_v46 = vadd.f32 %v5710_v54, %v5474_v5 }
 0xa9e   : > { %v6102_v9 = vadd.f32 %v6024_v47, %v5788_v46 }
 0xaa0   : > { %v13090_v53 = vpop.f32.mrf.mxu0 }
 0xaa1   : > { %v13116_v60 = vpop.f32.mrf.mxu1 }
 0xaa3   : > { %8528 = vmatmul.msk.f32.gmra.mxu0 %vm1292_vm1, %v6463_v2  ;;  %v13118_v24 = vpop.f32.mrf.mxu3 }
 0xaa4   : > { %14068 = vst [vmem:[#allocation16_spill] sm:$0xff] %v13118_v24 }
 0xaa8   : > { %v13093_v22 = vpop.f32.mrf.mxu0 }
 0xaa9   : > { %v13131_v5 = vpop.f32.mrf.mxu1 }
 0xaab   : > { %8529 = vmatmul.msk.f32.gmra.mxu0 %vm1292_vm1, %v6464_v7  ;;  %v13108_v7 = vpop.f32.mrf.mxu2  ;;  %v13136_v49 = vpop.f32.mrf.mxu3 }
 0xaac   : > { %14064 = vst [vmem:[#allocation20_spill] sm:$0xff] %v13108_v7 }
 0xab0   : > { %v6643_v3 = vpop.f32.mrf.mxu0 }
 0xab3   : > { %8530 = vmatmul.msk.f32.gmra.mxu0 %vm1292_vm1, %v6465_v19  ;;  %v14067_v19 = vld [vmem:[#allocation15_spill] sm:$0xff]  ;;  %v13128_v24 = vpop.f32.mrf.mxu2 }
 0xab4   : > { %v5158_v38 = vadd.f32 %v14067_v19, %v14066_v58  ;;  %v5787_v58 = vadd.f32 %v5707_v10, %v5473_v34 }
 0xab6   : > { %v5472_v7 = vadd.f32 %v12788_v25, %v5158_v38  ;;  %v6101_v19 = vadd.f32 %v6021_v11, %v5787_v58  ;;  %v6416_v38 = vadd.f32 %v6338_v41, %v6102_v9  ;;  %v6468_v11 = vld [vmem:[#allocation3 + $0x11e] sm:$0xff] }
 0xab7   : > { %v14078_v9 = vld [vmem:[#allocation27_spill] sm:$0xff] }
 0xab8   : > { %v6646_v2 = vpop.f32.mrf.mxu0  ;;  %v5786_v55 = vadd.f32 %v5704_v36, %v5472_v7  ;;  %v6415_v34 = vadd.f32 %v6335_v44, %v6101_v19  ;;  %v6103_v36 = vadd.f32 %v6027_v8, %v5789_v0  ;;  %v6412_v44 = vadd.f32 %v12932_v12, %v13028_v17  ;;  %v13153_v12 = vpop.f32.mrf.mxu1  ;;  %v14081_v19 = vld [vmem:[#allocation66_spill] sm:$0xff]  ;;  %v14085_v0 = vld [vmem:[#allocation31_spill] sm:$0xff] }
 0xaba   : > { %v6100_v25 = vadd.f32 %v6018_v42, %v5786_v55  ;;  %v6417_v41 = vadd.f32 %v6341_v15, %v6103_v36 }
 0xabb   : > { %8531 = vmatmul.msk.f32.gmra.mxu0 %vm1292_vm1, %v6466_v29  ;;  %v5157_v29 = vadd.f32 %v14070_v27, %v14069_v51  ;;  %v13144_v7 = vpop.f32.mrf.mxu2  ;;  %v6726_v27 = vadd.f32 %v13093_v22, %v6412_v44 }
 0xabc   : > { %v6414_v46 = vadd.f32 %v13079_v18, %v6100_v25  ;;  %v14083_v25 = vld [vmem:[#allocation82_spill] sm:$0xff] }
 0xabd   : > { %v5471_v33 = vadd.f32 %v12772_v4, %v5157_v29  ;;  %v6469_v29 = vld [vmem:[#allocation3 + $0x126] sm:$0xff] }
 0xabe   : > { %v6728_v61 = vadd.f32 %v6646_v2, %v6414_v46  ;;  %v14088_v46 = vld [vmem:[#allocation56_spill] sm:$0xff] }
 0xabf   : > { %v5785_v51 = vadd.f32 %v13067_v56, %v5471_v33 }
 0xac0   : > { %v6649_v1 = vpop.f32.mrf.mxu0 }
 0xac1   : > { %v6099_v4 = vadd.f32 %v13069_v30, %v5785_v51  ;;  %v6729_v56 = vadd.f32 %v6649_v1, %v6415_v34  ;;  %v6411_v1 = vadd.f32 %v12917_v14, %v13020_v43  ;;  %v13160_v14 = vpop.f32.mrf.mxu3 }
 0xac3   : > { %8532 = vmatmul.msk.f32.gmra.mxu0 %vm1292_vm1, %v6467_v37  ;;  %v14072_v37 = vld [vmem:[#allocation22_spill] sm:$0xff]  ;;  %v6413_v30 = vadd.f32 %v13072_v45, %v6099_v4  ;;  %v14073_v45 = vld [vmem:[#allocation23_spill] sm:$0xff]  ;;  %v6725_v15 = vadd.f32 %v13090_v53, %v6411_v1  ;;  %v6407_v53 = vadd.f32 %v12831_v63, %v12988_v6  ;;  %v6356_v52 = vpop.f32.mrf.mxu2  ;;  %v14080_v63 = vld [vmem:[#allocation12_spill] sm:$0xff] }
 0xac4   : > { %v5162_v47 = vadd.f32 %v14072_v37, %v12621_v16  ;;  %v5163_v2 = vadd.f32 %v14073_v45, %v12639_v23  ;;  %v6408_v23 = vadd.f32 %v12869_v21, %v12996_v13  ;;  %v6470_v21 = vld [vmem:[#allocation3 + $0x12e] sm:$0xff]  ;;  %v14076_v13 = vld [vmem:[#allocation84_spill] sm:$0xff]  ;;  %v6471_v1 = vld [vmem:[#allocation3 + $0x136] sm:$0xff] }
 0xac5   : > { %v6727_v16 = vadd.f32 %v6643_v3, %v6413_v30  ;;  %v6410_v3 = vadd.f32 %v12901_v48, %v13012_v40  ;;  %v14084_v4 = vld [vmem:[#allocation64_spill] sm:$0xff]  ;;  %v14094_v45 = vld [vmem:[#allocation14_spill] sm:$0xff] }
 0xac6   : > { %v5476_v42 = vadd.f32 %v12874_v35, %v5162_v47  ;;  %v5477_v43 = vadd.f32 %v12890_v28, %v5163_v2  ;;  %v6722_v40 = vadd.f32 %v13077_v26, %v6408_v23  ;;  %v14074_v28 = vld [vmem:[#allocation9_spill] sm:$0xff]  ;;  %v5731_v26 = vpop.f32.mrf.mxu1  ;;  %v6404_v34 = vadd.f32 %v14085_v0, %v14084_v4  ;;  %v14087_v47 = vld [vmem:[#allocation20_spill] sm:$0xff] }
 0xac7   : > { %v6724_v22 = vadd.f32 %v13087_v59, %v6410_v3  ;;  %v14075_v59 = vld [vmem:[#allocation25_spill] sm:$0xff]  ;;  %v14090_v30 = vld [vmem:[#allocation80_spill] sm:$0xff] }
 0xac8   : > { %v6652_v54 = vpop.f32.mrf.mxu0  ;;  %v5790_v18 = vadd.f32 %v5716_v31, %v5476_v42  ;;  %v5791_v48 = vadd.f32 %v13101_v57, %v5477_v43  ;;  %v5164_v39 = vadd.f32 %v14075_v59, %v14074_v28  ;;  %v14079_v57 = vld [vmem:[#allocation83_spill] sm:$0xff]  ;;  %v14096_v3 = vld [vmem:[#allocation16_spill] sm:$0xff]  ;;  %v14101_v28 = vld [vmem:[#allocation77_spill] sm:$0xff] }
 0xac9   : > { %v6730_v10 = vadd.f32 %v6652_v54, %v6416_v38  ;;  %v6721_v55 = vadd.f32 %v14079_v57, %v6407_v53  ;;  %v6045_v54 = vpop.f32.mrf.mxu3  ;;  %v14098_v23 = vld [vmem:[#allocation36_spill] sm:$0xff]  ;;  %v14103_v57 = vld [vmem:[#allocation33_spill] sm:$0xff] }
 0xaca   : > { %v6104_v17 = vadd.f32 %v13096_v50, %v5790_v18  ;;  %v6105_v58 = vadd.f32 %v14076_v13, %v5791_v48  ;;  %v5478_v6 = vadd.f32 %v14080_v63, %v5164_v39  ;;  %v14100_v48 = vld [vmem:[#allocation78_spill] sm:$0xff]  ;;  %v14105_v0 = vld [vmem:[#allocation41_spill] sm:$0xff] }
 0xacb   : > { %8533 = vmatmul.msk.f32.gmra.mxu0 %vm1292_vm1, %v6468_v11  ;;  %6951 = vmatpush.msrb.mxu1 %v6730_v10  ;;  %v14086_v10 = vld [vmem:[#allocation81_spill] sm:$0xff]  ;;  %v6359_v43 = vpop.f32.mrf.mxu2 }
 0xacc   : > { %v6418_v50 = vadd.f32 %v13098_v20, %v6104_v17  ;;  %v14077_v20 = vld [vmem:[#allocation68_spill] sm:$0xff]  ;;  %v6419_v11 = vadd.f32 %v14087_v47, %v6105_v58  ;;  %v5792_v44 = vadd.f32 %v13116_v60, %v5478_v6  ;;  %v14104_v6 = vld [vmem:[#allocation47_spill] sm:$0xff] }
 0xacd   : > { %6952 = vmatpush.msrb.mxu1 %v6729_v56  ;;  %v6406_v62 = vadd.f32 %v14078_v9, %v14077_v20  ;;  %v14089_v56 = vld [vmem:[#allocation24_spill] sm:$0xff] }
 0xace   : > { %v6403_v42 = vadd.f32 %v14089_v56, %v14088_v46  ;;  %v6472_v9 = vld [vmem:[#allocation3 + $0x13e] sm:$0x3f] }
 0xacf   : > { %6953 = vmatpush.msrb.mxu1 %v6728_v61  ;;  %v6720_v38 = vadd.f32 %v14083_v25, %v6406_v62  ;;  %v6718_v61 = vadd.f32 %v14090_v30, %v6404_v34  ;;  %v14102_v62 = vld [vmem:[#allocation13_spill] sm:$0xff]  ;;  %v14106_v34 = vld [vmem:[#allocation30_spill] sm:$0xff]  ;;  %v14109_v30 = vld [vmem:[#allocation40_spill] sm:$0xff] }
 0xad0   : > { %v6655_v8 = vpop.f32.mrf.mxu0 }
 0xad1   : > { %v13149_v35 = vadd.f32 %v6655_v8, %v6417_v41  ;;  %6954 = vmatpush.msrb.mxu1 %v6727_v16  ;;  %v14091_v41 = vld [vmem:[#allocation39_spill] sm:$0xff]  ;;  %v14092_v8 = vld [vmem:[#allocation17_spill] sm:$0xff] }
 0xad2   : > { %v5165_v18 = vadd.f32 %v14092_v8, %v14091_v41  ;;  %v14110_v8 = vld [vmem:[#allocation52_spill] sm:$0xff] }
 0xad3   : > { %8534 = vmatmul.msk.f32.gmra.mxu0 %vm1292_vm1, %v6469_v29  ;;  %6955 = vmatpush.msrb.mxu1 %v6726_v27  ;;  %v14093_v27 = vld [vmem:[#allocation54_spill] sm:$0xff]  ;;  %v14095_v29 = vld [vmem:[#allocation79_spill] sm:$0xff] }
 0xad4   : > { %v6402_v2 = vadd.f32 %v14094_v45, %v14093_v27  ;;  %v6717_v17 = vadd.f32 %v14095_v29, %v6403_v42 }
 0xad5   : > { %6956 = vmatpush.msrb.mxu1 %v6725_v15  ;;  %v6106_v15 = vadd.f32 %v14096_v3, %v5792_v44  ;;  %v14113_v3 = vld [vmem:[#allocation59_spill] sm:$0xff] }
 0xad6   : > { %v6716_v53 = vadd.f32 %v14100_v48, %v6402_v2  ;;  %v14112_v2 = vld [vmem:[#allocation43_spill] sm:$0xff] }
 0xad7   : > { %6957 = vmatpush.msrb.mxu1 %v6724_v22  ;;  %v14097_v22 = vld [vmem:[#allocation46_spill] sm:$0xff]  ;;  %v6420_v39 = vadd.f32 %v13128_v24, %v6106_v15 }
 0xad8   : > { %v6658_v31 = vpop.f32.mrf.mxu0  ;;  %v5479_v60 = vadd.f32 %v14097_v22, %v5165_v18 }
 0xad9   : > { %v13171_v33 = vadd.f32 %v6658_v31, %v6418_v50  ;;  %6958 = vmatpush.msrb.mxu1 %v13084_v32  ;;  %v14082_v32 = vld [vmem:[#allocation29_spill] sm:$0xff]  ;;  %v14099_v50 = vld [vmem:[#allocation62_spill] sm:$0xff] }
 0xada   : > { %v6405_v51 = vadd.f32 %v14082_v32, %v14081_v19  ;;  %v6401_v31 = vadd.f32 %v14099_v50, %v14098_v23  ;;  %v5793_v58 = vadd.f32 %v13131_v5, %v5479_v60  ;;  %v6362_v32 = vpop.f32.mrf.mxu2 }
 0xadb   : > { %8535 = vmatmul.msk.f32.gmra.mxu0 %vm1292_vm1, %v6470_v21  ;;  %6959 = vmatpush.msrb.mxu1 %v6722_v40  ;;  %v5734_v40 = vpop.f32.mrf.mxu1  ;;  %v6048_v21 = vpop.f32.mrf.mxu3 }
 0xadc   : > { %v6719_v37 = vadd.f32 %v14086_v10, %v6405_v51  ;;  %v6715_v59 = vadd.f32 %v14101_v28, %v6401_v31  ;;  %v6107_v63 = vadd.f32 %v13136_v49, %v5793_v58  ;;  %v5167_v10 = vadd.f32 %v14106_v34, %v14105_v0  ;;  %v14107_v49 = vld [vmem:[#allocation50_spill] sm:$0xff] }
 0xadd   : > { %6960 = vmatpush.msrb.mxu1 %v6721_v55  ;;  %v5166_v55 = vadd.f32 %v14103_v57, %v14102_v62  ;;  %v14114_v34 = vld [vmem:[#allocation42_spill] sm:$0xff] }
 0xade   : > { %v6421_v24 = vadd.f32 %v13144_v7, %v6107_v63  ;;  %v5481_v47 = vadd.f32 %v14107_v49, %v5167_v10  ;;  %v14108_v7 = vld [vmem:[#allocation26_spill] sm:$0xff]  ;;  %v14115_v10 = vld [vmem:[#allocation11_spill] sm:$0xff]  ;;  %v14116_v49 = vld [vmem:[#allocation37_spill] sm:$0xff] }
 0xadf   : > { %6961 = vmatpush.msrb.mxu1 %v6720_v38  ;;  %v5480_v19 = vadd.f32 %v14104_v6, %v5166_v55 }
 0xae0   : > { %v6661_v36 = vpop.f32.mrf.mxu0  ;;  %v5795_v56 = vadd.f32 %v5731_v26, %v5481_v47  ;;  %v14111_v26 = vld [vmem:[#allocation8_spill] sm:$0xff]  ;;  %v14117_v47 = vld [vmem:[#allocation35_spill] sm:$0xff] }
 0xae1   : > { %v13193_v16 = vadd.f32 %v6661_v36, %v6419_v11  ;;  %6962 = vmatpush.msrb.mxu1 %v6719_v37  ;;  %v5794_v5 = vadd.f32 %v13153_v12, %v5480_v19  ;;  %v5169_v29 = vadd.f32 %v14112_v2, %v14111_v26  ;;  %v14124_v26 = vld [vmem:[#allocation70_spill] sm:$0xff] }
 0xae2   : > { %v6365_v36 = vpop.f32.mrf.mxu2  ;;  %v6109_v44 = vadd.f32 %v6045_v54, %v5795_v56 }
 0xae3   : > { %8536 = vmatmul.msk.f32.gmra.mxu0 %vm1292_vm1, %v6471_v1  ;;  %6963 = vmatpush.msrb.mxu1 %v6718_v61  ;;  %v5737_v25 = vpop.f32.mrf.mxu1  ;;  %v6051_v4 = vpop.f32.mrf.mxu3  ;;  %v6108_v37 = vadd.f32 %v13160_v14, %v5794_v5  ;;  %v5168_v61 = vadd.f32 %v14109_v30, %v14108_v7  ;;  %v5483_v15 = vadd.f32 %v14113_v3, %v5169_v29  ;;  %v14119_v7 = vld [vmem:[#allocation5_spill] sm:$0xff]  ;;  %v14120_v30 = vld [vmem:[#allocation58_spill] sm:$0xff] }
 0xae4   : > { %v6423_v1 = vadd.f32 %v6359_v43, %v6109_v44  ;;  %v14121_v44 = vld [vmem:[#allocation71_spill] sm:$0xff] }
 0xae5   : > { %6964 = vmatpush.msrb.mxu1 %v6717_v17  ;;  %v6422_v11 = vadd.f32 %v6356_v52, %v6108_v37  ;;  %v5482_v18 = vadd.f32 %v14110_v8, %v5168_v61  ;;  %v5797_v50 = vadd.f32 %v5737_v25, %v5483_v15  ;;  %v5176_v37 = vadd.f32 %v14115_v10, %v14114_v34  ;;  %v14125_v15 = vld [vmem:[#allocation7_spill] sm:$0xff]  ;;  %v14128_v34 = vld [vmem:[#allocation45_spill] sm:$0xff] }
 0xae6   : > { %v5174_v61 = vadd.f32 %v14120_v30, %v14119_v7  ;;  %v14129_v10 = vld [vmem:[#allocation51_spill] sm:$0xff]  ;;  %v14132_v30 = vld [vmem:[#allocation44_spill] sm:$0xff] }
 0xae7   : > { %6965 = vmatpush.msrb.mxu1 %v6716_v53  ;;  %v5796_v27 = vadd.f32 %v5734_v40, %v5482_v18  ;;  %v6111_v31 = vadd.f32 %v6051_v4, %v5797_v50  ;;  %v14127_v50 = vld [vmem:[#allocation69_spill] sm:$0xff]  ;;  %v14131_v7 = vld [vmem:[#allocation19_spill] sm:$0xff] }
 0xae8   : > { %v6664_v13 = vpop.f32.mrf.mxu0  ;;  %v5488_v2 = vadd.f32 %v14124_v26, %v5174_v61  ;;  %v5170_v61 = vadd.f32 %v14132_v30, %v14131_v7  ;;  %v14134_v26 = vld [vmem:[#allocation63_spill] sm:$0xff] }
 0xae9   : > { %v13209_v20 = vadd.f32 %v6664_v13, %v6420_v39  ;;  %6966 = vmatpush.msrb.mxu1 %v6715_v59  ;;  %v6110_v17 = vadd.f32 %v6048_v21, %v5796_v27  ;;  %v6425_v40 = vadd.f32 %v6365_v36, %v6111_v31  ;;  %v14118_v36 = vld [vmem:[#allocation72_spill] sm:$0xff] }
 0xaea   : > { %v13235_v52 = vpop.f32.mrf.mxu2 }
 0xaeb   : > { %8537 = vmatmul.msk.f32.gmra.mxu0 %vm1292_vm1, %v6472_v9  ;;  %v13228_v12 = vpop.f32.mrf.mxu1  ;;  %v13230_v41 = vpop.f32.mrf.mxu3  ;;  %v6424_v60 = vadd.f32 %v6362_v32, %v6110_v17 }
 0xaf0   : > { %v6667_v51 = vpop.f32.mrf.mxu0 }
 0xaf1   : > { %v13218_v38 = vadd.f32 %v6667_v51, %v6421_v24 }
 0xaf2   : > { %v13246_v48 = vpop.f32.mrf.mxu2 }
 0xaf3   : > { %v13240_v22 = vpop.f32.mrf.mxu1  ;;  %v13242_v54 = vpop.f32.mrf.mxu3 }
 0xaf8   : > { %v6670_v46 = vpop.f32.mrf.mxu0 }
 0xaf9   : > { %v13224_v42 = vadd.f32 %v6670_v46, %v6422_v11  ;;  %v5175_v11 = vadd.f32 %v14117_v47, %v14116_v49  ;;  %v5490_v46 = vadd.f32 %v14118_v36, %v5176_v37  ;;  %v5171_v37 = vadd.f32 %v14129_v10, %v14128_v34  ;;  %v14130_v49 = vld [vmem:[#allocation67_spill] sm:$0xff]  ;;  %v14137_v34 = vld [vmem:[#allocation48_spill] sm:$0xff]  ;;  %v14138_v10 = vld [vmem:[#allocation6_spill] sm:$0xff] }
 0xafa   : > { %v6374_v21 = vpop.f32.mrf.mxu2 }
 0xafb   : > { %v5746_v53 = vpop.f32.mrf.mxu1  ;;  %v6060_v28 = vpop.f32.mrf.mxu3  ;;  %v5489_v8 = vadd.f32 %v14121_v44, %v5175_v11 }
 0xb00   : > { %v6673_v14 = vpop.f32.mrf.mxu0 }
 0xb01   : > { %v13233_v45 = vadd.f32 %v6673_v14, %v6423_v1  ;;  %v14122_v1 = vld [vmem:[#allocation28_spill] sm:$0xff]  ;;  %v14123_v14 = vld [vmem:[#allocation55_spill] sm:$0xff] }
 0xb02   : > { %v6377_v62 = vpop.f32.mrf.mxu2  ;;  %v5173_v27 = vadd.f32 %v14123_v14, %v14122_v1 }
 0xb03   : > { %v5749_v58 = vpop.f32.mrf.mxu1  ;;  %v6063_v9 = vpop.f32.mrf.mxu3 }
 0xb04   : > { %v5487_v31 = vadd.f32 %v14127_v50, %v5173_v27 }
 0xb06   : > { %v5801_v44 = vadd.f32 %v5749_v58, %v5487_v31 }
 0xb08   : > { %v6676_v23 = vpop.f32.mrf.mxu0 }
 0xb09   : > { %v13244_v43 = vadd.f32 %v6676_v23, %v6424_v60  ;;  %v14126_v60 = vld [vmem:[#allocation53_spill] sm:$0xff] }
 0xb0a   : > { %v6380_v19 = vpop.f32.mrf.mxu2  ;;  %v5172_v23 = vadd.f32 %v14126_v60, %v14125_v15  ;;  %v5484_v15 = vadd.f32 %v14134_v26, %v5170_v61 }
 0xb0b   : > { %v5752_v55 = vpop.f32.mrf.mxu1  ;;  %v6066_v63 = vpop.f32.mrf.mxu3 }
 0xb0c   : > { %v5486_v47 = vadd.f32 %v14130_v49, %v5172_v23  ;;  %v5802_v11 = vadd.f32 %v5752_v55, %v5488_v2  ;;  %v5798_v58 = vadd.f32 %v13228_v12, %v5484_v15  ;;  %v6751_v12 = vld [vmem:[%s13756_s11] sm:$0xff]  ;;  %v14146_v15 = vld [vmem:[#allocation73_spill] sm:$0xff] }
 0xb0d   : > { %6967 = vmatmul.f32.vlgmr.msrb.gmra.mxu1 %v6751_v12  ;;  %v6772_v12 = vld [vmem:[%s13756_s11 + $0xa8] sm:$0xff] }
 0xb0e   : > { %v6116_v1 = vadd.f32 %v6066_v63, %v5802_v11 }
 0xb10   : > { %v6679_v59 = vpop.f32.mrf.mxu0  ;;  %v6430_v2 = vadd.f32 %v6380_v19, %v6116_v1  ;;  %v14145_v1 = vld [vmem:[#allocation74_spill] sm:$0xff] }
 0xb11   : > { %v13248_v39 = vadd.f32 %v6679_v59, %v6425_v40 }
 0xb12   : > { %v6383_v25 = vpop.f32.mrf.mxu2 }
 0xb13   : > { %v5755_v32 = vpop.f32.mrf.mxu1  ;;  %v6069_v24 = vpop.f32.mrf.mxu3 }
 0xb14   : > { %v5803_v40 = vadd.f32 %v5755_v32, %v5489_v8  ;;  %v6115_v8 = vadd.f32 %v6063_v9, %v5801_v44 }
 0xb16   : > { %v6117_v36 = vadd.f32 %v6069_v24, %v5803_v40 }
 0xb18   : > { %v13250_v13 = vpop.f32.mrf.mxu0 }
 0xb1a   : > { %v6386_v56 = vpop.f32.mrf.mxu2 }
 0xb1b   : > { %v5758_v5 = vpop.f32.mrf.mxu1  ;;  %v6072_v4 = vpop.f32.mrf.mxu3 }
 0xb1c   : > { %v5804_v17 = vadd.f32 %v5758_v5, %v5490_v46  ;;  %v14133_v5 = vld [vmem:[#allocation65_spill] sm:$0xff] }
 0xb1d   : > { %v5485_v46 = vadd.f32 %v14133_v5, %v5171_v37  ;;  %v14139_v37 = vld [vmem:[#allocation76_spill] sm:$0xff] }
 0xb1e   : > { %v6118_v59 = vadd.f32 %v6072_v4, %v5804_v17  ;;  %v5800_v4 = vadd.f32 %v5746_v53, %v5486_v47  ;;  %v6431_v17 = vadd.f32 %v6383_v25, %v6117_v36  ;;  %v6112_v53 = vadd.f32 %v13230_v41, %v5798_v58  ;;  %v14140_v47 = vld [vmem:[#allocation38_spill] sm:$0xff]  ;;  %v14142_v36 = vld [vmem:[#allocation75_spill] sm:$0xff] }
 0xb1f   : > { %v5799_v55 = vadd.f32 %v13240_v22, %v5485_v46  ;;  %v14144_v46 = vld [vmem:[#allocation32_spill] sm:$0xff] }
 0xb20   : > { %v13252_v57 = vpop.f32.mrf.mxu0  ;;  %v6432_v14 = vadd.f32 %v6386_v56, %v6118_v59  ;;  %v6114_v24 = vadd.f32 %v6060_v28, %v5800_v4  ;;  %v6429_v56 = vadd.f32 %v6377_v62, %v6115_v8 }
 0xb21   : > { %v6113_v63 = vadd.f32 %v13242_v54, %v5799_v55  ;;  %v6426_v54 = vadd.f32 %v13235_v52, %v6112_v53  ;;  %v6758_v53 = vld [vmem:[%s13756_s11 + $0x38] sm:$0xff] }
 0xb22   : > { %v13279_v27 = vpop.f32.mrf.mxu2  ;;  %v6428_v9 = vadd.f32 %v6374_v21, %v6114_v24 }
 0xb23   : > { %v13265_v29 = vpop.f32.mrf.mxu1  ;;  %v13267_v3 = vpop.f32.mrf.mxu3  ;;  %v6427_v22 = vadd.f32 %v13246_v48, %v6113_v63  ;;  %v6740_v21 = vadd.f32 %v13250_v13, %v6426_v54  ;;  %v5179_v13 = vadd.f32 %v14138_v10, %v14137_v34  ;;  %v6765_v54 = vld [vmem:[%s13756_s11 + $0x70] sm:$0xff]  ;;  %v6784_v34 = vld [vmem:[%s13756_s11 + $0x108] sm:$0xff] }
 0xb24   : > { %v6777_v10 = vld [vmem:[%s13756_s11 + $0xd0] sm:$0xff] }
 0xb25   : > { %v6741_v62 = vadd.f32 %v13252_v57, %v6427_v22  ;;  %v5493_v7 = vadd.f32 %v14142_v36, %v5179_v13  ;;  %v6769_v22 = vld [vmem:[%s13756_s11 + $0x90] sm:$0xff]  ;;  %v6779_v13 = vld [vmem:[%s13756_s11 + $0xe0] sm:$0xff] }
 0xb26   : > { %v6785_v36 = vld [vmem:[%s13756_s11 + $0x110] sm:$0xff] }
 0xb28   : > { %v6688_v6 = vpop.f32.mrf.mxu0 }
 0xb29   : > { %v6742_v28 = vadd.f32 %v6688_v6, %v6428_v9  ;;  %v6754_v6 = vld [vmem:[%s13756_s11 + $0x18] sm:$0xff] }
 0xb2a   : > { %v6392_v19 = vpop.f32.mrf.mxu2  ;;  %6970 = vmatmul.f32.gmra.mxu1 %v6754_v6  ;;  %v6766_v9 = vld [vmem:[%s13756_s11 + $0x78] sm:$0xff]  ;;  %v6771_v6 = vld [vmem:[%s13756_s11 + $0xa0] sm:$0xff] }
 0xb2b   : > { %v5764_v23 = vpop.f32.mrf.mxu1  ;;  %v6078_v40 = vpop.f32.mrf.mxu3 }
 0xb30   : > { %v6691_v51 = vpop.f32.mrf.mxu0 }
 0xb31   : > { %v6743_v25 = vadd.f32 %v6691_v51, %v6429_v56  ;;  %v6755_v56 = vld [vmem:[%s13756_s11 + $0x20] sm:$0xff] }
 0xb32   : > { %v6395_v57 = vpop.f32.mrf.mxu2 }
 0xb33   : > { %v5767_v41 = vpop.f32.mrf.mxu1  ;;  %v6081_v51 = vpop.f32.mrf.mxu3 }
 0xb34   : > { %v5807_v4 = vadd.f32 %v5767_v41, %v5493_v7  ;;  %v6775_v41 = vld [vmem:[%s13756_s11 + $0xc0] sm:$0xff]  ;;  %v6793_v7 = vld [vmem:[%s13756_s11 + $0x150] sm:$0xff] }
 0xb38   : > { %v6694_v0 = vpop.f32.mrf.mxu0 }
 0xb39   : > { %v6744_v31 = vadd.f32 %v6694_v0, %v6430_v2  ;;  %v14135_v0 = vld [vmem:[#allocation49_spill] sm:$0xff]  ;;  %v6752_v2 = vld [vmem:[%s13756_s11 + $0x8] sm:$0xff] }
 0xb3b   : > { %v5770_v30 = vpop.f32.mrf.mxu1  ;;  %v6084_v61 = vpop.f32.mrf.mxu3 }
 0xb40   : > { %v6697_v18 = vpop.f32.mrf.mxu0 }
 0xb41   : > { %v6745_v50 = vadd.f32 %v6697_v18, %v6431_v17  ;;  %v14136_v18 = vld [vmem:[#allocation61_spill] sm:$0xff]  ;;  %v6121_v17 = vadd.f32 %v6081_v51, %v5807_v4 }
 0xb42   : > { %v5180_v52 = vadd.f32 %v14136_v18, %v14135_v0  ;;  %v6770_v51 = vld [vmem:[%s13756_s11 + $0x98] sm:$0xff]  ;;  %v6773_v0 = vld [vmem:[%s13756_s11 + $0xb0] sm:$0xff] }
 0xb43   : > { %v6781_v18 = vld [vmem:[%s13756_s11 + $0xf0] sm:$0xff]  ;;  %v6802_v4 = vld [vmem:[%s13756_s11 + $0x198] sm:$0xff] }
 0xb44   : > { %v5494_v49 = vadd.f32 %v14139_v37, %v5180_v52  ;;  %v6774_v52 = vld [vmem:[%s13756_s11 + $0xb8] sm:$0xff]  ;;  %v6787_v37 = vld [vmem:[%s13756_s11 + $0x120] sm:$0xff] }
 0xb46   : > { %v5808_v26 = vadd.f32 %v5770_v30, %v5494_v49  ;;  %v6780_v49 = vld [vmem:[%s13756_s11 + $0xe8] sm:$0xff]  ;;  %v6786_v30 = vld [vmem:[%s13756_s11 + $0x118] sm:$0xff] }
 0xb48   : > { %v6700_v32 = vpop.f32.mrf.mxu0  ;;  %v6122_v8 = vadd.f32 %v6084_v61, %v5808_v26  ;;  %v6788_v61 = vld [vmem:[%s13756_s11 + $0x128] sm:$0xff]  ;;  %v6794_v26 = vld [vmem:[%s13756_s11 + $0x158] sm:$0xff] }
 0xb49   : > { %v6746_v60 = vadd.f32 %v6700_v32, %v6432_v14 }
 0xb4b   : > { %7064 = vmatpush.msrb.mxu3 %v6746_v60  ;;  %v6398_v60 = vpop.f32.mrf.mxu2 }
 0xb4d   : > { %7065 = vmatpush.msrb.mxu3 %v6745_v50 }
 0xb4f   : > { %7066 = vmatpush.msrb.mxu3 %v6744_v31  ;;  %v6756_v31 = vld [vmem:[%s13756_s11 + $0x28] sm:$0xff] }
 0xb50   : > { %v13285_v59 = vpop.f32.mrf.mxu0 }
 0xb51   : > { %7067 = vmatpush.msrb.mxu3 %v6743_v25  ;;  %v6759_v25 = vld [vmem:[%s13756_s11 + $0x40] sm:$0xff] }
 0xb53   : > { %7068 = vmatpush.msrb.mxu3 %v6742_v28  ;;  %v6762_v28 = vld [vmem:[%s13756_s11 + $0x58] sm:$0xff] }
 0xb55   : > { %7069 = vmatpush.msrb.mxu3 %v6741_v62  ;;  %v6767_v62 = vld [vmem:[%s13756_s11 + $0x80] sm:$0xff] }
 0xb57   : > { %7070 = vmatpush.msrb.mxu3 %v6740_v21  ;;  %v6768_v21 = vld [vmem:[%s13756_s11 + $0x88] sm:$0xff] }
 0xb58   : > { %v6706_v48 = vpop.f32.mrf.mxu0 }
 0xb59   : > { %7071 = vmatpush.msrb.mxu3 %v13248_v39  ;;  %v14141_v39 = vld [vmem:[#allocation34_spill] sm:$0xff] }
 0xb5a   : > { %v5178_v11 = vadd.f32 %v14141_v39, %v14140_v47  ;;  %v6782_v47 = vld [vmem:[%s13756_s11 + $0xf8] sm:$0xff] }
 0xb5b   : > { %7072 = vmatpush.msrb.mxu3 %v13244_v43  ;;  %v14143_v43 = vld [vmem:[#allocation18_spill] sm:$0xff] }
 0xb5c   : > { %v5177_v44 = vadd.f32 %v14144_v46, %v14143_v43  ;;  %v5492_v14 = vadd.f32 %v14145_v1, %v5178_v11  ;;  %v6790_v39 = vld [vmem:[%s13756_s11 + $0x138] sm:$0xff]  ;;  %v6783_v11 = vld [vmem:[%s13756_s11 + $0x100] sm:$0xff]  ;;  %v6789_v43 = vld [vmem:[%s13756_s11 + $0x130] sm:$0xff] }
 0xb5d   : > { %7073 = vmatpush.msrb.mxu3 %v13233_v45  ;;  %v6757_v45 = vld [vmem:[%s13756_s11 + $0x30] sm:$0xff]  ;;  %v6791_v46 = vld [vmem:[%s13756_s11 + $0x140] sm:$0xff] }
 0xb5e   : > { %v5491_v32 = vadd.f32 %v14146_v15, %v5177_v44  ;;  %6973 = vmatmul.f32.gmra.mxu1 %v6757_v45  ;;  %v6799_v44 = vld [vmem:[%s13756_s11 + $0x180] sm:$0xff] }
 0xb5f   : > { %7074 = vmatpush.msrb.mxu3 %v13224_v42  ;;  %v5806_v42 = vadd.f32 %v5764_v23, %v5492_v14  ;;  %v6792_v14 = vld [vmem:[%s13756_s11 + $0x148] sm:$0xff]  ;;  %v6795_v15 = vld [vmem:[%s13756_s11 + $0x160] sm:$0xff] }
 0xb60   : > { %v6709_v5 = vpop.f32.mrf.mxu0  ;;  %v5805_v55 = vadd.f32 %v13265_v29, %v5491_v32  ;;  %v6797_v32 = vld [vmem:[%s13756_s11 + $0x170] sm:$0xff] }
 0xb61   : > { %7075 = vmatpush.msrb.mxu3 %v13218_v38  ;;  %v6120_v24 = vadd.f32 %v6078_v40, %v5806_v42  ;;  %v6436_v38 = vadd.f32 %v6398_v60, %v6122_v8  ;;  %v6798_v42 = vld [vmem:[%s13756_s11 + $0x178] sm:$0xff]  ;;  %v6805_v60 = vld [vmem:[%s13756_s11 + $0x1b0] sm:$0xff] }
 0xb62   : > { %v6119_v58 = vadd.f32 %v13267_v3, %v5805_v55  ;;  %v13489_v55 = vld [vmem:[#allocation4] ss:$0 sm:$0xff] }
 0xb63   : > { %7076 = vmatpush.msrb.mxu3 %v13209_v20  ;;  %v6435_v20 = vadd.f32 %v6395_v57, %v6121_v17  ;;  %v6434_v29 = vadd.f32 %v6392_v19, %v6120_v24  ;;  %v6764_v19 = vld [vmem:[%s13756_s11 + $0x68] sm:$0xff] }
 0xb64   : > { %v6776_v57 = vld [vmem:[%s13756_s11 + $0xc8] sm:$0xff] }
 0xb65   : > { %7077 = vmatpush.msrb.mxu3 %v13193_v16  ;;  %v6760_v16 = vld [vmem:[%s13756_s11 + $0x48] sm:$0xff]  ;;  %v6749_v23 = vadd.f32 %v6709_v5, %v6435_v20  ;;  %v6748_v40 = vadd.f32 %v6706_v48, %v6434_v29  ;;  %v6778_v48 = vld [vmem:[%s13756_s11 + $0xd8] sm:$0xff] }
 0xb66   : > { %6976 = vmatmul.f32.gmra.mxu1 %v6760_v16  ;;  %v6796_v5 = vld [vmem:[%s13756_s11 + $0x168] sm:$0xff] }
 0xb67   : > { %7078 = vmatpush.msrb.mxu3 %v13171_v33  ;;  %v6433_v33 = vadd.f32 %v13279_v27, %v6119_v58  ;;  %v6763_v27 = vld [vmem:[%s13756_s11 + $0x60] sm:$0xff]  ;;  %v6800_v17 = vld [vmem:[%s13756_s11 + $0x188] sm:$0xff] }
 0xb68   : > { %v6712_v50 = vpop.f32.mrf.mxu0  ;;  %v6803_v58 = vld [vmem:[%s13756_s11 + $0x1a0] sm:$0xff]  ;;  %v6808_v20 = vld [vmem:[%s13756_s11 + $0x1c8] sm:$0xff] }
 0xb69   : > { %v6750_v63 = vadd.f32 %v6712_v50, %v6436_v38  ;;  %7079 = vmatpush.msrb.mxu3 %v13149_v35  ;;  %v6747_v3 = vadd.f32 %v13285_v59, %v6433_v33  ;;  %v6753_v35 = vld [vmem:[%s13756_s11 + $0x10] sm:$0xff] }
 0xb6a   : > { %7080 = vmatmul.f32.vlgmr.msrb.gmra.mxu3 %v6752_v2  ;;  %v6761_v59 = vld [vmem:[%s13756_s11 + $0x50] sm:$0xff] }
 0xb6b   : > { %8538 = vmatpush.msk.msrb.mxu2 %vm2598_vm3, %v6750_v63  ;;  %v6801_v50 = vld [vmem:[%s13756_s11 + $0x190] sm:$0xff] }
 0xb6d   : > { %7190 = vmatpush.msrb.mxu2 %v6749_v23 }
 0xb6e   : > { %6979 = vmatmul.f32.gmra.mxu1 %v6763_v27 }
 0xb6f   : > { %7191 = vmatpush.msrb.mxu2 %v6748_v40 }
 0xb71   : > { %7192 = vmatpush.msrb.mxu2 %v6747_v3  ;;  %v6804_v3 = vld [vmem:[%s13756_s11 + $0x1a8] sm:$0xff] }
 0xb72   : > { %8539 = vmatmul.msk.f32.vlgmr.msrb.gmra.mxu2 %vm6851_vm5, %v6753_v35  ;;  %7083 = vmatmul.f32.gmra.mxu3 %v6755_v56  ;;  %v6806_v35 = vld [vmem:[%s13756_s11 + $0x1b8] sm:$0xff]  ;;  %v6811_v56 = vld [vmem:[%s13756_s11 + $0x1e0] sm:$0xff] }
 0xb76   : > { %6982 = vmatmul.f32.gmra.mxu1 %v6766_v9 }
 0xb7a   : > { %8540 = vmatmul.msk.f32.gmra.mxu2 %vm6851_vm5, %v6756_v31  ;;  %7086 = vmatmul.f32.gmra.mxu3 %v6758_v53 }
 0xb7e   : > { %6985 = vmatmul.f32.gmra.mxu1 %v6769_v22 }
 0xb82   : > { %8541 = vmatmul.msk.f32.gmra.mxu2 %vm6851_vm5, %v6759_v25  ;;  %7089 = vmatmul.f32.gmra.mxu3 %v6761_v59 }
 0xb86   : > { %6988 = vmatmul.f32.gmra.mxu1 %v6772_v12  ;;  %v6809_v12 = vld [vmem:[%s13756_s11 + $0x1d0] sm:$0xff] }
 0xb8a   : > { %8542 = vmatmul.msk.f32.gmra.mxu2 %vm6851_vm5, %v6762_v28  ;;  %7092 = vmatmul.f32.gmra.mxu3 %v6764_v19  ;;  %v6968_v1 = vpop.f32.mrf.mxu1  ;;  %v6807_v19 = vld [vmem:[%s13756_s11 + $0x1c0] sm:$0xff] }
 0xb8b   : > { %v6969_v2 = vadd.f32 %v13489_v55, %v6968_v1  ;;  %v6820_v1 = vld [vmem:[%s13756_s11 + $0x228] sm:$0xff] }
 0xb8e   : > { %6991 = vmatmul.f32.gmra.mxu1 %v6775_v41 }
 0xb92   : > { %8543 = vmatmul.msk.f32.gmra.mxu2 %vm6851_vm5, %v6765_v54  ;;  %7095 = vmatmul.f32.gmra.mxu3 %v6767_v62  ;;  %v6814_v54 = vld [vmem:[%s13756_s11 + $0x1f8] sm:$0xff] }
 0xb96   : > { %6994 = vmatmul.f32.gmra.mxu1 %v6778_v48 }
 0xb9a   : > { %8544 = vmatmul.msk.f32.gmra.mxu2 %vm6851_vm5, %v6768_v21  ;;  %7098 = vmatmul.f32.gmra.mxu3 %v6770_v51 }
 0xb9e   : > { %6997 = vmatmul.f32.gmra.mxu1 %v6781_v18 }
 0xba2   : > { %8545 = vmatmul.msk.f32.gmra.mxu2 %vm6851_vm5, %v6771_v6  ;;  %7101 = vmatmul.f32.gmra.mxu3 %v6773_v0 }
 0xba6   : > { %7000 = vmatmul.f32.gmra.mxu1 %v6784_v34  ;;  %v6810_v34 = vld [vmem:[%s13756_s11 + $0x1d8] sm:$0xff] }
 0xba7   : > { %v6971_v45 = vpop.f32.mrf.mxu1 }
 0xba8   : > { %v6972_v33 = vadd.f32 %v13489_v55, %v6971_v45 }
 0xbaa   : > { %8546 = vmatmul.msk.f32.gmra.mxu2 %vm6851_vm5, %v6774_v52  ;;  %7104 = vmatmul.f32.gmra.mxu3 %v6776_v57 }
 0xbae   : > { %7003 = vmatmul.f32.gmra.mxu1 %v6787_v37 }
 0xbb2   : > { %8547 = vmatmul.msk.f32.gmra.mxu2 %vm6851_vm5, %v6777_v10  ;;  %7107 = vmatmul.f32.gmra.mxu3 %v6779_v13  ;;  %v6812_v10 = vld [vmem:[%s13756_s11 + $0x1e8] sm:$0xff]  ;;  %v6817_v13 = vld [vmem:[%s13756_s11 + $0x210] sm:$0xff] }
 0xbb6   : > { %7006 = vmatmul.f32.gmra.mxu1 %v6790_v39 }
 0xbba   : > { %8548 = vmatmul.msk.f32.gmra.mxu2 %vm6851_vm5, %v6780_v49  ;;  %7110 = vmatmul.f32.gmra.mxu3 %v6782_v47 }
 0xbbe   : > { %7009 = vmatmul.f32.gmra.mxu1 %v6793_v7 }
 0xbc2   : > { %8549 = vmatmul.msk.f32.gmra.mxu2 %vm6851_vm5, %v6783_v11  ;;  %7113 = vmatmul.f32.gmra.mxu3 %v6785_v36 }
 0xbc6   : > { %7012 = vmatmul.f32.gmra.mxu1 %v6796_v5 }
 0xbca   : > { %8550 = vmatmul.msk.f32.gmra.mxu2 %vm6851_vm5, %v6786_v30  ;;  %7116 = vmatmul.f32.gmra.mxu3 %v6788_v61 }
 0xbce   : > { %7015 = vmatmul.f32.gmra.mxu1 %v6799_v44  ;;  %v6815_v44 = vld [vmem:[%s13756_s11 + $0x200] sm:$0xff] }
 0xbd2   : > { %8551 = vmatmul.msk.f32.gmra.mxu2 %vm6851_vm5, %v6789_v43  ;;  %7119 = vmatmul.f32.gmra.mxu3 %v6791_v46  ;;  %v6813_v46 = vld [vmem:[%s13756_s11 + $0x1f0] sm:$0xff] }
 0xbd6   : > { %7018 = vmatmul.f32.gmra.mxu1 %v6802_v4 }
 0xbda   : > { %8552 = vmatmul.msk.f32.gmra.mxu2 %vm6851_vm5, %v6792_v14  ;;  %7122 = vmatmul.f32.gmra.mxu3 %v6794_v26 }
 0xbdb   : > { %v6974_v8 = vpop.f32.mrf.mxu1 }
 0xbdc   : > { %v6975_v22 = vadd.f32 %v13489_v55, %v6974_v8 }
 0xbde   : > { %7021 = vmatmul.f32.gmra.mxu1 %v6805_v60 }
 0xbe2   : > { %8553 = vmatmul.msk.f32.gmra.mxu2 %vm6851_vm5, %v6795_v15  ;;  %7125 = vmatmul.f32.gmra.mxu3 %v6797_v32 }
 0xbe3   : > { %v6977_v38 = vpop.f32.mrf.mxu1 }
 0xbe4   : > { %v6978_v52 = vadd.f32 %v13489_v55, %v6977_v38  ;;  %v6816_v38 = vld [vmem:[%s13756_s11 + $0x208] sm:$0xff] }
 0xbe6   : > { %7024 = vmatmul.f32.gmra.mxu1 %v6808_v20 }
 0xbea   : > { %8554 = vmatmul.msk.f32.gmra.mxu2 %vm6851_vm5, %v6798_v42  ;;  %7128 = vmatmul.f32.gmra.mxu3 %v6800_v17 }
 0xbeb   : > { %v6980_v40 = vpop.f32.mrf.mxu1 }
 0xbec   : > { %v6981_v5 = vadd.f32 %v13489_v55, %v6980_v40 }
 0xbed   : > { %v7081_v24 = vpop.f32.mrf.mxu3 }
 0xbee   : > { %v7082_v63 = vadd.f32 %v7081_v24, %v6969_v2  ;;  %7027 = vmatmul.f32.gmra.mxu1 %v6811_v56  ;;  %v6818_v2 = vld [vmem:[%s13756_s11 + $0x218] sm:$0xff] }
 0xbf2   : > { %8555 = vmatmul.msk.f32.gmra.mxu2 %vm6851_vm5, %v6801_v50  ;;  %7131 = vmatmul.f32.gmra.mxu3 %v6803_v58  ;;  %v6823_v50 = vld [vmem:[%s13756_s11 + $0x240] sm:$0xff] }
 0xbf3   : > { %v6983_v28 = vpop.f32.mrf.mxu1 }
 0xbf4   : > { %v6984_v60 = vadd.f32 %v13489_v55, %v6983_v28 }
 0xbf5   : > { %v7194_v16 = vpop.f32.mrf.mxu2  ;;  %v7084_v29 = vpop.f32.mrf.mxu3 }
 0xbf6   : > { %v7195_v23 = vadd.f32 %v7194_v16, %v7082_v63  ;;  %v7085_v53 = vadd.f32 %v7084_v29, %v6972_v33  ;;  %7030 = vmatmul.f32.gmra.mxu1 %v6814_v54 }
 0xbf8   : > { %v7290_v27 = vsub.f32 0.0, %v7195_v23 }
 0xbfa   : > { %v7322_v31 = vmul.f32 1.442695, %v7290_v27  ;;  %8556 = vmatmul.msk.f32.gmra.mxu2 %vm6851_vm5, %v6804_v3  ;;  %7134 = vmatmul.f32.gmra.mxu3 %v6806_v35  ;;  %v6819_v27 = vld [vmem:[%s13756_s11 + $0x220] sm:$0xff] }
 0xbfb   : > { %v6986_v57 = vpop.f32.mrf.mxu1 }
 0xbfc   : > { %8618 = vpow2.f32 %v7322_v31  ;;  %v6987_v35 = vadd.f32 %v13489_v55, %v6986_v57  ;;  %v6821_v31 = vld [vmem:[%s13756_s11 + $0x230] sm:$0xff] }
 0xbfd   : > { %v7197_v9 = vpop.f32.mrf.mxu2  ;;  %v7087_v25 = vpop.f32.mrf.mxu3 }
 0xbfe   : > { %v7198_v59 = vadd.f32 %v7197_v9, %v7085_v53  ;;  %v7088_v51 = vadd.f32 %v7087_v25, %v6975_v22  ;;  %7033 = vmatmul.f32.gmra.mxu1 %v6817_v13  ;;  %v6826_v53 = vld [vmem:[%s13756_s11 + $0x258] sm:$0xff] }
 0xc00   : > { %v7291_v62 = vsub.f32 0.0, %v7198_v59 }
 0xc02   : > { %v8619_v41 = vpop.eup %8618  ;;  %v7324_v21 = vmul.f32 1.442695, %v7291_v62  ;;  %8557 = vmatmul.msk.f32.gmra.mxu2 %vm6851_vm5, %v6807_v19  ;;  %7137 = vmatmul.f32.gmra.mxu3 %v6809_v12 }
 0xc03   : > { %v7386_v48 = vadd.f32 1.0, %v8619_v41  ;;  %v6989_v43 = vpop.f32.mrf.mxu1 }
 0xc04   : > { %8620 = vpow2.f32 %v7324_v21  ;;  %v6990_v41 = vadd.f32 %v13489_v55, %v6989_v43 }
 0xc05   : > { %8622 = vrcp.f32 %v7386_v48  ;;  %v7200_v6 = vpop.f32.mrf.mxu2  ;;  %v7090_v0 = vpop.f32.mrf.mxu3  ;;  %v6824_v48 = vld [vmem:[%s13756_s11 + $0x248] sm:$0xff] }
 0xc06   : > { %v7201_v18 = vadd.f32 %v7200_v6, %v7088_v51  ;;  %v7091_v39 = vadd.f32 %v7090_v0, %v6978_v52  ;;  %7036 = vmatmul.f32.gmra.mxu1 %v6820_v1  ;;  %v6822_v51 = vld [vmem:[%s13756_s11 + $0x238] sm:$0xff]  ;;  %v6829_v6 = vld [vmem:[%s13756_s11 + $0x270] sm:$0xff] }
 0xc08   : > { %v7292_v37 = vsub.f32 0.0, %v7201_v18 }
 0xc0a   : > { %v8621_v49 = vpop.eup %8620  ;;  %v7326_v47 = vmul.f32 1.442695, %v7292_v37  ;;  %8558 = vmatmul.msk.f32.gmra.mxu2 %vm6851_vm5, %v6810_v34  ;;  %7140 = vmatmul.f32.gmra.mxu3 %v6812_v10 }
 0xc0b   : > { %v8623_v11 = vpop.eup %8622  ;;  %v7387_v36 = vadd.f32 1.0, %v8621_v49  ;;  %v6992_v24 = vpop.f32.mrf.mxu1 }
 0xc0c   : > { %7451 = vst.msk [vmem:[%s13539_s18] sm:$0xff] %vm7450_vm6, %v8623_v11  ;;  %8624 = vpow2.f32 %v7326_v47  ;;  %v6993_v47 = vadd.f32 %v13489_v55, %v6992_v24  ;;  %v6825_v11 = vld [vmem:[%s13756_s11 + $0x250] sm:$0xff] }
 0xc0d   : > { %8626 = vrcp.f32 %v7387_v36  ;;  %v7203_v7 = vpop.f32.mrf.mxu2  ;;  %v7093_v30 = vpop.f32.mrf.mxu3  ;;  %v6827_v36 = vld [vmem:[%s13756_s11 + $0x260] sm:$0xff] }
 0xc0e   : > { %v7204_v61 = vadd.f32 %v7203_v7, %v7091_v39  ;;  %v7094_v15 = vadd.f32 %v7093_v30, %v6981_v5  ;;  %7039 = vmatmul.f32.gmra.mxu1 %v6823_v50  ;;  %v6832_v7 = vld [vmem:[%s13756_s11 + $0x288] sm:$0xff] }
 0xc10   : > { %v7293_v14 = vsub.f32 0.0, %v7204_v61 }
 0xc12   : > { %v8625_v26 = vpop.eup %8624  ;;  %v7328_v45 = vmul.f32 1.442695, %v7293_v14  ;;  %8559 = vmatmul.msk.f32.gmra.mxu2 %vm6851_vm5, %v6813_v46  ;;  %7143 = vmatmul.f32.gmra.mxu3 %v6815_v44 }
 0xc13   : > { %v8627_v32 = vpop.eup %8626  ;;  %v7388_v4 = vadd.f32 1.0, %v8625_v26  ;;  %v6995_v56 = vpop.f32.mrf.mxu1 }
 0xc14   : > { %7452 = vst.msk [vmem:[%s13539_s18 + $0x8] sm:$0xff] %vm7450_vm6, %v8627_v32  ;;  %8628 = vpow2.f32 %v7328_v45  ;;  %v6996_v45 = vadd.f32 %v13489_v55, %v6995_v56  ;;  %v6828_v32 = vld [vmem:[%s13756_s11 + $0x268] sm:$0xff] }
 0xc15   : > { %8630 = vrcp.f32 %v7388_v4  ;;  %v7206_v8 = vpop.f32.mrf.mxu2  ;;  %v7096_v42 = vpop.f32.mrf.mxu3  ;;  %v6830_v4 = vld [vmem:[%s13756_s11 + $0x278] sm:$0xff] }
 0xc16   : > { %v7207_v17 = vadd.f32 %v7206_v8, %v7094_v15  ;;  %v7097_v16 = vadd.f32 %v7096_v42, %v6984_v60  ;;  %7042 = vmatmul.f32.gmra.mxu1 %v6826_v53  ;;  %v6835_v8 = vld [vmem:[%s13756_s11 + $0x2a0] sm:$0xff] }
 0xc18   : > { %v7294_v58 = vsub.f32 0.0, %v7207_v17 }
 0xc1a   : > { %v8629_v20 = vpop.eup %8628  ;;  %v7330_v63 = vmul.f32 1.442695, %v7294_v58  ;;  %8560 = vmatmul.msk.f32.gmra.mxu2 %vm6851_vm5, %v6816_v38  ;;  %7146 = vmatmul.f32.gmra.mxu3 %v6818_v2 }
 0xc1b   : > { %v8631_v29 = vpop.eup %8630  ;;  %v7389_v23 = vadd.f32 1.0, %v8629_v20  ;;  %v6998_v21 = vpop.f32.mrf.mxu1 }
 0xc1c   : > { %7453 = vst.msk [vmem:[%s13539_s18 + $0x10] sm:$0xff] %vm7450_vm6, %v8631_v29  ;;  %8632 = vpow2.f32 %v7330_v63  ;;  %v6999_v63 = vadd.f32 %v13489_v55, %v6998_v21  ;;  %v6831_v29 = vld [vmem:[%s13756_s11 + $0x280] sm:$0xff] }
 0xc1d   : > { %8634 = vrcp.f32 %v7389_v23  ;;  %v7209_v33 = vpop.f32.mrf.mxu2  ;;  %v7099_v40 = vpop.f32.mrf.mxu3  ;;  %v6833_v23 = vld [vmem:[%s13756_s11 + $0x290] sm:$0xff] }
 0xc1e   : > { %v7210_v3 = vadd.f32 %v7209_v33, %v7097_v16  ;;  %v7100_v22 = vadd.f32 %v7099_v40, %v6987_v35  ;;  %7045 = vmatmul.f32.gmra.mxu1 %v6829_v6  ;;  %v6838_v33 = vld [vmem:[%s13756_s11 + $0x2b8] sm:$0xff] }
 0xc20   : > { %v7295_v9 = vsub.f32 0.0, %v7210_v3 }
 0xc22   : > { %v8633_v25 = vpop.eup %8632  ;;  %v7332_v59 = vmul.f32 1.442695, %v7295_v9  ;;  %8561 = vmatmul.msk.f32.gmra.mxu2 %vm6851_vm5, %v6819_v27  ;;  %7149 = vmatmul.f32.gmra.mxu3 %v6821_v31 }
 0xc23   : > { %v8635_v28 = vpop.eup %8634  ;;  %v7390_v19 = vadd.f32 1.0, %v8633_v25  ;;  %v7001_v39 = vpop.f32.mrf.mxu1 }
 0xc24   : > { %7454 = vst.msk [vmem:[%s13539_s18 + $0x18] sm:$0xff] %vm7450_vm6, %v8635_v28  ;;  %8636 = vpow2.f32 %v7332_v59  ;;  %v7002_v59 = vadd.f32 %v13489_v55, %v7001_v39  ;;  %v6834_v28 = vld [vmem:[%s13756_s11 + $0x298] sm:$0xff] }
 0xc25   : > { %8638 = vrcp.f32 %v7390_v19  ;;  %v7212_v12 = vpop.f32.mrf.mxu2  ;;  %v7102_v54 = vpop.f32.mrf.mxu3  ;;  %v6836_v19 = vld [vmem:[%s13756_s11 + $0x2a8] sm:$0xff] }
 0xc26   : > { %v7213_v62 = vadd.f32 %v7212_v12, %v7100_v22  ;;  %v7103_v57 = vadd.f32 %v7102_v54, %v6990_v41  ;;  %7048 = vmatmul.f32.gmra.mxu1 %v6832_v7  ;;  %v6841_v12 = vld [vmem:[%s13756_s11 + $0x2d0] sm:$0xff] }
 0xc28   : > { %v7296_v0 = vsub.f32 0.0, %v7213_v62 }
 0xc2a   : > { %v8637_v18 = vpop.eup %8636  ;;  %v7334_v52 = vmul.f32 1.442695, %v7296_v0  ;;  %8562 = vmatmul.msk.f32.gmra.mxu2 %vm6851_vm5, %v6822_v51  ;;  %7152 = vmatmul.f32.gmra.mxu3 %v6824_v48 }
 0xc2b   : > { %v8639_v34 = vpop.eup %8638  ;;  %v7391_v10 = vadd.f32 1.0, %v8637_v18  ;;  %v7004_v15 = vpop.f32.mrf.mxu1 }
 0xc2c   : > { %7455 = vst.msk [vmem:[%s13539_s18 + $0x20] sm:$0xff] %vm7450_vm6, %v8639_v34  ;;  %8640 = vpow2.f32 %v7334_v52  ;;  %v7005_v52 = vadd.f32 %v13489_v55, %v7004_v15  ;;  %v6837_v34 = vld [vmem:[%s13756_s11 + $0x2b0] sm:$0xff] }
 0xc2d   : > { %8642 = vrcp.f32 %v7391_v10  ;;  %v7215_v13 = vpop.f32.mrf.mxu2  ;;  %v7105_v37 = vpop.f32.mrf.mxu3  ;;  %v6839_v10 = vld [vmem:[%s13756_s11 + $0x2c0] sm:$0xff] }
 0xc2e   : > { %v7216_v49 = vadd.f32 %v7215_v13, %v7103_v57  ;;  %v7106_v43 = vadd.f32 %v7105_v37, %v6993_v47  ;;  %7051 = vmatmul.f32.gmra.mxu1 %v6835_v8  ;;  %v6844_v13 = vld [vmem:[%s13756_s11 + $0x2e8] sm:$0xff] }
 0xc30   : > { %v7297_v30 = vsub.f32 0.0, %v7216_v49 }
 0xc32   : > { %v8641_v61 = vpop.eup %8640  ;;  %v7336_v5 = vmul.f32 1.442695, %v7297_v30  ;;  %8563 = vmatmul.msk.f32.gmra.mxu2 %vm6851_vm5, %v6825_v11  ;;  %7155 = vmatmul.f32.gmra.mxu3 %v6827_v36 }
 0xc33   : > { %v8643_v46 = vpop.eup %8642  ;;  %v7392_v44 = vadd.f32 1.0, %v8641_v61  ;;  %v7007_v16 = vpop.f32.mrf.mxu1 }
 0xc34   : > { %7456 = vst.msk [vmem:[%s13539_s18 + $0x28] sm:$0xff] %vm7450_vm6, %v8643_v46  ;;  %8644 = vpow2.f32 %v7336_v5  ;;  %v7008_v5 = vadd.f32 %v13489_v55, %v7007_v16  ;;  %v6840_v46 = vld [vmem:[%s13756_s11 + $0x2c8] sm:$0xff] }
 0xc35   : > { %8646 = vrcp.f32 %v7392_v44  ;;  %v7218_v1 = vpop.f32.mrf.mxu2  ;;  %v7108_v14 = vpop.f32.mrf.mxu3  ;;  %v6842_v44 = vld [vmem:[%s13756_s11 + $0x2d8] sm:$0xff] }
 0xc36   : > { %v7219_v26 = vadd.f32 %v7218_v1, %v7106_v43  ;;  %v7109_v24 = vadd.f32 %v7108_v14, %v6996_v45  ;;  %7054 = vmatmul.f32.gmra.mxu1 %v6838_v33 }
 0xc38   : > { %v7298_v42 = vsub.f32 0.0, %v7219_v26 }
 0xc3a   : > { %v8645_v17 = vpop.eup %8644  ;;  %v7338_v60 = vmul.f32 1.442695, %v7298_v42  ;;  %8564 = vmatmul.msk.f32.gmra.mxu2 %vm6851_vm5, %v6828_v32  ;;  %7158 = vmatmul.f32.gmra.mxu3 %v6830_v4 }
 0xc3b   : > { %v8647_v38 = vpop.eup %8646  ;;  %v7393_v2 = vadd.f32 1.0, %v8645_v17  ;;  %v7010_v22 = vpop.f32.mrf.mxu1 }
 0xc3c   : > { %7457 = vst.msk [vmem:[%s13539_s18 + $0x30] sm:$0xff] %vm7450_vm6, %v8647_v38  ;;  %8648 = vpow2.f32 %v7338_v60  ;;  %v7011_v17 = vadd.f32 %v13489_v55, %v7010_v22  ;;  %v6845_v38 = vld [vmem:[%s13756_s11 + $0x2f0] sm:$0xff] }
 0xc3d   : > { %8650 = vrcp.f32 %v7393_v2  ;;  %v7221_v50 = vpop.f32.mrf.mxu2  ;;  %v7111_v58 = vpop.f32.mrf.mxu3 }
 0xc3e   : > { %v7222_v20 = vadd.f32 %v7221_v50, %v7109_v24  ;;  %v7112_v56 = vadd.f32 %v7111_v58, %v6999_v63  ;;  %7057 = vmatmul.f32.gmra.mxu1 %v6841_v12  ;;  %v6843_v24 = vld [vmem:[%s13756_s11 + $0x2e0] sm:$0xff] }
 0xc40   : > { %v7299_v40 = vsub.f32 0.0, %v7222_v20 }
 0xc42   : > { %v8649_v3 = vpop.eup %8648  ;;  %v7340_v35 = vmul.f32 1.442695, %v7299_v40  ;;  %8565 = vmatmul.msk.f32.gmra.mxu2 %vm6851_vm5, %v6831_v29  ;;  %7161 = vmatmul.f32.gmra.mxu3 %v6833_v23 }
 0xc43   : > { %v8651_v27 = vpop.eup %8650  ;;  %v7394_v31 = vadd.f32 1.0, %v8649_v3  ;;  %v7013_v57 = vpop.f32.mrf.mxu1 }
 0xc44   : > { %7458 = vst.msk [vmem:[%s13539_s18 + $0x38] sm:$0xff] %vm7450_vm6, %v8651_v27  ;;  %8652 = vpow2.f32 %v7340_v35  ;;  %v7014_v40 = vadd.f32 %v13489_v55, %v7013_v57  ;;  %v6846_v35 = vld [vmem:[%s13756_s11 + $0x2f8] sm:$0xff] }
 0xc45   : > { %8654 = vrcp.f32 %v7394_v31  ;;  %v7224_v53 = vpop.f32.mrf.mxu2  ;;  %v7114_v9 = vpop.f32.mrf.mxu3 }
 0xc46   : > { %v7225_v25 = vadd.f32 %v7224_v53, %v7112_v56  ;;  %v7115_v21 = vadd.f32 %v7114_v9, %v7002_v59  ;;  %7060 = vmatmul.f32.gmra.mxu1 %v6844_v13 }
 0xc48   : > { %v7300_v54 = vsub.f32 0.0, %v7225_v25 }
 0xc4a   : > { %v8653_v62 = vpop.eup %8652  ;;  %v7342_v41 = vmul.f32 1.442695, %v7300_v54  ;;  %8566 = vmatmul.msk.f32.gmra.mxu2 %vm6851_vm5, %v6834_v28  ;;  %7164 = vmatmul.f32.gmra.mxu3 %v6836_v19 }
 0xc4b   : > { %v8655_v51 = vpop.eup %8654  ;;  %v7395_v48 = vadd.f32 1.0, %v8653_v62  ;;  %v7016_v43 = vpop.f32.mrf.mxu1 }
 0xc4c   : > { %7459 = vst.msk [vmem:[%s13539_s18 + $0x40] sm:$0xff] %vm7450_vm6, %v8655_v51  ;;  %8656 = vpow2.f32 %v7342_v41  ;;  %v7017_v19 = vadd.f32 %v13489_v55, %v7016_v43 }
 0xc4d   : > { %8658 = vrcp.f32 %v7395_v48  ;;  %v7227_v6 = vpop.f32.mrf.mxu2  ;;  %v7117_v0 = vpop.f32.mrf.mxu3 }
 0xc4e   : > { %v7228_v18 = vadd.f32 %v7227_v6, %v7115_v21  ;;  %v7118_v39 = vadd.f32 %v7117_v0, %v7005_v52 }
 0xc50   : > { %v7301_v37 = vsub.f32 0.0, %v7228_v18 }
 0xc52   : > { %v8657_v49 = vpop.eup %8656  ;;  %v7344_v47 = vmul.f32 1.442695, %v7301_v37  ;;  %8567 = vmatmul.msk.f32.gmra.mxu2 %vm6851_vm5, %v6837_v34  ;;  %7167 = vmatmul.f32.gmra.mxu3 %v6839_v10 }
 0xc53   : > { %v8659_v11 = vpop.eup %8658  ;;  %v7396_v36 = vadd.f32 1.0, %v8657_v49  ;;  %v7019_v60 = vpop.f32.mrf.mxu1 }
 0xc54   : > { %7460 = vst.msk [vmem:[%s13539_s18 + $0x48] sm:$0xff] %vm7450_vm6, %v8659_v11  ;;  %8660 = vpow2.f32 %v7344_v47  ;;  %v7020_v52 = vadd.f32 %v13489_v55, %v7019_v60 }
 0xc55   : > { %8662 = vrcp.f32 %v7396_v36  ;;  %v7230_v7 = vpop.f32.mrf.mxu2  ;;  %v7120_v30 = vpop.f32.mrf.mxu3 }
 0xc56   : > { %v7231_v61 = vadd.f32 %v7230_v7, %v7118_v39  ;;  %v7121_v45 = vadd.f32 %v7120_v30, %v7008_v5 }
 0xc58   : > { %v7302_v1 = vsub.f32 0.0, %v7231_v61 }
 0xc5a   : > { %v8661_v14 = vpop.eup %8660  ;;  %v7346_v26 = vmul.f32 1.442695, %v7302_v1  ;;  %8568 = vmatmul.msk.f32.gmra.mxu2 %vm6851_vm5, %v6840_v46  ;;  %7170 = vmatmul.f32.gmra.mxu3 %v6842_v44 }
 0xc5b   : > { %v8663_v15 = vpop.eup %8662  ;;  %v7397_v32 = vadd.f32 1.0, %v8661_v14  ;;  %v7022_v3 = vpop.f32.mrf.mxu1 }
 0xc5c   : > { %7461 = vst.msk [vmem:[%s13539_s18 + $0x50] sm:$0xff] %vm7450_vm6, %v8663_v15  ;;  %8664 = vpow2.f32 %v7346_v26  ;;  %v7023_v7 = vadd.f32 %v13489_v55, %v7022_v3 }
 0xc5d   : > { %8666 = vrcp.f32 %v7397_v32  ;;  %v7233_v4 = vpop.f32.mrf.mxu2  ;;  %v7123_v8 = vpop.f32.mrf.mxu3 }
 0xc5e   : > { %v7234_v42 = vadd.f32 %v7233_v4, %v7121_v45  ;;  %v7124_v20 = vadd.f32 %v7123_v8, %v7011_v17 }
 0xc60   : > { %v7303_v2 = vsub.f32 0.0, %v7234_v42 }
 0xc62   : > { %v8665_v50 = vpop.eup %8664  ;;  %v7348_v58 = vmul.f32 1.442695, %v7303_v2  ;;  %8569 = vmatmul.msk.f32.gmra.mxu2 %vm6851_vm5, %v6843_v24  ;;  %7173 = vmatmul.f32.gmra.mxu3 %v6845_v38 }
 0xc63   : > { %v8667_v63 = vpop.eup %8666  ;;  %v7398_v16 = vadd.f32 1.0, %v8665_v50  ;;  %v7025_v12 = vpop.f32.mrf.mxu1 }
 0xc64   : > { %7462 = vst.msk [vmem:[%s13539_s18 + $0x58] sm:$0xff] %vm7450_vm6, %v8667_v63  ;;  %8668 = vpow2.f32 %v7348_v58  ;;  %v7026_v15 = vadd.f32 %v13489_v55, %v7025_v12 }
 0xc65   : > { %8670 = vrcp.f32 %v7398_v16  ;;  %v7236_v29 = vpop.f32.mrf.mxu2  ;;  %v7126_v23 = vpop.f32.mrf.mxu3 }
 0xc66   : > { %v7237_v33 = vadd.f32 %v7236_v29, %v7124_v20  ;;  %v7127_v53 = vadd.f32 %v7126_v23, %v7014_v40 }
 0xc68   : > { %v7304_v56 = vsub.f32 0.0, %v7237_v33 }
 0xc6a   : > { %v8669_v27 = vpop.eup %8668  ;;  %v7350_v31 = vmul.f32 1.442695, %v7304_v56  ;;  %8570 = vmatmul.msk.f32.gmra.mxu2 %vm6851_vm5, %v6846_v35 }
 0xc6b   : > { %v8671_v9 = vpop.eup %8670  ;;  %v7399_v25 = vadd.f32 1.0, %v8669_v27  ;;  %v7028_v57 = vpop.f32.mrf.mxu1 }
 0xc6c   : > { %7463 = vst.msk [vmem:[%s13539_s18 + $0x60] sm:$0xff] %vm7450_vm6, %v8671_v9  ;;  %8672 = vpow2.f32 %v7350_v31  ;;  %v7029_v58 = vadd.f32 %v13489_v55, %v7028_v57 }
 0xc6d   : > { %8674 = vrcp.f32 %v7399_v25  ;;  %v7239_v59 = vpop.f32.mrf.mxu2  ;;  %v7129_v22 = vpop.f32.mrf.mxu3 }
 0xc6e   : > { %v7240_v28 = vadd.f32 %v7239_v59, %v7127_v53  ;;  %v7130_v21 = vadd.f32 %v7129_v22, %v7017_v19 }
 0xc70   : > { %v7305_v54 = vsub.f32 0.0, %v7240_v28 }
 0xc72   : > { %v8673_v62 = vpop.eup %8672  ;;  %v7352_v41 = vmul.f32 1.442695, %v7305_v54 }
 0xc73   : > { %v8675_v51 = vpop.eup %8674  ;;  %v7400_v48 = vadd.f32 1.0, %v8673_v62  ;;  %v7031_v30 = vpop.f32.mrf.mxu1 }
 0xc74   : > { %7464 = vst.msk [vmem:[%s13539_s18 + $0x68] sm:$0xff] %vm7450_vm6, %v8675_v51  ;;  %8676 = vpow2.f32 %v7352_v41  ;;  %v7032_v27 = vadd.f32 %v13489_v55, %v7031_v30 }
 0xc75   : > { %8678 = vrcp.f32 %v7400_v48  ;;  %v7242_v6 = vpop.f32.mrf.mxu2  ;;  %v7132_v0 = vpop.f32.mrf.mxu3 }
 0xc76   : > { %v7243_v18 = vadd.f32 %v7242_v6, %v7130_v21  ;;  %v7133_v37 = vadd.f32 %v7132_v0, %v7020_v52 }
 0xc78   : > { %v7306_v34 = vsub.f32 0.0, %v7243_v18 }
 0xc7a   : > { %v8677_v10 = vpop.eup %8676  ;;  %v7354_v13 = vmul.f32 1.442695, %v7306_v34 }
 0xc7b   : > { %v8679_v49 = vpop.eup %8678  ;;  %v7401_v47 = vadd.f32 1.0, %v8677_v10  ;;  %v7034_v4 = vpop.f32.mrf.mxu1 }
 0xc7c   : > { %7465 = vst.msk [vmem:[%s13539_s18 + $0x70] sm:$0xff] %vm7450_vm6, %v8679_v49  ;;  %8680 = vpow2.f32 %v7354_v13  ;;  %v7035_v62 = vadd.f32 %v13489_v55, %v7034_v4 }
 0xc7d   : > { %8682 = vrcp.f32 %v7401_v47  ;;  %v7245_v39 = vpop.f32.mrf.mxu2  ;;  %v7135_v11 = vpop.f32.mrf.mxu3 }
 0xc7e   : > { %v7246_v36 = vadd.f32 %v7245_v39, %v7133_v37  ;;  %v7136_v46 = vadd.f32 %v7135_v11, %v7023_v7 }
 0xc80   : > { %v7307_v61 = vsub.f32 0.0, %v7246_v36 }
 0xc82   : > { %v8681_v5 = vpop.eup %8680  ;;  %v7356_v43 = vmul.f32 1.442695, %v7307_v61 }
 0xc83   : > { %v8683_v44 = vpop.eup %8682  ;;  %v7402_v1 = vadd.f32 1.0, %v8681_v5  ;;  %v7037_v23 = vpop.f32.mrf.mxu1 }
 0xc84   : > { %7466 = vst.msk [vmem:[%s13539_s18 + $0x78] sm:$0xff] %vm7450_vm6, %v8683_v44  ;;  %8684 = vpow2.f32 %v7356_v43  ;;  %v7038_v34 = vadd.f32 %v13489_v55, %v7037_v23 }
 0xc85   : > { %8686 = vrcp.f32 %v7402_v1  ;;  %v7248_v14 = vpop.f32.mrf.mxu2  ;;  %v7138_v26 = vpop.f32.mrf.mxu3 }
 0xc86   : > { %v7249_v45 = vadd.f32 %v7248_v14, %v7136_v46  ;;  %v7139_v17 = vadd.f32 %v7138_v26, %v7026_v15 }
 0xc88   : > { %v7308_v32 = vsub.f32 0.0, %v7249_v45 }
 0xc8a   : > { %v8685_v8 = vpop.eup %8684  ;;  %v7358_v42 = vmul.f32 1.442695, %v7308_v32 }
 0xc8b   : > { %v8687_v60 = vpop.eup %8686  ;;  %v7403_v24 = vadd.f32 1.0, %v8685_v8  ;;  %v7040_v28 = vpop.f32.mrf.mxu1 }
 0xc8c   : > { %7467 = vst.msk [vmem:[%s13539_s18 + $0x80] sm:$0xff] %vm7450_vm6, %v8687_v60  ;;  %8688 = vpow2.f32 %v7358_v42  ;;  %v7041_v61 = vadd.f32 %v13489_v55, %v7040_v28 }
 0xc8d   : > { %8690 = vrcp.f32 %v7403_v24  ;;  %v7251_v38 = vpop.f32.mrf.mxu2  ;;  %v7141_v2 = vpop.f32.mrf.mxu3 }
 0xc8e   : > { %v7252_v50 = vadd.f32 %v7251_v38, %v7139_v17  ;;  %v7142_v29 = vadd.f32 %v7141_v2, %v7029_v58 }
 0xc90   : > { %v7309_v20 = vsub.f32 0.0, %v7252_v50 }
 0xc92   : > { %v8689_v63 = vpop.eup %8688  ;;  %v7360_v16 = vmul.f32 1.442695, %v7309_v20 }
 0xc93   : > { %v8691_v33 = vpop.eup %8690  ;;  %v7404_v40 = vadd.f32 1.0, %v8689_v63  ;;  %v7043_v10 = vpop.f32.mrf.mxu1 }
 0xc94   : > { %7468 = vst.msk [vmem:[%s13539_s18 + $0x88] sm:$0xff] %vm7450_vm6, %v8691_v33  ;;  %8692 = vpow2.f32 %v7360_v16  ;;  %v7044_v4 = vadd.f32 %v13489_v55, %v7043_v10 }
 0xc95   : > { %8694 = vrcp.f32 %v7404_v40  ;;  %v7254_v3 = vpop.f32.mrf.mxu2  ;;  %v7144_v35 = vpop.f32.mrf.mxu3 }
 0xc96   : > { %v7255_v56 = vadd.f32 %v7254_v3, %v7142_v29  ;;  %v7145_v25 = vadd.f32 %v7144_v35, %v7032_v27 }
 0xc98   : > { %v7310_v31 = vsub.f32 0.0, %v7255_v56 }
 0xc9a   : > { %v8693_v53 = vpop.eup %8692  ;;  %v7362_v9 = vmul.f32 1.442695, %v7310_v31 }
 0xc9b   : > { %v8695_v59 = vpop.eup %8694  ;;  %v7405_v22 = vadd.f32 1.0, %v8693_v53  ;;  %v7046_v43 = vpop.f32.mrf.mxu1 }
 0xc9c   : > { %7469 = vst.msk [vmem:[%s13539_s18 + $0x90] sm:$0xff] %vm7450_vm6, %v8695_v59  ;;  %8696 = vpow2.f32 %v7362_v9  ;;  %v7047_v63 = vadd.f32 %v13489_v55, %v7046_v43 }
 0xc9d   : > { %8698 = vrcp.f32 %v7405_v22  ;;  %v7257_v19 = vpop.f32.mrf.mxu2  ;;  %v7147_v12 = vpop.f32.mrf.mxu3 }
 0xc9e   : > { %v7258_v54 = vadd.f32 %v7257_v19, %v7145_v25  ;;  %v7148_v48 = vadd.f32 %v7147_v12, %v7035_v62 }
 0xca0   : > { %v7311_v41 = vsub.f32 0.0, %v7258_v54 }
 0xca2   : > { %v8697_v21 = vpop.eup %8696  ;;  %v7364_v51 = vmul.f32 1.442695, %v7311_v41 }
 0xca3   : > { %v8699_v6 = vpop.eup %8698  ;;  %v7406_v0 = vadd.f32 1.0, %v8697_v21  ;;  %v7049_v24 = vpop.f32.mrf.mxu1 }
 0xca4   : > { %7470 = vst.msk [vmem:[%s13539_s18 + $0x98] sm:$0xff] %vm7450_vm6, %v8699_v6  ;;  %8700 = vpow2.f32 %v7364_v51  ;;  %v7050_v53 = vadd.f32 %v13489_v55, %v7049_v24 }
 0xca5   : > { %8702 = vrcp.f32 %v7406_v0  ;;  %v7260_v18 = vpop.f32.mrf.mxu2  ;;  %v7150_v52 = vpop.f32.mrf.mxu3 }
 0xca6   : > { %v7261_v57 = vadd.f32 %v7260_v18, %v7148_v48  ;;  %v7151_v47 = vadd.f32 %v7150_v52, %v7038_v34 }
 0xca8   : > { %v7312_v13 = vsub.f32 0.0, %v7261_v57 }
 0xcaa   : > { %v8701_v37 = vpop.eup %8700  ;;  %v7366_v49 = vmul.f32 1.442695, %v7312_v13 }
 0xcab   : > { %v8703_v39 = vpop.eup %8702  ;;  %v7407_v11 = vadd.f32 1.0, %v8701_v37  ;;  %v7052_v35 = vpop.f32.mrf.mxu1 }
 0xcac   : > { %7471 = vst.msk [vmem:[%s13539_s18 + $0xa0] sm:$0xff] %vm7450_vm6, %v8703_v39  ;;  %8704 = vpow2.f32 %v7366_v49  ;;  %v7053_v41 = vadd.f32 %v13489_v55, %v7052_v35 }
 0xcad   : > { %8706 = vrcp.f32 %v7407_v11  ;;  %v7263_v36 = vpop.f32.mrf.mxu2  ;;  %v7153_v7 = vpop.f32.mrf.mxu3 }
 0xcae   : > { %v7264_v30 = vadd.f32 %v7263_v36, %v7151_v47  ;;  %v7154_v1 = vadd.f32 %v7153_v7, %v7041_v61 }
 0xcb0   : > { %v7313_v5 = vsub.f32 0.0, %v7264_v30 }
 0xcb2   : > { %v8705_v46 = vpop.eup %8704  ;;  %v7368_v44 = vmul.f32 1.442695, %v7313_v5 }
 0xcb3   : > { %v8707_v14 = vpop.eup %8706  ;;  %v7408_v26 = vadd.f32 1.0, %v8705_v46  ;;  %v7055_v21 = vpop.f32.mrf.mxu1 }
 0xcb4   : > { %7472 = vst.msk [vmem:[%s13539_s18 + $0xa8] sm:$0xff] %vm7450_vm6, %v8707_v14  ;;  %8708 = vpow2.f32 %v7368_v44  ;;  %v7056_v13 = vadd.f32 %v13489_v55, %v7055_v21 }
 0xcb5   : > { %8710 = vrcp.f32 %v7408_v26  ;;  %v7266_v45 = vpop.f32.mrf.mxu2  ;;  %v7156_v15 = vpop.f32.mrf.mxu3 }
 0xcb6   : > { %v7267_v32 = vadd.f32 %v7266_v45, %v7154_v1  ;;  %v7157_v60 = vadd.f32 %v7156_v15, %v7044_v4 }
 0xcb8   : > { %v7314_v8 = vsub.f32 0.0, %v7267_v32 }
 0xcba   : > { %v8709_v42 = vpop.eup %8708  ;;  %v7370_v17 = vmul.f32 1.442695, %v7314_v8 }
 0xcbb   : > { %v8711_v38 = vpop.eup %8710  ;;  %v7409_v2 = vadd.f32 1.0, %v8709_v42  ;;  %v7058_v49 = vpop.f32.mrf.mxu1 }
 0xcbc   : > { %7473 = vst.msk [vmem:[%s13539_s18 + $0xb0] sm:$0xff] %vm7450_vm6, %v8711_v38  ;;  %8712 = vpow2.f32 %v7370_v17  ;;  %v7059_v43 = vadd.f32 %v13489_v55, %v7058_v49 }
 0xcbd   : > { %8714 = vrcp.f32 %v7409_v2  ;;  %v7269_v50 = vpop.f32.mrf.mxu2  ;;  %v7159_v58 = vpop.f32.mrf.mxu3 }
 0xcbe   : > { %v7270_v20 = vadd.f32 %v7269_v50, %v7157_v60  ;;  %v7160_v33 = vadd.f32 %v7159_v58, %v7047_v63 }
 0xcc0   : > { %v7315_v16 = vsub.f32 0.0, %v7270_v20 }
 0xcc2   : > { %v8713_v29 = vpop.eup %8712  ;;  %v7372_v23 = vmul.f32 1.442695, %v7315_v16 }
 0xcc3   : > { %v8715_v40 = vpop.eup %8714  ;;  %v7410_v3 = vadd.f32 1.0, %v8713_v29  ;;  %v7061_v15 = vpop.f32.mrf.mxu1 }
 0xcc4   : > { %7474 = vst.msk [vmem:[%s13539_s18 + $0xb8] sm:$0xff] %vm7450_vm6, %v8715_v40  ;;  %8716 = vpow2.f32 %v7372_v23  ;;  %v7062_v8 = vadd.f32 %v13489_v55, %v7061_v15 }
 0xcc5   : > { %8718 = vrcp.f32 %v7410_v3  ;;  %v7272_v56 = vpop.f32.mrf.mxu2  ;;  %v7162_v27 = vpop.f32.mrf.mxu3 }
 0xcc6   : > { %v7273_v31 = vadd.f32 %v7272_v56, %v7160_v33  ;;  %v7163_v22 = vadd.f32 %v7162_v27, %v7050_v53 }
 0xcc8   : > { %v7316_v9 = vsub.f32 0.0, %v7273_v31 }
 0xcca   : > { %v8717_v25 = vpop.eup %8716  ;;  %v7374_v59 = vmul.f32 1.442695, %v7316_v9 }
 0xccb   : > { %v8719_v28 = vpop.eup %8718  ;;  %v7411_v19 = vadd.f32 1.0, %v8717_v25 }
 0xccc   : > { %7475 = vst.msk [vmem:[%s13539_s18 + $0xc0] sm:$0xff] %vm7450_vm6, %v8719_v28  ;;  %8720 = vpow2.f32 %v7374_v59 }
 0xccd   : > { %8722 = vrcp.f32 %v7411_v19  ;;  %v7275_v12 = vpop.f32.mrf.mxu2  ;;  %v7165_v54 = vpop.f32.mrf.mxu3 }
 0xcce   : > { %v7276_v62 = vadd.f32 %v7275_v12, %v7163_v22  ;;  %v7166_v0 = vadd.f32 %v7165_v54, %v7053_v41 }
 0xcd0   : > { %v7317_v51 = vsub.f32 0.0, %v7276_v62 }
 0xcd2   : > { %v8721_v48 = vpop.eup %8720  ;;  %v7376_v6 = vmul.f32 1.442695, %v7317_v51 }
 0xcd3   : > { %v8723_v18 = vpop.eup %8722  ;;  %v7412_v52 = vadd.f32 1.0, %v8721_v48 }
 0xcd4   : > { %7476 = vst.msk [vmem:[%s13539_s18 + $0xc8] sm:$0xff] %vm7450_vm6, %v8723_v18  ;;  %8724 = vpow2.f32 %v7376_v6 }
 0xcd5   : > { %8726 = vrcp.f32 %v7412_v52  ;;  %v7278_v57 = vpop.f32.mrf.mxu2  ;;  %v7168_v34 = vpop.f32.mrf.mxu3 }
 0xcd6   : > { %v7279_v10 = vadd.f32 %v7278_v57, %v7166_v0  ;;  %v7169_v11 = vadd.f32 %v7168_v34, %v7056_v13 }
 0xcd8   : > { %v7318_v37 = vsub.f32 0.0, %v7279_v10 }
 0xcda   : > { %v8725_v47 = vpop.eup %8724  ;;  %v7378_v39 = vmul.f32 1.442695, %v7318_v37 }
 0xcdb   : > { %v8727_v36 = vpop.eup %8726  ;;  %v7413_v7 = vadd.f32 1.0, %v8725_v47 }
 0xcdc   : > { %7477 = vst.msk [vmem:[%s13539_s18 + $0xd0] sm:$0xff] %vm7450_vm6, %v8727_v36  ;;  %8728 = vpow2.f32 %v7378_v39 }
 0xcdd   : > { %8730 = vrcp.f32 %v7413_v7  ;;  %v7281_v30 = vpop.f32.mrf.mxu2  ;;  %v7171_v61 = vpop.f32.mrf.mxu3 }
 0xcde   : > { %v7282_v5 = vadd.f32 %v7281_v30, %v7169_v11  ;;  %v7172_v14 = vadd.f32 %v7171_v61, %v7059_v43 }
 0xce0   : > { %v7319_v46 = vsub.f32 0.0, %v7282_v5 }
 0xce2   : > { %v8729_v44 = vpop.eup %8728  ;;  %v7380_v1 = vmul.f32 1.442695, %v7319_v46 }
 0xce3   : > { %v8731_v26 = vpop.eup %8730  ;;  %v7414_v45 = vadd.f32 1.0, %v8729_v44 }
 0xce4   : > { %7478 = vst.msk [vmem:[%s13539_s18 + $0xd8] sm:$0xff] %vm7450_vm6, %v8731_v26  ;;  %8732 = vpow2.f32 %v7380_v1 }
 0xce5   : > { %8734 = vrcp.f32 %v7414_v45  ;;  %v7284_v32 = vpop.f32.mrf.mxu2  ;;  %v7174_v42 = vpop.f32.mrf.mxu3 }
 0xce6   : > { %v7285_v4 = vadd.f32 %v7284_v32, %v7172_v14  ;;  %v7175_v38 = vadd.f32 %v7174_v42, %v7062_v8 }
 0xce8   : > { %v7320_v17 = vsub.f32 0.0, %v7285_v4 }
 0xcea   : > { %v8733_v60 = vpop.eup %8732  ;;  %v7382_v24 = vmul.f32 1.442695, %v7320_v17 }
 0xceb   : > { %v8735_v2 = vpop.eup %8734  ;;  %v7415_v50 = vadd.f32 1.0, %v8733_v60 }
 0xcec   : > { %7479 = vst.msk [vmem:[%s13539_s18 + $0xe0] sm:$0xff] %vm7450_vm6, %v8735_v2  ;;  %8736 = vpow2.f32 %v7382_v24 }
 0xced   : > { %8738 = vrcp.f32 %v7415_v50  ;;  %v7287_v58 = vpop.f32.mrf.mxu2 }
 0xcee   : > { %v7288_v20 = vadd.f32 %v7287_v58, %v7175_v38 }
 0xcf0   : > { %v7321_v63 = vsub.f32 0.0, %v7288_v20 }
 0xcf2   : > { %v8737_v16 = vpop.eup %8736  ;;  %v7384_v29 = vmul.f32 1.442695, %v7321_v63 }
 0xcf3   : > { %v8739_v55 = vpop.eup %8738  ;;  %v7416_v23 = vadd.f32 1.0, %v8737_v16 }
 0xcf4   : > { %7480 = vst.msk [vmem:[%s13539_s18 + $0xe8] sm:$0xff] %vm7450_vm6, %v8739_v55  ;;  %8740 = vpow2.f32 %v7384_v29 }
 0xcf5   : > { %8742 = vrcp.f32 %v7416_v23 }
 0xcfa   : > { %v8741_v33 = vpop.eup %8740 }
 0xcfb   : > { %v8743_v40 = vpop.eup %8742  ;;  %v7417_v3 = vadd.f32 1.0, %v8741_v33 }
 0xcfc   : > { %7481 = vst.msk [vmem:[%s13539_s18 + $0xf0] sm:$0xff] %vm7450_vm6, %v8743_v40 }
 0xcfd   : > { %8744 = vrcp.f32 %v7417_v3 }
 0xd03   : > { %v8745_v35 = vpop.eup %8744 }
 0xd04   : > { %7482 = vst.msk [vmem:[%s13539_s18 + $0xf8] sm:$0xff] %vm7450_vm6, %v8745_v35 }
 0xd05 PF: > { %s24_s23 = sadd.s32 1, %s8752_s23  }
 0xd06   : > { %p21_p4 = scmp.ge.s32.totalorder %s24_s23, 4  }
 0xd08   :  { %23 = sbr.rel (!%p21_p4) target bundleno = 3 (0x3), region = 123 }

</bundles_post_ra>
